<compile_context>
chip_gen: v5e
topology: v5e:2x2
jax: 0.10.0
libtpu: 0.0.40
codegen_flags: <defaults>
</compile_context>

<pallas_src>
import functools

import jax
import jax.numpy as jnp
from jax.experimental import pallas as pl
from jax.experimental.pallas import tpu as pltpu

NEG_SLOPE = 0.01   # nn.LeakyReLU default negative_slope
BN_EPS = 1e-5      # nn.BatchNorm2d default eps
LPAD = 16          # interior column offset in padded scratch (bf16 tile aligned)


def _leaky(y):
    return jnp.where(y >= 0, y, NEG_SLOPE * y)


# ----------------------------- fused Pallas kernel ---------------------------

def group2_kernel(x_ref, w1_ref, t1_ref, w2_ref, we_ref, t2e_ref, o_ref,
                  xp_ref, o1p_ref, *, H, W, Cin, C2):
    """One batch element: fused ResBlk + 2x2 max-pool, all in VMEM."""
    Ho, Wo = H // 2, W // 2
    Wp = xp_ref.shape[1]
    f32 = jnp.float32
    bf16 = jnp.bfloat16

    x_in = x_ref[0]                                            # (H, W, Cin) bf16

    # ---- stage padded x: aligned interior store + minimal halo zeroing ------
    xp_ref[1:H + 1, LPAD:LPAD + W, :] = x_in
    zrow_x = jnp.zeros((1, Wp, Cin), bf16)
    zcol_x = jnp.zeros((H + 2, 1, Cin), bf16)
    xp_ref[0:1, :, :] = zrow_x                                 # top halo row
    xp_ref[H + 1:H + 2, :, :] = zrow_x                         # bottom halo row
    xp_ref[:, LPAD - 1:LPAD, :] = zcol_x                       # left halo col
    xp_ref[:, LPAD + W:LPAD + W + 1, :] = zcol_x               # right halo col

    # ---- conv1 (+bias+BN folded) : 9 accumulated per-tap matmuls, LeakyReLU -
    acc1 = jnp.zeros((H * W, C2), f32)
    for k in range(9):
        kh, kw = k // 3, k % 3
        c0 = LPAD - 1 + kw
        tap = xp_ref[kh:kh + H, c0:c0 + W, :].reshape(H * W, Cin)
        acc1 += jnp.dot(tap, w1_ref[k], preferred_element_type=f32)
    out1 = _leaky(acc1 + t1_ref[...])                          # (H*W, C2) f32

    # ---- stage padded out1 (bf16) -------------------------------------------
    o1p_ref[1:H + 1, LPAD:LPAD + W, :] = out1.reshape(H, W, C2).astype(bf16)
    zrow_o = jnp.zeros((1, Wp, C2), bf16)
    zcol_o = jnp.zeros((H + 2, 1, C2), bf16)
    o1p_ref[0:1, :, :] = zrow_o
    o1p_ref[H + 1:H + 2, :, :] = zrow_o
    o1p_ref[:, LPAD - 1:LPAD, :] = zcol_o
    o1p_ref[:, LPAD + W:LPAD + W + 1, :] = zcol_o

    # ---- conv2 (+bias+BN) + 1x1 shortcut (+BN) + residual -> LeakyReLU ------
    acc2 = jnp.dot(x_in.reshape(H * W, Cin), we_ref[...],
                   preferred_element_type=f32)                 # 1x1 shortcut
    for k in range(9):
        kh, kw = k // 3, k % 3
        c0 = LPAD - 1 + kw
        tap = o1p_ref[kh:kh + H, c0:c0 + W, :].reshape(H * W, C2)
        acc2 += jnp.dot(tap, w2_ref[k], preferred_element_type=f32)
    rb = _leaky(acc2 + t2e_ref[...])                           # (H*W, C2) f32

    # ---- MaxPool2d(kernel_size=2, stride=2) ---------------------------------
    r4 = rb.reshape(Ho, 2, W, C2)
    rowmax = jnp.maximum(r4[:, 0], r4[:, 1])                   # (Ho, W, C2)
    c4 = rowmax.reshape(Ho, Wo, 2, C2)
    pooled = jnp.maximum(c4[:, :, 0, :], c4[:, :, 1, :])       # (Ho, Wo, C2)

    # (Ho, Wo*C2) slab; lane-dense whenever Wo*C2 >= 128 (true at realistic C2).
    o_ref[0] = pooled.reshape(Ho, Wo * C2)


# ----------------------------- model forward --------------------------------

def group2_forward(x_nchw, P):
    # TODO(synk): keep the surrounding model NHWC end-to-end to drop these two
    # wrapper-side HBM transpose passes.
    x = jnp.transpose(x_nchw, (0, 2, 3, 1)).astype(jnp.bfloat16)   # NCHW -> NHWC
    N, H, W, Cin = x.shape
    C2 = P['w1f'].shape[-1]
    assert H % 2 == 0 and W % 2 == 0, "2x2 max-pool assumes even H, W"
    Ho, Wo = H // 2, W // 2
    Wp = LPAD + W + 8                                              # padded scratch width

    out2d = pl.pallas_call(
        functools.partial(group2_kernel, H=H, W=W, Cin=Cin, C2=C2),
        out_shape=jax.ShapeDtypeStruct((N, Ho, Wo * C2), jnp.float32),
        grid=(N,),
        in_specs=[
            pl.BlockSpec((1, H, W, Cin), lambda n: (n, 0, 0, 0)),
            pl.BlockSpec((9, Cin, C2), lambda n: (0, 0, 0)),
            pl.BlockSpec((1, C2), lambda n: (0, 0)),
            pl.BlockSpec((9, C2, C2), lambda n: (0, 0, 0)),
            pl.BlockSpec((Cin, C2), lambda n: (0, 0)),
            pl.BlockSpec((1, C2), lambda n: (0, 0)),
        ],
        out_specs=pl.BlockSpec((1, Ho, Wo * C2), lambda n: (n, 0, 0)),
        scratch_shapes=[
            pltpu.VMEM((H + 2, Wp, Cin), jnp.bfloat16),   # padded x
            pltpu.VMEM((H + 2, Wp, C2), jnp.bfloat16),    # padded conv1 output
        ],
        compiler_params=pltpu.CompilerParams(
            dimension_semantics=("parallel",),
            vmem_limit_bytes=32 * 1024 * 1024),
    )(x, P['w1f'], P['t1f'], P['w2f'], P['wef'], P['t2ef'])

    y = out2d.reshape(N, Ho, Wo, C2)
    return jnp.transpose(y, (0, 3, 1, 2)).astype(jnp.float32)      # NHWC -> NCHW


# ----------------------------- parameters ------------------------------------

def init_params(key, ch_in, ch_out):
    keys = iter(jax.random.split(key, 32))

    def rnd(shape, scale=0.1):
        return (scale * jax.random.normal(next(keys), shape)).astype(jnp.float32)

    def bn(c):
        gamma = 1.0 + rnd((c,))
        beta = rnd((c,))
        mean = rnd((c,))
        var = 1.0 + jnp.abs(rnd((c,)))
        scale = gamma / jnp.sqrt(var + BN_EPS)
        shift = beta - mean * scale
        return scale, shift

    w1 = rnd((3, 3, ch_in, ch_out)); b1 = rnd((ch_out,)); s1, t1 = bn(ch_out)
    w2 = rnd((3, 3, ch_out, ch_out)); b2 = rnd((ch_out,)); s2, t2 = bn(ch_out)
    if ch_in != ch_out:
        we = rnd((1, 1, ch_in, ch_out)); be = rnd((ch_out,)); se, te = bn(ch_out)
    else:
        # ResBlk.extra is nn.Sequential() (identity) when ch_in == ch_out.
        we = jnp.eye(ch_in, dtype=jnp.float32).reshape(1, 1, ch_in, ch_out)
        be = jnp.zeros((ch_out,), jnp.float32)
        se = jnp.ones((ch_out,), jnp.float32)
        te = jnp.zeros((ch_out,), jnp.float32)

    raw = dict(w1=w1, b1=b1, s1=s1, t1=t1, w2=w2, b2=b2, s2=s2, t2=t2,
               we=we, be=be, se=se, te=te)

    # Host-side folding: w' = w * s (per out-channel), t' = b*s + t.
    # Per-tap layout (9, Cin, C2); matmul operands stored in bf16 (MXU-native).
    P = {'raw': raw}
    P['w1f'] = (w1 * s1).reshape(9, ch_in, ch_out).astype(jnp.bfloat16)
    P['t1f'] = (b1 * s1 + t1).reshape(1, ch_out).astype(jnp.float32)
    P['w2f'] = (w2 * s2).reshape(9, ch_out, ch_out).astype(jnp.bfloat16)
    P['wef'] = (we.reshape(ch_in, ch_out) * se).astype(jnp.bfloat16)
    P['t2ef'] = ((b2 * s2 + t2) + (be * se + te)).reshape(1, ch_out).astype(jnp.float32)
    return P


# ----------------------------- pure-JAX reference ----------------------------

def reference_forward(x_nchw, P):
    R = P['raw']

    def conv(x, w, b, stride, pad):
        y = jax.lax.conv_general_dilated(
            x, w, window_strides=(stride, stride),
            padding=[(pad, pad), (pad, pad)],
            dimension_numbers=('NHWC', 'HWIO', 'NHWC'))
        return y + b.reshape(1, 1, 1, -1)

    def bn(y, s, t):
        return y * s.reshape(1, 1, 1, -1) + t.reshape(1, 1, 1, -1)

    x = jnp.transpose(x_nchw, (0, 2, 3, 1)).astype(jnp.float32)
    o1 = _leaky(bn(conv(x, R['w1'], R['b1'], 1, 1), R['s1'], R['t1']))
    o2 = bn(conv(o1, R['w2'], R['b2'], 1, 1), R['s2'], R['t2'])
    ex = bn(conv(x, R['we'], R['be'], 1, 0), R['se'], R['te'])
    rb = _leaky(ex + o2)
    pooled = jax.lax.reduce_window(
        rb, -jnp.inf, jax.lax.max,
        window_dimensions=(1, 2, 2, 1), window_strides=(1, 2, 2, 1),
        padding='VALID')
    return jnp.transpose(pooled, (0, 3, 1, 2))


if __name__ == "__main__":
    N, CH_IN, CH_OUT, H, W = 2, 4, 8, 16, 16
    key = jax.random.PRNGKey(0)
    kx, kp = jax.random.split(key)
    x = jax.random.normal(kx, (N, CH_IN, H, W), jnp.float32)   # NCHW, like PyTorch
    P = init_params(kp, CH_IN, CH_OUT)

    out = jax.block_until_ready(group2_forward(x, P))
    ref = jax.block_until_ready(reference_forward(x, P))       # pure f32 reference

    assert out.shape == (N, CH_OUT, H // 2, W // 2), out.shape
    # Kernel feeds the MXU bf16 operands (f32 accumulation); tolerance reflects
    # bf16 input quantization vs. the f32 reference.
    max_err = float(jnp.max(jnp.abs(out - ref)))
    assert jnp.allclose(out, ref, atol=5e-2, rtol=5e-2), max_err
    print("KERNEL_OK")
</pallas_src>

<mosaic_0001>
module attributes {stable_mosaic.version = 11 : i64} {
  func.func @group2_kernel(%arg0: i32, %arg1: memref<1x16x16x4xbf16, #tpu.memory_space<vmem>>, %arg2: memref<9x4x8xbf16, #tpu.memory_space<vmem>>, %arg3: memref<1x8xf32, #tpu.memory_space<vmem>>, %arg4: memref<9x8x8xbf16, #tpu.memory_space<vmem>>, %arg5: memref<4x8xbf16, #tpu.memory_space<vmem>>, %arg6: memref<1x8xf32, #tpu.memory_space<vmem>>, %arg7: memref<1x8x64xf32, #tpu.memory_space<vmem>>, %arg8: memref<18x40x4xbf16, #tpu.memory_space<vmem>>, %arg9: memref<18x40x8xbf16, #tpu.memory_space<vmem>>) attributes {dimension_semantics = [#tpu.dimension_semantics<parallel>], iteration_bounds = array<i64: 2>, scalar_prefetch = 0 : i64, scratch_operands = 2 : i64, tpu.core_type = #tpu.core_type<tc>, window_params = [{transform_indices = @transform_0, window_bounds = array<i64: 1, 16, 16, 4>}, {pipeline_mode = #tpu.pipeline_mode<synchronous>, transform_indices = @transform_1, window_bounds = array<i64: 9, 4, 8>}, {pipeline_mode = #tpu.pipeline_mode<synchronous>, transform_indices = @transform_2, window_bounds = array<i64: 1, 8>}, {pipeline_mode = #tpu.pipeline_mode<synchronous>, transform_indices = @transform_3, window_bounds = array<i64: 9, 8, 8>}, {pipeline_mode = #tpu.pipeline_mode<synchronous>, transform_indices = @transform_4, window_bounds = array<i64: 4, 8>}, {pipeline_mode = #tpu.pipeline_mode<synchronous>, transform_indices = @transform_5, window_bounds = array<i64: 1, 8>}, {transform_indices = @transform_6, window_bounds = array<i64: 1, 8, 64>}]} {
    %c0 = arith.constant 0 : index
    %c0_0 = arith.constant 0 : index
    %c0_1 = arith.constant 0 : index
    %c0_2 = arith.constant 0 : index
    %0 = vector.load %arg1[%c0, %c0_0, %c0_1, %c0_2] : memref<1x16x16x4xbf16, #tpu.memory_space<vmem>>, vector<1x16x16x4xbf16>
    %1 = vector.shape_cast %0 : vector<1x16x16x4xbf16> to vector<16x16x4xbf16>
    %c1 = arith.constant 1 : index
    %c16 = arith.constant 16 : index
    %c0_3 = arith.constant 0 : index
    %2 = vector.load %arg8[%c1, %c16, %c0_3] : memref<18x40x4xbf16, #tpu.memory_space<vmem>>, vector<16x16x4xbf16>
    tpu.vector_store %arg8[%c1, %c16, %c0_3], %1 {strides = array<i32>} : memref<18x40x4xbf16, #tpu.memory_space<vmem>>, vector<16x16x4xbf16>,
    %cst = arith.constant 0.000000e+00 : bf16
    %3 = vector.broadcast %cst : bf16 to vector<1x40x4xbf16>
    %cst_4 = arith.constant 0.000000e+00 : bf16
    %4 = vector.broadcast %cst_4 : bf16 to vector<18x1x4xbf16>
    %c0_5 = arith.constant 0 : index
    %c0_6 = arith.constant 0 : index
    %c0_7 = arith.constant 0 : index
    %5 = vector.load %arg8[%c0_5, %c0_6, %c0_7] : memref<18x40x4xbf16, #tpu.memory_space<vmem>>, vector<1x40x4xbf16>
    tpu.vector_store %arg8[%c0_5, %c0_6, %c0_7], %3 {strides = array<i32>} : memref<18x40x4xbf16, #tpu.memory_space<vmem>>, vector<1x40x4xbf16>,
    %c17 = arith.constant 17 : index
    %c0_8 = arith.constant 0 : index
    %c0_9 = arith.constant 0 : index
    %6 = vector.load %arg8[%c17, %c0_8, %c0_9] : memref<18x40x4xbf16, #tpu.memory_space<vmem>>, vector<1x40x4xbf16>
    tpu.vector_store %arg8[%c17, %c0_8, %c0_9], %3 {strides = array<i32>} : memref<18x40x4xbf16, #tpu.memory_space<vmem>>, vector<1x40x4xbf16>,
    %c0_10 = arith.constant 0 : index
    %c15 = arith.constant 15 : index
    %c0_11 = arith.constant 0 : index
    %7 = vector.load %arg8[%c0_10, %c15, %c0_11] : memref<18x40x4xbf16, #tpu.memory_space<vmem>>, vector<18x1x4xbf16>
    tpu.vector_store %arg8[%c0_10, %c15, %c0_11], %4 {strides = array<i32>} : memref<18x40x4xbf16, #tpu.memory_space<vmem>>, vector<18x1x4xbf16>,
    %c0_12 = arith.constant 0 : index
    %c32 = arith.constant 32 : index
    %c0_13 = arith.constant 0 : index
    %8 = vector.load %arg8[%c0_12, %c32, %c0_13] : memref<18x40x4xbf16, #tpu.memory_space<vmem>>, vector<18x1x4xbf16>
    tpu.vector_store %arg8[%c0_12, %c32, %c0_13], %4 {strides = array<i32>} : memref<18x40x4xbf16, #tpu.memory_space<vmem>>, vector<18x1x4xbf16>,
    %cst_14 = arith.constant 0.000000e+00 : f32
    %9 = vector.broadcast %cst_14 : f32 to vector<256x8xf32>
    %c0_15 = arith.constant 0 : index
    %c15_16 = arith.constant 15 : index
    %c0_17 = arith.constant 0 : index
    %10 = vector.load %arg8[%c0_15, %c15_16, %c0_17] : memref<18x40x4xbf16, #tpu.memory_space<vmem>>, vector<16x16x4xbf16>
    %11 = vector.shape_cast %10 : vector<16x16x4xbf16> to vector<256x4xbf16>
    %c0_18 = arith.constant 0 : index
    %c0_19 = arith.constant 0 : index
    %c0_20 = arith.constant 0 : index
    %12 = vector.load %arg2[%c0_18, %c0_19, %c0_20] : memref<9x4x8xbf16, #tpu.memory_space<vmem>>, vector<1x4x8xbf16>
    %13 = vector.shape_cast %12 : vector<1x4x8xbf16> to vector<4x8xbf16>
    %cst_21 = arith.constant dense<0.000000e+00> : vector<256x8xf32>
    %14 = tpu.matmul %11, %13, %cst_21 {dimension_numbers = #tpu.dot_dimension_numbers<[1], [0], [0], [1], [0, 0, 1, 1], [], []>} : vector<256x4xbf16>, vector<4x8xbf16>, vector<256x8xf32> -> vector<256x8xf32>
    %15 = arith.addf %9, %14 : vector<256x8xf32>
    %c0_22 = arith.constant 0 : index
    %c16_23 = arith.constant 16 : index
    %c0_24 = arith.constant 0 : index
    %16 = vector.load %arg8[%c0_22, %c16_23, %c0_24] : memref<18x40x4xbf16, #tpu.memory_space<vmem>>, vector<16x16x4xbf16>
    %17 = vector.shape_cast %16 : vector<16x16x4xbf16> to vector<256x4xbf16>
    %c1_25 = arith.constant 1 : index
    %c0_26 = arith.constant 0 : index
    %c0_27 = arith.constant 0 : index
    %18 = vector.load %arg2[%c1_25, %c0_26, %c0_27] : memref<9x4x8xbf16, #tpu.memory_space<vmem>>, vector<1x4x8xbf16>
    %19 = vector.shape_cast %18 : vector<1x4x8xbf16> to vector<4x8xbf16>
    %cst_28 = arith.constant dense<0.000000e+00> : vector<256x8xf32>
    %20 = tpu.matmul %17, %19, %cst_28 {dimension_numbers = #tpu.dot_dimension_numbers<[1], [0], [0], [1], [0, 0, 1, 1], [], []>} : vector<256x4xbf16>, vector<4x8xbf16>, vector<256x8xf32> -> vector<256x8xf32>
    %21 = arith.addf %15, %20 : vector<256x8xf32>
    %c0_29 = arith.constant 0 : index
    %c17_30 = arith.constant 17 : index
    %c0_31 = arith.constant 0 : index
    %22 = vector.load %arg8[%c0_29, %c17_30, %c0_31] : memref<18x40x4xbf16, #tpu.memory_space<vmem>>, vector<16x16x4xbf16>
    %23 = vector.shape_cast %22 : vector<16x16x4xbf16> to vector<256x4xbf16>
    %c2 = arith.constant 2 : index
    %c0_32 = arith.constant 0 : index
    %c0_33 = arith.constant 0 : index
    %24 = vector.load %arg2[%c2, %c0_32, %c0_33] : memref<9x4x8xbf16, #tpu.memory_space<vmem>>, vector<1x4x8xbf16>
    %25 = vector.shape_cast %24 : vector<1x4x8xbf16> to vector<4x8xbf16>
    %cst_34 = arith.constant dense<0.000000e+00> : vector<256x8xf32>
    %26 = tpu.matmul %23, %25, %cst_34 {dimension_numbers = #tpu.dot_dimension_numbers<[1], [0], [0], [1], [0, 0, 1, 1], [], []>} : vector<256x4xbf16>, vector<4x8xbf16>, vector<256x8xf32> -> vector<256x8xf32>
    %27 = arith.addf %21, %26 : vector<256x8xf32>
    %c1_35 = arith.constant 1 : index
    %c15_36 = arith.constant 15 : index
    %c0_37 = arith.constant 0 : index
    %28 = vector.load %arg8[%c1_35, %c15_36, %c0_37] : memref<18x40x4xbf16, #tpu.memory_space<vmem>>, vector<16x16x4xbf16>
    %29 = vector.shape_cast %28 : vector<16x16x4xbf16> to vector<256x4xbf16>
    %c3 = arith.constant 3 : index
    %c0_38 = arith.constant 0 : index
    %c0_39 = arith.constant 0 : index
    %30 = vector.load %arg2[%c3, %c0_38, %c0_39] : memref<9x4x8xbf16, #tpu.memory_space<vmem>>, vector<1x4x8xbf16>
    %31 = vector.shape_cast %30 : vector<1x4x8xbf16> to vector<4x8xbf16>
    %cst_40 = arith.constant dense<0.000000e+00> : vector<256x8xf32>
    %32 = tpu.matmul %29, %31, %cst_40 {dimension_numbers = #tpu.dot_dimension_numbers<[1], [0], [0], [1], [0, 0, 1, 1], [], []>} : vector<256x4xbf16>, vector<4x8xbf16>, vector<256x8xf32> -> vector<256x8xf32>
    %33 = arith.addf %27, %32 : vector<256x8xf32>
    %c1_41 = arith.constant 1 : index
    %c16_42 = arith.constant 16 : index
    %c0_43 = arith.constant 0 : index
    %34 = vector.load %arg8[%c1_41, %c16_42, %c0_43] : memref<18x40x4xbf16, #tpu.memory_space<vmem>>, vector<16x16x4xbf16>
    %35 = vector.shape_cast %34 : vector<16x16x4xbf16> to vector<256x4xbf16>
    %c4 = arith.constant 4 : index
    %c0_44 = arith.constant 0 : index
    %c0_45 = arith.constant 0 : index
    %36 = vector.load %arg2[%c4, %c0_44, %c0_45] : memref<9x4x8xbf16, #tpu.memory_space<vmem>>, vector<1x4x8xbf16>
    %37 = vector.shape_cast %36 : vector<1x4x8xbf16> to vector<4x8xbf16>
    %cst_46 = arith.constant dense<0.000000e+00> : vector<256x8xf32>
    %38 = tpu.matmul %35, %37, %cst_46 {dimension_numbers = #tpu.dot_dimension_numbers<[1], [0], [0], [1], [0, 0, 1, 1], [], []>} : vector<256x4xbf16>, vector<4x8xbf16>, vector<256x8xf32> -> vector<256x8xf32>
    %39 = arith.addf %33, %38 : vector<256x8xf32>
    %c1_47 = arith.constant 1 : index
    %c17_48 = arith.constant 17 : index
    %c0_49 = arith.constant 0 : index
    %40 = vector.load %arg8[%c1_47, %c17_48, %c0_49] : memref<18x40x4xbf16, #tpu.memory_space<vmem>>, vector<16x16x4xbf16>
    %41 = vector.shape_cast %40 : vector<16x16x4xbf16> to vector<256x4xbf16>
    %c5 = arith.constant 5 : index
    %c0_50 = arith.constant 0 : index
    %c0_51 = arith.constant 0 : index
    %42 = vector.load %arg2[%c5, %c0_50, %c0_51] : memref<9x4x8xbf16, #tpu.memory_space<vmem>>, vector<1x4x8xbf16>
    %43 = vector.shape_cast %42 : vector<1x4x8xbf16> to vector<4x8xbf16>
    %cst_52 = arith.constant dense<0.000000e+00> : vector<256x8xf32>
    %44 = tpu.matmul %41, %43, %cst_52 {dimension_numbers = #tpu.dot_dimension_numbers<[1], [0], [0], [1], [0, 0, 1, 1], [], []>} : vector<256x4xbf16>, vector<4x8xbf16>, vector<256x8xf32> -> vector<256x8xf32>
    %45 = arith.addf %39, %44 : vector<256x8xf32>
    %c2_53 = arith.constant 2 : index
    %c15_54 = arith.constant 15 : index
    %c0_55 = arith.constant 0 : index
    %46 = vector.load %arg8[%c2_53, %c15_54, %c0_55] : memref<18x40x4xbf16, #tpu.memory_space<vmem>>, vector<16x16x4xbf16>
    %47 = vector.shape_cast %46 : vector<16x16x4xbf16> to vector<256x4xbf16>
    %c6 = arith.constant 6 : index
    %c0_56 = arith.constant 0 : index
    %c0_57 = arith.constant 0 : index
    %48 = vector.load %arg2[%c6, %c0_56, %c0_57] : memref<9x4x8xbf16, #tpu.memory_space<vmem>>, vector<1x4x8xbf16>
    %49 = vector.shape_cast %48 : vector<1x4x8xbf16> to vector<4x8xbf16>
    %cst_58 = arith.constant dense<0.000000e+00> : vector<256x8xf32>
    %50 = tpu.matmul %47, %49, %cst_58 {dimension_numbers = #tpu.dot_dimension_numbers<[1], [0], [0], [1], [0, 0, 1, 1], [], []>} : vector<256x4xbf16>, vector<4x8xbf16>, vector<256x8xf32> -> vector<256x8xf32>
    %51 = arith.addf %45, %50 : vector<256x8xf32>
    %c2_59 = arith.constant 2 : index
    %c16_60 = arith.constant 16 : index
    %c0_61 = arith.constant 0 : index
    %52 = vector.load %arg8[%c2_59, %c16_60, %c0_61] : memref<18x40x4xbf16, #tpu.memory_space<vmem>>, vector<16x16x4xbf16>
    %53 = vector.shape_cast %52 : vector<16x16x4xbf16> to vector<256x4xbf16>
    %c7 = arith.constant 7 : index
    %c0_62 = arith.constant 0 : index
    %c0_63 = arith.constant 0 : index
    %54 = vector.load %arg2[%c7, %c0_62, %c0_63] : memref<9x4x8xbf16, #tpu.memory_space<vmem>>, vector<1x4x8xbf16>
    %55 = vector.shape_cast %54 : vector<1x4x8xbf16> to vector<4x8xbf16>
    %cst_64 = arith.constant dense<0.000000e+00> : vector<256x8xf32>
    %56 = tpu.matmul %53, %55, %cst_64 {dimension_numbers = #tpu.dot_dimension_numbers<[1], [0], [0], [1], [0, 0, 1, 1], [], []>} : vector<256x4xbf16>, vector<4x8xbf16>, vector<256x8xf32> -> vector<256x8xf32>
    %57 = arith.addf %51, %56 : vector<256x8xf32>
    %c2_65 = arith.constant 2 : index
    %c17_66 = arith.constant 17 : index
    %c0_67 = arith.constant 0 : index
    %58 = vector.load %arg8[%c2_65, %c17_66, %c0_67] : memref<18x40x4xbf16, #tpu.memory_space<vmem>>, vector<16x16x4xbf16>
    %59 = vector.shape_cast %58 : vector<16x16x4xbf16> to vector<256x4xbf16>
    %c8 = arith.constant 8 : index
    %c0_68 = arith.constant 0 : index
    %c0_69 = arith.constant 0 : index
    %60 = vector.load %arg2[%c8, %c0_68, %c0_69] : memref<9x4x8xbf16, #tpu.memory_space<vmem>>, vector<1x4x8xbf16>
    %61 = vector.shape_cast %60 : vector<1x4x8xbf16> to vector<4x8xbf16>
    %cst_70 = arith.constant dense<0.000000e+00> : vector<256x8xf32>
    %62 = tpu.matmul %59, %61, %cst_70 {dimension_numbers = #tpu.dot_dimension_numbers<[1], [0], [0], [1], [0, 0, 1, 1], [], []>} : vector<256x4xbf16>, vector<4x8xbf16>, vector<256x8xf32> -> vector<256x8xf32>
    %63 = arith.addf %57, %62 : vector<256x8xf32>
    %c0_71 = arith.constant 0 : index
    %c0_72 = arith.constant 0 : index
    %64 = vector.load %arg3[%c0_71, %c0_72] : memref<1x8xf32, #tpu.memory_space<vmem>>, vector<1x8xf32>
    %65 = vector.broadcast %64 : vector<1x8xf32> to vector<256x8xf32>
    %66 = arith.addf %63, %65 : vector<256x8xf32>
    %cst_73 = arith.constant 0.000000e+00 : f32
    %67 = vector.broadcast %cst_73 : f32 to vector<256x8xf32>
    %68 = arith.cmpf oge, %66, %67 : vector<256x8xf32>
    %cst_74 = arith.constant 0.00999999977 : f32
    %69 = vector.broadcast %cst_74 : f32 to vector<256x8xf32>
    %70 = arith.mulf %69, %66 : vector<256x8xf32>
    %71 = arith.select %68, %66, %70 : vector<256x8xi1>, vector<256x8xf32>
    %72 = vector.shape_cast %71 : vector<256x8xf32> to vector<16x16x8xf32>
    %73 = arith.truncf %72 : vector<16x16x8xf32> to vector<16x16x8xbf16>
    %c1_75 = arith.constant 1 : index
    %c16_76 = arith.constant 16 : index
    %c0_77 = arith.constant 0 : index
    %74 = vector.load %arg9[%c1_75, %c16_76, %c0_77] : memref<18x40x8xbf16, #tpu.memory_space<vmem>>, vector<16x16x8xbf16>
    tpu.vector_store %arg9[%c1_75, %c16_76, %c0_77], %73 {strides = array<i32>} : memref<18x40x8xbf16, #tpu.memory_space<vmem>>, vector<16x16x8xbf16>,
    %cst_78 = arith.constant 0.000000e+00 : bf16
    %75 = vector.broadcast %cst_78 : bf16 to vector<1x40x8xbf16>
    %cst_79 = arith.constant 0.000000e+00 : bf16
    %76 = vector.broadcast %cst_79 : bf16 to vector<18x1x8xbf16>
    %c0_80 = arith.constant 0 : index
    %c0_81 = arith.constant 0 : index
    %c0_82 = arith.constant 0 : index
    %77 = vector.load %arg9[%c0_80, %c0_81, %c0_82] : memref<18x40x8xbf16, #tpu.memory_space<vmem>>, vector<1x40x8xbf16>
    tpu.vector_store %arg9[%c0_80, %c0_81, %c0_82], %75 {strides = array<i32>} : memref<18x40x8xbf16, #tpu.memory_space<vmem>>, vector<1x40x8xbf16>,
    %c17_83 = arith.constant 17 : index
    %c0_84 = arith.constant 0 : index
    %c0_85 = arith.constant 0 : index
    %78 = vector.load %arg9[%c17_83, %c0_84, %c0_85] : memref<18x40x8xbf16, #tpu.memory_space<vmem>>, vector<1x40x8xbf16>
    tpu.vector_store %arg9[%c17_83, %c0_84, %c0_85], %75 {strides = array<i32>} : memref<18x40x8xbf16, #tpu.memory_space<vmem>>, vector<1x40x8xbf16>,
    %c0_86 = arith.constant 0 : index
    %c15_87 = arith.constant 15 : index
    %c0_88 = arith.constant 0 : index
    %79 = vector.load %arg9[%c0_86, %c15_87, %c0_88] : memref<18x40x8xbf16, #tpu.memory_space<vmem>>, vector<18x1x8xbf16>
    tpu.vector_store %arg9[%c0_86, %c15_87, %c0_88], %76 {strides = array<i32>} : memref<18x40x8xbf16, #tpu.memory_space<vmem>>, vector<18x1x8xbf16>,
    %c0_89 = arith.constant 0 : index
    %c32_90 = arith.constant 32 : index
    %c0_91 = arith.constant 0 : index
    %80 = vector.load %arg9[%c0_89, %c32_90, %c0_91] : memref<18x40x8xbf16, #tpu.memory_space<vmem>>, vector<18x1x8xbf16>
    tpu.vector_store %arg9[%c0_89, %c32_90, %c0_91], %76 {strides = array<i32>} : memref<18x40x8xbf16, #tpu.memory_space<vmem>>, vector<18x1x8xbf16>,
    %81 = vector.shape_cast %1 : vector<16x16x4xbf16> to vector<256x4xbf16>
    %c0_92 = arith.constant 0 : index
    %c0_93 = arith.constant 0 : index
    %82 = vector.load %arg5[%c0_92, %c0_93] : memref<4x8xbf16, #tpu.memory_space<vmem>>, vector<4x8xbf16>
    %cst_94 = arith.constant dense<0.000000e+00> : vector<256x8xf32>
    %83 = tpu.matmul %81, %82, %cst_94 {dimension_numbers = #tpu.dot_dimension_numbers<[1], [0], [0], [1], [0, 0, 1, 1], [], []>} : vector<256x4xbf16>, vector<4x8xbf16>, vector<256x8xf32> -> vector<256x8xf32>
    %c0_95 = arith.constant 0 : index
    %c15_96 = arith.constant 15 : index
    %c0_97 = arith.constant 0 : index
    %84 = vector.load %arg9[%c0_95, %c15_96, %c0_97] : memref<18x40x8xbf16, #tpu.memory_space<vmem>>, vector<16x16x8xbf16>
    %85 = vector.shape_cast %84 : vector<16x16x8xbf16> to vector<256x8xbf16>
    %c0_98 = arith.constant 0 : index
    %c0_99 = arith.constant 0 : index
    %c0_100 = arith.constant 0 : index
    %86 = vector.load %arg4[%c0_98, %c0_99, %c0_100] : memref<9x8x8xbf16, #tpu.memory_space<vmem>>, vector<1x8x8xbf16>
    %87 = vector.shape_cast %86 : vector<1x8x8xbf16> to vector<8x8xbf16>
    %cst_101 = arith.constant dense<0.000000e+00> : vector<256x8xf32>
    %88 = tpu.matmul %85, %87, %cst_101 {dimension_numbers = #tpu.dot_dimension_numbers<[1], [0], [0], [1], [0, 0, 1, 1], [], []>} : vector<256x8xbf16>, vector<8x8xbf16>, vector<256x8xf32> -> vector<256x8xf32>
    %89 = arith.addf %83, %88 : vector<256x8xf32>
    %c0_102 = arith.constant 0 : index
    %c16_103 = arith.constant 16 : index
    %c0_104 = arith.constant 0 : index
    %90 = vector.load %arg9[%c0_102, %c16_103, %c0_104] : memref<18x40x8xbf16, #tpu.memory_space<vmem>>, vector<16x16x8xbf16>
    %91 = vector.shape_cast %90 : vector<16x16x8xbf16> to vector<256x8xbf16>
    %c1_105 = arith.constant 1 : index
    %c0_106 = arith.constant 0 : index
    %c0_107 = arith.constant 0 : index
    %92 = vector.load %arg4[%c1_105, %c0_106, %c0_107] : memref<9x8x8xbf16, #tpu.memory_space<vmem>>, vector<1x8x8xbf16>
    %93 = vector.shape_cast %92 : vector<1x8x8xbf16> to vector<8x8xbf16>
    %cst_108 = arith.constant dense<0.000000e+00> : vector<256x8xf32>
    %94 = tpu.matmul %91, %93, %cst_108 {dimension_numbers = #tpu.dot_dimension_numbers<[1], [0], [0], [1], [0, 0, 1, 1], [], []>} : vector<256x8xbf16>, vector<8x8xbf16>, vector<256x8xf32> -> vector<256x8xf32>
    %95 = arith.addf %89, %94 : vector<256x8xf32>
    %c0_109 = arith.constant 0 : index
    %c17_110 = arith.constant 17 : index
    %c0_111 = arith.constant 0 : index
    %96 = vector.load %arg9[%c0_109, %c17_110, %c0_111] : memref<18x40x8xbf16, #tpu.memory_space<vmem>>, vector<16x16x8xbf16>
    %97 = vector.shape_cast %96 : vector<16x16x8xbf16> to vector<256x8xbf16>
    %c2_112 = arith.constant 2 : index
    %c0_113 = arith.constant 0 : index
    %c0_114 = arith.constant 0 : index
    %98 = vector.load %arg4[%c2_112, %c0_113, %c0_114] : memref<9x8x8xbf16, #tpu.memory_space<vmem>>, vector<1x8x8xbf16>
    %99 = vector.shape_cast %98 : vector<1x8x8xbf16> to vector<8x8xbf16>
    %cst_115 = arith.constant dense<0.000000e+00> : vector<256x8xf32>
    %100 = tpu.matmul %97, %99, %cst_115 {dimension_numbers = #tpu.dot_dimension_numbers<[1], [0], [0], [1], [0, 0, 1, 1], [], []>} : vector<256x8xbf16>, vector<8x8xbf16>, vector<256x8xf32> -> vector<256x8xf32>
    %101 = arith.addf %95, %100 : vector<256x8xf32>
    %c1_116 = arith.constant 1 : index
    %c15_117 = arith.constant 15 : index
    %c0_118 = arith.constant 0 : index
    %102 = vector.load %arg9[%c1_116, %c15_117, %c0_118] : memref<18x40x8xbf16, #tpu.memory_space<vmem>>, vector<16x16x8xbf16>
    %103 = vector.shape_cast %102 : vector<16x16x8xbf16> to vector<256x8xbf16>
    %c3_119 = arith.constant 3 : index
    %c0_120 = arith.constant 0 : index
    %c0_121 = arith.constant 0 : index
    %104 = vector.load %arg4[%c3_119, %c0_120, %c0_121] : memref<9x8x8xbf16, #tpu.memory_space<vmem>>, vector<1x8x8xbf16>
    %105 = vector.shape_cast %104 : vector<1x8x8xbf16> to vector<8x8xbf16>
    %cst_122 = arith.constant dense<0.000000e+00> : vector<256x8xf32>
    %106 = tpu.matmul %103, %105, %cst_122 {dimension_numbers = #tpu.dot_dimension_numbers<[1], [0], [0], [1], [0, 0, 1, 1], [], []>} : vector<256x8xbf16>, vector<8x8xbf16>, vector<256x8xf32> -> vector<256x8xf32>
    %107 = arith.addf %101, %106 : vector<256x8xf32>
    %c1_123 = arith.constant 1 : index
    %c16_124 = arith.constant 16 : index
    %c0_125 = arith.constant 0 : index
    %108 = vector.load %arg9[%c1_123, %c16_124, %c0_125] : memref<18x40x8xbf16, #tpu.memory_space<vmem>>, vector<16x16x8xbf16>
    %109 = vector.shape_cast %108 : vector<16x16x8xbf16> to vector<256x8xbf16>
    %c4_126 = arith.constant 4 : index
    %c0_127 = arith.constant 0 : index
    %c0_128 = arith.constant 0 : index
    %110 = vector.load %arg4[%c4_126, %c0_127, %c0_128] : memref<9x8x8xbf16, #tpu.memory_space<vmem>>, vector<1x8x8xbf16>
    %111 = vector.shape_cast %110 : vector<1x8x8xbf16> to vector<8x8xbf16>
    %cst_129 = arith.constant dense<0.000000e+00> : vector<256x8xf32>
    %112 = tpu.matmul %109, %111, %cst_129 {dimension_numbers = #tpu.dot_dimension_numbers<[1], [0], [0], [1], [0, 0, 1, 1], [], []>} : vector<256x8xbf16>, vector<8x8xbf16>, vector<256x8xf32> -> vector<256x8xf32>
    %113 = arith.addf %107, %112 : vector<256x8xf32>
    %c1_130 = arith.constant 1 : index
    %c17_131 = arith.constant 17 : index
    %c0_132 = arith.constant 0 : index
    %114 = vector.load %arg9[%c1_130, %c17_131, %c0_132] : memref<18x40x8xbf16, #tpu.memory_space<vmem>>, vector<16x16x8xbf16>
    %115 = vector.shape_cast %114 : vector<16x16x8xbf16> to vector<256x8xbf16>
    %c5_133 = arith.constant 5 : index
    %c0_134 = arith.constant 0 : index
    %c0_135 = arith.constant 0 : index
    %116 = vector.load %arg4[%c5_133, %c0_134, %c0_135] : memref<9x8x8xbf16, #tpu.memory_space<vmem>>, vector<1x8x8xbf16>
    %117 = vector.shape_cast %116 : vector<1x8x8xbf16> to vector<8x8xbf16>
    %cst_136 = arith.constant dense<0.000000e+00> : vector<256x8xf32>
    %118 = tpu.matmul %115, %117, %cst_136 {dimension_numbers = #tpu.dot_dimension_numbers<[1], [0], [0], [1], [0, 0, 1, 1], [], []>} : vector<256x8xbf16>, vector<8x8xbf16>, vector<256x8xf32> -> vector<256x8xf32>
    %119 = arith.addf %113, %118 : vector<256x8xf32>
    %c2_137 = arith.constant 2 : index
    %c15_138 = arith.constant 15 : index
    %c0_139 = arith.constant 0 : index
    %120 = vector.load %arg9[%c2_137, %c15_138, %c0_139] : memref<18x40x8xbf16, #tpu.memory_space<vmem>>, vector<16x16x8xbf16>
    %121 = vector.shape_cast %120 : vector<16x16x8xbf16> to vector<256x8xbf16>
    %c6_140 = arith.constant 6 : index
    %c0_141 = arith.constant 0 : index
    %c0_142 = arith.constant 0 : index
    %122 = vector.load %arg4[%c6_140, %c0_141, %c0_142] : memref<9x8x8xbf16, #tpu.memory_space<vmem>>, vector<1x8x8xbf16>
    %123 = vector.shape_cast %122 : vector<1x8x8xbf16> to vector<8x8xbf16>
    %cst_143 = arith.constant dense<0.000000e+00> : vector<256x8xf32>
    %124 = tpu.matmul %121, %123, %cst_143 {dimension_numbers = #tpu.dot_dimension_numbers<[1], [0], [0], [1], [0, 0, 1, 1], [], []>} : vector<256x8xbf16>, vector<8x8xbf16>, vector<256x8xf32> -> vector<256x8xf32>
    %125 = arith.addf %119, %124 : vector<256x8xf32>
    %c2_144 = arith.constant 2 : index
    %c16_145 = arith.constant 16 : index
    %c0_146 = arith.constant 0 : index
    %126 = vector.load %arg9[%c2_144, %c16_145, %c0_146] : memref<18x40x8xbf16, #tpu.memory_space<vmem>>, vector<16x16x8xbf16>
    %127 = vector.shape_cast %126 : vector<16x16x8xbf16> to vector<256x8xbf16>
    %c7_147 = arith.constant 7 : index
    %c0_148 = arith.constant 0 : index
    %c0_149 = arith.constant 0 : index
    %128 = vector.load %arg4[%c7_147, %c0_148, %c0_149] : memref<9x8x8xbf16, #tpu.memory_space<vmem>>, vector<1x8x8xbf16>
    %129 = vector.shape_cast %128 : vector<1x8x8xbf16> to vector<8x8xbf16>
    %cst_150 = arith.constant dense<0.000000e+00> : vector<256x8xf32>
    %130 = tpu.matmul %127, %129, %cst_150 {dimension_numbers = #tpu.dot_dimension_numbers<[1], [0], [0], [1], [0, 0, 1, 1], [], []>} : vector<256x8xbf16>, vector<8x8xbf16>, vector<256x8xf32> -> vector<256x8xf32>
    %131 = arith.addf %125, %130 : vector<256x8xf32>
    %c2_151 = arith.constant 2 : index
    %c17_152 = arith.constant 17 : index
    %c0_153 = arith.constant 0 : index
    %132 = vector.load %arg9[%c2_151, %c17_152, %c0_153] : memref<18x40x8xbf16, #tpu.memory_space<vmem>>, vector<16x16x8xbf16>
    %133 = vector.shape_cast %132 : vector<16x16x8xbf16> to vector<256x8xbf16>
    %c8_154 = arith.constant 8 : index
    %c0_155 = arith.constant 0 : index
    %c0_156 = arith.constant 0 : index
    %134 = vector.load %arg4[%c8_154, %c0_155, %c0_156] : memref<9x8x8xbf16, #tpu.memory_space<vmem>>, vector<1x8x8xbf16>
    %135 = vector.shape_cast %134 : vector<1x8x8xbf16> to vector<8x8xbf16>
    %cst_157 = arith.constant dense<0.000000e+00> : vector<256x8xf32>
    %136 = tpu.matmul %133, %135, %cst_157 {dimension_numbers = #tpu.dot_dimension_numbers<[1], [0], [0], [1], [0, 0, 1, 1], [], []>} : vector<256x8xbf16>, vector<8x8xbf16>, vector<256x8xf32> -> vector<256x8xf32>
    %137 = arith.addf %131, %136 : vector<256x8xf32>
    %c0_158 = arith.constant 0 : index
    %c0_159 = arith.constant 0 : index
    %138 = vector.load %arg6[%c0_158, %c0_159] : memref<1x8xf32, #tpu.memory_space<vmem>>, vector<1x8xf32>
    %139 = vector.broadcast %138 : vector<1x8xf32> to vector<256x8xf32>
    %140 = arith.addf %137, %139 : vector<256x8xf32>
    %cst_160 = arith.constant 0.000000e+00 : f32
    %141 = vector.broadcast %cst_160 : f32 to vector<256x8xf32>
    %142 = arith.cmpf oge, %140, %141 : vector<256x8xf32>
    %cst_161 = arith.constant 0.00999999977 : f32
    %143 = vector.broadcast %cst_161 : f32 to vector<256x8xf32>
    %144 = arith.mulf %143, %140 : vector<256x8xf32>
    %145 = arith.select %142, %140, %144 : vector<256x8xi1>, vector<256x8xf32>
    %146 = vector.shape_cast %145 : vector<256x8xf32> to vector<8x2x16x8xf32>
    %147 = vector.extract_strided_slice %146 {offsets = [0, 0, 0, 0], sizes = [8, 1, 16, 8], strides = [1, 1, 1, 1]} : vector<8x2x16x8xf32> to vector<8x1x16x8xf32>
    %148 = vector.shape_cast %147 : vector<8x1x16x8xf32> to vector<8x16x8xf32>
    %149 = vector.extract_strided_slice %146 {offsets = [0, 1, 0, 0], sizes = [8, 1, 16, 8], strides = [1, 1, 1, 1]} : vector<8x2x16x8xf32> to vector<8x1x16x8xf32>
    %150 = vector.shape_cast %149 : vector<8x1x16x8xf32> to vector<8x16x8xf32>
    %151 = arith.maximumf %148, %150 : vector<8x16x8xf32>
    %152 = vector.shape_cast %151 : vector<8x16x8xf32> to vector<8x8x2x8xf32>
    %153 = vector.extract_strided_slice %152 {offsets = [0, 0, 0, 0], sizes = [8, 8, 1, 8], strides = [1, 1, 1, 1]} : vector<8x8x2x8xf32> to vector<8x8x1x8xf32>
    %154 = vector.shape_cast %153 : vector<8x8x1x8xf32> to vector<8x8x8xf32>
    %155 = vector.extract_strided_slice %152 {offsets = [0, 0, 1, 0], sizes = [8, 8, 1, 8], strides = [1, 1, 1, 1]} : vector<8x8x2x8xf32> to vector<8x8x1x8xf32>
    %156 = vector.shape_cast %155 : vector<8x8x1x8xf32> to vector<8x8x8xf32>
    %157 = arith.maximumf %154, %156 : vector<8x8x8xf32>
    %158 = vector.shape_cast %157 : vector<8x8x8xf32> to vector<8x64xf32>
    %c0_162 = arith.constant 0 : index
    %c0_163 = arith.constant 0 : index
    %c0_164 = arith.constant 0 : index
    %159 = vector.load %arg7[%c0_162, %c0_163, %c0_164] : memref<1x8x64xf32, #tpu.memory_space<vmem>>, vector<1x8x64xf32>
    %160 = vector.shape_cast %159 : vector<1x8x64xf32> to vector<8x64xf32>
    %161 = vector.shape_cast %158 : vector<8x64xf32> to vector<1x8x64xf32>
    tpu.vector_store %arg7[%c0_162, %c0_163, %c0_164], %161 {strides = array<i32>} : memref<1x8x64xf32, #tpu.memory_space<vmem>>, vector<1x8x64xf32>,
    return
  }
  func.func @transform_0(%arg0: i32) -> (i32, i32, i32, i32) {
    %c0_i32 = arith.constant 0 : i32
    %c0_i32_0 = arith.constant 0 : i32
    %c0_i32_1 = arith.constant 0 : i32
    %c0_i32_2 = arith.constant 0 : i32
    return %arg0, %c0_i32, %c0_i32_0, %c0_i32_1 : i32, i32, i32, i32
  }
  func.func @transform_1(%arg0: i32) -> (i32, i32, i32) {
    %c0_i32 = arith.constant 0 : i32
    %c0_i32_0 = arith.constant 0 : i32
    %c0_i32_1 = arith.constant 0 : i32
    %c0_i32_2 = arith.constant 0 : i32
    return %c0_i32, %c0_i32_0, %c0_i32_1 : i32, i32, i32
  }
  func.func @transform_2(%arg0: i32) -> (i32, i32) {
    %c0_i32 = arith.constant 0 : i32
    %c0_i32_0 = arith.constant 0 : i32
    %c0_i32_1 = arith.constant 0 : i32
    return %c0_i32, %c0_i32_0 : i32, i32
  }
  func.func @transform_3(%arg0: i32) -> (i32, i32, i32) {
    %c0_i32 = arith.constant 0 : i32
    %c0_i32_0 = arith.constant 0 : i32
    %c0_i32_1 = arith.constant 0 : i32
    %c0_i32_2 = arith.constant 0 : i32
    return %c0_i32, %c0_i32_0, %c0_i32_1 : i32, i32, i32
  }
  func.func @transform_4(%arg0: i32) -> (i32, i32) {
    %c0_i32 = arith.constant 0 : i32
    %c0_i32_0 = arith.constant 0 : i32
    %c0_i32_1 = arith.constant 0 : i32
    return %c0_i32, %c0_i32_0 : i32, i32
  }
  func.func @transform_5(%arg0: i32) -> (i32, i32) {
    %c0_i32 = arith.constant 0 : i32
    %c0_i32_0 = arith.constant 0 : i32
    %c0_i32_1 = arith.constant 0 : i32
    return %c0_i32, %c0_i32_0 : i32, i32
  }
  func.func @transform_6(%arg0: i32) -> (i32, i32, i32) {
    %c0_i32 = arith.constant 0 : i32
    %c0_i32_0 = arith.constant 0 : i32
    %c0_i32_1 = arith.constant 0 : i32
    return %arg0, %c0_i32, %c0_i32_0 : i32, i32, i32
  }
}

</mosaic_0001>

<bundles_post_ra>
// kernel: tpu_custom_call.1
= control target key start
LH: loop header
LB: loop body
LE: loop exit
PB: predicated region body
PF: predicated region fallthrough
CT: control target
= control target key end

     0   :  { %11 = vsyncpa [#allocation5], 0  ;;  %s16567_s0 = inlined_call_operand.vmem [shape: bf16[2,16,16,4], index: 0, kind: input, shape index: {}]   ;;  %s16568_s1 = inlined_call_operand.vmem [shape: bf16[9,4,8], index: 1, kind: input, shape index: {}]   ;;  %s16569_s2 = inlined_call_operand.vmem [shape: f32[1,8], index: 2, kind: input, shape index: {}]   ;;  %s16570_s3 = inlined_call_operand.vmem [shape: bf16[9,8,8], index: 3, kind: input, shape index: {}]   ;;  %s16571_s4 = inlined_call_operand.vmem [shape: bf16[4,8], index: 4, kind: input, shape index: {}]   ;;  %s16572_s5 = inlined_call_operand.vmem [shape: f32[1,8], index: 5, kind: input, shape index: {}]   ;;  %s16573_s6 = inlined_call_operand.hbm [shape: f32[2,8,64], index: 6, kind: output, shape index: {}]  }
   0x1   :  { %13 = vsyncpa [#allocation5 + $0x1], 0  ;;  %s12472_s21 = smov 0   ;;  %s12474_s22 = smov 0  }
   0x2   :  { %s12476_s23 = smov 0   ;;  %s12478_s24 = smov 0  }
   0x3 LB: > { %s12493_s25 = sadd.s32 4294967295, %s12426_s24   ;;  %s11256_s26 = sadd.s32 4294967294, %s12426_s24   ;;  %s12426_s24 = sphi %s12478_s24, %s16915_s24   ;;  %s12422_s23 = sphi %s12476_s23, %s16914_s23   ;;  %s12418_s22 = sphi %s12474_s22, %s16913_s22   ;;  %s12414_s21 = sphi %s12472_s21, %s16912_s21  }
   0x4   : > { %s12497_s27 = sadd.s32 1, %s12426_s24   ;;  %s157_s28 = sadd.s32 1, %s12422_s23 }
   0x5   : > { %s154_s29 = ssub.s32 %s12426_s24, %s12497_s27  ;;  %p167_p0 = scmp.ne.s32.totalorder %s12422_s23, %s12418_s22 }
   0x6   : > { %p155_p1 = scmp.eq.s32.totalorder %s154_s29, 0  ;;  %p168_p2 = scmp.eq.s32.totalorder %s12493_s25, 1 }
   0x7   : > { %p173_p3 = scmp.ne.s32.totalorder %s12418_s22, %s12414_s21  ;;  %p174_p4 = scmp.eq.s32.totalorder %s11256_s26, 1 }
   0x8   : > { %s12508_s30 = scalar_select %p155_p1, %s12422_s23, %s157_s28  }
   0x9   : > { %p12510_p5 = por %p168_p2, %p167_p0  ;;  %p12514_p6 = por %p174_p4, %p173_p3 }
   0xa   : > { %p11259_p7 = scmp.ge.s32.totalorder %s12426_s24, 1  ;;  %p215_p8 = scmp.lt.s32.totalorder %s12426_s24, 3 }
   0xc   : > { %p216_p9 = pnand %p11259_p7, %p215_p8 }
   0xe   : > { %219 = sbr.rel (%p216_p9) target bundleno = 1757 (0x6dd), region = 44 }
  0x13   : > { %v11279_v0 = vld [vmem:[%s16568_s1 + $0x2] sm:$0x3]  ;;  %vm976_vm0 = vcmask 1041408   ;;  %vm284_vm1 = vcmask 27648   ;;  %p245_p10 = scmp.lt.s32.totalorder %s12493_s25, 1  ;;  %v12428_v2 = vmov 0  }
  0x14   : > { %v978_v1 = vsel %vm976_vm0, %v11279_v0, 0  ;;  %319 = vst.msk [vmem:[#allocation2 + $0x8] sm:$0xf] %vm284_vm1, %v12428_v2  ;;  %v844_v3 = vld [vmem:[%s16568_s1] sm:$0x3]  ;;  %vm5140_vm2 = vcmask 60416  }
  0x15   : > { %987 = vmatpush.bf16.msra.mxu0 %v978_v1  ;;  %12308 = vmatpush.bf16.msra.mxu3 %v978_v1  ;;  %v11376_v4 = vld [vmem:[%s16568_s1 + $0x4] sm:$0x3]  ;;  %320 = vst.msk [vmem:[#allocation2 + $0xc] sm:$0xf] %vm284_vm1, %v12428_v2  ;;  %v1166_v5 = vsel %vm976_vm0, %v844_v3, 0  ;;  %s246_s17 = scalar_select %p245_p10, %s12493_s25, 1 }
  0x16   : > { %v12535_v6 = vsel %vm976_vm0, %v11376_v4, 0  ;;  %1175 = vmatpush.bf16.msra.mxu1 %v1166_v5  ;;  %v11426_v7 = vld [vmem:[%s16568_s1 + $0x8] sm:$0x3]  ;;  %318 = vst.msk [vmem:[#allocation2 + $0x4] sm:$0xf] %vm284_vm1, %v12428_v2  ;;  %vm927_vm3 = vcmask 31744  }
  0x17   : > { %1800 = vmatpush.bf16.msra.mxu2 %v12535_v6  ;;  %v2667_v8 = vsel %vm976_vm0, %v11426_v7, 0  ;;  %321 = vst.msk [vmem:[#allocation2 + $0x10] sm:$0xf] %vm284_vm1, %v12428_v2  ;;  %s12195_s18 = sshll.u32 %s246_s17, 7  ;;  %vm328_vm4 = vcmask 27651   ;;  %vm385_vm6 = vcmask 24576  }
  0x18   : > { %324 = vst.msk [vmem:[#allocation2 + $0x158] sm:$0xf] %vm284_vm1, %v12428_v2  ;;  %s12558_s26 = scalar_lea.vmem %s16567_s0, %s12195_s18  ;;  %vm329_vm5 = vsmask.f32 7950  ;;  %vm386_vm7 = vsmask.f32 256 }
  0x19   : > { %12309 = vmatpush.bf16.msrb.mxu3 %v1166_v5  ;;  %2676 = vmatpush.bf16.msrb.mxu0 %v2667_v8  ;;  %325 = vst.msk [vmem:[#allocation2 + $0x15c] sm:$0xf] %vm284_vm1, %v12428_v2  ;;  %v273_v14 = vld [vmem:[%s12558_s26 + $0x58] sm:$0xf]  ;;  %vm490_vm8 = vsmask.f32 4368  ;;  %vm12572_vm9 = vmand %vm328_vm4, %vm329_vm5 }
  0x1a   : > { %326 = vst.msk [vmem:[#allocation2 + $0x160] sm:$0xf] %vm284_vm1, %v12428_v2  ;;  %v274_v17 = vld [vmem:[%s12558_s26 + $0x5c] sm:$0xf]  ;;  %v251_v19 = vld [vmem:[%s12558_s26] sm:$0xf]  ;;  %vm12579_vm11 = vmand %vm385_vm6, %vm386_vm7 }
  0x1b   : > { %v12550_v10 = vld [vmem:[#allocation2 + $0x8] sm:$0xf]  ;;  %327 = vst.msk [vmem:[#allocation2 + $0x164] sm:$0xf] %vm284_vm1, %v12428_v2  ;;  %vm1305_vm10 = vsmask.f32 3328  ;;  %vm12599_vm12 = vmor %vm386_vm7, %vm490_vm8 }
  0x1c   : > { %v12212_v9 = vld [vmem:[#allocation2 + $0x8] sm:$0xff]  ;;  %5174 = vst.msk [vmem:[#allocation3 + $0x4] sm:$0xf] %vm5140_vm2, %v12428_v2  ;;  %v498_v12 = vshrl.u32 %v12550_v10, 16  ;;  %v252_v30 = vld [vmem:[%s12558_s26 + $0x4] sm:$0xf] }
  0x1d   : > { %11344 = vmatmul.msk.bf16.vlgmr.msra.gmra.mxu0 %vm927_vm3, %v12212_v9  ;;  %v1257_v11 = vld [vmem:[#allocation2 + $0x8] sm:$0xf]  ;;  %5175 = vst.msk [vmem:[#allocation3 + $0x8] sm:$0xf] %vm5140_vm2, %v12428_v2  ;;  %v444_v13 = vld [vmem:[#allocation2 + $0xc] sm:$0xf] }
  0x1e   : > { %5176 = vst.msk [vmem:[#allocation3 + $0xc] sm:$0xf] %vm5140_vm2, %v12428_v2  ;;  %v1309_v15 = vshrl.u32 %v1257_v11, 16  ;;  %v1312_v16 = vshll.u32 %v1257_v11, 16  ;;  %v1258_v18 = vld [vmem:[#allocation2 + $0xc] sm:$0xf] }
  0x1f   : > { %5177 = vst.msk [vmem:[#allocation3 + $0x10] sm:$0xf] %vm5140_vm2, %v12428_v2  ;;  %v500_v20 = vrot.slane %v498_v12, 7  ;;  %v507_v21 = vshrl.u32 %v444_v13, 16  ;;  %v331_v23 = vld [vmem:[#allocation2 + $0x4] sm:$0x8] }
  0x20   : > { %5180 = vst.msk [vmem:[#allocation3 + $0x158] sm:$0xf] %vm5140_vm2, %v12428_v2  ;;  %v388_v24 = vld [vmem:[#allocation2 + $0x10] sm:$0x1]  ;;  %v1311_v26 = vrot.slane %v1309_v15, 4  ;;  %v1314_v27 = vrot.slane %v1312_v16, 5 }
  0x21   : > { %5181 = vst.msk [vmem:[#allocation3 + $0x15c] sm:$0xf] %vm5140_vm2, %v12428_v2  ;;  %v1318_v28 = vshll.u32 %v1258_v18, 16  ;;  %v1322_v29 = vshrl.u32 %v1258_v18, 16  ;;  %v332_v31 = vsel %vm12572_vm9, 0, %v331_v23  ;;  %v509_v32 = vrot.slane %v507_v21, 7 }
  0x22   : > { %5182 = vst.msk [vmem:[#allocation3 + $0x160] sm:$0xf] %vm5140_vm2, %v12428_v2  ;;  %v510_v33 = vshll.u32 %v444_v13, 16  ;;  %v505_v34 = vrot.slane %v500_v20, 4  ;;  %v389_v35 = vsel %vm12579_vm11, 0, %v388_v24  ;;  %v1315_v36 = vor.u32 %v1314_v27, %v1311_v26  ;;  %s12430_s17 = smov 8  }
  0x23   : > { %5183 = vst.msk [vmem:[#allocation3 + $0x164] sm:$0xf] %vm5140_vm2, %v12428_v2  ;;  %v12592_v37 = vrot.slane %v1318_v28, 5  ;;  %v1324_v38 = vrot.slane %v1322_v29, 4  ;;  %v275_v39 = vld [vmem:[%s12558_s26 + $0x60] sm:$0xf] }
  0x24   : > { %307 = vst.msk [vmem:[#allocation2 + $0xf8] sm:$0xf] %vm284_vm1, %v273_v14  ;;  %v276_v40 = vld [vmem:[%s12558_s26 + $0x64] sm:$0xf]  ;;  %v334_v41 = vld [vmem:[#allocation2 + $0x18] sm:$0x8]  ;;  %v512_v42 = vor.u32 %v510_v33, %v509_v32 }
  0x25   : > { %308 = vst.msk [vmem:[#allocation2 + $0xfc] sm:$0xf] %vm284_vm1, %v274_v17  ;;  %v253_v43 = vld [vmem:[%s12558_s26 + $0x8] sm:$0xf]  ;;  %v391_v44 = vld [vmem:[#allocation2 + $0x24] sm:$0x1]  ;;  %v1325_v49 = vor.u32 %v1324_v38, %v12592_v37 }
  0x26   : > { %285 = vst.msk [vmem:[#allocation2 + $0x1c] sm:$0xf] %vm284_vm1, %v251_v19  ;;  %vm1306_vm13 = vsmask.f32 7440  ;;  %v254_v46 = vld [vmem:[%s12558_s26 + $0xc] sm:$0xf]  ;;  %v513_v54 = vsel %vm12599_vm12, %v505_v34, %v512_v42 }
  0x27   : > { %286 = vst.msk [vmem:[#allocation2 + $0x20] sm:$0xf] %vm284_vm1, %v252_v30  ;;  %v501_v47 = vshll.u32 %v12550_v10, 16  ;;  %v1316_v48 = vrot.slane %v1315_v36, 4  ;;  %v335_v50 = vsel %vm12572_vm9, 0, %v334_v41  ;;  %v392_v52 = vsel %vm12579_vm11, 0, %v391_v44  ;;  %vm12616_vm14 = vmor %vm1305_vm10, %vm1306_vm13 }
  0x28   : > { %333 = vst [vmem:[#allocation2 + $0x4] sm:$0x8] %v332_v31  ;;  %v337_v53 = vld [vmem:[#allocation2 + $0x2c] sm:$0x8]  ;;  %v277_v58 = vld [vmem:[%s12558_s26 + $0x68] sm:$0xf]  ;;  %v1070_v4 = vunpack.c.l.b16 %v513_v54 }
  0x29   : > { %390 = vst [vmem:[#allocation2 + $0x10] sm:$0x1] %v389_v35  ;;  %v278_v61 = vld [vmem:[%s12558_s26 + $0x6c] sm:$0xf]  ;;  %v503_v63 = vor.u32 %v501_v47, %v500_v20  ;;  %v1326_v0 = vrot.slane %v1325_v49, 4  ;;  %v1321_v7 = vsel %vm12616_vm14, %v1316_v48, %v12592_v37  ;;  %v338_v8 = vsel %vm12572_vm9, 0, %v337_v53 }
  0x2a   : > { %309 = vst.msk [vmem:[#allocation2 + $0x10c] sm:$0xf] %vm284_vm1, %v275_v39  ;;  %v394_v2 = vld [vmem:[#allocation2 + $0x38] sm:$0x1]  ;;  %v1694_v23 = vunpack.c.l.b16 %v1321_v7  ;;  %v255_v27 = vld [vmem:[%s12558_s26 + $0x10] sm:$0xf] }
  0x2b   : > { %310 = vst.msk [vmem:[#allocation2 + $0x110] sm:$0xf] %vm284_vm1, %v276_v40  ;;  %v395_v16 = vsel %vm12579_vm11, 0, %v394_v2  ;;  %v256_v28 = vld [vmem:[%s12558_s26 + $0x14] sm:$0xf]  ;;  %vm5795_vm15 = vcmask 1043456  }
  0x2c   : > { %v12224_v51 = vld [vmem:[#allocation2 + $0xf8] sm:$0xff]  ;;  %287 = vst.msk [vmem:[#allocation2 + $0x30] sm:$0xf] %vm284_vm1, %v253_v43  ;;  %v280_v54 = vld [vmem:[%s12558_s26 + $0x74] sm:$0xf]  ;;  %vm5746_vm4 = vcmask 64512  }
  0x2d   : > { %288 = vst.msk [vmem:[#allocation2 + $0x34] sm:$0xf] %vm284_vm1, %v254_v46  ;;  %v12621_v56 = vld [vmem:[#allocation2 + $0x1c] sm:$0xf]  ;;  %11356 = vmatmul.msk.bf16.vlgmr.msra.gmra.mxu3 %vm927_vm3, %v12224_v51  ;;  %s12431_s18 = smov 16   ;;  %s12432_s19 = smov 24  }
  0x2e   : > { %v1260_v57 = vld [vmem:[#allocation2 + $0x1c] sm:$0xf]  ;;  %336 = vst [vmem:[#allocation2 + $0x18] sm:$0x8] %v335_v50  ;;  %v447_v60 = vld [vmem:[#allocation2 + $0x20] sm:$0xf]  ;;  %12310 = vmatpush.bf16.msra.mxu3 %v12535_v6 }
  0x2f   : > { %v12213_v59 = vld [vmem:[#allocation2 + $0x1c] sm:$0xff]  ;;  %v442_v62 = vld [vmem:[#allocation2 + $0x4] sm:$0x8]  ;;  %v1333_v1 = vshrl.u32 %v1260_v57, 16  ;;  %393 = vst [vmem:[#allocation2 + $0x24] sm:$0x1] %v392_v52 }
  0x30   : > { %11345 = vmatmul.msk.bf16.gmra.mxu0 %vm927_vm3, %v12213_v59  ;;  %v493_v3 = vshrl.u32 %v442_v62, 16  ;;  %v1259_v5 = vld [vmem:[#allocation2 + $0x10] sm:$0x1]  ;;  %v520_v10 = vshrl.u32 %v12621_v56, 16  ;;  %v529_v11 = vshrl.u32 %v447_v60, 16  ;;  %v1336_v6 = vshll.u32 %v1260_v57, 16 }
  0x31   : > { %v1328_v9 = vshll.u32 %v1259_v5, 16  ;;  %v1261_v12 = vld [vmem:[#allocation2 + $0x20] sm:$0xf]  ;;  %v1335_v14 = vrot.slane %v1333_v1, 4  ;;  %311 = vst.msk [vmem:[#allocation2 + $0x120] sm:$0xf] %vm284_vm1, %v277_v58 }
  0x32   : > { %v11263_v13 = vrot.slane %v493_v3, 11  ;;  %v1342_v15 = vshll.u32 %v1261_v12, 16  ;;  %v523_v18 = vshll.u32 %v12621_v56, 16  ;;  %v1338_v19 = vrot.slane %v1336_v6, 5  ;;  %312 = vst.msk [vmem:[#allocation2 + $0x124] sm:$0xf] %vm284_vm1, %v278_v61 }
  0x33   : > { %v1330_v17 = vrot.slane %v1328_v9, 5  ;;  %v1346_v20 = vshrl.u32 %v1261_v12, 16  ;;  %v532_v24 = vshll.u32 %v447_v60, 16  ;;  %v522_v32 = vrot.slane %v520_v10, 7  ;;  %289 = vst.msk [vmem:[#allocation2 + $0x44] sm:$0xf] %vm284_vm1, %v255_v27 }
  0x34   : > { %v504_v21 = vsel %vm12599_vm12, %v11263_v13, %v503_v63  ;;  %v1344_v26 = vrot.slane %v1342_v15, 5  ;;  %v531_v33 = vrot.slane %v529_v11, 7  ;;  %v1339_v36 = vor.u32 %v1338_v19, %v1335_v14  ;;  %290 = vst.msk [vmem:[#allocation2 + $0x48] sm:$0xf] %vm284_vm1, %v256_v28  ;;  %v12225_v43 = vld [vmem:[#allocation2 + $0x10c] sm:$0xff]  ;;  %s12433_s20 = smov 32  }
  0x35   : > { %v1069_v29 = vunpack.c.l.b16 %v504_v21  ;;  %v1331_v30 = vsel %vm12616_vm14, %v1326_v0, %v1330_v17  ;;  %v445_v31 = vld [vmem:[#allocation2 + $0x18] sm:$0x8]  ;;  %v1348_v37 = vrot.slane %v1346_v20, 4  ;;  %339 = vst [vmem:[#allocation2 + $0x2c] sm:$0x8] %v338_v8  ;;  %v525_v44 = vor.u32 %v523_v18, %v522_v32  ;;  %v12214_v53 = vld [vmem:[#allocation2 + $0x30] sm:$0xff] }
  0x36   : > { %v1695_v34 = vunpack.c.l.b16 %v1331_v30  ;;  %v515_v35 = vshrl.u32 %v445_v31, 16  ;;  %v1262_v39 = vld [vmem:[#allocation2 + $0x24] sm:$0x1]  ;;  %396 = vst [vmem:[#allocation2 + $0x38] sm:$0x1] %v395_v16  ;;  %v527_v46 = vrot.slane %v522_v32, 4  ;;  %v534_v47 = vor.u32 %v532_v24, %v531_v33 }
  0x37   : > { %v1101_v38 = vpack.c.b16 %v1070_v4, %v1069_v29  ;;  %v1349_v41 = vor.u32 %v1348_v37, %v1344_v26  ;;  %v1352_v42 = vshll.u32 %v1262_v39, 16  ;;  %v1340_v49 = vrot.slane %v1339_v36, 4  ;;  %v279_v52 = vld [vmem:[%s12558_s26 + $0x70] sm:$0xf]  ;;  %v1263_v56 = vld [vmem:[#allocation2 + $0x30] sm:$0xf] }
  0x38   : > { %v1726_v40 = vpack.c.b16 %v1695_v34, %v1694_v23  ;;  %v11264_v48 = vrot.slane %v515_v35, 11  ;;  %313 = vst.msk [vmem:[#allocation2 + $0x134] sm:$0xf] %vm284_vm1, %v279_v52  ;;  %v1264_v57 = vld [vmem:[#allocation2 + $0x34] sm:$0xf]  ;;  %v535_v61 = vsel %vm12599_vm12, %v527_v46, %v534_v47  ;;  %v1357_v2 = vshrl.u32 %v1263_v56, 16 }
  0x39   : > { %11360 = vmatmul.msk.bf16.vlgmr.msra.gmra.mxu1 %vm927_vm3, %v1101_v38  ;;  %v1350_v50 = vrot.slane %v1349_v41, 4  ;;  %v1354_v51 = vrot.slane %v1352_v42, 5  ;;  %314 = vst.msk [vmem:[#allocation2 + $0x138] sm:$0xf] %vm284_vm1, %v280_v54  ;;  %v449_v58 = vld [vmem:[#allocation2 + $0x30] sm:$0xf]  ;;  %v1345_v62 = vsel %vm12616_vm14, %v1340_v49, %v1344_v26  ;;  %v1072_v11 = vunpack.c.l.b16 %v535_v61 }
  0x3a   : > { %11377 = vmatmul.msk.bf16.vlgmr.msra.gmra.mxu2 %vm927_vm3, %v1726_v40  ;;  %v340_v59 = vld [vmem:[#allocation2 + $0x40] sm:$0x8]  ;;  %v526_v60 = vsel %vm12599_vm12, %v11264_v48, %v525_v44  ;;  %v257_v0 = vld [vmem:[%s12558_s26 + $0x18] sm:$0xf]  ;;  %v450_v1 = vld [vmem:[#allocation2 + $0x34] sm:$0xf]  ;;  %v1696_v12 = vunpack.c.l.b16 %v1345_v62 }
  0x3b   : > { %v1355_v63 = vsel %vm12616_vm14, %v1350_v50, %v1354_v51  ;;  %v1360_v3 = vshll.u32 %v1263_v56, 16  ;;  %v1366_v4 = vshll.u32 %v1264_v57, 16  ;;  %v1370_v5 = vshrl.u32 %v1264_v57, 16  ;;  %v258_v8 = vld [vmem:[%s12558_s26 + $0x1c] sm:$0xf]  ;;  %v12226_v35 = vld [vmem:[#allocation2 + $0x120] sm:$0xff] }
  0x3c   : > { %v542_v7 = vshrl.u32 %v449_v58, 16  ;;  %291 = vst.msk [vmem:[#allocation2 + $0x58] sm:$0xf] %vm284_vm1, %v257_v0  ;;  %v341_v9 = vsel %vm12572_vm9, 0, %v340_v59  ;;  %v1071_v10 = vunpack.c.l.b16 %v526_v60  ;;  %v1697_v6 = vunpack.c.l.b16 %v1355_v63  ;;  %v448_v13 = vld [vmem:[#allocation2 + $0x2c] sm:$0x8] }
  0x3d   : > { %11357 = vmatmul.msk.bf16.gmra.mxu3 %vm927_vm3, %v12225_v43  ;;  %292 = vst.msk [vmem:[#allocation2 + $0x5c] sm:$0xf] %vm284_vm1, %v258_v8  ;;  %v551_v14 = vshrl.u32 %v450_v1, 16  ;;  %v1359_v15 = vrot.slane %v1357_v2, 4  ;;  %v1362_v16 = vrot.slane %v1360_v3, 5  ;;  %v1368_v17 = vrot.slane %v1366_v4, 5 }
  0x3e   : > { %342 = vst [vmem:[#allocation2 + $0x40] sm:$0x8] %v341_v9  ;;  %v1372_v18 = vrot.slane %v1370_v5, 4  ;;  %v397_v19 = vld [vmem:[#allocation2 + $0x4c] sm:$0x1]  ;;  %v544_v20 = vrot.slane %v542_v7, 7  ;;  %v1102_v23 = vpack.c.b16 %v1072_v11, %v1071_v10  ;;  %v1727_v28 = vpack.c.b16 %v1697_v6, %v1696_v12 }
  0x3f   : > { %v1265_v21 = vld [vmem:[#allocation2 + $0x38] sm:$0x1]  ;;  %v537_v24 = vshrl.u32 %v448_v13, 16  ;;  %v545_v26 = vshll.u32 %v449_v58, 16  ;;  %v398_v27 = vsel %vm12579_vm11, 0, %v397_v19  ;;  %v553_v29 = vrot.slane %v551_v14, 7 }
  0x40   : > { %11346 = vmatmul.msk.bf16.gmra.mxu0 %vm927_vm3, %v12214_v53  ;;  %v554_v30 = vshll.u32 %v450_v1, 16  ;;  %399 = vst [vmem:[#allocation2 + $0x4c] sm:$0x1] %v398_v27  ;;  %v367_v31 = vld [vmem:[#allocation2 + $0xf4] sm:$0x8]  ;;  %v1363_v32 = vor.u32 %v1362_v16, %v1359_v15  ;;  %v1373_v33 = vor.u32 %v1372_v18, %v1368_v17  ;;  %v1376_v34 = vshll.u32 %v1265_v21, 16 }
  0x41   : > { %v11265_v36 = vrot.slane %v537_v24, 11  ;;  %v549_v37 = vrot.slane %v544_v20, 4  ;;  %v1266_v38 = vld [vmem:[#allocation2 + $0x44] sm:$0xf]  ;;  %v368_v39 = vsel %vm12572_vm9, 0, %v367_v31  ;;  %v547_v40 = vor.u32 %v545_v26, %v544_v20  ;;  %s12434_s28 = smov 40  }
  0x42   : > { %v556_v41 = vor.u32 %v554_v30, %v553_v29  ;;  %v12675_v42 = vld [vmem:[#allocation2 + $0x44] sm:$0xf]  ;;  %v1267_v43 = vld [vmem:[#allocation2 + $0x48] sm:$0xf]  ;;  %369 = vst [vmem:[#allocation2 + $0xf4] sm:$0x8] %v368_v39 }
  0x43   : > { %v1364_v44 = vrot.slane %v1363_v32, 4  ;;  %v1374_v46 = vrot.slane %v1373_v33, 4  ;;  %v1378_v47 = vrot.slane %v1376_v34, 5  ;;  %v343_v48 = vld [vmem:[#allocation2 + $0x54] sm:$0x8]  ;;  %v12215_v49 = vld [vmem:[#allocation2 + $0x44] sm:$0xff]  ;;  %v548_v56 = vsel %vm12599_vm12, %v11265_v36, %v547_v40 }
  0x44   : > { %v453_v50 = vld [vmem:[#allocation2 + $0x48] sm:$0xf]  ;;  %v1381_v51 = vshrl.u32 %v1266_v38, 16  ;;  %v1384_v52 = vshll.u32 %v1266_v38, 16  ;;  %v1390_v53 = vshll.u32 %v1267_v43, 16  ;;  %v1394_v54 = vshrl.u32 %v1267_v43, 16 }
  0x45   : > { %v557_v57 = vsel %vm12599_vm12, %v549_v37, %v556_v41  ;;  %v564_v58 = vshrl.u32 %v12675_v42, 16  ;;  %v259_v59 = vld [vmem:[%s12558_s26 + $0x20] sm:$0xf]  ;;  %v260_v60 = vld [vmem:[%s12558_s26 + $0x24] sm:$0xf]  ;;  %v344_v61 = vsel %vm12572_vm9, 0, %v343_v48  ;;  %v1369_v62 = vsel %vm12616_vm14, %v1364_v44, %v1368_v17 }
  0x46   : > { %v1379_v63 = vsel %vm12616_vm14, %v1374_v46, %v1378_v47  ;;  %v573_v0 = vshrl.u32 %v453_v50, 16  ;;  %v479_v1 = vld [vmem:[#allocation2 + $0xf8] sm:$0xf]  ;;  %293 = vst.msk [vmem:[#allocation2 + $0x6c] sm:$0xf] %vm284_vm1, %v259_v59  ;;  %v1383_v2 = vrot.slane %v1381_v51, 4  ;;  %v1073_v5 = vunpack.c.l.b16 %v548_v56 }
  0x47   : > { %v1386_v3 = vrot.slane %v1384_v52, 5  ;;  %294 = vst.msk [vmem:[#allocation2 + $0x70] sm:$0xf] %vm284_vm1, %v260_v60  ;;  %v400_v4 = vld [vmem:[#allocation2 + $0x60] sm:$0x1]  ;;  %v1074_v7 = vunpack.c.l.b16 %v557_v57  ;;  %v12694_v9 = vrot.slane %v1390_v53, 5  ;;  %v1698_v11 = vunpack.c.l.b16 %v1369_v62 }
  0x48   : > { %v451_v8 = vld [vmem:[#allocation2 + $0x40] sm:$0x8]  ;;  %v1396_v10 = vrot.slane %v1394_v54, 4  ;;  %345 = vst [vmem:[#allocation2 + $0x54] sm:$0x8] %v344_v61  ;;  %v1699_v12 = vunpack.c.l.b16 %v1379_v63  ;;  %v566_v6 = vrot.slane %v564_v58, 7 }
  0x49   : > { %11361 = vmatmul.msk.bf16.gmra.mxu1 %vm927_vm3, %v1102_v23  ;;  %v1268_v13 = vld [vmem:[#allocation2 + $0x4c] sm:$0x1]  ;;  %v480_v14 = vld [vmem:[#allocation2 + $0xfc] sm:$0xf]  ;;  %v575_v15 = vrot.slane %v573_v0, 7  ;;  %v576_v16 = vshll.u32 %v453_v50, 16  ;;  %v1387_v23 = vor.u32 %v1386_v3, %v1383_v2  ;;  %v1103_v24 = vpack.c.b16 %v1074_v7, %v1073_v5 }
  0x4a   : > { %11378 = vmatmul.msk.bf16.gmra.mxu2 %vm927_vm3, %v1727_v28  ;;  %v762_v17 = vshrl.u32 %v479_v1, 16  ;;  %v401_v18 = vsel %vm12579_vm11, 0, %v400_v4  ;;  %v370_v19 = vld [vmem:[#allocation2 + $0x108] sm:$0x8]  ;;  %v559_v20 = vshrl.u32 %v451_v8, 16  ;;  %v567_v21 = vshll.u32 %v12675_v42, 16 }
  0x4b   : > { %402 = vst [vmem:[#allocation2 + $0x60] sm:$0x1] %v401_v18  ;;  %v1397_v26 = vor.u32 %v1396_v10, %v12694_v9  ;;  %v1400_v27 = vshll.u32 %v1268_v13, 16  ;;  %v771_v28 = vshrl.u32 %v480_v14, 16  ;;  %v1728_v29 = vpack.c.b16 %v1699_v12, %v1698_v11  ;;  %v478_v33 = vld [vmem:[#allocation2 + $0xf4] sm:$0x8] }
  0x4c   : > { %v571_v30 = vrot.slane %v566_v6, 4  ;;  %v371_v31 = vsel %vm12572_vm9, 0, %v370_v19  ;;  %v578_v32 = vor.u32 %v576_v16, %v575_v15  ;;  %v764_v34 = vrot.slane %v762_v17, 7  ;;  %v346_v39 = vld [vmem:[#allocation2 + $0x68] sm:$0x8]  ;;  %v12227_v46 = vld [vmem:[#allocation2 + $0x134] sm:$0xff] }
  0x4d   : > { %11358 = vmatmul.msk.bf16.gmra.mxu3 %vm927_vm3, %v12226_v35  ;;  %v765_v35 = vshll.u32 %v479_v1, 16  ;;  %372 = vst [vmem:[#allocation2 + $0x108] sm:$0x8] %v371_v31  ;;  %v11266_v36 = vrot.slane %v559_v20, 11  ;;  %v569_v37 = vor.u32 %v567_v21, %v566_v6  ;;  %v1388_v38 = vrot.slane %v1387_v23, 4  ;;  %v12216_v50 = vld [vmem:[#allocation2 + $0x58] sm:$0xff] }
  0x4e   : > { %v1398_v40 = vrot.slane %v1397_v26, 4  ;;  %v1402_v41 = vrot.slane %v1400_v27, 5  ;;  %v773_v42 = vrot.slane %v771_v28, 7  ;;  %v774_v43 = vshll.u32 %v480_v14, 16  ;;  %v403_v44 = vld [vmem:[#allocation2 + $0x74] sm:$0x1] }
  0x4f   : > { %v757_v47 = vshrl.u32 %v478_v33, 16  ;;  %v1269_v48 = vld [vmem:[#allocation2 + $0x58] sm:$0xf]  ;;  %v579_v51 = vsel %vm12599_vm12, %v571_v30, %v578_v32  ;;  %v767_v52 = vor.u32 %v765_v35, %v764_v34  ;;  %v1270_v54 = vld [vmem:[#allocation2 + $0x5c] sm:$0xf]  ;;  %v570_v56 = vsel %vm12599_vm12, %v11266_v36, %v569_v37  ;;  %s12435_s29 = smov 48  }
  0x50   : > { %11347 = vmatmul.msk.bf16.gmra.mxu0 %vm927_vm3, %v12215_v49  ;;  %v347_v49 = vsel %vm12572_vm9, 0, %v346_v39  ;;  %v12708_v53 = vld [vmem:[#allocation2 + $0x58] sm:$0xf]  ;;  %v1393_v57 = vsel %vm12616_vm14, %v1388_v38, %v12694_v9  ;;  %v769_v58 = vrot.slane %v764_v34, 4  ;;  %v456_v59 = vld [vmem:[#allocation2 + $0x5c] sm:$0xf]  ;;  %v1403_v61 = vsel %vm12616_vm14, %v1398_v40, %v1402_v41 }
  0x51   : > { %348 = vst [vmem:[#allocation2 + $0x68] sm:$0x8] %v347_v49  ;;  %v404_v60 = vsel %vm12579_vm11, 0, %v403_v44  ;;  %v776_v62 = vor.u32 %v774_v43, %v773_v42  ;;  %v1405_v63 = vshrl.u32 %v1269_v48, 16  ;;  %v1408_v0 = vshll.u32 %v1269_v48, 16  ;;  %s12436_s9 = smov 56  }
  0x52   : > { %v12719_v1 = vld [vmem:[#allocation2 + $0x10c] sm:$0xf]  ;;  %405 = vst [vmem:[#allocation2 + $0x74] sm:$0x1] %v404_v60  ;;  %v11275_v2 = vrot.slane %v757_v47, 11  ;;  %v586_v3 = vshrl.u32 %v12708_v53, 16  ;;  %v1075_v8 = vunpack.c.l.b16 %v570_v56  ;;  %v1076_v9 = vunpack.c.l.b16 %v579_v51 }
  0x53   : > { %v1414_v4 = vshll.u32 %v1270_v54, 16  ;;  %v1418_v5 = vshrl.u32 %v1270_v54, 16  ;;  %v261_v7 = vld [vmem:[%s12558_s26 + $0x28] sm:$0xf]  ;;  %v483_v10 = vld [vmem:[#allocation2 + $0x110] sm:$0xf]  ;;  %v1700_v12 = vunpack.c.l.b16 %v1393_v57  ;;  %v1701_v6 = vunpack.c.l.b16 %v1403_v61 }
  0x54   : > { %v262_v11 = vld [vmem:[%s12558_s26 + $0x2c] sm:$0xf]  ;;  %295 = vst.msk [vmem:[#allocation2 + $0x80] sm:$0xf] %vm284_vm1, %v261_v7  ;;  %v595_v13 = vshrl.u32 %v456_v59, 16  ;;  %v777_v14 = vsel %vm12599_vm12, %v769_v58, %v776_v62  ;;  %v1407_v15 = vrot.slane %v1405_v63, 4  ;;  %v768_v18 = vsel %vm12599_vm12, %v11275_v2, %v767_v52 }
  0x55   : > { %296 = vst.msk [vmem:[#allocation2 + $0x84] sm:$0xf] %vm284_vm1, %v262_v11  ;;  %v1410_v16 = vrot.slane %v1408_v0, 5  ;;  %v784_v17 = vshrl.u32 %v12719_v1, 16  ;;  %v454_v19 = vld [vmem:[#allocation2 + $0x54] sm:$0x8]  ;;  %v1094_v30 = vunpack.c.l.b16 %v777_v14  ;;  %v1093_v34 = vunpack.c.l.b16 %v768_v18 }
  0x56   : > { %v12733_v20 = vrot.slane %v1414_v4, 5  ;;  %v1420_v21 = vrot.slane %v1418_v5, 4  ;;  %v793_v23 = vshrl.u32 %v483_v10, 16  ;;  %v588_v26 = vrot.slane %v586_v3, 7  ;;  %v1271_v28 = vld [vmem:[#allocation2 + $0x60] sm:$0x1] }
  0x57   : > { %v589_v27 = vshll.u32 %v12708_v53, 16  ;;  %v597_v31 = vrot.slane %v595_v13, 7  ;;  %v598_v32 = vshll.u32 %v456_v59, 16  ;;  %v373_v33 = vld [vmem:[#allocation2 + $0x11c] sm:$0x8]  ;;  %v581_v35 = vshrl.u32 %v454_v19, 16 }
  0x58   : > { %v1411_v36 = vor.u32 %v1410_v16, %v1407_v15  ;;  %v481_v37 = vld [vmem:[#allocation2 + $0x108] sm:$0x8]  ;;  %v786_v38 = vrot.slane %v784_v17, 7  ;;  %v1421_v39 = vor.u32 %v1420_v21, %v12733_v20  ;;  %v1424_v40 = vshll.u32 %v1271_v28, 16  ;;  %v1272_v44 = vld [vmem:[#allocation2 + $0x6c] sm:$0xf] }
  0x59   : > { %11362 = vmatmul.msk.bf16.gmra.mxu1 %vm927_vm3, %v1103_v24  ;;  %v1104_v24 = vpack.c.b16 %v1076_v9, %v1075_v8  ;;  %v795_v41 = vrot.slane %v793_v23, 7  ;;  %v796_v42 = vshll.u32 %v483_v10, 16  ;;  %v593_v43 = vrot.slane %v588_v26, 4  ;;  %v406_v56 = vld [vmem:[#allocation2 + $0x88] sm:$0x1]  ;;  %v12217_v4 = vld [vmem:[#allocation2 + $0x6c] sm:$0xff] }
  0x5a   : > { %11379 = vmatmul.msk.bf16.gmra.mxu2 %vm927_vm3, %v1728_v29  ;;  %v1729_v29 = vpack.c.b16 %v1701_v6, %v1700_v12  ;;  %v600_v47 = vor.u32 %v598_v32, %v597_v31  ;;  %v779_v48 = vshrl.u32 %v481_v37, 16  ;;  %v787_v49 = vshll.u32 %v12719_v1, 16  ;;  %v458_v61 = vld [vmem:[#allocation2 + $0x6c] sm:$0xf]  ;;  %v459_v62 = vld [vmem:[#allocation2 + $0x70] sm:$0xf] }
  0x5b   : > { %v11267_v51 = vrot.slane %v581_v35, 11  ;;  %v591_v52 = vor.u32 %v589_v27, %v588_v26  ;;  %v1412_v53 = vrot.slane %v1411_v36, 4  ;;  %v791_v54 = vrot.slane %v786_v38, 4  ;;  %v1273_v63 = vld [vmem:[#allocation2 + $0x70] sm:$0xf]  ;;  %s242_s10 = sand.u32 1, %s12418_s22  }
  0x5c   : > { %v1113_v57 = vpack.c.b16 %v1094_v30, %v1093_v34  ;;  %v1422_v58 = vrot.slane %v1421_v39, 4  ;;  %v1426_v59 = vrot.slane %v1424_v40, 5  ;;  %v798_v60 = vor.u32 %v796_v42, %v795_v41  ;;  %v457_v11 = vld [vmem:[#allocation2 + $0x68] sm:$0x8]  ;;  %v264_v17 = vld [vmem:[%s12558_s26 + $0x34] sm:$0xf] }
  0x5d   : > { %11359 = vmatmul.msk.bf16.gmra.mxu3 %vm927_vm3, %v12227_v46  ;;  %v374_v46 = vsel %vm12572_vm9, 0, %v373_v33  ;;  %v1429_v0 = vshrl.u32 %v1272_v44, 16  ;;  %v1432_v1 = vshll.u32 %v1272_v44, 16  ;;  %v407_v3 = vsel %vm12579_vm11, 0, %v406_v56  ;;  %v263_v16 = vld [vmem:[%s12558_s26 + $0x30] sm:$0xf] }
  0x5e   : > { %375 = vst [vmem:[#allocation2 + $0x11c] sm:$0x8] %v374_v46  ;;  %v601_v5 = vsel %vm12599_vm12, %v593_v43, %v600_v47  ;;  %v11276_v7 = vrot.slane %v779_v48, 11  ;;  %v789_v8 = vor.u32 %v787_v49, %v786_v38  ;;  %v592_v9 = vsel %vm12599_vm12, %v11267_v51, %v591_v52  ;;  %v12764_v28 = vld [vmem:[#allocation2 + $0x120] sm:$0xf]  ;;  %s11260_s11 = sshll.u32 %s242_s10, 3 }
  0x5f   : > { %v1417_v10 = vsel %vm12616_vm14, %v1412_v53, %v12733_v20  ;;  %v608_v12 = vshrl.u32 %v458_v61, 16  ;;  %v617_v6 = vshrl.u32 %v459_v62, 16  ;;  %408 = vst [vmem:[#allocation2 + $0x88] sm:$0x1] %v407_v3  ;;  %v799_v13 = vsel %vm12599_vm12, %v791_v54, %v798_v60  ;;  %v486_v34 = vld [vmem:[#allocation2 + $0x124] sm:$0xf] }
  0x60   : > { %11348 = vmatmul.msk.bf16.gmra.mxu0 %vm927_vm3, %v12216_v50  ;;  %v349_v50 = vld [vmem:[#allocation2 + $0x7c] sm:$0x8]  ;;  %v1438_v14 = vshll.u32 %v1273_v63, 16  ;;  %v1442_v15 = vshrl.u32 %v1273_v63, 16  ;;  %v1427_v18 = vsel %vm12616_vm14, %v1422_v58, %v1426_v59  ;;  %v611_v19 = vshll.u32 %v458_v61, 16  ;;  %s12192_s12 = sshll.u32 %s12493_s25, 3 }
  0x61   : > { %v350_v2 = vsel %vm12572_vm9, 0, %v349_v50  ;;  %v1431_v21 = vrot.slane %v1429_v0, 4  ;;  %v1434_v23 = vrot.slane %v1432_v1, 5  ;;  %297 = vst.msk [vmem:[#allocation2 + $0x94] sm:$0xf] %vm284_vm1, %v263_v16  ;;  %v1077_v20 = vunpack.c.l.b16 %v592_v9  ;;  %s11192_s15 = scalar_lea.hbm %s16573_s6, %s12192_s12  ;;  %s244_s16 = scalar_lea.vmem [#allocation4], %s11260_s11 }
  0x62   : > { %351 = vst [vmem:[#allocation2 + $0x7c] sm:$0x8] %v350_v2  ;;  %v1702_v26 = vunpack.c.l.b16 %v1417_v10  ;;  %v790_v27 = vsel %vm12599_vm12, %v11276_v7, %v789_v8  ;;  %v603_v30 = vshrl.u32 %v457_v11, 16  ;;  %v610_v31 = vrot.slane %v608_v12, 7  ;;  %v1274_v40 = vld [vmem:[#allocation2 + $0x74] sm:$0x1] }
  0x63   : > { %298 = vst.msk [vmem:[#allocation2 + $0x98] sm:$0xf] %vm284_vm1, %v264_v17  ;;  %v619_v32 = vrot.slane %v617_v6, 7  ;;  %v620_v33 = vshll.u32 %v459_v62, 16  ;;  %v1703_v35 = vunpack.c.l.b16 %v1427_v18  ;;  %v1096_v36 = vunpack.c.l.b16 %v799_v13  ;;  %v12772_v52 = vld [vmem:[#allocation2 + $0x80] sm:$0xf] }
  0x64   : > { %v12767_v37 = vrot.slane %v1438_v14, 5  ;;  %v1444_v38 = vrot.slane %v1442_v15, 4  ;;  %v1095_v39 = vunpack.c.l.b16 %v790_v27  ;;  %v1435_v41 = vor.u32 %v1434_v23, %v1431_v21  ;;  %v352_v61 = vld [vmem:[#allocation2 + $0x90] sm:$0x8]  ;;  %v1276_v2 = vld [vmem:[#allocation2 + $0x84] sm:$0xf] }
  0x65   : > { %v806_v42 = vshrl.u32 %v12764_v28, 16  ;;  %v815_v46 = vshrl.u32 %v486_v34, 16  ;;  %v11268_v47 = vrot.slane %v603_v30, 11  ;;  %v613_v48 = vor.u32 %v611_v19, %v610_v31  ;;  %v484_v51 = vld [vmem:[#allocation2 + $0x11c] sm:$0x8]  ;;  %v12218_v17 = vld [vmem:[#allocation2 + $0x80] sm:$0xff] }
  0x66   : > { %v615_v49 = vrot.slane %v610_v31, 4  ;;  %v622_v50 = vor.u32 %v620_v33, %v619_v32  ;;  %v1730_v53 = vpack.c.b16 %v1703_v35, %v1702_v26  ;;  %v1445_v54 = vor.u32 %v1444_v38, %v12767_v37  ;;  %v409_v9 = vld [vmem:[#allocation2 + $0x9c] sm:$0x1]  ;;  %v1277_v30 = vld [vmem:[#allocation2 + $0x88] sm:$0x1]  ;;  %s11182_s25 = scalar_lea.sflag [#allocation5], %s242_s10 }
  0x67   : > { %v1448_v56 = vshll.u32 %v1274_v40, 16  ;;  %v1114_v58 = vpack.c.b16 %v1096_v36, %v1095_v39  ;;  %v1436_v59 = vrot.slane %v1435_v41, 4  ;;  %v808_v60 = vrot.slane %v806_v42, 7  ;;  %v265_v31 = vld [vmem:[%s12558_s26 + $0x38] sm:$0xf] }
  0x68   : > { %v801_v62 = vshrl.u32 %v484_v51, 16  ;;  %v817_v63 = vrot.slane %v815_v46, 7  ;;  %v818_v0 = vshll.u32 %v486_v34, 16  ;;  %v630_v1 = vshrl.u32 %v12772_v52, 16  ;;  %v266_v32 = vld [vmem:[%s12558_s26 + $0x3c] sm:$0xf] }
  0x69   : > { %11363 = vmatmul.msk.bf16.gmra.mxu1 %vm927_vm3, %v1104_v24  ;;  %v1078_v24 = vunpack.c.l.b16 %v601_v5  ;;  %v614_v3 = vsel %vm12599_vm12, %v11268_v47, %v613_v48  ;;  %v462_v5 = vld [vmem:[#allocation2 + $0x84] sm:$0xf]  ;;  %v1446_v10 = vrot.slane %v1445_v54, 4  ;;  %v1450_v11 = vrot.slane %v1448_v56, 5  ;;  %v460_v26 = vld [vmem:[#allocation2 + $0x7c] sm:$0x8] }
  0x6a   : > { %11380 = vmatmul.msk.bf16.gmra.mxu2 %vm927_vm3, %v1729_v29  ;;  %v376_v29 = vld [vmem:[#allocation2 + $0x130] sm:$0x8]  ;;  %v809_v12 = vshll.u32 %v12764_v28, 16  ;;  %v353_v6 = vsel %vm12572_vm9, 0, %v352_v61  ;;  %v813_v13 = vrot.slane %v808_v60, 4  ;;  %v633_v14 = vshll.u32 %v12772_v52, 16 }
  0x6b   : > { %v377_v43 = vsel %vm12572_vm9, 0, %v376_v29  ;;  %v1105_v44 = vpack.c.b16 %v1078_v24, %v1077_v20  ;;  %v1462_v15 = vshll.u32 %v1276_v2, 16  ;;  %v1466_v16 = vshrl.u32 %v1276_v2, 16  ;;  %354 = vst [vmem:[#allocation2 + $0x90] sm:$0x8] %v353_v6 }
  0x6c   : > { %378 = vst [vmem:[#allocation2 + $0x130] sm:$0x8] %v377_v43  ;;  %v11277_v18 = vrot.slane %v801_v62, 11  ;;  %v12786_v19 = vrot.slane %v630_v1, 7  ;;  %v639_v21 = vshrl.u32 %v462_v5, 16  ;;  %v410_v23 = vsel %vm12579_vm11, 0, %v409_v9 }
  0x6d   : > { %11372 = vmatmul.msk.bf16.vlgmr.msrb.gmra.mxu3 %vm927_vm3, %v1113_v57  ;;  %v1275_v57 = vld [vmem:[#allocation2 + $0x80] sm:$0xf]  ;;  %v1441_v20 = vsel %vm12616_vm14, %v1436_v59, %v12767_v37  ;;  %v820_v24 = vor.u32 %v818_v0, %v817_v63  ;;  %411 = vst [vmem:[#allocation2 + $0x9c] sm:$0x1] %v410_v23  ;;  %v811_v29 = vor.u32 %v809_v12, %v808_v60  ;;  %v12798_v34 = vrot.slane %v1462_v15, 5 }
  0x6e   : > { %v1453_v7 = vshrl.u32 %v1275_v57, 16  ;;  %v1456_v8 = vshll.u32 %v1275_v57, 16  ;;  %v1451_v33 = vsel %vm12616_vm14, %v1446_v10, %v1450_v11  ;;  %v1468_v35 = vrot.slane %v1466_v16, 4  ;;  %v488_v36 = vld [vmem:[#allocation2 + $0x134] sm:$0xf] }
  0x6f   : > { %299 = vst.msk [vmem:[#allocation2 + $0xa8] sm:$0xf] %vm284_vm1, %v265_v31  ;;  %v1079_v37 = vunpack.c.l.b16 %v614_v3  ;;  %v1704_v39 = vunpack.c.l.b16 %v1441_v20  ;;  %v489_v40 = vld [vmem:[#allocation2 + $0x138] sm:$0xf]  ;;  %v424_v41 = vld [vmem:[#allocation2 + $0x100] sm:$0x1]  ;;  %v821_v42 = vsel %vm12599_vm12, %v813_v13, %v820_v24  ;;  %v1705_v47 = vunpack.c.l.b16 %v1451_v33 }
  0x70   : > { %11349 = vmatmul.msk.bf16.gmra.mxu0 %vm927_vm3, %v12217_v4  ;;  %v623_v4 = vsel %vm12599_vm12, %v615_v49, %v622_v50  ;;  %v1455_v27 = vrot.slane %v1453_v7, 4  ;;  %v1458_v28 = vrot.slane %v1456_v8, 5  ;;  %300 = vst.msk [vmem:[#allocation2 + $0xac] sm:$0xf] %vm284_vm1, %v266_v32  ;;  %v625_v43 = vshrl.u32 %v460_v26, 16  ;;  %v12219_v20 = vld [vmem:[#allocation2 + $0x94] sm:$0xff] }
  0x71   : > { %v1080_v38 = vunpack.c.l.b16 %v623_v4  ;;  %v642_v46 = vshll.u32 %v462_v5, 16  ;;  %v812_v48 = vsel %vm12599_vm12, %v11277_v18, %v811_v29  ;;  %v828_v50 = vshrl.u32 %v488_v36, 16  ;;  %v355_v9 = vld [vmem:[#allocation2 + $0xa4] sm:$0x8]  ;;  %v1278_v11 = vld [vmem:[#allocation2 + $0x94] sm:$0xf] }
  0x72   : > { %v1459_v49 = vor.u32 %v1458_v28, %v1455_v27  ;;  %v1469_v51 = vor.u32 %v1468_v35, %v12798_v34  ;;  %v1472_v52 = vshll.u32 %v1277_v30, 16  ;;  %v425_v54 = vsel %vm12579_vm11, 0, %v424_v41  ;;  %v412_v12 = vld [vmem:[#allocation2 + $0xb0] sm:$0x1]  ;;  %v464_v15 = vld [vmem:[#allocation2 + $0x94] sm:$0xf] }
  0x73   : > { %v1106_v56 = vpack.c.b16 %v1080_v38, %v1079_v37  ;;  %v1098_v57 = vunpack.c.l.b16 %v821_v42  ;;  %426 = vst [vmem:[#allocation2 + $0x100] sm:$0x1] %v425_v54  ;;  %v1097_v59 = vunpack.c.l.b16 %v812_v48  ;;  %v11269_v60 = vrot.slane %v625_v43, 11  ;;  %v487_v63 = vld [vmem:[#allocation2 + $0x130] sm:$0x8] }
  0x74   : > { %v637_v61 = vrot.slane %v12786_v19, 4  ;;  %v1731_v0 = vpack.c.b16 %v1705_v47, %v1704_v39  ;;  %v1460_v1 = vrot.slane %v1459_v49, 4  ;;  %v830_v2 = vrot.slane %v828_v50, 7  ;;  %v1279_v16 = vld [vmem:[#allocation2 + $0x98] sm:$0xf] }
  0x75   : > { %v831_v3 = vshll.u32 %v488_v36, 16  ;;  %v1470_v4 = vrot.slane %v1469_v51, 4  ;;  %v1474_v5 = vrot.slane %v1472_v52, 5  ;;  %v840_v8 = vshll.u32 %v489_v40, 16  ;;  %v1293_v37 = vld [vmem:[#allocation2 + $0xf8] sm:$0xf] }
  0x76   : > { %v823_v10 = vshrl.u32 %v487_v63, 16  ;;  %v1115_v6 = vpack.c.b16 %v1098_v57, %v1097_v59  ;;  %v413_v23 = vsel %vm12579_vm11, 0, %v412_v12  ;;  %v835_v26 = vrot.slane %v830_v2, 4  ;;  %v1294_v41 = vld [vmem:[#allocation2 + $0xfc] sm:$0xf] }
  0x77   : > { %v833_v18 = vor.u32 %v831_v3, %v830_v2  ;;  %v1475_v24 = vsel %vm12616_vm14, %v1470_v4, %v1474_v5  ;;  %v1477_v28 = vshrl.u32 %v1278_v11, 16  ;;  %v652_v30 = vshrl.u32 %v464_v15, 16  ;;  %414 = vst [vmem:[#allocation2 + $0xb0] sm:$0x1] %v413_v23  ;;  %v11409_v42 = vld [vmem:[%s16568_s1 + $0x6] sm:$0x3] }
  0x78   : > { %v11278_v29 = vrot.slane %v823_v10, 11  ;;  %v1480_v31 = vshll.u32 %v1278_v11, 16  ;;  %v1486_v32 = vshll.u32 %v1279_v16, 16  ;;  %v655_v33 = vshll.u32 %v464_v15, 16  ;;  %v267_v48 = vld [vmem:[%s12558_s26 + $0x40] sm:$0xf] }
  0x79   : > { %11364 = vmatmul.msk.bf16.gmra.mxu1 %vm927_vm3, %v1105_v44  ;;  %v641_v44 = vrot.slane %v639_v21, 7  ;;  %v356_v21 = vsel %vm12572_vm9, 0, %v355_v9  ;;  %v1490_v36 = vshrl.u32 %v1279_v16, 16  ;;  %v2413_v47 = vsel %vm976_vm0, %v11409_v42, 0  ;;  %v268_v49 = vld [vmem:[%s12558_s26 + $0x44] sm:$0xf] }
  0x7a   : > { %11381 = vmatmul.msk.bf16.gmra.mxu2 %vm927_vm3, %v1730_v53  ;;  %v837_v53 = vshrl.u32 %v489_v40, 16  ;;  %357 = vst [vmem:[#allocation2 + $0xa4] sm:$0x8] %v356_v21  ;;  %v463_v40 = vld [vmem:[#allocation2 + $0x90] sm:$0x8]  ;;  %v834_v50 = vsel %vm12599_vm12, %v11278_v29, %v833_v18  ;;  %v654_v52 = vrot.slane %v652_v30, 7  ;;  %2422 = vmatpush.bf16.msrb.mxu3 %v2413_v47 }
  0x7b   : > { %v644_v62 = vor.u32 %v642_v46, %v641_v44  ;;  %v1707_v44 = vunpack.c.l.b16 %v1475_v24  ;;  %v1479_v46 = vrot.slane %v1477_v28, 4  ;;  %301 = vst.msk [vmem:[#allocation2 + $0xbc] sm:$0xf] %vm284_vm1, %v267_v48  ;;  %v427_v54 = vld [vmem:[#allocation2 + $0x114] sm:$0x1]  ;;  %v1492_v59 = vrot.slane %v1490_v36, 4 }
  0x7c   : > { %v839_v7 = vrot.slane %v837_v53, 7  ;;  %v1482_v53 = vrot.slane %v1480_v31, 5  ;;  %302 = vst.msk [vmem:[#allocation2 + $0xc0] sm:$0xf] %vm284_vm1, %v268_v49  ;;  %v1606_v63 = vshll.u32 %v1294_v41, 16  ;;  %v428_v4 = vsel %vm12579_vm11, 0, %v427_v54 }
  0x7d   : > { %11373 = vmatmul.msk.bf16.gmra.mxu3 %vm927_vm3, %v1114_v58  ;;  %v635_v58 = vor.u32 %v633_v14, %v12786_v19  ;;  %v645_v14 = vsel %vm12599_vm12, %v637_v61, %v644_v62  ;;  %v465_v19 = vld [vmem:[#allocation2 + $0x98] sm:$0xf]  ;;  %v1597_v61 = vshrl.u32 %v1293_v37, 16  ;;  %v1600_v62 = vshll.u32 %v1293_v37, 16  ;;  %v1281_v10 = vld [vmem:[#allocation2 + $0xa8] sm:$0xf] }
  0x7e   : > { %v842_v27 = vor.u32 %v840_v8, %v839_v7  ;;  %v664_v35 = vshll.u32 %v465_v19, 16  ;;  %v1082_v39 = vunpack.c.l.b16 %v645_v14  ;;  %v1099_v5 = vunpack.c.l.b16 %v834_v50  ;;  %429 = vst [vmem:[#allocation2 + $0x114] sm:$0x1] %v428_v4  ;;  %v1295_v18 = vld [vmem:[#allocation2 + $0x100] sm:$0x1] }
  0x7f   : > { %v636_v13 = vsel %vm12599_vm12, %v11269_v60, %v635_v58  ;;  %v12840_v58 = vrot.slane %v1486_v32, 5  ;;  %v1280_v60 = vld [vmem:[#allocation2 + $0x9c] sm:$0x1]  ;;  %v657_v7 = vor.u32 %v655_v33, %v654_v52  ;;  %v659_v8 = vrot.slane %v654_v52, 4  ;;  %v358_v23 = vld [vmem:[#allocation2 + $0xb8] sm:$0x8] }
  0x80   : > { %11350 = vmatmul.msk.bf16.gmra.mxu0 %vm927_vm3, %v12218_v17  ;;  %v1465_v17 = vsel %vm12616_vm14, %v1460_v1, %v12798_v34  ;;  %v661_v34 = vshrl.u32 %v465_v19, 16  ;;  %v1081_v38 = vunpack.c.l.b16 %v636_v13  ;;  %v843_v51 = vsel %vm12599_vm12, %v835_v26, %v842_v27  ;;  %v12848_v26 = vld [vmem:[#allocation2 + $0xa8] sm:$0xf]  ;;  %v415_v27 = vld [vmem:[#allocation2 + $0xc4] sm:$0x1] }
  0x81   : > { %v1706_v43 = vunpack.c.l.b16 %v1465_v17  ;;  %v1100_v3 = vunpack.c.l.b16 %v843_v51  ;;  %v1483_v9 = vor.u32 %v1482_v53, %v1479_v46  ;;  %v1496_v13 = vshll.u32 %v1280_v60, 16  ;;  %v1282_v33 = vld [vmem:[#allocation2 + $0xac] sm:$0xf]  ;;  %v466_v47 = vld [vmem:[#allocation2 + $0xa4] sm:$0x8] }
  0x82   : > { %v663_v57 = vrot.slane %v661_v34, 7  ;;  %v1107_v1 = vpack.c.b16 %v1082_v39, %v1081_v38  ;;  %v1599_v14 = vrot.slane %v1597_v61, 4  ;;  %v1602_v15 = vrot.slane %v1600_v62, 5  ;;  %v12220_v34 = vld [vmem:[#allocation2 + $0xa8] sm:$0xff]  ;;  %v1297_v52 = vld [vmem:[#allocation2 + $0x110] sm:$0xf] }
  0x83   : > { %v1732_v2 = vpack.c.b16 %v1707_v44, %v1706_v43  ;;  %v12846_v16 = vrot.slane %v1606_v63, 5  ;;  %v1501_v19 = vshrl.u32 %v1281_v10, 16  ;;  %v1504_v21 = vshll.u32 %v1281_v10, 16  ;;  %v12861_v38 = vld [vmem:[#allocation2 + $0xac] sm:$0xf] }
  0x84   : > { %v666_v12 = vor.u32 %v664_v35, %v663_v57  ;;  %v1484_v24 = vrot.slane %v1483_v9, 4  ;;  %v1498_v32 = vrot.slane %v1496_v13, 5  ;;  %v1603_v35 = vor.u32 %v1602_v15, %v1599_v14  ;;  %v1296_v39 = vld [vmem:[#allocation2 + $0x10c] sm:$0xf]  ;;  %v1283_v61 = vld [vmem:[#allocation2 + $0xb0] sm:$0x1] }
  0x85   : > { %v1616_v37 = vshll.u32 %v1295_v18, 16  ;;  %v1503_v42 = vrot.slane %v1501_v19, 4  ;;  %v1506_v43 = vrot.slane %v1504_v21, 5  ;;  %v416_v44 = vsel %vm12579_vm11, 0, %v415_v27  ;;  %v430_v15 = vld [vmem:[#allocation2 + $0x128] sm:$0x1] }
  0x86   : > { %v12857_v30 = vsel %vm12599_vm12, %v659_v8, %v666_v12  ;;  %v1510_v48 = vshll.u32 %v1282_v33, 16  ;;  %v1514_v49 = vshrl.u32 %v1282_v33, 16  ;;  %417 = vst [vmem:[#allocation2 + $0xc4] sm:$0x1] %v416_v44  ;;  %v1489_v51 = vsel %vm12616_vm14, %v1484_v24, %v12840_v58  ;;  %v1285_v33 = vld [vmem:[#allocation2 + $0xc0] sm:$0xf] }
  0x87   : > { %v1084_v50 = vunpack.c.l.b16 %v12857_v30  ;;  %v1621_v53 = vshrl.u32 %v1296_v39, 16  ;;  %v1624_v54 = vshll.u32 %v1296_v39, 16  ;;  %v683_v60 = vshrl.u32 %v12861_v38, 16  ;;  %v11540_v39 = vld [vmem:[%s16568_s1 + $0xc] sm:$0x3] }
  0x88   : > { %v669_v63 = vshrl.u32 %v466_v47, 16  ;;  %v1516_v4 = vrot.slane %v1514_v49, 4  ;;  %v1708_v8 = vunpack.c.l.b16 %v1489_v51  ;;  %v1520_v9 = vshll.u32 %v1283_v61, 16  ;;  %v361_v44 = vld [vmem:[#allocation2 + $0xcc] sm:$0x8] }
  0x89   : > { %11365 = vmatmul.msk.bf16.gmra.mxu1 %vm927_vm3, %v1106_v56  ;;  %v647_v56 = vshrl.u32 %v463_v40, 16  ;;  %v359_v40 = vsel %vm12572_vm9, 0, %v358_v23  ;;  %v1623_v10 = vrot.slane %v1621_v53, 4  ;;  %v677_v14 = vshll.u32 %v12848_v26, 16 }
  0x8a   : > { %11382 = vmatmul.msk.bf16.gmra.mxu2 %vm927_vm3, %v1731_v0  ;;  %v1610_v0 = vshrl.u32 %v1294_v41, 16  ;;  %v674_v41 = vshrl.u32 %v12848_v26, 16  ;;  %360 = vst [vmem:[#allocation2 + $0xb8] sm:$0x8] %v359_v40  ;;  %v12893_v18 = vrot.slane %v669_v63, 11  ;;  %v685_v21 = vrot.slane %v683_v60, 7 }
  0x8b   : > { %v11270_v11 = vrot.slane %v647_v56, 11  ;;  %v1604_v56 = vrot.slane %v1603_v35, 4  ;;  %v686_v23 = vshll.u32 %v12861_v38, 16  ;;  %v12902_v26 = vrot.slane %v1520_v9, 5  ;;  %v12910_v40 = vld [vmem:[#allocation2 + $0xbc] sm:$0xf] }
  0x8c   : > { %v1612_v17 = vrot.slane %v1610_v0, 4  ;;  %v12876_v0 = vrot.slane %v674_v41, 7  ;;  %v696_v53 = vshrl.u32 %v12910_v40, 16  ;;  %v1534_v60 = vshll.u32 %v1285_v33, 16 }
  0x8d   : > { %11374 = vmatmul.msk.bf16.gmra.mxu3 %vm927_vm3, %v1115_v6  ;;  %v1493_v6 = vor.u32 %v1492_v59, %v12840_v58  ;;  %v658_v29 = vsel %vm12599_vm12, %v11270_v11, %v657_v7  ;;  %v1618_v59 = vrot.slane %v1616_v37, 5  ;;  %v270_v58 = vld [vmem:[%s12558_s26 + $0x4c] sm:$0xf]  ;;  %v1634_v7 = vshrl.u32 %v1297_v52, 16 }
  0x8e   : > { %v1613_v36 = vor.u32 %v1612_v17, %v12846_v16  ;;  %v1083_v46 = vunpack.c.l.b16 %v658_v29  ;;  %v1626_v11 = vrot.slane %v1624_v54, 5  ;;  %304 = vst.msk [vmem:[#allocation2 + $0xd4] sm:$0xf] %vm284_vm1, %v270_v58  ;;  %v681_v19 = vrot.slane %v12876_v0, 4  ;;  %v1299_v58 = vld [vmem:[#allocation2 + $0x120] sm:$0xf] }
  0x8f   : > { %v1494_v31 = vrot.slane %v1493_v6, 4  ;;  %v1609_v6 = vsel %vm12616_vm14, %v1604_v56, %v12846_v16  ;;  %v1298_v16 = vld [vmem:[#allocation2 + $0x114] sm:$0x1]  ;;  %v1636_v29 = vrot.slane %v1634_v7, 4  ;;  %v679_v38 = vor.u32 %v677_v14, %v12876_v0 }
  0x90   : > { %11351 = vmatmul.msk.bf16.gmra.mxu0 %vm927_vm3, %v12219_v20  ;;  %v1116_v20 = vpack.c.b16 %v1100_v3, %v1099_v5  ;;  %v1614_v57 = vrot.slane %v1613_v36, 4  ;;  %v12881_v3 = vrot.slane %v1510_v48, 5  ;;  %v1630_v5 = vshll.u32 %v1297_v52, 16  ;;  %v12915_v52 = vld [vmem:[#allocation2 + $0xc0] sm:$0xf] }
  0x91   : > { %v1499_v62 = vsel %vm12616_vm14, %v1494_v31, %v1498_v32  ;;  %v1108_v30 = vpack.c.b16 %v1084_v50, %v1083_v46  ;;  %v1627_v31 = vor.u32 %v1626_v11, %v1623_v10  ;;  %v1284_v32 = vld [vmem:[#allocation2 + $0xbc] sm:$0xf]  ;;  %v1718_v36 = vunpack.c.l.b16 %v1609_v6  ;;  %v418_v46 = vld [vmem:[#allocation2 + $0xd8] sm:$0x1] }
  0x92   : > { %v1709_v12 = vunpack.c.l.b16 %v1499_v62  ;;  %v1619_v13 = vsel %vm12616_vm14, %v1614_v57, %v1618_v59  ;;  %v1517_v24 = vor.u32 %v1516_v4, %v12881_v3  ;;  %v12900_v27 = vrot.slane %v1630_v5, 5  ;;  %v11507_v62 = vld [vmem:[%s16568_s1 + $0xa] sm:$0x3] }
  0x93   : > { %v1719_v37 = vunpack.c.l.b16 %v1619_v13  ;;  %v688_v41 = vor.u32 %v686_v23, %v685_v21  ;;  %v1525_v49 = vshrl.u32 %v1284_v32, 16  ;;  %v1528_v50 = vshll.u32 %v1284_v32, 16  ;;  %v12221_v4 = vld [vmem:[#allocation2 + $0xbc] sm:$0xff] }
  0x94   : > { %v1733_v35 = vpack.c.b16 %v1709_v12, %v1708_v8  ;;  %v1518_v47 = vrot.slane %v1517_v24, 4  ;;  %v1637_v48 = vor.u32 %v1636_v29, %v12900_v27  ;;  %v1628_v51 = vrot.slane %v1627_v31, 4  ;;  %v271_v29 = vld [vmem:[%s12558_s26 + $0x50] sm:$0xf] }
  0x95   : > { %v362_v54 = vsel %vm12572_vm9, 0, %v361_v44  ;;  %v419_v56 = vsel %vm12579_vm11, 0, %v418_v46  ;;  %v1738_v57 = vpack.c.b16 %v1719_v37, %v1718_v36  ;;  %v680_v59 = vsel %vm12599_vm12, %v12893_v18, %v679_v38  ;;  %305 = vst.msk [vmem:[#allocation2 + $0xe4] sm:$0xf] %vm284_vm1, %v271_v29 }
  0x96   : > { %v1538_v61 = vshrl.u32 %v1285_v33, 16  ;;  %363 = vst [vmem:[#allocation2 + $0xcc] sm:$0x8] %v362_v54  ;;  %v689_v63 = vsel %vm12599_vm12, %v681_v19, %v688_v41  ;;  %v1638_v5 = vrot.slane %v1637_v48, 4  ;;  %v705_v7 = vshrl.u32 %v12915_v52, 16 }
  0x97   : > { %420 = vst [vmem:[#allocation2 + $0xd8] sm:$0x1] %v419_v56  ;;  %v1527_v8 = vrot.slane %v1525_v49, 4  ;;  %v1530_v9 = vrot.slane %v1528_v50, 5  ;;  %v1523_v11 = vsel %vm12616_vm14, %v1518_v47, %v12902_v26  ;;  %v698_v12 = vrot.slane %v696_v53, 7 }
  0x98   : > { %v699_v6 = vshll.u32 %v12910_v40, 16  ;;  %v12944_v13 = vrot.slane %v1534_v60, 5  ;;  %v1540_v14 = vrot.slane %v1538_v61, 4  ;;  %v1645_v18 = vshrl.u32 %v1299_v58, 16 }
  0x99   : > { %11366 = vmatmul.msk.bf16.gmra.mxu1 %vm927_vm3, %v1107_v1  ;;  %v1507_v1 = vor.u32 %v1506_v43, %v1503_v42  ;;  %v1640_v42 = vshll.u32 %v1298_v16, 16  ;;  %v3944_v43 = vsel %vm976_vm0, %v11540_v39, 0  ;;  %v1648_v19 = vshll.u32 %v1299_v58, 16  ;;  %v1286_v16 = vld [vmem:[#allocation2 + $0xc4] sm:$0x1] }
  0x9a   : > { %v12851_v28 = vpop.f32.mrf.mxu0  ;;  %11383 = vmatmul.msk.bf16.gmra.mxu2 %vm927_vm3, %v1732_v2  ;;  %v269_v2 = vld [vmem:[%s12558_s26 + $0x48] sm:$0xf]  ;;  %v1085_v21 = vunpack.c.l.b16 %v680_v59  ;;  %v1086_v23 = vunpack.c.l.b16 %v689_v63  ;;  %v1633_v24 = vsel %vm12616_vm14, %v1628_v51, %v12900_v27  ;;  %v707_v31 = vrot.slane %v705_v7, 7 }
  0x9b   : > { %303 = vst.msk [vmem:[#allocation2 + $0xd0] sm:$0xf] %vm284_vm1, %v269_v2  ;;  %3953 = vmatpush.bf16.msrb.mxu2 %v3944_v43  ;;  %v3321_v2 = vsel %vm976_vm0, %v11507_v62, 0  ;;  %v708_v32 = vshll.u32 %v12915_v52, 16  ;;  %v1531_v33 = vor.u32 %v1530_v9, %v1527_v8  ;;  %v1541_v38 = vor.u32 %v1540_v14, %v12944_v13 }
  0x9c   : > { %3330 = vmatpush.bf16.msrb.mxu1 %v3321_v2  ;;  %v1544_v39 = vshll.u32 %v1286_v16, 16  ;;  %v1647_v40 = vrot.slane %v1645_v18, 4  ;;  %v1650_v41 = vrot.slane %v1648_v19, 5  ;;  %v1109_v43 = vpack.c.b16 %v1086_v23, %v1085_v21  ;;  %v12983_v18 = vld [vmem:[#allocation2 + $0xd4] sm:$0xf] }
  0x9d   : > { %11375 = vmatmul.msk.bf16.gmra.mxu3 %vm927_vm3, %v1116_v20  ;;  %v12897_v20 = vrot.slane %v1507_v1, 4  ;;  %v1642_v1 = vrot.slane %v1640_v42, 5  ;;  %v433_v42 = vld [vmem:[#allocation2 + $0x13c] sm:$0x1]  ;;  %v1720_v44 = vunpack.c.l.b16 %v1633_v24  ;;  %v701_v47 = vor.u32 %v699_v6, %v698_v12 }
  0x9e   : > { %v703_v48 = vrot.slane %v698_v12, 4  ;;  %v710_v49 = vor.u32 %v708_v32, %v707_v31  ;;  %v1532_v50 = vrot.slane %v1531_v33, 4  ;;  %v434_v56 = vsel %vm12579_vm11, 0, %v433_v42  ;;  %v1303_v42 = vld [vmem:[#allocation2 + $0x138] sm:$0xf] }
  0x9f   : > { %v1513_v0 = vsel %vm12616_vm14, %v12897_v20, %v12881_v3  ;;  %v469_v3 = vld [vmem:[#allocation2 + $0xb8] sm:$0x8]  ;;  %v1643_v26 = vsel %vm12616_vm14, %v1638_v5, %v1642_v1  ;;  %v1542_v60 = vrot.slane %v1541_v38, 4  ;;  %v1546_v61 = vrot.slane %v1544_v39, 5  ;;  %435 = vst [vmem:[#allocation2 + $0x13c] sm:$0x1] %v434_v56 }
  0xa0   : > { %11352 = vmatmul.msk.bf16.gmra.mxu0 %vm927_vm3, %v12220_v34  ;;  %v431_v34 = vsel %vm12579_vm11, 0, %v430_v15  ;;  %v1300_v15 = vld [vmem:[#allocation2 + $0x124] sm:$0xf]  ;;  %v1710_v20 = vunpack.c.l.b16 %v1513_v0  ;;  %v691_v36 = vshrl.u32 %v469_v3, 16  ;;  %v1721_v46 = vunpack.c.l.b16 %v1643_v26  ;;  %v421_v5 = vld [vmem:[#allocation2 + $0xec] sm:$0x1] }
  0xa1   : > { %432 = vst [vmem:[#allocation2 + $0x128] sm:$0x1] %v431_v34  ;;  %v1654_v37 = vshll.u32 %v1300_v15, 16  ;;  %v1658_v27 = vshrl.u32 %v1300_v15, 16  ;;  %v1651_v62 = vor.u32 %v1650_v41, %v1647_v40  ;;  %v711_v9 = vsel %vm12599_vm12, %v703_v48, %v710_v49  ;;  %v1288_v3 = vld [vmem:[#allocation2 + $0xd4] sm:$0xf] }
  0xa2   : > { %v12891_v17 = vpop.f32.mrf.mxu0  ;;  %v11272_v52 = vrot.slane %v691_v36, 11  ;;  %v1287_v1 = vld [vmem:[#allocation2 + $0xd0] sm:$0xf]  ;;  %v1739_v2 = vpack.c.b16 %v1721_v46, %v1720_v44  ;;  %v1547_v12 = vsel %vm12616_vm14, %v1542_v60, %v1546_v61  ;;  %v1088_v24 = vunpack.c.l.b16 %v711_v9  ;;  %v1302_v36 = vld [vmem:[#allocation2 + $0x134] sm:$0xf] }
  0xa3   : > { %v12962_v53 = vrot.slane %v1654_v37, 5  ;;  %v1660_v54 = vrot.slane %v1658_v27, 4  ;;  %v12967_v58 = vld [vmem:[#allocation2 + $0xd0] sm:$0xf]  ;;  %v1652_v6 = vrot.slane %v1651_v62, 4  ;;  %v1549_v15 = vshrl.u32 %v1287_v1, 16 }
  0xa4   : > { %v702_v8 = vsel %vm12599_vm12, %v11272_v52, %v701_v47  ;;  %v718_v19 = vshrl.u32 %v12967_v58, 16  ;;  %v1552_v21 = vshll.u32 %v1287_v1, 16  ;;  %v1558_v16 = vshll.u32 %v1288_v3, 16  ;;  %v472_v40 = vld [vmem:[#allocation2 + $0xcc] sm:$0x8] }
  0xa5   : > { %v1562_v29 = vshrl.u32 %v1288_v3, 16  ;;  %v1087_v31 = vunpack.c.l.b16 %v702_v8  ;;  %v12994_v33 = vunpack.c.l.b16 %v1547_v12  ;;  %v1657_v38 = vsel %vm12616_vm14, %v1652_v6, %v12962_v53 }
  0xa6   : > { %v727_v41 = vshrl.u32 %v12983_v18, 16  ;;  %v720_v44 = vrot.slane %v718_v19, 7  ;;  %v1551_v46 = vrot.slane %v1549_v15, 4  ;;  %v1554_v47 = vrot.slane %v1552_v21, 5 }
  0xa7   : > { %v13005_v48 = vrot.slane %v1558_v16, 5  ;;  %v1564_v49 = vrot.slane %v1562_v29, 4  ;;  %v1672_v52 = vshll.u32 %v1302_v36, 16  ;;  %v721_v56 = vshll.u32 %v12967_v58, 16 }
  0xa8   : > { %v1301_v0 = vld [vmem:[#allocation2 + $0x128] sm:$0x1]  ;;  %v1682_v60 = vshrl.u32 %v1303_v42, 16  ;;  %v1110_v61 = vpack.c.b16 %v1088_v24, %v1087_v31  ;;  %v730_v62 = vshll.u32 %v12983_v18, 16  ;;  %v1722_v1 = vunpack.c.l.b16 %v1657_v38  ;;  %v1290_v24 = vld [vmem:[#allocation2 + $0xe4] sm:$0xf] }
  0xa9   : > { %11367 = vmatmul.msk.bf16.gmra.mxu1 %vm927_vm3, %v1108_v30  ;;  %v272_v30 = vld [vmem:[%s12558_s26 + $0x54] sm:$0xf]  ;;  %v1664_v14 = vshll.u32 %v1301_v0, 16  ;;  %v1674_v58 = vrot.slane %v1672_v52, 5  ;;  %v723_v3 = vor.u32 %v721_v56, %v720_v44  ;;  %v725_v19 = vrot.slane %v720_v44, 4 }
  0xaa   : > { %11384 = vmatmul.msk.bf16.gmra.mxu2 %vm927_vm3, %v1733_v35  ;;  %v1711_v35 = vunpack.c.l.b16 %v1523_v11  ;;  %306 = vst.msk [vmem:[#allocation2 + $0xe8] sm:$0xf] %vm284_vm1, %v272_v30  ;;  %v1661_v11 = vor.u32 %v1660_v54, %v12962_v53  ;;  %v713_v53 = vshrl.u32 %v472_v40, 16  ;;  %v1684_v6 = vrot.slane %v1682_v60, 4 }
  0xab   : > { %v1666_v39 = vrot.slane %v1664_v14, 5  ;;  %v1573_v40 = vshrl.u32 %v1290_v24, 16 }
  0xac   : > { %v1734_v59 = vpack.c.b16 %v1711_v35, %v1710_v20  ;;  %v12222_v20 = vld [vmem:[#allocation2 + $0xd0] sm:$0xff]  ;;  %v1662_v35 = vrot.slane %v1661_v11, 4  ;;  %v11273_v11 = vrot.slane %v713_v53, 11 }
  0xad   : > { %v12937_v10 = vpop.f32.mrf.mxu0  ;;  %11389 = vmatmul.msk.bf16.vlgmr.msra.gmra.mxu3 %vm927_vm3, %v1738_v57 }
  0xae   : > { %v1667_v0 = vsel %vm12616_vm14, %v1662_v35, %v1666_v39 }
  0xaf   : > { %v1723_v18 = vunpack.c.l.b16 %v1667_v0  ;;  %v1575_v0 = vrot.slane %v1573_v40, 4 }
  0xb0   : > { %11353 = vmatmul.msk.bf16.gmra.mxu0 %vm927_vm3, %v12221_v4  ;;  %v12956_v34 = vpop.f32.mrf.mxu3  ;;  %v364_v4 = vld [vmem:[#allocation2 + $0xe0] sm:$0x8] }
  0xb1   : > { %v365_v23 = vsel %vm12572_vm9, 0, %v364_v4  ;;  %v1565_v4 = vor.u32 %v1564_v49, %v13005_v48  ;;  %v1291_v31 = vld [vmem:[#allocation2 + $0xe8] sm:$0xf] }
  0xb2   : > { %366 = vst [vmem:[#allocation2 + $0xe0] sm:$0x8] %v365_v23  ;;  %v1304_v23 = vld [vmem:[#allocation2 + $0x13c] sm:$0x1]  ;;  %v477_v39 = vld [vmem:[#allocation2 + $0xe8] sm:$0xf] }
  0xb3   : > { %v1566_v16 = vrot.slane %v1565_v4, 4  ;;  %v1586_v44 = vshrl.u32 %v1291_v31, 16 }
  0xb5   : > { %v12960_v51 = vpop.f32.mrf.mxu0 }
  0xb6   : > { %v1177_v57 = vpop.f32.mrf.mxu1 }
  0xb7   : > { %v1178_v63 = vadd.f32 %v1177_v57, %v12851_v28  ;;  %v1537_v28 = vsel %vm12616_vm14, %v1532_v50, %v12944_v13  ;;  %v422_v13 = vsel %vm12579_vm11, 0, %v421_v5  ;;  %v1669_v50 = vshrl.u32 %v1302_v36, 16  ;;  %v1289_v57 = vld [vmem:[#allocation2 + $0xd8] sm:$0x1] }
  0xb8   : > { %v12970_v7 = vpop.f32.mrf.mxu3  ;;  %v12992_v32 = vunpack.c.l.b16 %v1537_v28  ;;  %423 = vst [vmem:[#allocation2 + $0xec] sm:$0x1] %v422_v13  ;;  %v1568_v5 = vshll.u32 %v1289_v57, 16  ;;  %v1688_v36 = vshll.u32 %v1304_v23, 16 }
  0xb9   : > { %11368 = vmatmul.msk.bf16.gmra.mxu1 %vm927_vm3, %v1109_v43  ;;  %v1671_v8 = vrot.slane %v1669_v50, 4 }
  0xba   : > { %11385 = vmatmul.msk.bf16.gmra.mxu2 %vm927_vm3, %v1734_v59  ;;  %v1678_v59 = vshll.u32 %v1303_v42, 16  ;;  %v1570_v29 = vrot.slane %v1568_v5, 5  ;;  %v1690_v60 = vrot.slane %v1688_v36, 5 }
  0xbc   : > { %v13018_v12 = vrot.slane %v1678_v59, 5  ;;  %v1571_v49 = vsel %vm12616_vm14, %v1566_v16, %v1570_v29 }
  0xbd   : > { %v1802_v30 = vpop.f32.mrf.mxu2  ;;  %v12990_v26 = vpop.f32.mrf.mxu0  ;;  %11390 = vmatmul.msk.bf16.gmra.mxu3 %vm927_vm3, %v1739_v2  ;;  %v1555_v2 = vor.u32 %v1554_v47, %v1551_v46  ;;  %v12223_v46 = vld [vmem:[#allocation2 + $0xe4] sm:$0xff]  ;;  %v1715_v4 = vunpack.c.l.b16 %v1571_v49 }
  0xbe   : > { %v12996_v37 = vadd.f32 %v1802_v30, %v1178_v63  ;;  %v1179_v27 = vpop.f32.mrf.mxu1  ;;  %v1735_v63 = vpack.c.b16 %v12994_v33, %v12992_v32  ;;  %v1675_v30 = vor.u32 %v1674_v58, %v1671_v8  ;;  %v724_v33 = vsel %vm12599_vm12, %v11273_v11, %v723_v3 }
  0xbf   : > { %v1180_v43 = vadd.f32 %v1179_v27, %v12891_v17  ;;  %v729_v17 = vrot.slane %v727_v41, 7  ;;  %v1685_v35 = vor.u32 %v1684_v6, %v13018_v12  ;;  %v476_v27 = vld [vmem:[#allocation2 + $0xe4] sm:$0xf]  ;;  %v1576_v41 = vshll.u32 %v1290_v24, 16  ;;  %v1292_v5 = vld [vmem:[#allocation2 + $0xec] sm:$0x1] }
  0xc0   : > { %11354 = vmatmul.msk.bf16.gmra.mxu0 %vm927_vm3, %v12222_v20  ;;  %v13007_v54 = vpop.f32.mrf.mxu3  ;;  %v1556_v20 = vrot.slane %v1555_v2, 4  ;;  %v1089_v47 = vunpack.c.l.b16 %v724_v33  ;;  %v1676_v50 = vrot.slane %v1675_v30, 4  ;;  %v740_v52 = vshrl.u32 %v476_v27, 16  ;;  %v1914_v30 = vld [vmem:[#allocation2 + $0x18] sm:$0x8] }
  0xc1   : > { %v732_v21 = vor.u32 %v730_v62, %v729_v17  ;;  %v1686_v59 = vrot.slane %v1685_v35, 4  ;;  %v1588_v58 = vrot.slane %v1586_v44, 4  ;;  %v743_v6 = vshll.u32 %v476_v27, 16 }
  0xc2   : > { %v1561_v42 = vsel %vm12616_vm14, %v1556_v20, %v13005_v48  ;;  %v1681_v11 = vsel %vm12616_vm14, %v1676_v50, %v13018_v12  ;;  %v742_v3 = vrot.slane %v740_v52, 7  ;;  %v1916_v20 = vld [vmem:[#allocation2 + $0x20] sm:$0xf]  ;;  %v1592_v16 = vshll.u32 %v1292_v5, 16 }
  0xc3   : > { %v733_v38 = vsel %vm12599_vm12, %v725_v19, %v732_v21  ;;  %v1714_v48 = vunpack.c.l.b16 %v1561_v42  ;;  %v1691_v19 = vsel %vm12616_vm14, %v1686_v59, %v1690_v60  ;;  %v1724_v35 = vunpack.c.l.b16 %v1681_v11  ;;  %v11638_v59 = vld [vmem:[%s16568_s1 + $0x10] sm:$0x3] }
  0xc4   : > { %v1090_v57 = vunpack.c.l.b16 %v733_v38  ;;  %v1725_v36 = vunpack.c.l.b16 %v1691_v19  ;;  %v1977_v27 = vshrl.u32 %v1916_v20, 16  ;;  %v747_v42 = vrot.slane %v742_v3, 4 }
  0xc5   : > { %v1804_v9 = vpop.f32.mrf.mxu2  ;;  %v13016_v28 = vpop.f32.mrf.mxu0  ;;  %v1736_v33 = vpack.c.b16 %v1715_v4, %v1714_v48  ;;  %v1963_v49 = vshrl.u32 %v1914_v30, 16  ;;  %v2790_v48 = vld [vmem:[#allocation2 + $0x1c] sm:$0xf] }
  0xc6   : > { %v13020_v14 = vadd.f32 %v1804_v9, %v1180_v43  ;;  %v1182_v15 = vpop.f32.mrf.mxu1  ;;  %v1582_v43 = vshll.u32 %v1291_v31, 16  ;;  %v11557_v9 = vld [vmem:[%s16568_s1 + $0xe] sm:$0x3]  ;;  %v1111_v29 = vpack.c.b16 %v1090_v57, %v1089_v47  ;;  %v1594_v47 = vrot.slane %v1592_v16, 5 }
  0xc7   : > { %v1183_v13 = vadd.f32 %v1182_v15, %v12937_v10  ;;  %v1740_v10 = vpack.c.b16 %v1723_v18, %v1722_v1  ;;  %v1578_v1 = vrot.slane %v1576_v41, 5  ;;  %v1915_v15 = vld [vmem:[#allocation2 + $0x1c] sm:$0xf]  ;;  %v745_v41 = vor.u32 %v743_v6, %v742_v3 }
  0xc8   : > { %v13024_v32 = vpop.f32.mrf.mxu3  ;;  %v13043_v8 = vrot.slane %v1582_v43, 5  ;;  %v1968_v31 = vshrl.u32 %v1915_v15, 16  ;;  %v1971_v57 = vshll.u32 %v1915_v15, 16  ;;  %v1979_v60 = vrot.slane %v1977_v27, 7  ;;  %v12228_v6 = vld [vmem:[#allocation2 + $0x1c] sm:$0xff] }
  0xc9   : > { %11369 = vmatmul.msk.bf16.gmra.mxu1 %vm927_vm3, %v1110_v61  ;;  %v749_v61 = vshrl.u32 %v477_v39, 16  ;;  %v1579_v24 = vor.u32 %v1578_v1, %v1575_v0  ;;  %v1741_v0 = vpack.c.b16 %v1725_v36, %v1724_v35  ;;  %v2791_v1 = vld [vmem:[#allocation2 + $0x20] sm:$0xf]  ;;  %v11393_v5 = vrot.slane %v1963_v49, 11  ;;  %v3445_v49 = vld [vmem:[#allocation2 + $0x2c] sm:$0x8] }
  0xca   : > { %11386 = vmatmul.msk.bf16.gmra.mxu2 %vm927_vm3, %v1735_v63  ;;  %v475_v63 = vld [vmem:[#allocation2 + $0xe0] sm:$0x8]  ;;  %v1589_v12 = vor.u32 %v1588_v58, %v13043_v8  ;;  %v2839_v11 = vshrl.u32 %v2790_v48, 16  ;;  %v2842_v3 = vshll.u32 %v2790_v48, 16  ;;  %v2848_v19 = vshll.u32 %v2791_v1, 16 }
  0xcb   : > { %v735_v21 = vshrl.u32 %v475_v63, 16  ;;  %v751_v23 = vrot.slane %v749_v61, 7  ;;  %v1980_v61 = vshll.u32 %v1916_v20, 16 }
  0xcc   : > { %v1590_v52 = vrot.slane %v1589_v12, 4  ;;  %v2841_v27 = vrot.slane %v2839_v11, 4 }
  0xcd   : > { %v1807_v53 = vpop.f32.mrf.mxu2  ;;  %v13037_v56 = vpop.f32.mrf.mxu0  ;;  %11391 = vmatmul.msk.bf16.gmra.mxu3 %vm927_vm3, %v1740_v10  ;;  %v11274_v40 = vrot.slane %v735_v21, 11  ;;  %v2852_v21 = vshrl.u32 %v2791_v1, 16  ;;  %v3494_v1 = vshrl.u32 %v3445_v49, 16 }
  0xce   : > { %v13039_v17 = vadd.f32 %v1807_v53, %v1183_v13  ;;  %v1184_v62 = vpop.f32.mrf.mxu1  ;;  %v752_v13 = vshll.u32 %v477_v39, 16  ;;  %v1970_v53 = vrot.slane %v1968_v31, 7  ;;  %v1595_v58 = vsel %vm12616_vm14, %v1590_v52, %v1594_v47  ;;  %v3447_v31 = vld [vmem:[#allocation2 + $0x34] sm:$0xf] }
  0xcf   : > { %v1185_v2 = vadd.f32 %v1184_v62, %v12960_v51  ;;  %v4198_v51 = vsel %vm976_vm0, %v11557_v9, 0  ;;  %v4852_v62 = vsel %vm976_vm0, %v11638_v59, 0  ;;  %v1717_v30 = vunpack.c.l.b16 %v1595_v58 }
  0xd0   : > { %11355 = vmatmul.msk.bf16.gmra.mxu0 %vm927_vm3, %v12223_v46  ;;  %v13053_v18 = vpop.f32.mrf.mxu3  ;;  %4207 = vmatpush.bf16.msra.mxu3 %v4198_v51  ;;  %v754_v39 = vor.u32 %v752_v13, %v751_v23  ;;  %v1580_v46 = vrot.slane %v1579_v24, 4  ;;  %v1973_v9 = vor.u32 %v1971_v57, %v1970_v53  ;;  %v1975_v15 = vrot.slane %v1970_v53, 4  ;;  %v3446_v24 = vld [vmem:[#allocation2 + $0x30] sm:$0xf]  ;;  %v1917_v57 = vld [vmem:[#allocation2 + $0x2c] sm:$0x8] }
  0xd1   : > { %4861 = vmatpush.bf16.msra.mxu0 %v4852_v62  ;;  %v1982_v51 = vor.u32 %v1980_v61, %v1979_v60  ;;  %v1985_v11 = vshrl.u32 %v1917_v57, 16 }
  0xd2   : > { %v1585_v4 = vsel %vm12616_vm14, %v1580_v46, %v13043_v8  ;;  %v1974_v36 = vsel %vm12599_vm12, %v11393_v5, %v1973_v9  ;;  %v3499_v46 = vshrl.u32 %v3446_v24, 16  ;;  %v3511_v9 = vshll.u32 %v3447_v31, 16 }
  0xd3   : > { %v1716_v12 = vunpack.c.l.b16 %v1585_v4  ;;  %v2316_v60 = vunpack.c.l.b16 %v1974_v36  ;;  %v2794_v36 = vld [vmem:[#allocation2 + $0x34] sm:$0xf] }
  0xd4   : > { %v2876_v49 = vshrl.u32 %v2794_v36, 16 }
  0xd5   : > { %v1809_v10 = vpop.f32.mrf.mxu2  ;;  %v13058_v38 = vpop.f32.mrf.mxu0  ;;  %v1737_v53 = vpack.c.b16 %v1717_v30, %v1716_v12  ;;  %v11524_v30 = vrot.slane %v3494_v1, 11 }
  0xd6   : > { %v13060_v43 = vadd.f32 %v1809_v10, %v1185_v2  ;;  %v1187_v44 = vpop.f32.mrf.mxu1  ;;  %v755_v2 = vsel %vm12599_vm12, %v747_v42, %v754_v39  ;;  %v2844_v10 = vrot.slane %v2842_v3, 5  ;;  %v2792_v42 = vld [vmem:[#allocation2 + $0x24] sm:$0x1]  ;;  %v13091_v39 = vrot.slane %v2848_v19, 5 }
  0xd7   : > { %v1188_v50 = vadd.f32 %v1187_v44, %v12990_v26  ;;  %v746_v26 = vsel %vm12599_vm12, %v11274_v40, %v745_v41  ;;  %v1092_v20 = vunpack.c.l.b16 %v755_v2  ;;  %v1919_v40 = vld [vmem:[#allocation2 + $0x34] sm:$0xf]  ;;  %v1983_v41 = vsel %vm12599_vm12, %v1975_v15, %v1982_v51 }
  0xd8   : > { %v13068_v63 = vpop.f32.mrf.mxu3  ;;  %v2854_v44 = vrot.slane %v2852_v21, 4  ;;  %v1999_v59 = vshrl.u32 %v1919_v40, 16  ;;  %v2317_v61 = vunpack.c.l.b16 %v1983_v41  ;;  %v2845_v62 = vor.u32 %v2844_v10, %v2841_v27 }
  0xd9   : > { %11370 = vmatmul.msk.bf16.gmra.mxu1 %vm927_vm3, %v1111_v29  ;;  %v1091_v29 = vunpack.c.l.b16 %v746_v26  ;;  %v2858_v48 = vshll.u32 %v2792_v42, 16  ;;  %v3501_v26 = vrot.slane %v3499_v46, 7  ;;  %v3502_v2 = vshll.u32 %v3446_v24, 16 }
  0xda   : > { %11387 = vmatmul.msk.bf16.gmra.mxu2 %vm927_vm3, %v1736_v33  ;;  %v1918_v33 = vld [vmem:[#allocation2 + $0x30] sm:$0xf]  ;;  %v2001_v19 = vrot.slane %v1999_v59, 7  ;;  %v2002_v21 = vshll.u32 %v1919_v40, 16  ;;  %v11394_v41 = vrot.slane %v1985_v11, 11  ;;  %v2872_v46 = vshll.u32 %v2794_v36, 16 }
  0xdb   : > { %v1112_v52 = vpack.c.b16 %v1092_v20, %v1091_v29  ;;  %v1993_v51 = vshll.u32 %v1918_v33, 16  ;;  %v2348_v20 = vpack.c.b16 %v2317_v61, %v2316_v60  ;;  %v2846_v29 = vrot.slane %v2845_v62, 4  ;;  %v3449_v61 = vld [vmem:[#allocation2 + $0x44] sm:$0xf]  ;;  %v2795_v11 = vld [vmem:[#allocation2 + $0x38] sm:$0x1] }
  0xdc   : > { %v2860_v24 = vrot.slane %v2858_v48, 5  ;;  %v3504_v27 = vor.u32 %v3502_v2, %v3501_v26 }
  0xdd   : > { %v1812_v23 = vpop.f32.mrf.mxu2  ;;  %v13080_v13 = vpop.f32.mrf.mxu0  ;;  %11392 = vmatmul.msk.bf16.gmra.mxu3 %vm927_vm3, %v1741_v0  ;;  %v2855_v0 = vor.u32 %v2854_v44, %v13091_v39 }
  0xde   : > { %v13082_v16 = vadd.f32 %v1812_v23, %v1188_v50  ;;  %v1189_v8 = vpop.f32.mrf.mxu1  ;;  %v1990_v50 = vshrl.u32 %v1918_v33, 16 }
  0xdf   : > { %v1190_v35 = vadd.f32 %v1189_v8, %v13016_v28  ;;  %v3508_v28 = vshrl.u32 %v3447_v31, 16  ;;  %v2793_v8 = vld [vmem:[#allocation2 + $0x30] sm:$0xf]  ;;  %v2856_v12 = vrot.slane %v2855_v0, 4 }
  0xe0   : > { %11491 = vmatmul.msk.bf16.vlgmr.msrb.gmra.mxu0 %vm927_vm3, %v12228_v6  ;;  %v13093_v47 = vpop.f32.mrf.mxu3  ;;  %v1992_v3 = vrot.slane %v1990_v50, 7  ;;  %v2863_v42 = vshrl.u32 %v2793_v8, 16  ;;  %v2866_v44 = vshll.u32 %v2793_v8, 16 }
  0xe1   : > { %v3510_v58 = vrot.slane %v3508_v28, 7  ;;  %v12229_v28 = vld [vmem:[#allocation2 + $0x30] sm:$0xff]  ;;  %v2861_v59 = vsel %vm12616_vm14, %v2856_v12, %v2860_v24  ;;  %v1921_v24 = vld [vmem:[#allocation2 + $0x44] sm:$0xf] }
  0xe2   : > { %v1995_v33 = vor.u32 %v1993_v51, %v1992_v3  ;;  %v1997_v40 = vrot.slane %v1992_v3, 4  ;;  %v2865_v1 = vrot.slane %v2863_v42, 4  ;;  %v2868_v2 = vrot.slane %v2866_v44, 5 }
  0xe3   : > { %v3513_v10 = vor.u32 %v3511_v9, %v3510_v58  ;;  %v2878_v58 = vrot.slane %v2876_v49, 4  ;;  %v3450_v9 = vld [vmem:[#allocation2 + $0x48] sm:$0xf]  ;;  %v3521_v3 = vshrl.u32 %v3449_v61, 16 }
  0xe4   : > { %v1996_v0 = vsel %vm12599_vm12, %v11394_v41, %v1995_v33  ;;  %v3530_v12 = vshrl.u32 %v3450_v9, 16  ;;  %v2869_v36 = vor.u32 %v2868_v2, %v2865_v1  ;;  %v3524_v33 = vshll.u32 %v3449_v61, 16  ;;  %v2796_v61 = vld [vmem:[#allocation2 + $0x44] sm:$0xf] }
  0xe5   : > { %v1814_v4 = vpop.f32.mrf.mxu2  ;;  %v13096_v5 = vpop.f32.mrf.mxu0  ;;  %v3523_v41 = vrot.slane %v3521_v3, 7  ;;  %v2797_v3 = vld [vmem:[#allocation2 + $0x48] sm:$0xf] }
  0xe6   : > { %v13098_v6 = vadd.f32 %v1814_v4, %v1190_v35  ;;  %v1192_v15 = vpop.f32.mrf.mxu1  ;;  %v3506_v35 = vrot.slane %v3501_v26, 4  ;;  %v13124_v4 = vrot.slane %v2872_v46, 5  ;;  %v1920_v46 = vld [vmem:[#allocation2 + $0x40] sm:$0x8] }
  0xe7   : > { %v1193_v23 = vadd.f32 %v1192_v15, %v13037_v56  ;;  %v2004_v56 = vor.u32 %v2002_v21, %v2001_v19  ;;  %v3225_v19 = vunpack.c.l.b16 %v2861_v59  ;;  %v3532_v59 = vrot.slane %v3530_v12, 7  ;;  %v12230_v12 = vld [vmem:[#allocation2 + $0x44] sm:$0xff] }
  0xe8   : > { %v13102_v31 = vpop.f32.mrf.mxu3  ;;  %v3514_v60 = vsel %vm12599_vm12, %v3506_v35, %v3513_v10  ;;  %v2882_v35 = vshll.u32 %v2795_v11, 16  ;;  %v3526_v2 = vor.u32 %v3524_v33, %v3523_v41  ;;  %v2007_v11 = vshrl.u32 %v1920_v46, 16 }
  0xe9   : > { %11371 = vmatmul.msk.bf16.gmra.mxu1 %vm927_vm3, %v1112_v52  ;;  %v2851_v52 = vsel %vm12616_vm14, %v2846_v29, %v13091_v39  ;;  %v2005_v39 = vsel %vm12599_vm12, %v1997_v40, %v2004_v56  ;;  %v2318_v29 = vunpack.c.l.b16 %v1996_v0 }
  0xea   : > { %11388 = vmatmul.msk.bf16.gmra.mxu2 %vm927_vm3, %v1737_v53  ;;  %v3505_v53 = vsel %vm12599_vm12, %v11524_v30, %v3504_v27  ;;  %v3224_v51 = vunpack.c.l.b16 %v2851_v52  ;;  %v1922_v30 = vld [vmem:[#allocation2 + $0x48] sm:$0xf]  ;;  %v2879_v27 = vor.u32 %v2878_v58, %v13124_v4  ;;  %v3528_v58 = vrot.slane %v3523_v41, 4 }
  0xeb   : > { %v3847_v21 = vunpack.c.l.b16 %v3505_v53  ;;  %v2021_v49 = vshrl.u32 %v1922_v30, 16  ;;  %v3533_v53 = vshll.u32 %v3450_v9, 16 }
  0xec   : > { %v3256_v56 = vpack.c.b16 %v3225_v19, %v3224_v51  ;;  %v2880_v0 = vrot.slane %v2879_v27, 4  ;;  %v2015_v51 = vshll.u32 %v1921_v24, 16  ;;  %v3452_v27 = vld [vmem:[#allocation2 + $0x58] sm:$0xf] }
  0xed   : > { %v1817_v50 = vpop.f32.mrf.mxu2  ;;  %v13105_v57 = vpop.f32.mrf.mxu0  ;;  %11410 = vmatmul.msk.bf16.vlgmr.msrb.gmra.mxu3 %vm927_vm3, %v2348_v20  ;;  %v3448_v20 = vld [vmem:[#allocation2 + $0x40] sm:$0x8]  ;;  %v2023_v19 = vrot.slane %v2021_v49, 7  ;;  %v3535_v9 = vor.u32 %v3533_v53, %v3532_v59 }
  0xee   : > { %v13116_v62 = vadd.f32 %v1817_v50, %v1193_v23  ;;  %v1194_v48 = vpop.f32.mrf.mxu1  ;;  %v3848_v23 = vunpack.c.l.b16 %v3514_v60  ;;  %v3516_v10 = vshrl.u32 %v3448_v20, 16  ;;  %v2890_v20 = vshll.u32 %v2796_v61, 16 }
  0xef   : > { %v1195_v26 = vadd.f32 %v1194_v48, %v13058_v38  ;;  %v2319_v38 = vunpack.c.l.b16 %v2005_v39  ;;  %v2870_v48 = vrot.slane %v2869_v36, 4  ;;  %v2884_v39 = vrot.slane %v2882_v35, 5 }
  0xf0   : > { %11492 = vmatmul.msk.bf16.gmra.mxu0 %vm927_vm3, %v12229_v28  ;;  %v1237_v15 = vpop.f32.mrf.mxu3  ;;  %v3879_v42 = vpack.c.b16 %v3848_v23, %v3847_v21  ;;  %v11525_v1 = vrot.slane %v3516_v10, 11  ;;  %v2024_v21 = vshll.u32 %v1922_v30, 16  ;;  %v2887_v23 = vshrl.u32 %v2796_v61, 16 }
  0xf1   : > { %v13128_v8 = vadd.f32 %v1237_v15, %v12956_v34  ;;  %v2012_v34 = vshrl.u32 %v1921_v24, 16  ;;  %v2349_v52 = vpack.c.b16 %v2319_v38, %v2318_v29  ;;  %v2896_v29 = vshll.u32 %v2797_v3, 16 }
  0xf2   : > { %v2900_v38 = vshrl.u32 %v2797_v3, 16  ;;  %v2875_v36 = vsel %vm12616_vm14, %v2870_v48, %v13124_v4  ;;  %v2885_v24 = vsel %vm12616_vm14, %v2880_v0, %v2884_v39  ;;  %v3527_v30 = vsel %vm12599_vm12, %v11525_v1, %v3526_v2  ;;  %v3451_v0 = vld [vmem:[#allocation2 + $0x54] sm:$0x8] }
  0xf3   : > { %v11395_v10 = vrot.slane %v2007_v11, 11  ;;  %v3536_v4 = vsel %vm12599_vm12, %v3528_v58, %v3535_v9  ;;  %v2889_v49 = vrot.slane %v2887_v23, 4  ;;  %v13156_v53 = vrot.slane %v2896_v29, 5 }
  0xf4   : > { %v2902_v48 = vrot.slane %v2900_v38, 4  ;;  %v3543_v39 = vshrl.u32 %v3452_v27, 16  ;;  %v3227_v61 = vunpack.c.l.b16 %v2885_v24  ;;  %v3850_v11 = vunpack.c.l.b16 %v3536_v4 }
  0xf5   : > { %v1819_v40 = vpop.f32.mrf.mxu2  ;;  %v13131_v44 = vpop.f32.mrf.mxu0 }
  0xf6   : > { %v13133_v28 = vadd.f32 %v1819_v40, %v1195_v26  ;;  %v1197_v50 = vpop.f32.mrf.mxu1  ;;  %v2014_v26 = vrot.slane %v2012_v34, 7  ;;  %v2026_v40 = vor.u32 %v2024_v21, %v2023_v19  ;;  %v2798_v34 = vld [vmem:[#allocation2 + $0x4c] sm:$0x1]  ;;  %v3538_v19 = vshrl.u32 %v3451_v0, 16  ;;  %v1925_v21 = vld [vmem:[#allocation2 + $0x5c] sm:$0xf] }
  0xf7   : > { %v1198_v60 = vadd.f32 %v1197_v50, %v13080_v13  ;;  %v2892_v50 = vrot.slane %v2890_v20, 5  ;;  %v2903_v9 = vor.u32 %v2902_v48, %v13156_v53  ;;  %v3545_v23 = vrot.slane %v3543_v39, 7  ;;  %v2800_v39 = vld [vmem:[#allocation2 + $0x5c] sm:$0xf] }
  0xf8   : > { %v1239_v15 = vpop.f32.mrf.mxu3  ;;  %v2017_v41 = vor.u32 %v2015_v51, %v2014_v26  ;;  %v2019_v33 = vrot.slane %v2014_v26, 4  ;;  %v2906_v51 = vshll.u32 %v2798_v34, 16  ;;  %v3546_v20 = vshll.u32 %v3452_v27, 16 }
  0xf9   : > { %11508 = vmatmul.msk.bf16.vlgmr.msrb.gmra.mxu1 %vm927_vm3, %v3256_v56  ;;  %v13139_v13 = vadd.f32 %v1239_v15, %v12970_v7  ;;  %v3453_v56 = vld [vmem:[#allocation2 + $0x5c] sm:$0xf]  ;;  %v2893_v26 = vor.u32 %v2892_v50, %v2889_v49  ;;  %v11526_v49 = vrot.slane %v3538_v19, 11  ;;  %v2799_v50 = vld [vmem:[#allocation2 + $0x58] sm:$0xf]  ;;  %v2904_v48 = vrot.slane %v2903_v9, 4 }
  0xfa   : > { %11541 = vmatmul.msk.bf16.vlgmr.msrb.gmra.mxu2 %vm927_vm3, %v3879_v42  ;;  %v3552_v1 = vshrl.u32 %v3453_v56, 16  ;;  %v2018_v58 = vsel %vm12599_vm12, %v11395_v10, %v2017_v41  ;;  %v2027_v3 = vsel %vm12599_vm12, %v2019_v33, %v2026_v40  ;;  %v2043_v33 = vshrl.u32 %v1925_v21, 16 }
  0xfb   : > { %v2320_v10 = vunpack.c.l.b16 %v2018_v58  ;;  %v2321_v41 = vunpack.c.l.b16 %v2027_v3  ;;  %v2894_v4 = vrot.slane %v2893_v26, 4  ;;  %v2908_v34 = vrot.slane %v2906_v51, 5 }
  0xfc   : > { %v3554_v38 = vrot.slane %v3552_v1, 7  ;;  %v3550_v0 = vrot.slane %v3545_v23, 4  ;;  %v2911_v58 = vshrl.u32 %v2799_v50, 16  ;;  %v2914_v3 = vshll.u32 %v2799_v50, 16 }
  0xfd   : > { %v1822_v35 = vpop.f32.mrf.mxu2  ;;  %v13148_v7 = vpop.f32.mrf.mxu0  ;;  %11411 = vmatmul.msk.bf16.gmra.mxu3 %vm927_vm3, %v2349_v52  ;;  %v3849_v52 = vunpack.c.l.b16 %v3527_v30  ;;  %v2920_v51 = vshll.u32 %v2800_v39, 16  ;;  %v2924_v19 = vshrl.u32 %v2800_v39, 16  ;;  %v2899_v9 = vsel %vm12616_vm14, %v2894_v4, %v13156_v53  ;;  %v2801_v53 = vld [vmem:[#allocation2 + $0x60] sm:$0x1] }
  0xfe   : > { %v13150_v42 = vadd.f32 %v1822_v35, %v1198_v60  ;;  %v1199_v46 = vpop.f32.mrf.mxu1  ;;  %v3226_v60 = vunpack.c.l.b16 %v2875_v36 }
  0xff   : > { %v1200_v59 = vadd.f32 %v1199_v46, %v13096_v5  ;;  %v1924_v5 = vld [vmem:[#allocation2 + $0x58] sm:$0xf]  ;;  %v3880_v30 = vpack.c.b16 %v3850_v11, %v3849_v52  ;;  %v2046_v11 = vshll.u32 %v1925_v21, 16  ;;  %v13191_v4 = vrot.slane %v2920_v51, 5 }
 0x100   : > { %11493 = vmatmul.msk.bf16.gmra.mxu0 %vm927_vm3, %v12230_v12  ;;  %v1242_v2 = vpop.f32.mrf.mxu3  ;;  %v3257_v29 = vpack.c.b16 %v3227_v61, %v3226_v60  ;;  %v3555_v12 = vshll.u32 %v3453_v56, 16  ;;  %v2034_v36 = vshrl.u32 %v1924_v5, 16  ;;  %v3548_v56 = vor.u32 %v3546_v20, %v3545_v23  ;;  %v3455_v23 = vld [vmem:[#allocation2 + $0x6c] sm:$0xf]  ;;  %v12231_v20 = vld [vmem:[#allocation2 + $0x58] sm:$0xff] }
 0x101   : > { %v13164_v15 = vadd.f32 %v1242_v2, %v13007_v54  ;;  %v1923_v54 = vld [vmem:[#allocation2 + $0x54] sm:$0x8]  ;;  %v2037_v2 = vshll.u32 %v1924_v5, 16  ;;  %v2909_v5 = vsel %vm12616_vm14, %v2904_v48, %v2908_v34  ;;  %v2926_v34 = vrot.slane %v2924_v19, 4 }
 0x102   : > { %v3557_v60 = vor.u32 %v3555_v12, %v3554_v38  ;;  %v2029_v61 = vshrl.u32 %v1923_v54, 16  ;;  %v2036_v1 = vrot.slane %v2034_v36, 7  ;;  %v3549_v21 = vsel %vm12599_vm12, %v11526_v49, %v3548_v56  ;;  %v3456_v12 = vld [vmem:[#allocation2 + $0x70] sm:$0xf]  ;;  %v3454_v49 = vld [vmem:[#allocation2 + $0x68] sm:$0x8] }
 0x103   : > { %v2916_v54 = vrot.slane %v2914_v3, 5  ;;  %v3565_v50 = vshrl.u32 %v3455_v23, 16  ;;  %v3228_v56 = vunpack.c.l.b16 %v2899_v9  ;;  %v3229_v39 = vunpack.c.l.b16 %v2909_v5  ;;  %v1928_v3 = vld [vmem:[#allocation2 + $0x70] sm:$0xf] }
 0x104   : > { %v2039_v38 = vor.u32 %v2037_v2, %v2036_v1  ;;  %v3568_v19 = vshll.u32 %v3455_v23, 16  ;;  %v3577_v5 = vshll.u32 %v3456_v12, 16 }
 0x105   : > { %v1824_v24 = vpop.f32.mrf.mxu2  ;;  %v13167_v35 = vpop.f32.mrf.mxu0  ;;  %v3567_v51 = vrot.slane %v3565_v50, 7  ;;  %v2802_v50 = vld [vmem:[#allocation2 + $0x6c] sm:$0xf] }
 0x106   : > { %v13169_v40 = vadd.f32 %v1824_v24, %v1200_v59  ;;  %v1202_v46 = vpop.f32.mrf.mxu1  ;;  %v2045_v59 = vrot.slane %v2043_v33, 7 }
 0x107   : > { %v1203_v27 = vadd.f32 %v1202_v46, %v13105_v57  ;;  %v2350_v57 = vpack.c.b16 %v2321_v41, %v2320_v10  ;;  %v2913_v41 = vrot.slane %v2911_v58, 4  ;;  %v1927_v58 = vld [vmem:[#allocation2 + $0x6c] sm:$0xf]  ;;  %v3570_v23 = vor.u32 %v3568_v19, %v3567_v51 }
 0x108   : > { %v1244_v52 = vpop.f32.mrf.mxu3  ;;  %v2048_v10 = vor.u32 %v2046_v11, %v2045_v59  ;;  %v2930_v59 = vshll.u32 %v2801_v53, 16  ;;  %v3560_v11 = vshrl.u32 %v3454_v49, 16 }
 0x109   : > { %11509 = vmatmul.msk.bf16.gmra.mxu1 %vm927_vm3, %v3257_v29  ;;  %v13175_v26 = vadd.f32 %v1244_v52, %v13024_v32  ;;  %v3558_v29 = vsel %vm12599_vm12, %v3550_v0, %v3557_v60  ;;  %v11396_v32 = vrot.slane %v2029_v61, 11  ;;  %v3574_v0 = vshrl.u32 %v3456_v12, 16  ;;  %v2803_v12 = vld [vmem:[#allocation2 + $0x70] sm:$0xf] }
 0x10a   : > { %11542 = vmatmul.msk.bf16.gmra.mxu2 %vm927_vm3, %v3880_v30  ;;  %v2041_v30 = vrot.slane %v2036_v1, 4  ;;  %v3851_v60 = vunpack.c.l.b16 %v3549_v21  ;;  %v3852_v61 = vunpack.c.l.b16 %v3558_v29  ;;  %v2917_v52 = vor.u32 %v2916_v54, %v2913_v41  ;;  %v1926_v29 = vld [vmem:[#allocation2 + $0x68] sm:$0x8] }
 0x10b   : > { %v3576_v9 = vrot.slane %v3574_v0, 7  ;;  %v2932_v54 = vrot.slane %v2930_v59, 5  ;;  %v11527_v49 = vrot.slane %v3560_v11, 11  ;;  %v3572_v0 = vrot.slane %v3567_v51, 4 }
 0x10c   : > { %v2049_v2 = vsel %vm12599_vm12, %v2041_v30, %v2048_v10  ;;  %v3881_v21 = vpack.c.b16 %v3852_v61, %v3851_v60  ;;  %v2918_v41 = vrot.slane %v2917_v52, 4  ;;  %v2051_v60 = vshrl.u32 %v1926_v29, 16  ;;  %v3458_v29 = vld [vmem:[#allocation2 + $0x80] sm:$0xf] }
 0x10d   : > { %v1827_v36 = vpop.f32.mrf.mxu2  ;;  %v13186_v24 = vpop.f32.mrf.mxu0  ;;  %11412 = vmatmul.msk.bf16.gmra.mxu3 %vm927_vm3, %v2350_v57  ;;  %v2927_v57 = vor.u32 %v2926_v34, %v13191_v4  ;;  %v2323_v53 = vunpack.c.l.b16 %v2049_v2  ;;  %v2938_v52 = vshll.u32 %v2802_v50, 16  ;;  %v2944_v59 = vshll.u32 %v2803_v12, 16 }
 0x10e   : > { %v13188_v33 = vadd.f32 %v1827_v36, %v1203_v27  ;;  %v1204_v46 = vpop.f32.mrf.mxu1  ;;  %v2040_v27 = vsel %vm12599_vm12, %v11396_v32, %v2039_v38  ;;  %v2056_v32 = vshrl.u32 %v1927_v58, 16  ;;  %v2065_v38 = vshrl.u32 %v1928_v3, 16 }
 0x10f   : > { %v1205_v48 = vadd.f32 %v1204_v46, %v13131_v44  ;;  %v2322_v10 = vunpack.c.l.b16 %v2040_v27  ;;  %v2928_v34 = vrot.slane %v2927_v57, 4  ;;  %v2068_v27 = vshll.u32 %v1928_v3, 16 }
 0x110   : > { %16588 = vst [vmem:[#allocation7_spill] sm:$0xff] %v13188_v33  ;;  %11494 = vmatmul.msk.bf16.gmra.mxu0 %vm927_vm3, %v12231_v20  ;;  %v1247_v1 = vpop.f32.mrf.mxu3  ;;  %v3258_v20 = vpack.c.b16 %v3229_v39, %v3228_v56  ;;  %v3579_v39 = vor.u32 %v3577_v5, %v3576_v9  ;;  %v2058_v61 = vrot.slane %v2056_v32, 7  ;;  %v2067_v33 = vrot.slane %v2065_v38, 7  ;;  %v12232_v9 = vld [vmem:[#allocation2 + $0x6c] sm:$0xff]  ;;  %v3459_v32 = vld [vmem:[#allocation2 + $0x84] sm:$0xf] }
 0x111   : > { %v13200_v44 = vadd.f32 %v1247_v1, %v13053_v18  ;;  %v2059_v1 = vshll.u32 %v1927_v58, 16  ;;  %v2948_v57 = vshrl.u32 %v2803_v12, 16  ;;  %v2923_v51 = vsel %vm12616_vm14, %v2918_v41, %v13191_v4 }
 0x112   : > { %v2933_v58 = vsel %vm12616_vm14, %v2928_v34, %v2932_v54  ;;  %v3571_v3 = vsel %vm12599_vm12, %v11527_v49, %v3570_v23  ;;  %v11397_v19 = vrot.slane %v2051_v60, 11  ;;  %v3580_v5 = vsel %vm12599_vm12, %v3572_v0, %v3579_v39  ;;  %v2804_v23 = vld [vmem:[#allocation2 + $0x74] sm:$0x1]  ;;  %v1930_v39 = vld [vmem:[#allocation2 + $0x80] sm:$0xf] }
 0x113   : > { %v2950_v41 = vrot.slane %v2948_v57, 4  ;;  %v3230_v34 = vunpack.c.l.b16 %v2923_v51  ;;  %v3231_v49 = vunpack.c.l.b16 %v2933_v58  ;;  %v3587_v12 = vshrl.u32 %v3458_v29, 16 }
 0x114   : > { %v3596_v0 = vshrl.u32 %v3459_v32, 16  ;;  %v3853_v60 = vunpack.c.l.b16 %v3571_v3  ;;  %v2078_v51 = vshrl.u32 %v1930_v39, 16  ;;  %v3590_v3 = vshll.u32 %v3458_v29, 16 }
 0x115   : > { %v1829_v36 = vpop.f32.mrf.mxu2  ;;  %v13203_v30 = vpop.f32.mrf.mxu0  ;;  %v3589_v58 = vrot.slane %v3587_v12, 7  ;;  %v2081_v12 = vshll.u32 %v1930_v39, 16 }
 0x116   : > { %v13205_v18 = vadd.f32 %v1829_v36, %v1205_v48  ;;  %v1207_v46 = vpop.f32.mrf.mxu1  ;;  %v2935_v48 = vshrl.u32 %v2802_v50, 16  ;;  %v3457_v50 = vld [vmem:[#allocation2 + $0x7c] sm:$0x8]  ;;  %v2080_v29 = vrot.slane %v2078_v51, 7 }
 0x117   : > { %v1208_v56 = vadd.f32 %v1207_v46, %v13148_v7  ;;  %v2351_v7 = vpack.c.b16 %v2323_v53, %v2322_v10  ;;  %v2940_v10 = vrot.slane %v2938_v52, 5  ;;  %v13224_v53 = vrot.slane %v2944_v59, 5 }
 0x118   : > { %16589 = vst [vmem:[#allocation8_spill] sm:$0xff] %v13205_v18  ;;  %v1249_v2 = vpop.f32.mrf.mxu3  ;;  %v2937_v4 = vrot.slane %v2935_v48, 4  ;;  %v2954_v52 = vshll.u32 %v2804_v23, 16  ;;  %v3582_v59 = vshrl.u32 %v3457_v50, 16 }
 0x119   : > { %11510 = vmatmul.msk.bf16.gmra.mxu1 %vm927_vm3, %v3258_v20  ;;  %v13211_v11 = vadd.f32 %v1249_v2, %v13068_v63  ;;  %v2061_v20 = vor.u32 %v2059_v1, %v2058_v61  ;;  %v2070_v63 = vor.u32 %v2068_v27, %v2067_v33  ;;  %v2951_v48 = vor.u32 %v2950_v41, %v13224_v53 }
 0x11a   : > { %11543 = vmatmul.msk.bf16.gmra.mxu2 %vm927_vm3, %v3881_v21  ;;  %v2063_v21 = vrot.slane %v2058_v61, 4  ;;  %v3854_v61 = vunpack.c.l.b16 %v3580_v5  ;;  %v2941_v2 = vor.u32 %v2940_v10, %v2937_v4  ;;  %v3599_v5 = vshll.u32 %v3459_v32, 16 }
 0x11b   : > { %v2956_v23 = vrot.slane %v2954_v52, 5  ;;  %v11528_v50 = vrot.slane %v3582_v59, 11 }
 0x11c   : > { %v2071_v1 = vsel %vm12599_vm12, %v2063_v21, %v2070_v63  ;;  %v2942_v41 = vrot.slane %v2941_v2, 4 }
 0x11d   : > { %v1832_v38 = vpop.f32.mrf.mxu2  ;;  %v13222_v36 = vpop.f32.mrf.mxu0  ;;  %11413 = vmatmul.msk.bf16.gmra.mxu3 %vm927_vm3, %v2351_v7  ;;  %v3259_v7 = vpack.c.b16 %v3231_v49, %v3230_v34  ;;  %v2325_v21 = vunpack.c.l.b16 %v2071_v1 }
 0x11e   : > { %v13226_v54 = vadd.f32 %v1832_v38, %v1208_v56  ;;  %v1209_v46 = vpop.f32.mrf.mxu1  ;;  %v2062_v56 = vsel %vm12599_vm12, %v11397_v19, %v2061_v20  ;;  %v1929_v19 = vld [vmem:[#allocation2 + $0x7c] sm:$0x8]  ;;  %v3882_v20 = vpack.c.b16 %v3854_v61, %v3853_v60  ;;  %v3594_v60 = vrot.slane %v3589_v58, 4 }
 0x11f   : > { %v1210_v33 = vadd.f32 %v1209_v46, %v13167_v35  ;;  %v1931_v35 = vld [vmem:[#allocation2 + $0x84] sm:$0xf]  ;;  %v2324_v38 = vunpack.c.l.b16 %v2062_v56  ;;  %v2952_v46 = vrot.slane %v2951_v48, 4  ;;  %v2073_v49 = vshrl.u32 %v1929_v19, 16 }
 0x120   : > { %16590 = vst [vmem:[#allocation9_spill] sm:$0xff] %v13226_v54  ;;  %11495 = vmatmul.msk.bf16.gmra.mxu0 %vm927_vm3, %v12232_v9  ;;  %v1252_v27 = vpop.f32.mrf.mxu3  ;;  %v3598_v9 = vrot.slane %v3596_v0, 7  ;;  %v2087_v63 = vshrl.u32 %v1931_v35, 16  ;;  %v3592_v0 = vor.u32 %v3590_v3, %v3589_v58  ;;  %v2090_v1 = vshll.u32 %v1931_v35, 16  ;;  %v2806_v54 = vld [vmem:[#allocation2 + $0x84] sm:$0xf] }
 0x121   : > { %v13237_v57 = vadd.f32 %v1252_v27, %v13093_v47  ;;  %v2805_v47 = vld [vmem:[#allocation2 + $0x80] sm:$0xf]  ;;  %v2352_v52 = vpack.c.b16 %v2325_v21, %v2324_v38  ;;  %v2957_v39 = vsel %vm12616_vm14, %v2952_v46, %v2956_v23  ;;  %v11398_v59 = vrot.slane %v2073_v49, 11 }
 0x122   : > { %v3601_v61 = vor.u32 %v3599_v5, %v3598_v9  ;;  %v2089_v56 = vrot.slane %v2087_v63, 7  ;;  %v2959_v18 = vshrl.u32 %v2805_v47, 16  ;;  %v2962_v2 = vshll.u32 %v2805_v47, 16  ;;  %v12233_v9 = vld [vmem:[#allocation2 + $0x80] sm:$0xff] }
 0x123   : > { %v2083_v35 = vor.u32 %v2081_v12, %v2080_v29  ;;  %v3593_v51 = vsel %vm12599_vm12, %v11528_v50, %v3592_v0  ;;  %v2968_v58 = vshll.u32 %v2806_v54, 16  ;;  %v2972_v3 = vshrl.u32 %v2806_v54, 16  ;;  %v3460_v12 = vld [vmem:[#allocation2 + $0x90] sm:$0x8] }
 0x124   : > { %v2092_v5 = vor.u32 %v2090_v1, %v2089_v56  ;;  %v2961_v19 = vrot.slane %v2959_v18, 4  ;;  %v3855_v50 = vunpack.c.l.b16 %v3593_v51 }
 0x125   : > { %v1834_v4 = vpop.f32.mrf.mxu2  ;;  %v13239_v10 = vpop.f32.mrf.mxu0  ;;  %v2084_v54 = vsel %vm12599_vm12, %v11398_v59, %v2083_v35  ;;  %v13266_v49 = vrot.slane %v2968_v58, 5  ;;  %v3604_v59 = vshrl.u32 %v3460_v12, 16  ;;  %v2808_v35 = vld [vmem:[#allocation2 + $0x94] sm:$0xf] }
 0x126   : > { %v13241_v27 = vadd.f32 %v1834_v4, %v1210_v33  ;;  %v1212_v34 = vpop.f32.mrf.mxu1  ;;  %v2947_v33 = vsel %vm12616_vm14, %v2942_v41, %v13224_v53  ;;  %v2085_v53 = vrot.slane %v2080_v29, 4  ;;  %v3233_v4 = vunpack.c.l.b16 %v2957_v39  ;;  %v2807_v41 = vld [vmem:[#allocation2 + $0x88] sm:$0x1] }
 0x127   : > { %v1213_v32 = vadd.f32 %v1212_v34, %v13186_v24  ;;  %v3232_v63 = vunpack.c.l.b16 %v2947_v33  ;;  %v3462_v34 = vld [vmem:[#allocation2 + $0x98] sm:$0xf]  ;;  %v2974_v29 = vrot.slane %v2972_v3, 4  ;;  %v2326_v39 = vunpack.c.l.b16 %v2084_v54 }
 0x128   : > { %16591 = vst [vmem:[#allocation10_spill] sm:$0xff] %v13241_v27  ;;  %v1254_v48 = vpop.f32.mrf.mxu3  ;;  %v11529_v12 = vrot.slane %v3604_v59, 11 }
 0x129   : > { %11511 = vmatmul.msk.bf16.gmra.mxu1 %vm927_vm3, %v3259_v7  ;;  %v13250_v24 = vadd.f32 %v1254_v48, %v13102_v31  ;;  %v3602_v7 = vsel %vm12599_vm12, %v3594_v60, %v3601_v61  ;;  %v3461_v31 = vld [vmem:[#allocation2 + $0x94] sm:$0xf]  ;;  %v2978_v61 = vshll.u32 %v2807_v41, 16  ;;  %v3260_v1 = vpack.c.b16 %v3233_v4, %v3232_v63 }
 0x12a   : > { %11544 = vmatmul.msk.bf16.gmra.mxu2 %vm927_vm3, %v3882_v20  ;;  %v2964_v20 = vrot.slane %v2962_v2, 5  ;;  %v3856_v47 = vunpack.c.l.b16 %v3602_v7  ;;  %v3609_v0 = vshrl.u32 %v3461_v31, 16  ;;  %v3618_v2 = vshrl.u32 %v3462_v34, 16  ;;  %v1933_v48 = vld [vmem:[#allocation2 + $0x94] sm:$0xf] }
 0x12b   : > { %v2975_v7 = vor.u32 %v2974_v29, %v13266_v49  ;;  %v3612_v3 = vshll.u32 %v3461_v31, 16  ;;  %v3621_v41 = vshll.u32 %v3462_v34, 16 }
 0x12c   : > { %v2965_v60 = vor.u32 %v2964_v20, %v2961_v19  ;;  %v3611_v58 = vrot.slane %v3609_v0, 7  ;;  %v1932_v19 = vld [vmem:[#allocation2 + $0x90] sm:$0x8]  ;;  %v2100_v20 = vshrl.u32 %v1933_v48, 16 }
 0x12d   : > { %v1837_v38 = vpop.f32.mrf.mxu2  ;;  %v13258_v21 = vpop.f32.mrf.mxu0  ;;  %11414 = vmatmul.msk.bf16.gmra.mxu3 %vm927_vm3, %v2352_v52  ;;  %v1934_v52 = vld [vmem:[#allocation2 + $0x98] sm:$0xf] }
 0x12e   : > { %v13260_v46 = vadd.f32 %v1837_v38, %v1213_v32  ;;  %v1214_v23 = vpop.f32.mrf.mxu1  ;;  %v2093_v32 = vsel %vm12599_vm12, %v2085_v53, %v2092_v5  ;;  %v2966_v53 = vrot.slane %v2965_v60, 4  ;;  %v2980_v5 = vrot.slane %v2978_v61, 5 }
 0x12f   : > { %v1215_v18 = vadd.f32 %v1214_v23, %v13203_v30  ;;  %v3883_v30 = vpack.c.b16 %v3856_v47, %v3855_v50  ;;  %v2327_v51 = vunpack.c.l.b16 %v2093_v32  ;;  %v2109_v38 = vshrl.u32 %v1934_v52, 16 }
 0x130   : > { %16592 = vst [vmem:[#allocation11_spill] sm:$0xff] %v13260_v46  ;;  %11496 = vmatmul.msk.bf16.gmra.mxu0 %vm927_vm3, %v12233_v9  ;;  %v1862_v56 = vpop.f32.mrf.mxu3  ;;  %v2809_v9 = vld [vmem:[#allocation2 + $0x98] sm:$0xf]  ;;  %v2983_v23 = vshrl.u32 %v2808_v35, 16  ;;  %v2986_v50 = vshll.u32 %v2808_v35, 16  ;;  %v2976_v32 = vrot.slane %v2975_v7, 4  ;;  %v3614_v60 = vor.u32 %v3612_v3, %v3611_v58 }
 0x131   : > { %v13272_v33 = vadd.f32 %v1862_v56, %v13128_v8  ;;  %v3620_v8 = vrot.slane %v3618_v2, 7  ;;  %v2992_v29 = vshll.u32 %v2809_v9, 16  ;;  %v2996_v0 = vshrl.u32 %v2809_v9, 16  ;;  %v2810_v7 = vld [vmem:[#allocation2 + $0x9c] sm:$0x1] }
 0x132   : > { %v2095_v61 = vshrl.u32 %v1932_v19, 16  ;;  %v2102_v56 = vrot.slane %v2100_v20, 7  ;;  %v2111_v46 = vrot.slane %v2109_v38, 7  ;;  %v2112_v27 = vshll.u32 %v1934_v52, 16  ;;  %v12234_v19 = vld [vmem:[#allocation2 + $0x94] sm:$0xff] }
 0x133   : > { %16593 = vst [vmem:[#allocation12_spill] sm:$0xff] %v13272_v33  ;;  %v2103_v33 = vshll.u32 %v1933_v48, 16  ;;  %v3616_v2 = vrot.slane %v3611_v58, 4  ;;  %v3623_v35 = vor.u32 %v3621_v41, %v3620_v8  ;;  %v13285_v3 = vrot.slane %v2992_v29, 5  ;;  %v3464_v48 = vld [vmem:[#allocation2 + $0xa8] sm:$0xf] }
 0x134   : > { %v2998_v9 = vrot.slane %v2996_v0, 4  ;;  %v2981_v52 = vsel %vm12616_vm14, %v2976_v32, %v2980_v5  ;;  %v3615_v58 = vsel %vm12599_vm12, %v11529_v12, %v3614_v60 }
 0x135   : > { %v1839_v63 = vpop.f32.mrf.mxu2  ;;  %v13275_v4 = vpop.f32.mrf.mxu0  ;;  %v2105_v20 = vor.u32 %v2103_v33, %v2102_v56  ;;  %v3624_v41 = vsel %vm12599_vm12, %v3616_v2, %v3623_v35  ;;  %v3235_v29 = vunpack.c.l.b16 %v2981_v52  ;;  %v3857_v0 = vunpack.c.l.b16 %v3615_v58 }
 0x136   : > { %v13277_v47 = vadd.f32 %v1839_v63, %v1215_v18  ;;  %v1217_v54 = vpop.f32.mrf.mxu1  ;;  %v2985_v18 = vrot.slane %v2983_v23, 4  ;;  %v2988_v63 = vrot.slane %v2986_v50, 5  ;;  %v3631_v50 = vshrl.u32 %v3464_v48, 16 }
 0x137   : > { %v1218_v31 = vadd.f32 %v1217_v54, %v13222_v36  ;;  %v2353_v36 = vpack.c.b16 %v2327_v51, %v2326_v39  ;;  %v2107_v39 = vrot.slane %v2102_v56, 4  ;;  %v2114_v51 = vor.u32 %v2112_v27, %v2111_v46  ;;  %v1936_v56 = vld [vmem:[#allocation2 + $0xa8] sm:$0xf] }
 0x138   : > { %v1864_v34 = vpop.f32.mrf.mxu3  ;;  %v2989_v23 = vor.u32 %v2988_v63, %v2985_v18  ;;  %v2999_v12 = vor.u32 %v2998_v9, %v13285_v3  ;;  %v3858_v32 = vunpack.c.l.b16 %v3624_v41  ;;  %v3633_v18 = vrot.slane %v3631_v50, 7 }
 0x139   : > { %11512 = vmatmul.msk.bf16.gmra.mxu1 %vm927_vm3, %v3260_v1  ;;  %v13283_v59 = vadd.f32 %v1864_v34, %v13139_v13  ;;  %v2971_v1 = vsel %vm12616_vm14, %v2966_v53, %v13266_v49  ;;  %v11399_v13 = vrot.slane %v2095_v61, 11  ;;  %v3002_v49 = vshll.u32 %v2810_v7, 16  ;;  %v3463_v53 = vld [vmem:[#allocation2 + $0xa4] sm:$0x8] }
 0x13a   : > { %11545 = vmatmul.msk.bf16.gmra.mxu2 %vm927_vm3, %v3883_v30  ;;  %v3465_v30 = vld [vmem:[#allocation2 + $0xac] sm:$0xf]  ;;  %v3234_v46 = vunpack.c.l.b16 %v2971_v1  ;;  %v3626_v61 = vshrl.u32 %v3463_v53, 16  ;;  %v2990_v2 = vrot.slane %v2989_v23, 4  ;;  %v3634_v63 = vshll.u32 %v3464_v48, 16 }
 0x13b   : > { %16594 = vst [vmem:[#allocation13_spill] sm:$0xff] %v13283_v59  ;;  %v3640_v33 = vshrl.u32 %v3465_v30, 16  ;;  %v2106_v60 = vsel %vm12599_vm12, %v11399_v13, %v2105_v20  ;;  %v3004_v35 = vrot.slane %v3002_v49, 5  ;;  %v3000_v7 = vrot.slane %v2999_v12, 4  ;;  %v1935_v20 = vld [vmem:[#allocation2 + $0xa4] sm:$0x8] }
 0x13c   : > { %v3643_v1 = vshll.u32 %v3465_v30, 16  ;;  %v2122_v52 = vshrl.u32 %v1936_v56, 16  ;;  %v3261_v58 = vpack.c.b16 %v3235_v29, %v3234_v46  ;;  %v2328_v13 = vunpack.c.l.b16 %v2106_v60  ;;  %v2811_v53 = vld [vmem:[#allocation2 + $0xa8] sm:$0xf] }
 0x13d   : > { %v1842_v38 = vpop.f32.mrf.mxu2  ;;  %v13294_v8 = vpop.f32.mrf.mxu0  ;;  %11415 = vmatmul.msk.bf16.gmra.mxu3 %vm927_vm3, %v2353_v36  ;;  %v3642_v9 = vrot.slane %v3640_v33, 7  ;;  %v11530_v23 = vrot.slane %v3626_v61, 11  ;;  %v3636_v49 = vor.u32 %v3634_v63, %v3633_v18  ;;  %v3638_v48 = vrot.slane %v3633_v18, 4  ;;  %v2812_v33 = vld [vmem:[#allocation2 + $0xac] sm:$0xf] }
 0x13e   : > { %v13298_v5 = vadd.f32 %v1842_v38, %v1218_v31  ;;  %v1219_v54 = vpop.f32.mrf.mxu1  ;;  %v2115_v31 = vsel %vm12599_vm12, %v2107_v39, %v2114_v51  ;;  %v2995_v30 = vsel %vm12616_vm14, %v2990_v2, %v13285_v3  ;;  %v2117_v29 = vshrl.u32 %v1935_v20, 16  ;;  %v13322_v2 = vld [vmem:[#allocation2 + $0xbc] sm:$0xf] }
 0x13f   : > { %v1220_v27 = vadd.f32 %v1219_v54, %v13239_v10  ;;  %v1937_v10 = vld [vmem:[#allocation2 + $0xac] sm:$0xf]  ;;  %v2329_v41 = vunpack.c.l.b16 %v2115_v31  ;;  %v3005_v54 = vsel %vm12616_vm14, %v3000_v7, %v3004_v35  ;;  %v3645_v12 = vor.u32 %v3643_v1, %v3642_v9 }
 0x140   : > { %11497 = vmatmul.msk.bf16.gmra.mxu0 %vm927_vm3, %v12234_v19  ;;  %v1867_v34 = vpop.f32.mrf.mxu3  ;;  %v3884_v19 = vpack.c.b16 %v3858_v32, %v3857_v0  ;;  %v2131_v39 = vshrl.u32 %v1937_v10, 16  ;;  %v2124_v0 = vrot.slane %v2122_v52, 7  ;;  %v2125_v32 = vshll.u32 %v1936_v56, 16 }
 0x141   : > { %v13309_v36 = vadd.f32 %v1867_v34, %v13164_v15  ;;  %v2134_v31 = vshll.u32 %v1937_v10, 16  ;;  %v3007_v61 = vshrl.u32 %v2811_v53, 16  ;;  %v2354_v18 = vpack.c.b16 %v2329_v41, %v2328_v13  ;;  %v12235_v13 = vld [vmem:[#allocation2 + $0xa8] sm:$0xff] }
 0x142   : > { %v2133_v60 = vrot.slane %v2131_v39, 7  ;;  %v3016_v63 = vshll.u32 %v2812_v33, 16  ;;  %v3020_v3 = vshrl.u32 %v2812_v33, 16  ;;  %v13330_v56 = vunpack.c.l.b16 %v3005_v54 }
 0x143   : > { %16595 = vst [vmem:[#allocation14_spill] sm:$0xff] %v13309_v36  ;;  %v3637_v10 = vsel %vm12599_vm12, %v11530_v23, %v3636_v49  ;;  %v3646_v7 = vsel %vm12599_vm12, %v3638_v48, %v3645_v12  ;;  %v11400_v9 = vrot.slane %v2117_v29, 11  ;;  %v2127_v1 = vor.u32 %v2125_v32, %v2124_v0  ;;  %v1940_v49 = vld [vmem:[#allocation2 + $0xc0] sm:$0xf]  ;;  %v3466_v29 = vld [vmem:[#allocation2 + $0xb8] sm:$0x8] }
 0x144   : > { %v2129_v52 = vrot.slane %v2124_v0, 4  ;;  %v2136_v20 = vor.u32 %v2134_v31, %v2133_v60  ;;  %v3022_v23 = vrot.slane %v3020_v3, 4  ;;  %v3859_v33 = vunpack.c.l.b16 %v3637_v10  ;;  %v2814_v36 = vld [vmem:[#allocation2 + $0xbc] sm:$0xf] }
 0x145   : > { %v1844_v51 = vpop.f32.mrf.mxu2  ;;  %v13311_v38 = vpop.f32.mrf.mxu0  ;;  %v3860_v60 = vunpack.c.l.b16 %v3646_v7  ;;  %v2128_v31 = vsel %vm12599_vm12, %v11400_v9, %v2127_v1 }
 0x146   : > { %v13313_v50 = vadd.f32 %v1844_v51, %v1220_v27  ;;  %v1222_v15 = vpop.f32.mrf.mxu1  ;;  %v3010_v27 = vshll.u32 %v2811_v53, 16  ;;  %v1939_v51 = vld [vmem:[#allocation2 + $0xbc] sm:$0xf] }
 0x147   : > { %v1223_v46 = vadd.f32 %v1222_v15, %v13258_v21  ;;  %v13328_v21 = vunpack.c.l.b16 %v2995_v30  ;;  %v2813_v15 = vld [vmem:[#allocation2 + $0xb0] sm:$0x1]  ;;  %v13339_v30 = vrot.slane %v3016_v63, 5  ;;  %v2153_v63 = vshrl.u32 %v1940_v49, 16 }
 0x148   : > { %v1869_v34 = vpop.f32.mrf.mxu3  ;;  %v3012_v39 = vrot.slane %v3010_v27, 5  ;;  %v2144_v27 = vshrl.u32 %v1939_v51, 16 }
 0x149   : > { %11513 = vmatmul.msk.bf16.gmra.mxu1 %vm927_vm3, %v3261_v58  ;;  %v13326_v35 = vadd.f32 %v1869_v34, %v13175_v26  ;;  %v3468_v58 = vld [vmem:[#allocation2 + $0xc0] sm:$0xf]  ;;  %v3653_v26 = vshrl.u32 %v13322_v2, 16  ;;  %v3262_v12 = vpack.c.b16 %v13330_v56, %v13328_v21  ;;  %v3023_v21 = vor.u32 %v3022_v23, %v13339_v30 }
 0x14a   : > { %11546 = vmatmul.msk.bf16.gmra.mxu2 %vm927_vm3, %v3884_v19  ;;  %v3009_v19 = vrot.slane %v3007_v61, 4  ;;  %v3662_v0 = vshrl.u32 %v3468_v58, 16  ;;  %v1938_v61 = vld [vmem:[#allocation2 + $0xb8] sm:$0x8]  ;;  %v3648_v56 = vshrl.u32 %v3466_v29, 16  ;;  %v3665_v1 = vshll.u32 %v3468_v58, 16 }
 0x14b   : > { %16596 = vst [vmem:[#allocation15_spill] sm:$0xff] %v13326_v35  ;;  %v3655_v10 = vrot.slane %v3653_v26, 7  ;;  %v2146_v35 = vrot.slane %v2144_v27, 7  ;;  %v3024_v26 = vrot.slane %v3023_v21, 4  ;;  %v3031_v27 = vshrl.u32 %v2814_v36, 16 }
 0x14c   : > { %v3013_v34 = vor.u32 %v3012_v39, %v3009_v19  ;;  %v3664_v9 = vrot.slane %v3662_v0, 7  ;;  %v2155_v39 = vrot.slane %v2153_v63, 7  ;;  %v11531_v59 = vrot.slane %v3648_v56, 11 }
 0x14d   : > { %v1847_v41 = vpop.f32.mrf.mxu2  ;;  %v13337_v53 = vpop.f32.mrf.mxu0  ;;  %11416 = vmatmul.msk.bf16.gmra.mxu3 %vm927_vm3, %v2354_v18  ;;  %v3026_v18 = vshll.u32 %v2813_v15, 16  ;;  %v2156_v15 = vshll.u32 %v1940_v49, 16  ;;  %v3034_v49 = vshll.u32 %v2814_v36, 16  ;;  %v3033_v56 = vrot.slane %v3031_v27, 4 }
 0x14e   : > { %v13341_v48 = vadd.f32 %v1847_v41, %v1223_v46  ;;  %v1224_v54 = vpop.f32.mrf.mxu1  ;;  %v2137_v46 = vsel %vm12599_vm12, %v2129_v52, %v2136_v20  ;;  %v2139_v41 = vshrl.u32 %v1938_v61, 16  ;;  %v2147_v52 = vshll.u32 %v1939_v51, 16 }
 0x14f   : > { %v1225_v32 = vadd.f32 %v1224_v54, %v13275_v4  ;;  %v3656_v4 = vshll.u32 %v13322_v2, 16  ;;  %v2330_v54 = vunpack.c.l.b16 %v2128_v31  ;;  %v2331_v20 = vunpack.c.l.b16 %v2137_v46 }
 0x150   : > { %11498 = vmatmul.msk.bf16.gmra.mxu0 %vm927_vm3, %v12235_v13  ;;  %v1872_v3 = vpop.f32.mrf.mxu3  ;;  %v3885_v13 = vpack.c.b16 %v3860_v60, %v3859_v33  ;;  %v3014_v19 = vrot.slane %v3013_v34, 4  ;;  %v3028_v2 = vrot.slane %v3026_v18, 5  ;;  %v3667_v60 = vor.u32 %v3665_v1, %v3664_v9 }
 0x151   : > { %v13355_v7 = vadd.f32 %v1872_v3, %v13200_v44  ;;  %v3660_v44 = vrot.slane %v3655_v10, 4  ;;  %v2815_v3 = vld [vmem:[#allocation2 + $0xc0] sm:$0xf]  ;;  %v3658_v33 = vor.u32 %v3656_v4, %v3655_v10  ;;  %v11401_v31 = vrot.slane %v2139_v41, 11  ;;  %v13376_v4 = vld [vmem:[#allocation2 + $0xd0] sm:$0xf] }
 0x152   : > { %v2149_v61 = vor.u32 %v2147_v52, %v2146_v35  ;;  %v2151_v46 = vrot.slane %v2146_v35, 4  ;;  %v2158_v34 = vor.u32 %v2156_v15, %v2155_v39  ;;  %v3040_v63 = vshll.u32 %v2815_v3, 16  ;;  %v3471_v39 = vld [vmem:[#allocation2 + $0xd4] sm:$0xf] }
 0x153   : > { %16597 = vst [vmem:[#allocation16_spill] sm:$0xff] %v13355_v7  ;;  %v3044_v7 = vshrl.u32 %v2815_v3, 16  ;;  %v2355_v21 = vpack.c.b16 %v2331_v20, %v2330_v54  ;;  %v3029_v36 = vsel %vm12616_vm14, %v3024_v26, %v3028_v2  ;;  %v3659_v35 = vsel %vm12599_vm12, %v11531_v59, %v3658_v33  ;;  %v2816_v20 = vld [vmem:[#allocation2 + $0xc4] sm:$0x1]  ;;  %v1942_v3 = vld [vmem:[#allocation2 + $0xd0] sm:$0xf] }
 0x154   : > { %v3036_v10 = vrot.slane %v3034_v49, 5  ;;  %v2150_v9 = vsel %vm12599_vm12, %v11401_v31, %v2149_v61  ;;  %v13382_v1 = vrot.slane %v3040_v63, 5  ;;  %v3239_v52 = vunpack.c.l.b16 %v3029_v36  ;;  %v1943_v31 = vld [vmem:[#allocation2 + $0xd4] sm:$0xf] }
 0x155   : > { %v1849_v23 = vpop.f32.mrf.mxu2  ;;  %v13357_v29 = vpop.f32.mrf.mxu0  ;;  %v3046_v41 = vrot.slane %v3044_v7, 4  ;;  %v3861_v26 = vunpack.c.l.b16 %v3659_v35  ;;  %v3684_v49 = vshrl.u32 %v3471_v39, 16 }
 0x156   : > { %v13359_v0 = vadd.f32 %v1849_v23, %v1225_v32  ;;  %v1227_v58 = vpop.f32.mrf.mxu1 }
 0x157   : > { %v1228_v51 = vadd.f32 %v1227_v58, %v13294_v8  ;;  %v3019_v8 = vsel %vm12616_vm14, %v3014_v19, %v13339_v30  ;;  %v2159_v30 = vsel %vm12599_vm12, %v2151_v46, %v2158_v34  ;;  %v3469_v19 = vld [vmem:[#allocation2 + $0xcc] sm:$0x8]  ;;  %v2332_v58 = vunpack.c.l.b16 %v2150_v9 }
 0x158   : > { %v1874_v18 = vpop.f32.mrf.mxu3  ;;  %v3238_v59 = vunpack.c.l.b16 %v3019_v8  ;;  %v2333_v33 = vunpack.c.l.b16 %v2159_v30  ;;  %v3047_v61 = vor.u32 %v3046_v41, %v13382_v1  ;;  %v3670_v27 = vshrl.u32 %v3469_v19, 16  ;;  %v2817_v41 = vld [vmem:[#allocation2 + $0xd0] sm:$0xf] }
 0x159   : > { %11514 = vmatmul.msk.bf16.gmra.mxu1 %vm927_vm3, %v3262_v12  ;;  %v13365_v32 = vadd.f32 %v1874_v18, %v13211_v11  ;;  %v3668_v12 = vsel %vm12599_vm12, %v3660_v44, %v3667_v60  ;;  %v12236_v11 = vld [vmem:[#allocation2 + $0xbc] sm:$0xff]  ;;  %v3675_v44 = vshrl.u32 %v13376_v4, 16  ;;  %v3037_v60 = vor.u32 %v3036_v10, %v3033_v56 }
 0x15a   : > { %11547 = vmatmul.msk.bf16.gmra.mxu2 %vm927_vm3, %v3885_v13  ;;  %v3862_v2 = vunpack.c.l.b16 %v3668_v12  ;;  %v2166_v34 = vshrl.u32 %v1942_v3, 16  ;;  %v3263_v18 = vpack.c.b16 %v3239_v52, %v3238_v59  ;;  %v2175_v8 = vshrl.u32 %v1943_v31, 16 }
 0x15b   : > { %16598 = vst [vmem:[#allocation17_spill] sm:$0xff] %v13365_v32  ;;  %v2356_v35 = vpack.c.b16 %v2333_v33, %v2332_v58  ;;  %v3038_v12 = vrot.slane %v3037_v60, 4  ;;  %v3678_v56 = vshll.u32 %v13376_v4, 16  ;;  %v3048_v10 = vrot.slane %v3047_v61, 4  ;;  %v5296_v33 = vld [vmem:[%s16571_s4] sm:$0x3] }
 0x15c   : > { %v3886_v36 = vpack.c.b16 %v3862_v2, %v3861_v26  ;;  %v13399_v9 = vrot.slane %v3670_v27, 11  ;;  %v3686_v30 = vrot.slane %v3684_v49, 7  ;;  %v2168_v52 = vrot.slane %v2166_v34, 7 }
 0x15d   : > { %v1852_v13 = vpop.f32.mrf.mxu2  ;;  %v13384_v54 = vpop.f32.mrf.mxu0  ;;  %11417 = vmatmul.msk.bf16.gmra.mxu3 %vm927_vm3, %v2355_v21  ;;  %v13396_v21 = vrot.slane %v3675_v44, 7  ;;  %v2169_v19 = vshll.u32 %v1942_v3, 16  ;;  %v2177_v4 = vrot.slane %v2175_v8, 7  ;;  %v2178_v58 = vshll.u32 %v1943_v31, 16  ;;  %v13415_v31 = vld [vmem:[#allocation2 + $0xe4] sm:$0xf] }
 0x15e   : > { %v13386_v15 = vadd.f32 %v1852_v13, %v1228_v51  ;;  %v1229_v23 = vpop.f32.mrf.mxu1  ;;  %v3050_v51 = vshll.u32 %v2816_v20, 16  ;;  %v6017_v61 = vsel %vm976_vm0, %v5296_v33, 0  ;;  %v3043_v3 = vsel %vm12616_vm14, %v3038_v12, %v13382_v1 }
 0x15f   : > { %v1230_v7 = vadd.f32 %v1229_v23, %v13311_v38  ;;  %v1941_v38 = vld [vmem:[#allocation2 + $0xcc] sm:$0x8]  ;;  %v2818_v23 = vld [vmem:[#allocation2 + $0xd4] sm:$0xf]  ;;  %v3682_v2 = vrot.slane %v13396_v21, 4  ;;  %6026 = vmatpush.bf16.msra.mxu2 %v6017_v61  ;;  %v2171_v8 = vor.u32 %v2169_v19, %v2168_v52  ;;  %v2180_v12 = vor.u32 %v2178_v58, %v2177_v4 }
 0x160   : > { %11499 = vmatmul.msk.bf16.gmra.mxu0 %vm927_vm3, %v12236_v11  ;;  %v1877_v46 = vpop.f32.mrf.mxu3  ;;  %v3052_v11 = vrot.slane %v3050_v51, 5  ;;  %v2161_v59 = vshrl.u32 %v1941_v38, 16  ;;  %v3058_v51 = vshll.u32 %v2817_v41, 16  ;;  %v3064_v27 = vshll.u32 %v2818_v23, 16 }
 0x161   : > { %v13394_v63 = vadd.f32 %v1877_v46, %v13237_v57  ;;  %v3687_v57 = vshll.u32 %v3471_v39, 16  ;;  %v3055_v39 = vshrl.u32 %v2817_v41, 16  ;;  %v3068_v49 = vshrl.u32 %v2818_v23, 16  ;;  %v5697_v41 = vld [vmem:[%s16570_s3] sm:$0xf] }
 0x162   : > { %v11402_v38 = vrot.slane %v2161_v59, 11  ;;  %v3060_v23 = vrot.slane %v3058_v51, 5  ;;  %v3240_v19 = vunpack.c.l.b16 %v3043_v3  ;;  %vm5184_vm0 = vcmask 60419  }
 0x163   : > { %16599 = vst [vmem:[#allocation18_spill] sm:$0xff] %v13394_v63  ;;  %v3689_v34 = vor.u32 %v3687_v57, %v3686_v30  ;;  %v2819_v30 = vld [vmem:[#allocation2 + $0xd8] sm:$0x1]  ;;  %v3472_v57 = vld [vmem:[#allocation2 + $0xe0] sm:$0x8] }
 0x164   : > { %v2172_v51 = vsel %vm12599_vm12, %v11402_v38, %v2171_v8 }
 0x165   : > { %v1854_v13 = vpop.f32.mrf.mxu2  ;;  %v13401_v20 = vpop.f32.mrf.mxu0 }
 0x166   : > { %v13403_v44 = vadd.f32 %v1854_v13, %v1230_v7  ;;  %v1232_v26 = vpop.f32.mrf.mxu1  ;;  %v3680_v7 = vor.u32 %v3678_v56, %v13396_v21  ;;  %v2173_v21 = vrot.slane %v2168_v52, 4  ;;  %v3474_v56 = vld [vmem:[#allocation2 + $0xe8] sm:$0xf]  ;;  %v3057_v13 = vrot.slane %v3055_v39, 4 }
 0x167   : > { %v1233_v60 = vadd.f32 %v1232_v26, %v13337_v53  ;;  %v3053_v53 = vsel %vm12616_vm14, %v3048_v10, %v3052_v11  ;;  %v3697_v10 = vshrl.u32 %v13415_v31, 16  ;;  %v5797_v11 = vsel %vm5795_vm15, %v5697_v41, 0 }
 0x168   : > { %v1879_v46 = vpop.f32.mrf.mxu3  ;;  %5806 = vmatpush.bf16.msra.mxu1 %v5797_v11  ;;  %v3241_v26 = vunpack.c.l.b16 %v3053_v53  ;;  %v3681_v4 = vsel %vm12599_vm12, %v13399_v9, %v3680_v7  ;;  %v3706_v58 = vshrl.u32 %v3474_v56, 16  ;;  %v3690_v39 = vsel %vm12599_vm12, %v3682_v2, %v3689_v34  ;;  %v1946_v34 = vld [vmem:[#allocation2 + $0xe8] sm:$0xf] }
 0x169   : > { %11515 = vmatmul.msk.bf16.gmra.mxu1 %vm927_vm3, %v3263_v18  ;;  %v13422_v1 = vadd.f32 %v1879_v46, %v13250_v24  ;;  %v12237_v18 = vld [vmem:[#allocation2 + $0xd0] sm:$0xff]  ;;  %v3070_v24 = vrot.slane %v3068_v49, 4  ;;  %v2181_v3 = vsel %vm12599_vm12, %v2173_v21, %v2180_v12  ;;  %v3061_v46 = vor.u32 %v3060_v23, %v3057_v13 }
 0x16a   : > { %11548 = vmatmul.msk.bf16.gmra.mxu2 %vm927_vm3, %v3886_v36  ;;  %v13429_v36 = vrot.slane %v3064_v27, 5  ;;  %v1945_v27 = vld [vmem:[#allocation2 + $0xe4] sm:$0xf]  ;;  %v3074_v9 = vshll.u32 %v2819_v30, 16  ;;  %v3692_v7 = vshrl.u32 %v3472_v57, 16  ;;  %v3699_v53 = vrot.slane %v3697_v10, 7 }
 0x16b   : > { %16600 = vst [vmem:[#allocation19_spill] sm:$0xff] %v13422_v1  ;;  %v3700_v2 = vshll.u32 %v13415_v31, 16  ;;  %v3264_v38 = vpack.c.b16 %v3241_v26, %v3240_v19  ;;  %v3708_v8 = vrot.slane %v3706_v58, 7  ;;  %v3709_v11 = vshll.u32 %v3474_v56, 16  ;;  %v1944_v30 = vld [vmem:[#allocation2 + $0xe0] sm:$0x8] }
 0x16c   : > { %v2188_v21 = vshrl.u32 %v1945_v27, 16  ;;  %v2334_v13 = vunpack.c.l.b16 %v2172_v51  ;;  %v2335_v23 = vunpack.c.l.b16 %v2181_v3  ;;  %v3062_v57 = vrot.slane %v3061_v46, 4 }
 0x16d   : > { %v1857_v59 = vpop.f32.mrf.mxu2  ;;  %v13431_v52 = vpop.f32.mrf.mxu0  ;;  %11418 = vmatmul.msk.bf16.gmra.mxu3 %vm927_vm3, %v2356_v35  ;;  %v3071_v35 = vor.u32 %v3070_v24, %v13429_v36  ;;  %v2820_v24 = vld [vmem:[#allocation2 + $0xe4] sm:$0xf]  ;;  %v3704_v1 = vrot.slane %v3699_v53, 4  ;;  %v3711_v56 = vor.u32 %v3709_v11, %v3708_v8  ;;  %v2183_v58 = vshrl.u32 %v1944_v30, 16 }
 0x16e   : > { %v13436_v33 = vadd.f32 %v1857_v59, %v1233_v60  ;;  %v1234_v61 = vpop.f32.mrf.mxu1  ;;  %v3863_v60 = vunpack.c.l.b16 %v3681_v4  ;;  %v11533_v59 = vrot.slane %v3692_v7, 11  ;;  %v2197_v4 = vshrl.u32 %v1946_v34, 16 }
 0x16f   : > { %v1235_v49 = vadd.f32 %v1234_v61, %v13357_v29  ;;  %v3864_v29 = vunpack.c.l.b16 %v3690_v39  ;;  %v3072_v31 = vrot.slane %v3071_v35, 4  ;;  %v3702_v61 = vor.u32 %v3700_v2, %v3699_v53 }
 0x170   : > { %11500 = vmatmul.msk.bf16.gmra.mxu0 %vm927_vm3, %v12237_v18  ;;  %v2424_v41 = vpop.f32.mrf.mxu3  ;;  %v3076_v18 = vrot.slane %v3074_v9, 5  ;;  %v2191_v39 = vshll.u32 %v1945_v27, 16  ;;  %v2821_v9 = vld [vmem:[#allocation2 + $0xe8] sm:$0xf]  ;;  %v3079_v7 = vshrl.u32 %v2820_v24, 16  ;;  %v2199_v32 = vrot.slane %v2197_v4, 7 }
 0x171   : > { %v2504_v12 = vadd.f32 %v2424_v41, %v12996_v37  ;;  %v2190_v37 = vrot.slane %v2188_v21, 7  ;;  %v3887_v46 = vpack.c.b16 %v3864_v29, %v3863_v60  ;;  %v3082_v41 = vshll.u32 %v2820_v24, 16  ;;  %v3476_v21 = vld [vmem:[#allocation2 + $0xf8] sm:$0xf] }
 0x172   : > { %v2357_v35 = vpack.c.b16 %v2335_v23, %v2334_v13  ;;  %v3067_v53 = vsel %vm12616_vm14, %v3062_v57, %v13429_v36  ;;  %v3077_v2 = vsel %vm12616_vm14, %v3072_v31, %v3076_v18  ;;  %v3703_v27 = vsel %vm12599_vm12, %v11533_v59, %v3702_v61  ;;  %v2822_v59 = vld [vmem:[#allocation2 + $0xec] sm:$0x1] }
 0x173   : > { %v2758_v10 = vadd.f32 %v13384_v54, %v2504_v12  ;;  %v2200_v54 = vshll.u32 %v1946_v34, 16  ;;  %v3712_v60 = vsel %vm12599_vm12, %v3704_v1, %v3711_v56  ;;  %v11403_v8 = vrot.slane %v2183_v58, 11  ;;  %v3477_v1 = vld [vmem:[#allocation2 + $0xfc] sm:$0xf]  ;;  %v3475_v56 = vld [vmem:[#allocation2 + $0xf4] sm:$0x8] }
 0x174   : > { %v2193_v11 = vor.u32 %v2191_v39, %v2190_v37  ;;  %v3088_v34 = vshll.u32 %v2821_v9, 16  ;;  %v3081_v12 = vrot.slane %v3079_v7, 4  ;;  %v3084_v29 = vrot.slane %v3082_v41, 5 }
 0x175   : > { %v1859_v19 = vpop.f32.mrf.mxu2  ;;  %v13451_v26 = vpop.f32.mrf.mxu0  ;;  %v3092_v13 = vshrl.u32 %v2821_v9, 16  ;;  %v2195_v23 = vrot.slane %v2190_v37, 4  ;;  %v2202_v30 = vor.u32 %v2200_v54, %v2199_v32  ;;  %v13468_v18 = vunpack.c.l.b16 %v3067_v53 }
 0x176   : > { %v13453_v51 = vadd.f32 %v1859_v19, %v1235_v49  ;;  %v3332_v3 = vpop.f32.mrf.mxu1  ;;  %v3719_v4 = vshrl.u32 %v3476_v21, 16  ;;  %v3243_v31 = vunpack.c.l.b16 %v3077_v2  ;;  %v3865_v61 = vunpack.c.l.b16 %v3703_v27 }
 0x177   : > { %v3412_v63 = vadd.f32 %v3332_v3, %v2758_v10  ;;  %v3866_v19 = vunpack.c.l.b16 %v3712_v60  ;;  %v13477_v37 = vrot.slane %v3088_v34, 5  ;;  %v3094_v39 = vrot.slane %v3092_v13, 4  ;;  %v1949_v60 = vld [vmem:[#allocation2 + $0xfc] sm:$0xf] }
 0x178   : > { %16601 = vst [vmem:[#allocation20_spill] sm:$0xff] %v13453_v51  ;;  %v2426_v49 = vpop.f32.mrf.mxu3  ;;  %v3098_v9 = vshll.u32 %v2822_v59, 16  ;;  %v3728_v7 = vshrl.u32 %v3477_v1, 16  ;;  %v3714_v41 = vshrl.u32 %v3475_v56, 16  ;;  %v3721_v54 = vrot.slane %v3719_v4, 7 }
 0x179   : > { %11516 = vmatmul.msk.bf16.gmra.mxu1 %vm927_vm3, %v3264_v38  ;;  %v2505_v36 = vadd.f32 %v2426_v49, %v13020_v14  ;;  %v12238_v38 = vld [vmem:[#allocation2 + $0xe4] sm:$0xff]  ;;  %v2194_v14 = vsel %vm12599_vm12, %v11403_v8, %v2193_v11  ;;  %v3722_v53 = vshll.u32 %v3476_v21, 16  ;;  %v3265_v27 = vpack.c.b16 %v3243_v31, %v13468_v18 }
 0x17a   : > { %11549 = vmatmul.msk.bf16.gmra.mxu2 %vm927_vm3, %v3887_v46  ;;  %v2203_v46 = vsel %vm12599_vm12, %v2195_v23, %v2202_v30  ;;  %v2336_v49 = vunpack.c.l.b16 %v2194_v14  ;;  %v3100_v13 = vrot.slane %v3098_v9, 5  ;;  %v3730_v23 = vrot.slane %v3728_v7, 7 }
 0x17b   : > { %v2759_v57 = vadd.f32 %v13401_v20, %v2505_v36  ;;  %v3085_v20 = vor.u32 %v3084_v29, %v3081_v12  ;;  %v2337_v11 = vunpack.c.l.b16 %v2203_v46  ;;  %v3095_v36 = vor.u32 %v3094_v39, %v13477_v37  ;;  %v2823_v12 = vld [vmem:[#allocation2 + $0xf8] sm:$0xf]  ;;  %v2824_v29 = vld [vmem:[#allocation2 + $0xfc] sm:$0xf] }
 0x17c   : > { %v3731_v30 = vshll.u32 %v3477_v1, 16  ;;  %v11534_v59 = vrot.slane %v3714_v41, 11  ;;  %v3724_v18 = vor.u32 %v3722_v53, %v3721_v54  ;;  %v2219_v4 = vshrl.u32 %v1949_v60, 16 }
 0x17d   : > { %v3955_v24 = vpop.f32.mrf.mxu2  ;;  %v13470_v10 = vpop.f32.mrf.mxu0  ;;  %11419 = vmatmul.msk.bf16.gmra.mxu3 %vm927_vm3, %v2357_v35  ;;  %v3888_v35 = vpack.c.b16 %v3866_v19, %v3865_v61  ;;  %v3086_v34 = vrot.slane %v3085_v20, 4  ;;  %v3106_v61 = vshll.u32 %v2823_v12, 16  ;;  %v3112_v19 = vshll.u32 %v2824_v29, 16 }
 0x17e   : > { %v13474_v58 = vadd.f32 %v3955_v24, %v3412_v63  ;;  %v3334_v32 = vpop.f32.mrf.mxu1  ;;  %v1948_v63 = vld [vmem:[#allocation2 + $0xf8] sm:$0xf]  ;;  %v3116_v14 = vshrl.u32 %v2824_v29, 16  ;;  %v3096_v20 = vrot.slane %v3095_v36, 4  ;;  %v3726_v39 = vrot.slane %v3721_v54, 4 }
 0x17f   : > { %v3413_v3 = vadd.f32 %v3334_v32, %v2759_v57  ;;  %v1947_v57 = vld [vmem:[#allocation2 + $0xf4] sm:$0x8]  ;;  %v2210_v21 = vshrl.u32 %v1948_v63, 16  ;;  %v3733_v9 = vor.u32 %v3731_v30, %v3730_v23  ;;  %v2358_v41 = vpack.c.b16 %v2337_v11, %v2336_v49 }
 0x180   : > { %16602 = vst [vmem:[#allocation21_spill] sm:$0xff] %v13474_v58  ;;  %11501 = vmatmul.msk.bf16.gmra.mxu0 %vm927_vm3, %v12238_v38  ;;  %v2429_v2 = vpop.f32.mrf.mxu3  ;;  %v2205_v1 = vshrl.u32 %v1947_v57, 16  ;;  %v2221_v53 = vrot.slane %v2219_v4, 7  ;;  %v3108_v51 = vrot.slane %v3106_v61, 5  ;;  %v13491_v29 = vrot.slane %v3112_v19, 5 }
 0x181   : > { %v2506_v8 = vadd.f32 %v2429_v2, %v13039_v17  ;;  %v3103_v17 = vshrl.u32 %v2823_v12, 16  ;;  %v2212_v7 = vrot.slane %v2210_v21, 7  ;;  %v2222_v2 = vshll.u32 %v1949_v60, 16  ;;  %v2825_v60 = vld [vmem:[#allocation2 + $0x100] sm:$0x1] }
 0x182   : > { %v3101_v49 = vsel %vm12616_vm14, %v3096_v20, %v3100_v13  ;;  %v3734_v11 = vsel %vm12599_vm12, %v3726_v39, %v3733_v9  ;;  %v11404_v36 = vrot.slane %v2205_v1, 11  ;;  %v3478_v21 = vld [vmem:[#allocation2 + $0x108] sm:$0x8] }
 0x183   : > { %v2760_v38 = vadd.f32 %v13431_v52, %v2506_v8  ;;  %v2213_v52 = vshll.u32 %v1948_v63, 16  ;;  %v3479_v8 = vld [vmem:[#allocation2 + $0x10c] sm:$0xf]  ;;  %v3105_v12 = vrot.slane %v3103_v17, 4  ;;  %v3091_v63 = vsel %vm12616_vm14, %v3086_v34, %v13477_v37 }
 0x184   : > { %v3741_v30 = vshrl.u32 %v3479_v8, 16  ;;  %v2224_v57 = vor.u32 %v2222_v2, %v2221_v53  ;;  %v3244_v13 = vunpack.c.l.b16 %v3091_v63  ;;  %v3245_v19 = vunpack.c.l.b16 %v3101_v49 }
 0x185   : > { %v3957_v24 = vpop.f32.mrf.mxu2  ;;  %v13486_v31 = vpop.f32.mrf.mxu0  ;;  %v2215_v23 = vor.u32 %v2213_v52, %v2212_v7  ;;  %v3109_v4 = vor.u32 %v3108_v51, %v3105_v12  ;;  %v3736_v39 = vshrl.u32 %v3478_v21, 16  ;;  %v3744_v9 = vshll.u32 %v3479_v8, 16  ;;  %v1950_v8 = vld [vmem:[#allocation2 + $0x108] sm:$0x8] }
 0x186   : > { %v13488_v56 = vadd.f32 %v3957_v24, %v3413_v3  ;;  %v3337_v32 = vpop.f32.mrf.mxu1  ;;  %v3118_v3 = vrot.slane %v3116_v14, 4  ;;  %v3480_v24 = vld [vmem:[#allocation2 + $0x110] sm:$0xf]  ;;  %v3868_v14 = vunpack.c.l.b16 %v3734_v11  ;;  %v3743_v1 = vrot.slane %v3741_v30, 7 }
 0x187   : > { %v3414_v46 = vadd.f32 %v3337_v32, %v2760_v38  ;;  %v3750_v37 = vshrl.u32 %v3480_v24, 16  ;;  %v1951_v32 = vld [vmem:[#allocation2 + $0x10c] sm:$0xf]  ;;  %v2216_v51 = vsel %vm12599_vm12, %v11404_v36, %v2215_v23  ;;  %v3753_v53 = vshll.u32 %v3480_v24, 16 }
 0x188   : > { %v2431_v58 = vpop.f32.mrf.mxu3  ;;  %v3110_v2 = vrot.slane %v3109_v4, 4  ;;  %v3266_v49 = vpack.c.b16 %v3245_v19, %v3244_v13  ;;  %v2338_v11 = vunpack.c.l.b16 %v2216_v51  ;;  %v11535_v30 = vrot.slane %v3736_v39, 11  ;;  %v2826_v24 = vld [vmem:[#allocation2 + $0x10c] sm:$0xf]  ;;  %v2827_v4 = vld [vmem:[#allocation2 + $0x110] sm:$0xf] }
 0x189   : > { %11517 = vmatmul.msk.bf16.gmra.mxu1 %vm927_vm3, %v3265_v27  ;;  %v2507_v54 = vadd.f32 %v2431_v58, %v13060_v43  ;;  %v3725_v27 = vsel %vm12599_vm12, %v11534_v59, %v3724_v18  ;;  %v12239_v43 = vld [vmem:[#allocation2 + $0xf8] sm:$0xff]  ;;  %v2217_v58 = vrot.slane %v2212_v7, 4  ;;  %v3119_v59 = vor.u32 %v3118_v3, %v13491_v29  ;;  %v1952_v7 = vld [vmem:[#allocation2 + $0x110] sm:$0xf] }
 0x18a   : > { %11550 = vmatmul.msk.bf16.gmra.mxu2 %vm927_vm3, %v3888_v35  ;;  %v3122_v18 = vshll.u32 %v2825_v60, 16  ;;  %v3752_v52 = vrot.slane %v3750_v37, 7  ;;  %v2244_v19 = vshll.u32 %v1952_v7, 16  ;;  %v3127_v39 = vshrl.u32 %v2826_v24, 16 }
 0x18b   : > { %v2761_v35 = vadd.f32 %v13451_v26, %v2507_v54  ;;  %v3867_v26 = vunpack.c.l.b16 %v3725_v27  ;;  %v3120_v12 = vrot.slane %v3119_v59, 4  ;;  %v2232_v54 = vshrl.u32 %v1951_v32, 16 }
 0x18c   : > { %v3124_v3 = vrot.slane %v3122_v18, 5  ;;  %v2241_v27 = vshrl.u32 %v1952_v7, 16  ;;  %v2235_v18 = vshll.u32 %v1951_v32, 16  ;;  %v3140_v51 = vshrl.u32 %v2827_v4, 16 }
 0x18d   : > { %v3960_v34 = vpop.f32.mrf.mxu2  ;;  %v13505_v38 = vpop.f32.mrf.mxu0  ;;  %11420 = vmatmul.msk.bf16.gmra.mxu3 %vm927_vm3, %v2358_v41  ;;  %v3889_v60 = vpack.c.b16 %v3868_v14, %v3867_v26  ;;  %v2234_v13 = vrot.slane %v2232_v54, 7 }
 0x18e   : > { %v13508_v17 = vadd.f32 %v3960_v34, %v3414_v46  ;;  %v3339_v61 = vpop.f32.mrf.mxu1  ;;  %v2225_v46 = vsel %vm12599_vm12, %v2217_v58, %v2224_v57  ;;  %v3755_v58 = vor.u32 %v3753_v53, %v3752_v52  ;;  %v3125_v37 = vsel %vm12616_vm14, %v3120_v12, %v3124_v3 }
 0x18f   : > { %v3415_v20 = vadd.f32 %v3339_v61, %v2761_v35  ;;  %v3746_v35 = vor.u32 %v3744_v9, %v3743_v1  ;;  %v2339_v23 = vunpack.c.l.b16 %v2225_v46  ;;  %v2227_v34 = vshrl.u32 %v1950_v8, 16  ;;  %v3482_v46 = vld [vmem:[#allocation2 + $0x120] sm:$0xf] }
 0x190   : > { %11502 = vmatmul.msk.bf16.gmra.mxu0 %vm927_vm3, %v12239_v43  ;;  %v2434_v41 = vpop.f32.mrf.mxu3  ;;  %v3748_v43 = vrot.slane %v3743_v1, 4  ;;  %v2243_v61 = vrot.slane %v2241_v27, 7  ;;  %v3130_v1 = vshll.u32 %v2826_v24, 16  ;;  %v3136_v9 = vshll.u32 %v2827_v4, 16  ;;  %v3483_v27 = vld [vmem:[#allocation2 + $0x124] sm:$0xf] }
 0x191   : > { %v2508_v63 = vadd.f32 %v2434_v41, %v13082_v16  ;;  %v3115_v16 = vsel %vm12616_vm14, %v3110_v2, %v13491_v29  ;;  %v3747_v14 = vsel %vm12599_vm12, %v11535_v30, %v3746_v35  ;;  %v2359_v52 = vpack.c.b16 %v2339_v23, %v2338_v11  ;;  %v12240_v11 = vld [vmem:[#allocation2 + $0x10c] sm:$0xff]  ;;  %v2828_v35 = vld [vmem:[#allocation2 + $0x114] sm:$0x1] }
 0x192   : > { %v3756_v29 = vsel %vm12599_vm12, %v3748_v43, %v3755_v58  ;;  %v13532_v53 = vunpack.c.l.b16 %v3115_v16  ;;  %v13534_v32 = vunpack.c.l.b16 %v3125_v37  ;;  %v11405_v7 = vrot.slane %v2227_v34, 11  ;;  %v3481_v16 = vld [vmem:[#allocation2 + $0x11c] sm:$0x8]  ;;  %v13550_v34 = vld [vmem:[#allocation2 + $0x120] sm:$0xf] }
 0x193   : > { %v2762_v36 = vadd.f32 %v13470_v10, %v2508_v63  ;;  %v2237_v2 = vor.u32 %v2235_v18, %v2234_v13  ;;  %v2239_v12 = vrot.slane %v2234_v13, 4  ;;  %v2246_v3 = vor.u32 %v2244_v19, %v2243_v61  ;;  %v13552_v61 = vld [vmem:[#allocation2 + $0x124] sm:$0xf] }
 0x194   : > { %v3869_v54 = vunpack.c.l.b16 %v3747_v14  ;;  %v3870_v63 = vunpack.c.l.b16 %v3756_v29  ;;  %v3129_v8 = vrot.slane %v3127_v39, 4  ;;  %v3763_v30 = vshrl.u32 %v3482_v46, 16  ;;  %v2829_v29 = vld [vmem:[#allocation2 + $0x120] sm:$0xf] }
 0x195   : > { %v3962_v57 = vpop.f32.mrf.mxu2  ;;  %v13518_v21 = vpop.f32.mrf.mxu0  ;;  %v13539_v23 = vrot.slane %v3136_v9, 5  ;;  %v3142_v43 = vrot.slane %v3140_v51, 4  ;;  %v3772_v37 = vshrl.u32 %v3483_v27, 16  ;;  %v3146_v4 = vshll.u32 %v2828_v35, 16 }
 0x196   : > { %v13525_v59 = vadd.f32 %v3962_v57, %v3415_v20  ;;  %v3342_v10 = vpop.f32.mrf.mxu1  ;;  %v2238_v57 = vsel %vm12599_vm12, %v11405_v7, %v2237_v2  ;;  %v3766_v18 = vshll.u32 %v3482_v46, 16  ;;  %v3267_v19 = vpack.c.b16 %v13534_v32, %v13532_v53  ;;  %v1953_v2 = vld [vmem:[#allocation2 + $0x11c] sm:$0x8] }
 0x197   : > { %v3416_v26 = vadd.f32 %v3342_v10, %v2762_v36  ;;  %v3132_v36 = vrot.slane %v3130_v1, 5  ;;  %v3765_v10 = vrot.slane %v3763_v30, 7  ;;  %v3143_v39 = vor.u32 %v3142_v43, %v13539_v23 }
 0x198   : > { %v2436_v20 = vpop.f32.mrf.mxu3  ;;  %v2340_v9 = vunpack.c.l.b16 %v2238_v57  ;;  %v3774_v7 = vrot.slane %v3772_v37, 7  ;;  %v281_v37 = vld [vmem:[%s12558_s26 + $0x78] sm:$0xf] }
 0x199   : > { %11518 = vmatmul.msk.bf16.gmra.mxu1 %vm927_vm3, %v3266_v49  ;;  %v2509_v41 = vadd.f32 %v2436_v20, %v13098_v6  ;;  %v3133_v14 = vor.u32 %v3132_v36, %v3129_v8  ;;  %v3758_v20 = vshrl.u32 %v3481_v16, 16  ;;  %v3768_v53 = vor.u32 %v3766_v18, %v3765_v10  ;;  %315 = vst.msk [vmem:[#allocation2 + $0x148] sm:$0xf] %vm284_vm1, %v281_v37  ;;  %v1958_v37 = vld [vmem:[#allocation2 + $0x138] sm:$0xf] }
 0x19a   : > { %11551 = vmatmul.msk.bf16.gmra.mxu2 %vm927_vm3, %v3889_v60  ;;  %v3770_v32 = vrot.slane %v3765_v10, 4  ;;  %v3144_v30 = vrot.slane %v3143_v39, 4  ;;  %v13570_v39 = vld [vmem:[#allocation2 + $0x134] sm:$0xf] }
 0x19b   : > { %v2763_v49 = vadd.f32 %v13486_v31, %v2509_v41  ;;  %v2247_v31 = vsel %vm12599_vm12, %v2239_v12, %v2246_v3  ;;  %v3775_v41 = vshll.u32 %v3483_v27, 16  ;;  %v2263_v12 = vshrl.u32 %v13552_v61, 16 }
 0x19c   : > { %v2341_v51 = vunpack.c.l.b16 %v2247_v31  ;;  %v3148_v3 = vrot.slane %v3146_v4, 5  ;;  %v3134_v8 = vrot.slane %v3133_v14, 4  ;;  %v2249_v27 = vshrl.u32 %v1953_v2, 16  ;;  %v282_v4 = vld [vmem:[%s12558_s26 + $0x7c] sm:$0xf] }
 0x19d   : > { %v3965_v58 = vpop.f32.mrf.mxu2  ;;  %v13541_v60 = vpop.f32.mrf.mxu0  ;;  %11421 = vmatmul.msk.bf16.gmra.mxu3 %vm927_vm3, %v2359_v52  ;;  %v2254_v52 = vshrl.u32 %v13550_v34, 16  ;;  %v3777_v31 = vor.u32 %v3775_v41, %v3774_v7  ;;  %v2265_v16 = vrot.slane %v2263_v12, 7  ;;  %316 = vst.msk [vmem:[#allocation2 + $0x14c] sm:$0xf] %vm284_vm1, %v282_v4  ;;  %v2831_v12 = vld [vmem:[#allocation2 + $0x128] sm:$0x1]  ;;  %vm13826_vm1 = vmand %vm5184_vm0, %vm329_vm5 }
 0x19e   : > { %v13543_v6 = vadd.f32 %v3965_v58, %v3416_v26  ;;  %v3344_v24 = vpop.f32.mrf.mxu1  ;;  %v3890_v26 = vpack.c.b16 %v3870_v63, %v3869_v54  ;;  %v3151_v54 = vshrl.u32 %v2829_v29, 16  ;;  %v2257_v58 = vshll.u32 %v13550_v34, 16  ;;  %v379_v34 = vld [vmem:[#allocation2 + $0x144] sm:$0x8] }
 0x19f   : > { %v3417_v13 = vadd.f32 %v3344_v24, %v2763_v49  ;;  %v2830_v49 = vld [vmem:[#allocation2 + $0x124] sm:$0xf]  ;;  %v2256_v43 = vrot.slane %v2254_v52, 7  ;;  %v3149_v52 = vsel %vm12616_vm14, %v3144_v30, %v3148_v3  ;;  %v11406_v7 = vrot.slane %v2249_v27, 11 }
 0x1a0   : > { %11503 = vmatmul.msk.bf16.gmra.mxu0 %vm927_vm3, %v12240_v11  ;;  %v2439_v1 = vpop.f32.mrf.mxu3  ;;  %v3154_v11 = vshll.u32 %v2829_v29, 16  ;;  %v3153_v18 = vrot.slane %v3151_v54, 4  ;;  %v3160_v14 = vshll.u32 %v2830_v49, 16  ;;  %v2360_v29 = vpack.c.b16 %v2341_v51, %v2340_v9  ;;  %v3486_v9 = vld [vmem:[#allocation2 + $0x138] sm:$0xf] }
 0x1a1   : > { %v2510_v46 = vadd.f32 %v2439_v1, %v13116_v62  ;;  %v11536_v62 = vrot.slane %v3758_v20, 11  ;;  %v3164_v20 = vshrl.u32 %v2830_v49, 16  ;;  %v2259_v41 = vor.u32 %v2257_v58, %v2256_v43 }
 0x1a2   : > { %v3156_v1 = vrot.slane %v3154_v11, 5  ;;  %v2261_v2 = vrot.slane %v2256_v43, 4  ;;  %v3785_v3 = vshrl.u32 %v13570_v39, 16  ;;  %v3794_v49 = vshrl.u32 %v3486_v9, 16 }
 0x1a3   : > { %v2764_v63 = vadd.f32 %v13505_v38, %v2510_v46  ;;  %v2266_v38 = vshll.u32 %v13552_v61, 16  ;;  %v3139_v61 = vsel %vm12616_vm14, %v3134_v8, %v13539_v23  ;;  %v3769_v46 = vsel %vm12599_vm12, %v11536_v62, %v3768_v53 }
 0x1a4   : > { %v13586_v23 = vrot.slane %v3160_v14, 5  ;;  %v380_v53 = vsel %vm12572_vm9, 0, %v379_v34  ;;  %v3157_v30 = vor.u32 %v3156_v1, %v3153_v18  ;;  %v3249_v62 = vunpack.c.l.b16 %v3149_v52 }
 0x1a5   : > { %v3967_v35 = vpop.f32.mrf.mxu2  ;;  %v13562_v36 = vpop.f32.mrf.mxu0  ;;  %v2268_v54 = vor.u32 %v2266_v38, %v2265_v16  ;;  %381 = vst [vmem:[#allocation2 + $0x144] sm:$0x8] %v380_v53  ;;  %v3871_v27 = vunpack.c.l.b16 %v3769_v46  ;;  %v1957_v38 = vld [vmem:[#allocation2 + $0x134] sm:$0xf]  ;;  %v3787_v14 = vrot.slane %v3785_v3, 7  ;;  %v3788_v1 = vshll.u32 %v13570_v39, 16 }
 0x1a6   : > { %v13565_v24 = vadd.f32 %v3967_v35, %v3417_v13  ;;  %v3347_v57 = vpop.f32.mrf.mxu1  ;;  %v13594_v35 = vunpack.c.l.b16 %v3139_v61  ;;  %v3797_v34 = vshll.u32 %v3486_v9, 16  ;;  %v2832_v53 = vld [vmem:[#allocation2 + $0x134] sm:$0xf]  ;;  %vm5240_vm5 = vcmask 57344  }
 0x1a7   : > { %v3418_v10 = vadd.f32 %v3347_v57, %v2764_v63  ;;  %v3484_v63 = vld [vmem:[#allocation2 + $0x130] sm:$0x8]  ;;  %v2269_v18 = vsel %vm12599_vm12, %v2261_v2, %v2268_v54  ;;  %v3790_v54 = vor.u32 %v3788_v1, %v3787_v14  ;;  %vm13882_vm6 = vmand %vm5240_vm5, %vm386_vm7 }
 0x1a8   : > { %v2441_v13 = vpop.f32.mrf.mxu3  ;;  %v3780_v16 = vshrl.u32 %v3484_v63, 16  ;;  %v3268_v52 = vpack.c.b16 %v3249_v62, %v13594_v35  ;;  %v2343_v39 = vunpack.c.l.b16 %v2269_v18  ;;  %v3792_v63 = vrot.slane %v3787_v14, 4 }
 0x1a9   : > { %11519 = vmatmul.msk.bf16.gmra.mxu1 %vm927_vm3, %v3267_v19  ;;  %v2511_v51 = vadd.f32 %v2441_v13, %v13133_v28  ;;  %v3778_v19 = vsel %vm12599_vm12, %v3770_v32, %v3777_v31  ;;  %v3166_v28 = vrot.slane %v3164_v20, 4  ;;  %v3170_v31 = vshll.u32 %v2831_v12, 16  ;;  %v1956_v13 = vld [vmem:[#allocation2 + $0x130] sm:$0x8] }
 0x1aa   : > { %11552 = vmatmul.msk.bf16.gmra.mxu2 %vm927_vm3, %v3890_v26  ;;  %v12241_v26 = vld [vmem:[#allocation2 + $0x120] sm:$0xff]  ;;  %v3872_v43 = vunpack.c.l.b16 %v3778_v19  ;;  %v11537_v12 = vrot.slane %v3780_v16, 11  ;;  %v2271_v3 = vshrl.u32 %v1956_v13, 16  ;;  %v2279_v35 = vshll.u32 %v1957_v38, 16 }
 0x1ab   : > { %v2765_v8 = vadd.f32 %v13518_v21, %v2511_v51  ;;  %v2260_v21 = vsel %vm12599_vm12, %v11406_v7, %v2259_v41  ;;  %v3167_v20 = vor.u32 %v3166_v28, %v13586_v23  ;;  %v2276_v7 = vshrl.u32 %v1957_v38, 16 }
 0x1ac   : > { %v3891_v46 = vpack.c.b16 %v3872_v43, %v3871_v27  ;;  %v2285_v51 = vshrl.u32 %v1958_v37, 16  ;;  %v2342_v41 = vunpack.c.l.b16 %v2260_v21  ;;  %v3172_v2 = vrot.slane %v3170_v31, 5 }
 0x1ad   : > { %v3970_v32 = vpop.f32.mrf.mxu2  ;;  %v13592_v11 = vpop.f32.mrf.mxu0  ;;  %11422 = vmatmul.msk.bf16.gmra.mxu3 %vm927_vm3, %v2360_v29  ;;  %v3796_v29 = vrot.slane %v3794_v49, 7  ;;  %v2288_v27 = vshll.u32 %v1958_v37, 16  ;;  %v3175_v21 = vshrl.u32 %v2832_v53, 16  ;;  %v3178_v31 = vshll.u32 %v2832_v53, 16  ;;  %v436_v37 = vld [vmem:[#allocation2 + $0x150] sm:$0x1] }
 0x1ae   : > { %v13596_v58 = vadd.f32 %v3970_v32, %v3418_v10  ;;  %v3349_v57 = vpop.f32.mrf.mxu1  ;;  %v3158_v10 = vrot.slane %v3157_v30, 4  ;;  %v3168_v30 = vrot.slane %v3167_v20, 4  ;;  %v2287_v62 = vrot.slane %v2285_v51, 7  ;;  %v3488_v20 = vld [vmem:[#allocation2 + $0x148] sm:$0xf]  ;;  %v12242_v53 = vld [vmem:[#allocation2 + $0x134] sm:$0xff] }
 0x1af   : > { %v3419_v4 = vadd.f32 %v3349_v57, %v2765_v8  ;;  %v2833_v8 = vld [vmem:[#allocation2 + $0x138] sm:$0xf]  ;;  %v3799_v28 = vor.u32 %v3797_v34, %v3796_v29  ;;  %v11407_v18 = vrot.slane %v2271_v3, 11  ;;  %v2361_v1 = vpack.c.b16 %v2343_v39, %v2342_v41 }
 0x1b0   : > { %11504 = vmatmul.msk.bf16.gmra.mxu0 %vm927_vm3, %v12241_v26  ;;  %v2444_v61 = vpop.f32.mrf.mxu3  ;;  %v3163_v26 = vsel %vm12616_vm14, %v3158_v10, %v13586_v23  ;;  %v3184_v16 = vshll.u32 %v2833_v8, 16  ;;  %v3188_v14 = vshrl.u32 %v2833_v8, 16  ;;  %v3173_v23 = vsel %vm12616_vm14, %v3168_v30, %v3172_v2 }
 0x1b1   : > { %v2512_v19 = vadd.f32 %v2444_v61, %v13150_v42  ;;  %v2278_v42 = vrot.slane %v2276_v7, 7  ;;  %v13618_v10 = vunpack.c.l.b16 %v3163_v26  ;;  %v3791_v38 = vsel %vm12599_vm12, %v11537_v12, %v3790_v54  ;;  %v3489_v12 = vld [vmem:[#allocation2 + $0x14c] sm:$0xf] }
 0x1b2   : > { %v3800_v34 = vsel %vm12599_vm12, %v3792_v63, %v3799_v28  ;;  %v2290_v7 = vor.u32 %v2288_v27, %v2287_v62  ;;  %v3180_v41 = vrot.slane %v3178_v31, 5  ;;  %v13627_v2 = vrot.slane %v3184_v16, 5  ;;  %v3487_v62 = vld [vmem:[#allocation2 + $0x144] sm:$0x8]  ;;  %v1960_v16 = vld [vmem:[#allocation2 + $0x148] sm:$0xf] }
 0x1b3   : > { %v2766_v9 = vadd.f32 %v13541_v60, %v2512_v19  ;;  %v2281_v13 = vor.u32 %v2279_v35, %v2278_v42  ;;  %v2283_v61 = vrot.slane %v2278_v42, 4  ;;  %v3177_v19 = vrot.slane %v3175_v21, 4 }
 0x1b4   : > { %v3190_v39 = vrot.slane %v3188_v14, 4  ;;  %v3807_v54 = vshrl.u32 %v3488_v20, 16  ;;  %v13634_v8 = vunpack.c.l.b16 %v3173_v23  ;;  %v3816_v28 = vshrl.u32 %v3489_v12, 16 }
 0x1b5   : > { %v3972_v49 = vpop.f32.mrf.mxu2  ;;  %v13612_v32 = vpop.f32.mrf.mxu0  ;;  %v2282_v22 = vsel %vm12599_vm12, %v11407_v18, %v2281_v13  ;;  %v3181_v35 = vor.u32 %v3180_v41, %v3177_v19  ;;  %v3810_v31 = vshll.u32 %v3488_v20, 16  ;;  %v2298_v20 = vshrl.u32 %v1960_v16, 16 }
 0x1b6   : > { %v13614_v43 = vadd.f32 %v3972_v49, %v3419_v4  ;;  %v3352_v57 = vpop.f32.mrf.mxu1  ;;  %v382_v4 = vld [vmem:[#allocation2 + $0x158] sm:$0x8]  ;;  %v3191_v27 = vor.u32 %v3190_v39, %v13627_v2  ;;  %v3809_v21 = vrot.slane %v3807_v54, 7  ;;  %v2344_v18 = vunpack.c.l.b16 %v2282_v22 }
 0x1b7   : > { %v3420_v60 = vadd.f32 %v3352_v57, %v2766_v9  ;;  %v383_v63 = vsel %vm12572_vm9, 0, %v382_v4  ;;  %v2834_v9 = vld [vmem:[#allocation2 + $0x13c] sm:$0x1]  ;;  %v3819_v4 = vshll.u32 %v3489_v12, 16 }
 0x1b8   : > { %v2446_v29 = vpop.f32.mrf.mxu3  ;;  %384 = vst [vmem:[#allocation2 + $0x158] sm:$0x8] %v383_v63  ;;  %v3194_v57 = vshll.u32 %v2834_v9, 16  ;;  %v3192_v19 = vrot.slane %v3191_v27, 4  ;;  %v3812_v39 = vor.u32 %v3810_v31, %v3809_v21  ;;  %v2301_v27 = vshll.u32 %v1960_v16, 16 }
 0x1b9   : > { %11520 = vmatmul.msk.bf16.gmra.mxu1 %vm927_vm3, %v3268_v52  ;;  %v2513_v51 = vadd.f32 %v2446_v29, %v13169_v40  ;;  %v437_v52 = vsel %vm12579_vm11, 0, %v436_v37  ;;  %v3874_v40 = vunpack.c.l.b16 %v3800_v34  ;;  %v3818_v37 = vrot.slane %v3816_v28, 7  ;;  %v4321_v29 = vld [vmem:[#allocation2 + $0x30] sm:$0xf]  ;;  %v16603_v34 = vld [vmem:[#allocation7_spill] sm:$0xff] }
 0x1ba   : > { %11553 = vmatmul.msk.bf16.gmra.mxu2 %vm927_vm3, %v3891_v46  ;;  %v3873_v46 = vunpack.c.l.b16 %v3791_v38  ;;  %438 = vst [vmem:[#allocation2 + $0x150] sm:$0x1] %v437_v52  ;;  %v3802_v38 = vshrl.u32 %v3487_v62, 16  ;;  %v3196_v41 = vrot.slane %v3194_v57, 5  ;;  %v4370_v63 = vshrl.u32 %v4321_v29, 16 }
 0x1bb   : > { %v2767_v3 = vadd.f32 %v13562_v36, %v2513_v51  ;;  %v2291_v36 = vsel %vm12599_vm12, %v2283_v61, %v2290_v7  ;;  %v3182_v7 = vrot.slane %v3181_v35, 4  ;;  %v1959_v51 = vld [vmem:[#allocation2 + $0x144] sm:$0x8]  ;;  %v3821_v9 = vor.u32 %v3819_v4, %v3818_v37  ;;  %v4322_v28 = vld [vmem:[#allocation2 + $0x34] sm:$0xf] }
 0x1bc   : > { %v3892_v14 = vpack.c.b16 %v3874_v40, %v3873_v46  ;;  %v2345_v61 = vunpack.c.l.b16 %v2291_v36  ;;  %v11538_v12 = vrot.slane %v3802_v38, 11  ;;  %v3814_v40 = vrot.slane %v3809_v21, 4  ;;  %v2835_v31 = vld [vmem:[#allocation2 + $0x148] sm:$0xf] }
 0x1bd   : > { %v3975_v26 = vpop.f32.mrf.mxu2  ;;  %v13636_v30 = vpop.f32.mrf.mxu0  ;;  %11423 = vmatmul.msk.bf16.gmra.mxu3 %vm927_vm3, %v2361_v1  ;;  %v1961_v1 = vld [vmem:[#allocation2 + $0x14c] sm:$0xf]  ;;  %v2300_v62 = vrot.slane %v2298_v20, 7  ;;  %v4379_v21 = vshll.u32 %v4322_v28, 16  ;;  %v4383_v37 = vshrl.u32 %v4322_v28, 16 }
 0x1be   : > { %v13638_v49 = vadd.f32 %v3975_v26, %v3420_v60  ;;  %v3354_v42 = vpop.f32.mrf.mxu1  ;;  %v3269_v60 = vpack.c.b16 %v13634_v8, %v13618_v10  ;;  %v2307_v54 = vshrl.u32 %v1961_v1, 16  ;;  %v2293_v26 = vshrl.u32 %v1959_v51, 16 }
 0x1bf   : > { %v3421_v52 = vadd.f32 %v3354_v42, %v2767_v3  ;;  %v2362_v35 = vpack.c.b16 %v2345_v61, %v2344_v18  ;;  %v2310_v42 = vshll.u32 %v1961_v1, 16  ;;  %v3197_v18 = vsel %vm12616_vm14, %v3192_v19, %v3196_v41  ;;  %v16604_v1 = vld [vmem:[#allocation8_spill] sm:$0xff]  ;;  %v4323_v61 = vld [vmem:[#allocation2 + $0x38] sm:$0x1] }
 0x1c0   : > { %11505 = vmatmul.msk.bf16.gmra.mxu0 %vm927_vm3, %v12242_v53  ;;  %v2449_v23 = vpop.f32.mrf.mxu3  ;;  %v4373_v53 = vshll.u32 %v4321_v29, 16  ;;  %v2309_v3 = vrot.slane %v2307_v54, 7  ;;  %v3813_v16 = vsel %vm12599_vm12, %v11538_v12, %v3812_v39  ;;  %v3822_v29 = vsel %vm12599_vm12, %v3814_v40, %v3821_v9  ;;  %v2836_v54 = vld [vmem:[#allocation2 + $0x14c] sm:$0xf] }
 0x1c1   : > { %v2514_v13 = vadd.f32 %v2449_v23, %v16603_v34  ;;  %v4372_v23 = vrot.slane %v4370_v63, 4  ;;  %v2305_v51 = vrot.slane %v2300_v62, 4  ;;  %v3199_v19 = vshrl.u32 %v2835_v31, 16 }
 0x1c2   : > { %v4375_v38 = vrot.slane %v4373_v53, 5  ;;  %v2312_v20 = vor.u32 %v2310_v42, %v2309_v3  ;;  %v3202_v41 = vshll.u32 %v2835_v31, 16  ;;  %v3253_v63 = vunpack.c.l.b16 %v3197_v18 }
 0x1c3   : > { %v2768_v10 = vadd.f32 %v13592_v11, %v2514_v13  ;;  %v3187_v11 = vsel %vm12616_vm14, %v3182_v7, %v13627_v2  ;;  %v11408_v2 = vrot.slane %v2293_v26, 11  ;;  %v2303_v13 = vor.u32 %v2301_v27, %v2300_v62 }
 0x1c4   : > { %v13667_v7 = vrot.slane %v4379_v21, 5  ;;  %v4376_v53 = vor.u32 %v4375_v38, %v4372_v23  ;;  %v3875_v12 = vunpack.c.l.b16 %v3813_v16  ;;  %v3876_v40 = vunpack.c.l.b16 %v3822_v29  ;;  %v3491_v23 = vld [vmem:[#allocation2 + $0x15c] sm:$0xf]  ;;  %v4324_v16 = vld [vmem:[#allocation2 + $0x44] sm:$0xf]  ;;  %v16605_v29 = vld [vmem:[#allocation9_spill] sm:$0xff] }
 0x1c5   : > { %v3977_v8 = vpop.f32.mrf.mxu2  ;;  %v13651_v46 = vpop.f32.mrf.mxu0  ;;  %v4389_v26 = vshll.u32 %v4323_v61, 16  ;;  %v3208_v62 = vshll.u32 %v2836_v54, 16  ;;  %v3212_v27 = vshrl.u32 %v2836_v54, 16  ;;  %v3201_v3 = vrot.slane %v3199_v19, 4  ;;  %v4325_v61 = vld [vmem:[#allocation2 + $0x48] sm:$0xf] }
 0x1c6   : > { %v13653_v22 = vadd.f32 %v3977_v8, %v3421_v52  ;;  %v3357_v36 = vpop.f32.mrf.mxu1  ;;  %v12243_v52 = vld [vmem:[#allocation2 + $0x148] sm:$0xff]  ;;  %v3204_v42 = vrot.slane %v3202_v41, 5  ;;  %v4377_v38 = vrot.slane %v4376_v53, 4  ;;  %v3832_v54 = vshll.u32 %v3491_v23, 16 }
 0x1c7   : > { %v3422_v57 = vadd.f32 %v3357_v36, %v2768_v10  ;;  %v13670_v10 = vunpack.c.l.b16 %v3187_v11  ;;  %v2313_v11 = vsel %vm12599_vm12, %v2305_v51, %v2312_v20  ;;  %v4391_v18 = vrot.slane %v4389_v26, 5 }
 0x1c8   : > { %v2451_v4 = vpop.f32.mrf.mxu3  ;;  %v3205_v51 = vor.u32 %v3204_v42, %v3201_v3  ;;  %v3829_v20 = vshrl.u32 %v3491_v23, 16  ;;  %v4394_v53 = vshrl.u32 %v4324_v16, 16  ;;  %v4403_v26 = vshll.u32 %v4325_v61, 16 }
 0x1c9   : > { %11521 = vmatmul.msk.bf16.gmra.mxu1 %vm927_vm3, %v3269_v60  ;;  %v2515_v34 = vadd.f32 %v2451_v4, %v16604_v1  ;;  %v4385_v60 = vrot.slane %v4383_v37, 4  ;;  %v3270_v31 = vpack.c.b16 %v3253_v63, %v13670_v10  ;;  %v3893_v37 = vpack.c.b16 %v3876_v40, %v3875_v12  ;;  %v3490_v10 = vld [vmem:[#allocation2 + $0x158] sm:$0x8] }
 0x1ca   : > { %11554 = vmatmul.msk.bf16.gmra.mxu2 %vm927_vm3, %v3892_v14  ;;  %v2347_v1 = vunpack.c.l.b16 %v2313_v11  ;;  %v4382_v63 = vsel %vm12616_vm14, %v4377_v38, %v13667_v7  ;;  %v3824_v3 = vshrl.u32 %v3490_v10, 16  ;;  %v3831_v42 = vrot.slane %v3829_v20, 7 }
 0x1cb   : > { %v2769_v39 = vadd.f32 %v13612_v32, %v2515_v34  ;;  %v4386_v9 = vor.u32 %v4385_v60, %v13667_v7  ;;  %v2304_v32 = vsel %vm12599_vm12, %v11408_v2, %v2303_v13  ;;  %v3210_v34 = vrot.slane %v3208_v62, 5  ;;  %v2837_v60 = vld [vmem:[#allocation2 + $0x150] sm:$0x1] }
 0x1cc   : > { %v3214_v13 = vrot.slane %v3212_v27, 4  ;;  %v3206_v23 = vrot.slane %v3205_v51, 4  ;;  %v4755_v38 = vunpack.c.l.b16 %v4382_v63  ;;  %v11539_v20 = vrot.slane %v3824_v3, 11 }
 0x1cd   : > { %v3980_v14 = vpop.f32.mrf.mxu2  ;;  %v13672_v8 = vpop.f32.mrf.mxu0  ;;  %11424 = vmatmul.msk.bf16.gmra.mxu3 %vm927_vm3, %v2362_v35  ;;  %v2346_v35 = vunpack.c.l.b16 %v2304_v32  ;;  %v4387_v4 = vrot.slane %v4386_v9, 4  ;;  %v4397_v9 = vshll.u32 %v4324_v16, 16  ;;  %v4407_v32 = vshrl.u32 %v4325_v61, 16  ;;  %v16606_v61 = vld [vmem:[#allocation10_spill] sm:$0xff] }
 0x1ce   : > { %v13675_v28 = vadd.f32 %v3980_v14, %v3422_v57  ;;  %v3359_v36 = vpop.f32.mrf.mxu1  ;;  %v3492_v57 = vld [vmem:[#allocation2 + $0x160] sm:$0xf]  ;;  %v4405_v16 = vrot.slane %v4403_v26, 5  ;;  %v3836_v51 = vrot.slane %v3831_v42, 4 }
 0x1cf   : > { %v3838_v19 = vshrl.u32 %v3492_v57, 16  ;;  %v3423_v41 = vadd.f32 %v3359_v36, %v2769_v39  ;;  %v4392_v40 = vsel %vm12616_vm14, %v4387_v4, %v4391_v18  ;;  %v3215_v36 = vor.u32 %v3214_v13, %v3210_v34 }
 0x1d0   : > { %11506 = vmatmul.msk.bf16.gmra.mxu0 %vm927_vm3, %v12243_v52  ;;  %v2454_v21 = vpop.f32.mrf.mxu3  ;;  %v3841_v27 = vshll.u32 %v3492_v57, 16  ;;  %v4396_v4 = vrot.slane %v4394_v53, 4  ;;  %v4399_v18 = vrot.slane %v4397_v9, 5 }
 0x1d1   : > { %v2516_v2 = vadd.f32 %v2454_v21, %v16605_v29  ;;  %v3840_v7 = vrot.slane %v3838_v19, 7  ;;  %v4756_v21 = vunpack.c.l.b16 %v4392_v40  ;;  %v3216_v57 = vrot.slane %v3215_v36, 4 }
 0x1d2   : > { %v3834_v19 = vor.u32 %v3832_v54, %v3831_v42  ;;  %v3211_v40 = vsel %vm12616_vm14, %v3206_v23, %v3210_v34  ;;  %v4328_v34 = vld [vmem:[#allocation2 + $0x5c] sm:$0xf] }
 0x1d3   : > { %v2770_v52 = vadd.f32 %v13636_v30, %v2516_v2  ;;  %v3218_v30 = vshll.u32 %v2837_v60, 16  ;;  %v4409_v2 = vrot.slane %v4407_v32, 4  ;;  %v2363_v60 = vpack.c.b16 %v2347_v1, %v2346_v35 }
 0x1d4   : > { %v3843_v10 = vor.u32 %v3841_v27, %v3840_v7  ;;  %v3254_v36 = vunpack.c.l.b16 %v3211_v40  ;;  %v16607_v7 = vld [vmem:[#allocation11_spill] sm:$0xff] }
 0x1d5   : > { %v3982_v14 = vpop.f32.mrf.mxu2  ;;  %v13689_v12 = vpop.f32.mrf.mxu0  ;;  %v4410_v9 = vor.u32 %v4409_v2, %v4405_v16  ;;  %v4431_v2 = vshrl.u32 %v4328_v34, 16 }
 0x1d6   : > { %v13693_v62 = vadd.f32 %v3982_v14, %v3423_v41  ;;  %v3362_v39 = vpop.f32.mrf.mxu1  ;;  %v3220_v41 = vrot.slane %v3218_v30, 5  ;;  %v3844_v32 = vsel %vm12599_vm12, %v3836_v51, %v3843_v10 }
 0x1d7   : > { %v3424_v11 = vadd.f32 %v3362_v39, %v2770_v52  ;;  %v4326_v52 = vld [vmem:[#allocation2 + $0x4c] sm:$0x1]  ;;  %v4327_v39 = vld [vmem:[#allocation2 + $0x58] sm:$0xf]  ;;  %v4411_v3 = vrot.slane %v4410_v9, 4 }
 0x1d8   : > { %v2456_v29 = vpop.f32.mrf.mxu3  ;;  %v4413_v26 = vshll.u32 %v4326_v52, 16  ;;  %v3221_v54 = vsel %vm12616_vm14, %v3216_v57, %v3220_v41 }
 0x1d9   : > { %11522 = vmatmul.msk.bf16.gmra.mxu1 %vm927_vm3, %v3270_v31  ;;  %v2517_v13 = vadd.f32 %v2456_v29, %v16606_v61  ;;  %v4787_v31 = vpack.c.b16 %v4756_v21, %v4755_v38  ;;  %v3255_v27 = vunpack.c.l.b16 %v3221_v54  ;;  %v3878_v21 = vunpack.c.l.b16 %v3844_v32  ;;  %v12244_v54 = vld [vmem:[#allocation2 + $0x30] sm:$0xff] }
 0x1da   : > { %11555 = vmatmul.msk.bf16.gmra.mxu2 %vm927_vm3, %v3893_v37  ;;  %v4400_v37 = vor.u32 %v4399_v18, %v4396_v4  ;;  %v4415_v42 = vrot.slane %v4413_v26, 5  ;;  %v4418_v29 = vshrl.u32 %v4327_v39, 16  ;;  %v4421_v4 = vshll.u32 %v4327_v39, 16  ;;  %v4329_v26 = vld [vmem:[#allocation2 + $0x60] sm:$0x1] }
 0x1db   : > { %v2771_v63 = vadd.f32 %v13651_v46, %v2517_v13  ;;  %v3835_v46 = vsel %vm12599_vm12, %v11539_v20, %v3834_v19  ;;  %v4427_v18 = vshll.u32 %v4328_v34, 16  ;;  %v3271_v57 = vpack.c.b16 %v3255_v27, %v3254_v36 }
 0x1dc   : > { %v3877_v38 = vunpack.c.l.b16 %v3835_v46  ;;  %v4416_v20 = vsel %vm12616_vm14, %v4411_v3, %v4415_v42  ;;  %v4423_v40 = vrot.slane %v4421_v4, 5  ;;  %v4437_v39 = vshll.u32 %v4329_v26, 16 }
 0x1dd   : > { %v3985_v14 = vpop.f32.mrf.mxu2  ;;  %v13699_v53 = vpop.f32.mrf.mxu0  ;;  %11425 = vmatmul.msk.bf16.gmra.mxu3 %vm927_vm3, %v2363_v60  ;;  %v4758_v9 = vunpack.c.l.b16 %v4416_v20 }
 0x1de   : > { %v13703_v35 = vadd.f32 %v3985_v14, %v3424_v11  ;;  %v3364_v1 = vpop.f32.mrf.mxu1  ;;  %v4401_v11 = vrot.slane %v4400_v37, 4  ;;  %v3894_v10 = vpack.c.b16 %v3878_v21, %v3877_v38  ;;  %v4433_v37 = vrot.slane %v4431_v2, 4  ;;  %v4331_v21 = vld [vmem:[#allocation2 + $0x70] sm:$0xf] }
 0x1df   : > { %v3425_v61 = vadd.f32 %v3364_v1, %v2771_v63  ;;  %v4429_v63 = vrot.slane %v4427_v18, 5 }
 0x1e0   : > { %11639 = vmatmul.msk.bf16.vlgmr.msra.gmra.mxu0 %vm927_vm3, %v4787_v31  ;;  %v2459_v30 = vpop.f32.mrf.mxu3  ;;  %v4406_v52 = vsel %vm12616_vm14, %v4401_v11, %v4405_v16  ;;  %v4420_v31 = vrot.slane %v4418_v29, 4 }
 0x1e1   : > { %v2518_v23 = vadd.f32 %v2459_v30, %v16607_v7  ;;  %v4434_v32 = vor.u32 %v4433_v37, %v4429_v63 }
 0x1e2   : > { %v4424_v46 = vor.u32 %v4423_v40, %v4420_v31  ;;  %v12196_v31 = vld [vmem:[%s12558_s26] sm:$0xff] }
 0x1e3   : > { %v2772_v13 = vadd.f32 %v13672_v8, %v2518_v23  ;;  %v4757_v8 = vunpack.c.l.b16 %v4406_v52  ;;  %v4435_v7 = vrot.slane %v4434_v32, 4  ;;  %v4439_v23 = vrot.slane %v4437_v39, 5 }
 0x1e4   : > { %v4425_v42 = vrot.slane %v4424_v46, 4 }
 0x1e5   : > { %v3987_v60 = vpop.f32.mrf.mxu2  ;;  %v13715_v41 = vpop.f32.mrf.mxu0  ;;  %v4788_v34 = vpack.c.b16 %v4758_v9, %v4757_v8  ;;  %v4440_v4 = vsel %vm12616_vm14, %v4435_v7, %v4439_v23 }
 0x1e6   : > { %v13721_v19 = vadd.f32 %v3987_v60, %v3425_v61  ;;  %v3367_v51 = vpop.f32.mrf.mxu1  ;;  %v4451_v60 = vshll.u32 %v4331_v21, 16  ;;  %v4760_v40 = vunpack.c.l.b16 %v4440_v4 }
 0x1e7   : > { %v3426_v14 = vadd.f32 %v3367_v51, %v2772_v13 }
 0x1e8   : > { %v2461_v1 = vpop.f32.mrf.mxu3  ;;  %v4453_v8 = vrot.slane %v4451_v60, 5 }
 0x1e9   : > { %11523 = vmatmul.msk.bf16.gmra.mxu1 %vm927_vm3, %v3271_v57  ;;  %v2519_v16 = vadd.f32 %v2461_v1, %v13277_v47  ;;  %v4330_v47 = vld [vmem:[#allocation2 + $0x6c] sm:$0xf]  ;;  %v4455_v57 = vshrl.u32 %v4331_v21, 16  ;;  %v4332_v1 = vld [vmem:[#allocation2 + $0x74] sm:$0x1] }
 0x1ea   : > { %11556 = vmatmul.msk.bf16.gmra.mxu2 %vm927_vm3, %v3894_v10  ;;  %v4442_v18 = vshrl.u32 %v4330_v47, 16  ;;  %v4445_v2 = vshll.u32 %v4330_v47, 16  ;;  %v4334_v21 = vld [vmem:[#allocation2 + $0x84] sm:$0xf] }
 0x1eb   : > { %v2773_v36 = vadd.f32 %v13689_v12, %v2519_v16  ;;  %v4430_v12 = vsel %vm12616_vm14, %v4425_v42, %v4429_v63  ;;  %v4457_v9 = vrot.slane %v4455_v57, 4  ;;  %v12245_v16 = vld [vmem:[#allocation2 + $0x44] sm:$0xff]  ;;  %v4475_v57 = vshll.u32 %v4334_v21, 16 }
 0x1ec   : > { %v4444_v63 = vrot.slane %v4442_v18, 4  ;;  %v4447_v37 = vrot.slane %v4445_v2, 5 }
 0x1ed   : > { %v3990_v30 = vpop.f32.mrf.mxu2  ;;  %v2723_v27 = vpop.f32.mrf.mxu0  ;;  %11622 = vmatmul.msk.bf16.vlgmr.msra.gmra.mxu3 %vm927_vm3, %v12244_v54  ;;  %v4458_v39 = vor.u32 %v4457_v9, %v4453_v8 }
 0x1ee   : > { %v13727_v11 = vadd.f32 %v3990_v30, %v3426_v14  ;;  %v3369_v3 = vpop.f32.mrf.mxu1  ;;  %v4759_v14 = vunpack.c.l.b16 %v4430_v12  ;;  %v4448_v32 = vor.u32 %v4447_v37, %v4444_v63 }
 0x1ef   : > { %v3427_v61 = vadd.f32 %v3369_v3, %v2773_v36  ;;  %v4461_v36 = vshll.u32 %v4332_v1, 16  ;;  %v4459_v23 = vrot.slane %v4458_v39, 4  ;;  %v12246_v1 = vld [vmem:[#allocation2 + $0x58] sm:$0xff] }
 0x1f0   : > { %11640 = vmatmul.msk.bf16.gmra.mxu0 %vm927_vm3, %v4788_v34  ;;  %v2464_v38 = vpop.f32.mrf.mxu3  ;;  %v4789_v54 = vpack.c.b16 %v4760_v40, %v4759_v14  ;;  %v4449_v7 = vrot.slane %v4448_v32, 4 }
 0x1f1   : > { %v2520_v29 = vadd.f32 %v2464_v38, %v13298_v5  ;;  %v4463_v47 = vrot.slane %v4461_v36, 5 }
 0x1f2   : > { %v4454_v4 = vsel %vm12616_vm14, %v4449_v7, %v4453_v8  ;;  %v4477_v8 = vrot.slane %v4475_v57, 5 }
 0x1f3   : > { %v2774_v13 = vadd.f32 %v13699_v53, %v2520_v29  ;;  %v4464_v18 = vsel %vm12616_vm14, %v4459_v23, %v4463_v47  ;;  %v4761_v14 = vunpack.c.l.b16 %v4454_v4  ;;  %v4336_v23 = vld [vmem:[#allocation2 + $0x94] sm:$0xf]  ;;  %v4337_v47 = vld [vmem:[#allocation2 + $0x98] sm:$0xf] }
 0x1f4   : > { %v4503_v4 = vshrl.u32 %v4337_v47, 16 }
 0x1f5   : > { %v3992_v52 = vpop.f32.mrf.mxu2  ;;  %v2725_v20 = vpop.f32.mrf.mxu0 }
 0x1f6   : > { %v13737_v51 = vadd.f32 %v3992_v52, %v3427_v61  ;;  %v3372_v10 = vpop.f32.mrf.mxu1  ;;  %v4479_v52 = vshrl.u32 %v4334_v21, 16  ;;  %v4490_v21 = vshrl.u32 %v4336_v23, 16 }
 0x1f7   : > { %v3428_v5 = vadd.f32 %v3372_v10, %v2774_v13 }
 0x1f8   : > { %v2466_v26 = vpop.f32.mrf.mxu3  ;;  %v4481_v9 = vrot.slane %v4479_v52, 4 }
 0x1f9   : > { %v2521_v53 = vadd.f32 %v2466_v26, %v13313_v50 }
 0x1fa   : > { %11751 = vmatmul.msk.bf16.vlgmr.msra.gmra.mxu2 %vm927_vm3, %v12196_v31  ;;  %v12197_v31 = vld [vmem:[%s12558_s26 + $0x8] sm:$0xff]  ;;  %v4482_v36 = vor.u32 %v4481_v9, %v4477_v8 }
 0x1fb   : > { %v2775_v46 = vadd.f32 %v13715_v41, %v2521_v53  ;;  %v4333_v41 = vld [vmem:[#allocation2 + $0x80] sm:$0xf]  ;;  %v4335_v53 = vld [vmem:[#allocation2 + $0x88] sm:$0x1] }
 0x1fc   : > { %v4466_v13 = vshrl.u32 %v4333_v41, 16  ;;  %v4469_v60 = vshll.u32 %v4333_v41, 16 }
 0x1fd   : > { %v3995_v34 = vpop.f32.mrf.mxu2  ;;  %v2728_v30 = vpop.f32.mrf.mxu0  ;;  %11623 = vmatmul.msk.bf16.gmra.mxu3 %vm927_vm3, %v12245_v16 }
 0x1fe   : > { %v13743_v3 = vadd.f32 %v3995_v34, %v3428_v5  ;;  %v3374_v42 = vpop.f32.mrf.mxu1  ;;  %v4468_v63 = vrot.slane %v4466_v13, 4  ;;  %v4471_v37 = vrot.slane %v4469_v60, 5  ;;  %v4485_v34 = vshll.u32 %v4335_v53, 16 }
 0x1ff   : > { %v3429_v29 = vadd.f32 %v3374_v42, %v2775_v46 }
 0x200   : > { %11641 = vmatmul.msk.bf16.gmra.mxu0 %vm927_vm3, %v4789_v54  ;;  %v2469_v50 = vpop.f32.mrf.mxu3  ;;  %v4472_v39 = vor.u32 %v4471_v37, %v4468_v63  ;;  %v4505_v63 = vrot.slane %v4503_v4, 4 }
 0x201   : > { %v2522_v38 = vadd.f32 %v2469_v50, %v13341_v48 }
 0x202   : > { %v4473_v50 = vrot.slane %v4472_v39, 4 }
 0x203   : > { %v2776_v12 = vadd.f32 %v2723_v27, %v2522_v38  ;;  %v4762_v27 = vunpack.c.l.b16 %v4464_v18  ;;  %v4487_v38 = vrot.slane %v4485_v34, 5 }
 0x204   : > { %v4478_v57 = vsel %vm12616_vm14, %v4473_v50, %v4477_v8 }
 0x205   : > { %v3997_v2 = vpop.f32.mrf.mxu2  ;;  %v13752_v61 = vpop.f32.mrf.mxu0  ;;  %v4790_v54 = vpack.c.b16 %v4762_v27, %v4761_v14  ;;  %v4492_v14 = vrot.slane %v4490_v21, 4  ;;  %v4763_v37 = vunpack.c.l.b16 %v4478_v57 }
 0x206   : > { %v13754_v10 = vadd.f32 %v3997_v2, %v3429_v29  ;;  %v3377_v48 = vpop.f32.mrf.mxu1  ;;  %v4493_v29 = vshll.u32 %v4336_v23, 16 }
 0x207   : > { %v3430_v5 = vadd.f32 %v3377_v48, %v2776_v12  ;;  %v4499_v12 = vshll.u32 %v4337_v47, 16 }
 0x208   : > { %v2471_v40 = vpop.f32.mrf.mxu3  ;;  %v4495_v27 = vrot.slane %v4493_v29, 5 }
 0x209   : > { %v2523_v26 = vadd.f32 %v2471_v40, %v13359_v0  ;;  %v4501_v40 = vrot.slane %v4499_v12, 5 }
 0x20a   : > { %11752 = vmatmul.msk.bf16.gmra.mxu2 %vm927_vm3, %v12197_v31  ;;  %v4496_v53 = vor.u32 %v4495_v27, %v4492_v14  ;;  %v12199_v14 = vld [vmem:[%s12558_s26 + $0x18] sm:$0xff] }
 0x20b   : > { %v2777_v16 = vadd.f32 %v2725_v20, %v2523_v26  ;;  %v4483_v20 = vrot.slane %v4482_v36, 4 }
 0x20c   : > { %v4497_v47 = vrot.slane %v4496_v53, 4 }
 0x20d   : > { %v4000_v46 = vpop.f32.mrf.mxu2  ;;  %v13759_v32 = vpop.f32.mrf.mxu0  ;;  %11624 = vmatmul.msk.bf16.gmra.mxu3 %vm927_vm3, %v12246_v1  ;;  %v4488_v52 = vsel %vm12616_vm14, %v4483_v20, %v4487_v38  ;;  %v12247_v1 = vld [vmem:[#allocation2 + $0x6c] sm:$0xff] }
 0x20e   : > { %v13761_v42 = vadd.f32 %v4000_v46, %v3430_v5  ;;  %v3379_v7 = vpop.f32.mrf.mxu1  ;;  %v12198_v5 = vld [vmem:[%s12558_s26 + $0x10] sm:$0xff]  ;;  %v4764_v9 = vunpack.c.l.b16 %v4488_v52 }
 0x20f   : > { %v3431_v18 = vadd.f32 %v3379_v7, %v2777_v16  ;;  %v4506_v16 = vor.u32 %v4505_v63, %v4501_v40  ;;  %v4340_v38 = vld [vmem:[#allocation2 + $0xac] sm:$0xf] }
 0x210   : > { %11642 = vmatmul.msk.bf16.gmra.mxu0 %vm927_vm3, %v4790_v54  ;;  %v2474_v0 = vpop.f32.mrf.mxu3  ;;  %v4791_v39 = vpack.c.b16 %v4764_v9, %v4763_v37 }
 0x211   : > { %v2524_v41 = vadd.f32 %v2474_v0, %v13386_v15  ;;  %v4507_v0 = vrot.slane %v4506_v16, 4 }
 0x213   : > { %v2778_v2 = vadd.f32 %v2728_v30, %v2524_v41  ;;  %v4338_v30 = vld [vmem:[#allocation2 + $0x9c] sm:$0x1] }
 0x214   : > { %v4509_v54 = vshll.u32 %v4338_v30, 16 }
 0x215   : > { %v4002_v13 = vpop.f32.mrf.mxu2  ;;  %v2735_v60 = vpop.f32.mrf.mxu0 }
 0x216   : > { %v13770_v48 = vadd.f32 %v4002_v13, %v3431_v18  ;;  %v3382_v31 = vpop.f32.mrf.mxu1  ;;  %v4511_v50 = vrot.slane %v4509_v54, 5  ;;  %v4527_v13 = vshrl.u32 %v4340_v38, 16 }
 0x217   : > { %v3432_v15 = vadd.f32 %v3382_v31, %v2778_v2  ;;  %v4523_v2 = vshll.u32 %v4340_v38, 16 }
 0x218   : > { %v2476_v26 = vpop.f32.mrf.mxu3  ;;  %v4512_v21 = vsel %vm12616_vm14, %v4507_v0, %v4511_v50  ;;  %v4529_v9 = vrot.slane %v4527_v13, 4 }
 0x219   : > { %v2525_v8 = vadd.f32 %v2476_v26, %v13403_v44  ;;  %v4339_v44 = vld [vmem:[#allocation2 + $0xa8] sm:$0xf]  ;;  %v4766_v27 = vunpack.c.l.b16 %v4512_v21  ;;  %v4525_v37 = vrot.slane %v4523_v2, 5  ;;  %v4341_v26 = vld [vmem:[#allocation2 + $0xb0] sm:$0x1] }
 0x21a   : > { %11753 = vmatmul.msk.bf16.gmra.mxu2 %vm927_vm3, %v12198_v5  ;;  %v4514_v29 = vshrl.u32 %v4339_v44, 16  ;;  %v4517_v12 = vshll.u32 %v4339_v44, 16  ;;  %v4343_v21 = vld [vmem:[#allocation2 + $0xc0] sm:$0xf] }
 0x21b   : > { %v2779_v46 = vadd.f32 %v13752_v61, %v2525_v8  ;;  %v4502_v61 = vsel %vm12616_vm14, %v4497_v47, %v4501_v40 }
 0x21c   : > { %v4516_v40 = vrot.slane %v4514_v29, 4  ;;  %v4519_v63 = vrot.slane %v4517_v12, 5 }
 0x21d   : > { %v4005_v36 = vpop.f32.mrf.mxu2  ;;  %v2738_v34 = vpop.f32.mrf.mxu0  ;;  %11625 = vmatmul.msk.bf16.gmra.mxu3 %vm927_vm3, %v12247_v1  ;;  %v12248_v1 = vld [vmem:[#allocation2 + $0x80] sm:$0xff] }
 0x21e   : > { %v13776_v7 = vadd.f32 %v4005_v36, %v3432_v15  ;;  %v3384_v23 = vpop.f32.mrf.mxu1  ;;  %v4765_v15 = vunpack.c.l.b16 %v4502_v61  ;;  %v4520_v54 = vor.u32 %v4519_v63, %v4516_v40  ;;  %v12200_v40 = vld [vmem:[%s12558_s26 + $0x20] sm:$0xff] }
 0x21f   : > { %v3433_v4 = vadd.f32 %v3384_v23, %v2779_v46  ;;  %v4530_v46 = vor.u32 %v4529_v9, %v4525_v37 }
 0x220   : > { %11643 = vmatmul.msk.bf16.gmra.mxu0 %vm927_vm3, %v4791_v39  ;;  %v2479_v20 = vpop.f32.mrf.mxu3  ;;  %v4792_v53 = vpack.c.b16 %v4766_v27, %v4765_v15  ;;  %v4533_v39 = vshll.u32 %v4341_v26, 16  ;;  %v4521_v50 = vrot.slane %v4520_v54, 4  ;;  %v4344_v54 = vld [vmem:[#allocation2 + $0xc4] sm:$0x1] }
 0x221   : > { %v2526_v41 = vadd.f32 %v2479_v20, %v13436_v33  ;;  %v4531_v44 = vrot.slane %v4530_v46, 4 }
 0x222   : > { %v4535_v20 = vrot.slane %v4533_v39, 5 }
 0x223   : > { %v2780_v18 = vadd.f32 %v13759_v32, %v2526_v41  ;;  %v16608_v32 = vld [vmem:[#allocation20_spill] sm:$0xff] }
 0x224   : > { %v16609_v41 = vld [vmem:[#allocation12_spill] sm:$0xff] }
 0x225   : > { %v4007_v57 = vpop.f32.mrf.mxu2  ;;  %v2740_v52 = vpop.f32.mrf.mxu0 }
 0x226   : > { %v13786_v31 = vadd.f32 %v4007_v57, %v3433_v4  ;;  %v3387_v5 = vpop.f32.mrf.mxu1  ;;  %v4526_v4 = vsel %vm12616_vm14, %v4521_v50, %v4525_v37 }
 0x227   : > { %v3434_v33 = vadd.f32 %v3387_v5, %v2780_v18  ;;  %v4536_v18 = vsel %vm12616_vm14, %v4531_v44, %v4535_v20  ;;  %v4767_v9 = vunpack.c.l.b16 %v4526_v4  ;;  %v4557_v20 = vshll.u32 %v4344_v54, 16  ;;  %v16611_v4 = vld [vmem:[#allocation14_spill] sm:$0xff] }
 0x228   : > { %v2481_v30 = vpop.f32.mrf.mxu3 }
 0x229   : > { %v2527_v8 = vadd.f32 %v2481_v30, %v16608_v32 }
 0x22a   : > { %11754 = vmatmul.msk.bf16.gmra.mxu2 %vm927_vm3, %v12199_v14  ;;  %v4547_v14 = vshll.u32 %v4343_v21, 16 }
 0x22b   : > { %v2781_v16 = vadd.f32 %v2735_v60, %v2527_v8  ;;  %v4342_v60 = vld [vmem:[#allocation2 + $0xbc] sm:$0xf] }
 0x22c   : > { %v4538_v57 = vshrl.u32 %v4342_v60, 16  ;;  %v4541_v5 = vshll.u32 %v4342_v60, 16  ;;  %v4549_v32 = vrot.slane %v4547_v14, 5 }
 0x22d   : > { %v4010_v36 = vpop.f32.mrf.mxu2  ;;  %v2743_v23 = vpop.f32.mrf.mxu0  ;;  %11626 = vmatmul.msk.bf16.gmra.mxu3 %vm927_vm3, %v12248_v1  ;;  %v16610_v1 = vld [vmem:[#allocation13_spill] sm:$0xff] }
 0x22e   : > { %v13791_v47 = vadd.f32 %v4010_v36, %v3434_v33  ;;  %v3389_v0 = vpop.f32.mrf.mxu1  ;;  %v4551_v33 = vshrl.u32 %v4343_v21, 16  ;;  %v4540_v26 = vrot.slane %v4538_v57, 4  ;;  %v4543_v37 = vrot.slane %v4541_v5, 5 }
 0x22f   : > { %v3435_v29 = vadd.f32 %v3389_v0, %v2781_v16  ;;  %v12249_v16 = vld [vmem:[#allocation2 + $0x94] sm:$0xff] }
 0x230   : > { %11644 = vmatmul.msk.bf16.gmra.mxu0 %vm927_vm3, %v4792_v53  ;;  %v2484_v38 = vpop.f32.mrf.mxu3  ;;  %v4553_v8 = vrot.slane %v4551_v33, 4  ;;  %v4544_v50 = vor.u32 %v4543_v37, %v4540_v26  ;;  %v12201_v37 = vld [vmem:[%s12558_s26 + $0x28] sm:$0xff] }
 0x231   : > { %v2528_v61 = vadd.f32 %v2484_v38, %v16609_v41 }
 0x232   : > { %v4554_v44 = vor.u32 %v4553_v8, %v4549_v32  ;;  %v4545_v21 = vrot.slane %v4544_v50, 4 }
 0x233   : > { %v2782_v12 = vadd.f32 %v2738_v34, %v2528_v61  ;;  %v4768_v34 = vunpack.c.l.b16 %v4536_v18  ;;  %v4345_v61 = vld [vmem:[#allocation2 + $0xd0] sm:$0xf] }
 0x234   : > { %v4565_v57 = vshll.u32 %v4345_v61, 16 }
 0x235   : > { %v4012_v2 = vpop.f32.mrf.mxu2  ;;  %v13800_v13 = vpop.f32.mrf.mxu0  ;;  %v4793_v39 = vpack.c.b16 %v4768_v34, %v4767_v9  ;;  %v4550_v9 = vsel %vm12616_vm14, %v4545_v21, %v4549_v32  ;;  %v16612_v32 = vld [vmem:[#allocation15_spill] sm:$0xff] }
 0x236   : > { %v13802_v15 = vadd.f32 %v4012_v2, %v3435_v29  ;;  %v3392_v27 = vpop.f32.mrf.mxu1  ;;  %v4555_v29 = vrot.slane %v4554_v44, 4  ;;  %v4562_v2 = vshrl.u32 %v4345_v61, 16  ;;  %v12250_v44 = vld [vmem:[#allocation2 + $0xa8] sm:$0xff] }
 0x237   : > { %v3436_v63 = vadd.f32 %v3392_v27, %v2782_v12  ;;  %v4346_v12 = vld [vmem:[#allocation2 + $0xd4] sm:$0xf] }
 0x238   : > { %v2486_v30 = vpop.f32.mrf.mxu3  ;;  %v4571_v33 = vshll.u32 %v4346_v12, 16  ;;  %v4575_v27 = vshrl.u32 %v4346_v12, 16 }
 0x239   : > { %v2529_v53 = vadd.f32 %v2486_v30, %v16610_v1  ;;  %v4564_v1 = vrot.slane %v4562_v2, 4  ;;  %v5186_v2 = vld [vmem:[#allocation3 + $0x4] sm:$0x8] }
 0x23a   : > { %11755 = vmatmul.msk.bf16.gmra.mxu2 %vm927_vm3, %v12200_v40  ;;  %v4573_v54 = vrot.slane %v4571_v33, 5  ;;  %v4348_v33 = vld [vmem:[#allocation2 + $0xe4] sm:$0xf] }
 0x23b   : > { %v2783_v46 = vadd.f32 %v2740_v52, %v2529_v53  ;;  %v4559_v52 = vrot.slane %v4557_v20, 5  ;;  %v4567_v53 = vrot.slane %v4565_v57, 5 }
 0x23d   : > { %v4015_v36 = vpop.f32.mrf.mxu2  ;;  %v13807_v0 = vpop.f32.mrf.mxu0  ;;  %11627 = vmatmul.msk.bf16.gmra.mxu3 %vm927_vm3, %v12249_v16  ;;  %v4560_v34 = vsel %vm12616_vm14, %v4555_v29, %v4559_v52  ;;  %v4769_v16 = vunpack.c.l.b16 %v4550_v9  ;;  %v4568_v20 = vor.u32 %v4567_v53, %v4564_v1 }
 0x23e   : > { %v13809_v38 = vadd.f32 %v4015_v36, %v3436_v63  ;;  %v3394_v41 = vpop.f32.mrf.mxu1  ;;  %v4347_v36 = vld [vmem:[#allocation2 + $0xd8] sm:$0x1] }
 0x23f   : > { %v3437_v5 = vadd.f32 %v3394_v41, %v2783_v46  ;;  %v4577_v46 = vrot.slane %v4575_v27, 4  ;;  %v16613_v41 = vmov 0  ;;  %v4581_v29 = vshll.u32 %v4347_v36, 16 }
 0x240   : > { %11645 = vmatmul.msk.bf16.gmra.mxu0 %vm927_vm3, %v4793_v39  ;;  %v2489_v60 = vpop.f32.mrf.mxu3  ;;  %v16614_v41 = vsel %vm13826_vm1, 4294967295, %v16613_v41  ;;  %v4569_v57 = vrot.slane %v4568_v20, 4 }
 0x241   : > { %v2530_v18 = vadd.f32 %v2489_v60, %v16611_v4  ;;  %16615 = vst [vmem:[#allocation7_spill] sm:$0xff] %v16614_v41  ;;  %v4578_v21 = vor.u32 %v4577_v46, %v4573_v54 }
 0x243   : > { %v2784_v14 = vadd.f32 %v2743_v23, %v2530_v18  ;;  %v4770_v23 = vunpack.c.l.b16 %v4560_v34  ;;  %v4349_v34 = vld [vmem:[#allocation2 + $0xe8] sm:$0xf] }
 0x244   : > { %v4599_v36 = vshrl.u32 %v4349_v34, 16 }
 0x245   : > { %v4017_v40 = vpop.f32.mrf.mxu2  ;;  %v13814_v63 = vpop.f32.mrf.mxu0  ;;  %v4794_v60 = vpack.c.b16 %v4770_v23, %v4769_v16  ;;  %v4589_v16 = vshll.u32 %v4348_v33, 16 }
 0x246   : > { %v13820_v30 = vadd.f32 %v4017_v40, %v3437_v5  ;;  %v3397_v26 = vpop.f32.mrf.mxu1  ;;  %v5187_v5 = vsel %vm13826_vm1, 0, %v5186_v2  ;;  %v16616_v40 = vld [vmem:[#allocation16_spill] sm:$0xff] }
 0x247   : > { %v3438_v8 = vadd.f32 %v3397_v26, %v2784_v14  ;;  %v4579_v14 = vrot.slane %v4578_v21, 4  ;;  %5188 = vst [vmem:[#allocation3 + $0x4] sm:$0x8] %v5187_v5  ;;  %v4574_v26 = vsel %vm12616_vm14, %v4569_v57, %v4573_v54  ;;  %v4591_v2 = vrot.slane %v4589_v16, 5 }
 0x248   : > { %v2491_v39 = vpop.f32.mrf.mxu3 }
 0x249   : > { %v2531_v50 = vadd.f32 %v2491_v39, %v16612_v32  ;;  %v4595_v39 = vshll.u32 %v4349_v34, 16  ;;  %v5298_v32 = vld [vmem:[#allocation3 + $0x8] sm:$0xf] }
 0x24a   : > { %11756 = vmatmul.msk.bf16.gmra.mxu2 %vm927_vm3, %v12201_v37  ;;  %v4586_v37 = vshrl.u32 %v4348_v33, 16  ;;  %v5351_v54 = vshrl.u32 %v5298_v32, 16  ;;  %v16618_v34 = vld [vmem:[#allocation17_spill] sm:$0xff] }
 0x24b   : > { %v2785_v61 = vadd.f32 %v13800_v13, %v2531_v50  ;;  %v4583_v13 = vrot.slane %v4581_v29, 5  ;;  %v5299_v50 = vld [vmem:[#allocation3 + $0xc] sm:$0xf]  ;;  %v4771_v29 = vunpack.c.l.b16 %v4574_v26  ;;  %v4597_v33 = vrot.slane %v4595_v39, 5 }
 0x24c   : > { %v5360_v21 = vshrl.u32 %v5299_v50, 16  ;;  %v5353_v5 = vrot.slane %v5351_v54, 7 }
 0x24d   : > { %v4020_v52 = vpop.f32.mrf.mxu2  ;;  %v13831_v12 = vpop.f32.mrf.mxu0  ;;  %11628 = vmatmul.msk.bf16.gmra.mxu3 %vm927_vm3, %v12250_v44  ;;  %v4584_v53 = vsel %vm12616_vm14, %v4579_v14, %v4583_v13  ;;  %v5354_v14 = vshll.u32 %v5298_v32, 16 }
 0x24e   : > { %v13833_v4 = vadd.f32 %v4020_v52, %v3438_v8  ;;  %v3399_v18 = vpop.f32.mrf.mxu1  ;;  %v4588_v52 = vrot.slane %v4586_v37, 4 }
 0x24f   : > { %v3439_v8 = vadd.f32 %v3399_v18, %v2785_v61  ;;  %v5297_v18 = vld [vmem:[#allocation3 + $0x4] sm:$0x8]  ;;  %v5356_v26 = vor.u32 %v5354_v14, %v5353_v5 }
 0x250   : > { %11646 = vmatmul.msk.bf16.gmra.mxu0 %vm927_vm3, %v4794_v60  ;;  %v2494_v27 = vpop.f32.mrf.mxu3  ;;  %v12202_v60 = vld [vmem:[%s12558_s26 + $0x30] sm:$0xff]  ;;  %v5346_v57 = vshrl.u32 %v5297_v18, 16  ;;  %v4592_v54 = vor.u32 %v4591_v2, %v4588_v52 }
 0x251   : > { %v2532_v9 = vadd.f32 %v2494_v27, %v16616_v40  ;;  %v4601_v27 = vrot.slane %v4599_v36, 4  ;;  %v5362_v40 = vrot.slane %v5360_v21, 7 }
 0x253   : > { %v2786_v1 = vadd.f32 %v13807_v0, %v2532_v9  ;;  %v4772_v0 = vunpack.c.l.b16 %v4584_v53  ;;  %v5363_v9 = vshll.u32 %v5299_v50, 16  ;;  %v5358_v53 = vrot.slane %v5353_v5, 4 }
 0x254   : > { %v4602_v50 = vor.u32 %v4601_v27, %v4597_v33 }
 0x255   : > { %v4022_v23 = vpop.f32.mrf.mxu2  ;;  %v13845_v46 = vpop.f32.mrf.mxu0  ;;  %v5365_v37 = vor.u32 %v5363_v9, %v5362_v40  ;;  %v16619_v40 = vld [vmem:[#allocation18_spill] sm:$0xff] }
 0x256   : > { %v13847_v44 = vadd.f32 %v4022_v23, %v3439_v8  ;;  %v3402_v20 = vpop.f32.mrf.mxu1  ;;  %v12251_v23 = vld [vmem:[#allocation2 + $0xbc] sm:$0xff]  ;;  %v4603_v27 = vrot.slane %v4602_v50, 4 }
 0x257   : > { %v3440_v61 = vadd.f32 %v3402_v20, %v2786_v1  ;;  %v11655_v1 = vrot.slane %v5346_v57, 11  ;;  %v4795_v20 = vpack.c.b16 %v4772_v0, %v4771_v29  ;;  %v5366_v21 = vsel %vm12599_vm12, %v5358_v53, %v5365_v37  ;;  %v5189_v29 = vld [vmem:[#allocation3 + $0x18] sm:$0x8]  ;;  %v4351_v0 = vld [vmem:[#allocation2 + $0xf8] sm:$0xf] }
 0x258   : > { %16617 = vst [vmem:[#allocation8_spill] sm:$0xff] %v13847_v44  ;;  %v2496_v13 = vpop.f32.mrf.mxu3  ;;  %v4350_v44 = vld [vmem:[#allocation2 + $0xec] sm:$0x1]  ;;  %v5190_v52 = vsel %vm13826_vm1, 0, %v5189_v29 }
 0x259   : > { %v2533_v8 = vadd.f32 %v2496_v13, %v16618_v34  ;;  %v5357_v39 = vsel %vm12599_vm12, %v11655_v1, %v5356_v26  ;;  %5191 = vst [vmem:[#allocation3 + $0x18] sm:$0x8] %v5190_v52  ;;  %v4593_v13 = vrot.slane %v4592_v54, 4  ;;  %v4610_v34 = vshrl.u32 %v4351_v0, 16  ;;  %v4353_v52 = vld [vmem:[#allocation2 + $0x100] sm:$0x1] }
 0x25a   : > { %11757 = vmatmul.msk.bf16.gmra.mxu2 %vm927_vm3, %v12202_v60  ;;  %v4605_v60 = vshll.u32 %v4350_v44, 16  ;;  %v5698_v18 = vunpack.c.l.b16 %v5357_v39  ;;  %v4352_v44 = vld [vmem:[#allocation2 + $0xfc] sm:$0xf] }
 0x25b   : > { %v2787_v16 = vadd.f32 %v13814_v63, %v2533_v8  ;;  %v5699_v63 = vunpack.c.l.b16 %v5366_v21  ;;  %v4613_v8 = vshll.u32 %v4351_v0, 16  ;;  %v4623_v1 = vshrl.u32 %v4352_v44, 16  ;;  %v12203_v21 = vld [vmem:[%s12558_s26 + $0x38] sm:$0xff] }
 0x25c   : > { %v4598_v54 = vsel %vm12616_vm14, %v4593_v13, %v4597_v33 }
 0x25d   : > { %v4025_v36 = vpop.f32.mrf.mxu2  ;;  %v13855_v32 = vpop.f32.mrf.mxu0  ;;  %11629 = vmatmul.msk.bf16.gmra.mxu3 %vm927_vm3, %v12251_v23  ;;  %v5730_v2 = vpack.c.b16 %v5699_v63, %v5698_v18  ;;  %v4619_v23 = vshll.u32 %v4352_v44, 16  ;;  %v4615_v18 = vrot.slane %v4613_v8, 5  ;;  %v4625_v29 = vrot.slane %v4623_v1, 4  ;;  %v5245_v44 = vld [vmem:[#allocation3 + $0x24] sm:$0x1] }
 0x25e   : > { %v13859_v57 = vadd.f32 %v4025_v36, %v3440_v61  ;;  %v3404_v5 = vpop.f32.mrf.mxu1  ;;  %v4607_v61 = vrot.slane %v4605_v60, 5  ;;  %v11767_v36 = vld [vmem:[%s16570_s3 + $0x4] sm:$0xf]  ;;  %v4773_v33 = vunpack.c.l.b16 %v4598_v54  ;;  %v5246_v13 = vsel %vm13882_vm6, 0, %v5245_v44  ;;  %v11848_v54 = vld [vmem:[%s16570_s3 + $0x8] sm:$0xf] }
 0x25f   : > { %11671 = vmatmul.msk.bf16.vlgmr.msra.gmra.mxu1 %vm5746_vm4, %v5730_v2  ;;  %v3441_v26 = vadd.f32 %v3404_v5, %v2787_v16  ;;  %v6239_v16 = vsel %vm5795_vm15, %v11767_v36, 0  ;;  %v4621_v63 = vrot.slane %v4619_v23, 5  ;;  %v16620_v2 = vmov 0  ;;  %5247 = vst [vmem:[#allocation3 + $0x24] sm:$0x1] %v5246_v13  ;;  %v16624_v44 = vld [vmem:[#allocation21_spill] sm:$0xff] }
 0x260   : > { %11647 = vmatmul.msk.bf16.gmra.mxu0 %vm927_vm3, %v4795_v20  ;;  %v2499_v14 = vpop.f32.mrf.mxu3  ;;  %v4608_v39 = vsel %vm12616_vm14, %v4603_v27, %v4607_v61  ;;  %6248 = vmatpush.bf16.msrb.mxu3 %v6239_v16  ;;  %v16621_v2 = vsel %vm13882_vm6, 4294967295, %v16620_v2  ;;  %v16623_v27 = vld [vmem:[#allocation19_spill] sm:$0xff]  ;;  %v4629_v8 = vshll.u32 %v4353_v52, 16  ;;  %v5192_v16 = vld [vmem:[#allocation3 + $0x2c] sm:$0x8] }
 0x261   : > { %v2534_v9 = vadd.f32 %v2499_v14, %v16619_v40  ;;  %v4774_v0 = vunpack.c.l.b16 %v4608_v39  ;;  %16622 = vst [vmem:[#allocation9_spill] sm:$0xff] %v16621_v2  ;;  %v12252_v40 = vld [vmem:[#allocation2 + $0xd0] sm:$0xff]  ;;  %v11881_v39 = vld [vmem:[%s16570_s3 + $0xc] sm:$0xf]  ;;  %v4354_v52 = vld [vmem:[#allocation2 + $0x10c] sm:$0xf] }
 0x262   : > { %v13915_v13 = vld [vmem:[%s16569_s2] ss:$0 sm:$0xff] }
 0x263   : > { %v2788_v53 = vadd.f32 %v13831_v12, %v2534_v9  ;;  %v4612_v12 = vrot.slane %v4610_v34, 4  ;;  %v4626_v34 = vor.u32 %v4625_v29, %v4621_v63  ;;  %v4796_v1 = vpack.c.b16 %v4774_v0, %v4773_v33 }
 0x264   : > { %v4631_v29 = vrot.slane %v4629_v8, 5  ;;  %v4634_v8 = vshrl.u32 %v4354_v52, 16 }
 0x265   : > { %v4027_v37 = vpop.f32.mrf.mxu2  ;;  %v13868_v20 = vpop.f32.mrf.mxu0  ;;  %v4616_v9 = vor.u32 %v4615_v18, %v4612_v12  ;;  %v4627_v18 = vrot.slane %v4626_v34, 4 }
 0x266   : > { %v13877_v50 = vadd.f32 %v4027_v37, %v3441_v26  ;;  %v3407_v60 = vpop.f32.mrf.mxu1  ;;  %v11898_v37 = vld [vmem:[%s16570_s3 + $0x10] sm:$0xf] }
 0x267   : > { %v3442_v5 = vadd.f32 %v3407_v60, %v2788_v53  ;;  %v6893_v60 = vsel %vm5795_vm15, %v11848_v54, 0  ;;  %v4617_v12 = vrot.slane %v4616_v9, 4 }
 0x268   : > { %v2501_v14 = vpop.f32.mrf.mxu3  ;;  %6902 = vmatpush.bf16.msrb.mxu0 %v6893_v60 }
 0x269   : > { %v2535_v61 = vadd.f32 %v2501_v14, %v16623_v27  ;;  %v4355_v27 = vld [vmem:[#allocation2 + $0x110] sm:$0xf] }
 0x26a   : > { %11758 = vmatmul.msk.bf16.gmra.mxu2 %vm927_vm3, %v12203_v21  ;;  %v7515_v21 = vsel %vm5795_vm15, %v11881_v39, 0  ;;  %v4643_v54 = vshll.u32 %v4355_v27, 16  ;;  %v4647_v39 = vshrl.u32 %v4355_v27, 16 }
 0x26b   : > { %v2789_v23 = vadd.f32 %v13845_v46, %v2535_v61  ;;  %v7769_v46 = vsel %vm5795_vm15, %v11898_v37, 0  ;;  %7524 = vmatpush.bf16.msrb.mxu1 %v7515_v21  ;;  %v4622_v61 = vsel %vm12616_vm14, %v4617_v12, %v4621_v63  ;;  %v12204_v21 = vld [vmem:[%s12558_s26 + $0x40] sm:$0xff] }
 0x26c   : > { %7778 = vmatpush.bf16.msrb.mxu2 %v7769_v46 }
 0x26d   : > { %v4030_v26 = vpop.f32.mrf.mxu2  ;;  %v13891_v53 = vpop.f32.mrf.mxu0  ;;  %11630 = vmatmul.msk.bf16.gmra.mxu3 %vm927_vm3, %v12252_v40  ;;  %v4632_v40 = vsel %vm12616_vm14, %v4627_v18, %v4631_v29  ;;  %v4636_v18 = vrot.slane %v4634_v8, 4 }
 0x26e   : > { %v13902_v36 = vadd.f32 %v4030_v26, %v3442_v5  ;;  %v5193_v5 = vsel %vm13826_vm1, 0, %v5192_v16  ;;  %v3409_v33 = vpop.f32.mrf.mxu1  ;;  %v4775_v16 = vunpack.c.l.b16 %v4622_v61  ;;  %v4776_v63 = vunpack.c.l.b16 %v4632_v40 }
 0x26f   : > { %5194 = vst [vmem:[#allocation3 + $0x2c] sm:$0x8] %v5193_v5  ;;  %v3443_v9 = vadd.f32 %v3409_v33, %v2789_v23  ;;  %v4649_v5 = vrot.slane %v4647_v39, 4 }
 0x270   : > { %11648 = vmatmul.msk.bf16.gmra.mxu0 %vm927_vm3, %v4796_v1  ;;  %v4209_v0 = vpop.f32.mrf.mxu3  ;;  %v4637_v1 = vshll.u32 %v4354_v52, 16  ;;  %v12253_v52 = vld [vmem:[#allocation2 + $0xe4] sm:$0xff] }
 0x271   : > { %v4289_v14 = vadd.f32 %v4209_v0, %v16624_v44  ;;  %v4356_v44 = vld [vmem:[#allocation2 + $0x114] sm:$0x1] }
 0x272   : > { %v4639_v23 = vrot.slane %v4637_v1, 5  ;;  %v4653_v1 = vshll.u32 %v4356_v44, 16 }
 0x273   : > { %v4943_v34 = vadd.f32 %v13855_v32, %v4289_v14  ;;  %v4645_v32 = vrot.slane %v4643_v54, 5  ;;  %v4357_v54 = vld [vmem:[#allocation2 + $0x120] sm:$0xf] }
 0x274   : > { %v4640_v61 = vor.u32 %v4639_v23, %v4636_v18 }
 0x275   : > { %v4032_v26 = vpop.f32.mrf.mxu2  ;;  %v13922_v37 = vpop.f32.mrf.mxu0  ;;  %v4979_v46 = vadd.f32 %v13915_v13, %v4943_v34  ;;  %v4650_v8 = vor.u32 %v4649_v5, %v4645_v32 }
 0x276   : > { %v13925_v60 = vadd.f32 %v4032_v26, %v3443_v9  ;;  %v4797_v9 = vpack.c.b16 %v4776_v63, %v4775_v16  ;;  %v4655_v63 = vrot.slane %v4653_v1, 5 }
 0x277   : > { %vm5011_vm7 = vcmp.ge.f32.partialorder %v4979_v46, 0.0  ;;  %v5043_v12 = vmul.f32 0.01, %v4979_v46  ;;  %v4651_v16 = vrot.slane %v4650_v8, 4 }
 0x278   : > { %16625 = vst [vmem:[#allocation10_spill] sm:$0xff] %v13925_v60  ;;  %v4211_v29 = vpop.f32.mrf.mxu3 }
 0x279   : > { %v5075_v33 = vsel %vm5011_vm7, %v4979_v46, %v5043_v12  ;;  %v4290_v0 = vadd.f32 %v4211_v29, %v13488_v56  ;;  %v5195_v56 = vld [vmem:[#allocation3 + $0x40] sm:$0x8]  ;;  %v4641_v46 = vrot.slane %v4640_v61, 4  ;;  %v5248_v12 = vld [vmem:[#allocation3 + $0x38] sm:$0x1]  ;;  %v4656_v61 = vsel %vm12616_vm14, %v4651_v16, %v4655_v63 }
 0x27a   : > { %11759 = vmatmul.msk.bf16.gmra.mxu2 %vm927_vm3, %v12204_v21  ;;  %v5107_v14 = vpack.c.bf16 %v5075_v33, %v5075_v33  ;;  %v5196_v39 = vsel %vm13826_vm1, 0, %v5195_v56  ;;  %v4358_v29 = vld [vmem:[#allocation2 + $0x124] sm:$0xf]  ;;  %v4658_v33 = vshrl.u32 %v4357_v54, 16 }
 0x27b   : > { %v4944_v27 = vadd.f32 %v13868_v20, %v4290_v0  ;;  %5197 = vst [vmem:[#allocation3 + $0x40] sm:$0x8] %v5196_v39  ;;  %v4661_v0 = vshll.u32 %v4357_v54, 16  ;;  %v4667_v1 = vshll.u32 %v4358_v29, 16  ;;  %v5300_v54 = vld [vmem:[#allocation3 + $0x18] sm:$0x8] }
 0x27c   : > { %5141 = vst.msk [vmem:[#allocation3 + $0x1c] sm:$0xf] %vm5140_vm2, %v5107_v14  ;;  %v4646_v14 = vsel %vm12616_vm14, %v4641_v46, %v4645_v32  ;;  %v4660_v39 = vrot.slane %v4658_v33, 4 }
 0x27d   : > { %v13932_v40 = vpop.f32.mrf.mxu2  ;;  %v13934_v34 = vpop.f32.mrf.mxu0  ;;  %v4980_v26 = vadd.f32 %v13915_v13, %v4944_v27  ;;  %11631 = vmatmul.msk.bf16.gmra.mxu3 %vm927_vm3, %v12253_v52  ;;  %v5249_v52 = vsel %vm13882_vm6, 0, %v5248_v12  ;;  %v4663_v32 = vrot.slane %v4661_v0, 5  ;;  %v4777_v46 = vunpack.c.l.b16 %v4646_v14 }
 0x27e   : > { %16626 = vst [vmem:[#allocation11_spill] sm:$0xff] %v13932_v40 }
 0x27f   : > { %vm5012_vm8 = vcmp.ge.f32.partialorder %v4980_v26, 0.0  ;;  %v5044_v20 = vmul.f32 0.01, %v4980_v26  ;;  %5250 = vst [vmem:[#allocation3 + $0x38] sm:$0x1] %v5249_v52  ;;  %v13956_v52 = vrot.slane %v4667_v1, 5  ;;  %v4664_v0 = vor.u32 %v4663_v32, %v4660_v39 }
 0x280   : > { %11649 = vmatmul.msk.bf16.gmra.mxu0 %vm927_vm3, %v4797_v9  ;;  %v4214_v21 = vpop.f32.mrf.mxu3 }
 0x281   : > { %v5076_v18 = vsel %vm5012_vm8, %v4980_v26, %v5044_v20  ;;  %v4291_v23 = vadd.f32 %v4214_v21, %v13508_v17  ;;  %v4671_v26 = vshrl.u32 %v4358_v29, 16  ;;  %v4778_v21 = vunpack.c.l.b16 %v4656_v61 }
 0x282   : > { %v5108_v5 = vpack.c.bf16 %v5076_v18, %v5076_v18  ;;  %v5368_v18 = vshrl.u32 %v5300_v54, 16  ;;  %v4665_v32 = vrot.slane %v4664_v0, 4 }
 0x283   : > { %v4945_v44 = vadd.f32 %v13891_v53, %v4291_v23  ;;  %v5301_v27 = vld [vmem:[#allocation3 + $0x1c] sm:$0xf]  ;;  %v4673_v16 = vrot.slane %v4671_v26, 4  ;;  %v4798_v14 = vpack.c.b16 %v4778_v21, %v4777_v46 }
 0x284   : > { %5142 = vst.msk [vmem:[#allocation3 + $0x20] sm:$0xf] %vm5140_vm2, %v5108_v5  ;;  %v5373_v8 = vshrl.u32 %v5301_v27, 16  ;;  %v12205_v53 = vld [vmem:[%s12558_s26 + $0x48] sm:$0xff]  ;;  %v4359_v5 = vld [vmem:[#allocation2 + $0x128] sm:$0x1] }
 0x285   : > { %v13948_v9 = vpop.f32.mrf.mxu2  ;;  %v13950_v17 = vpop.f32.mrf.mxu0  ;;  %v4981_v56 = vadd.f32 %v13915_v13, %v4945_v44  ;;  %v12254_v44 = vld [vmem:[#allocation2 + $0xf8] sm:$0xff]  ;;  %v5376_v33 = vshll.u32 %v5301_v27, 16  ;;  %v4677_v60 = vshll.u32 %v4359_v5, 16  ;;  %v11656_v26 = vrot.slane %v5368_v18, 11 }
 0x286   : > { %16627 = vst [vmem:[#allocation20_spill] sm:$0xff] %v13948_v9  ;;  %v5375_v23 = vrot.slane %v5373_v8, 7  ;;  %v5198_v27 = vld [vmem:[#allocation3 + $0x54] sm:$0x8] }
 0x287   : > { %vm5013_vm9 = vcmp.ge.f32.partialorder %v4981_v56, 0.0  ;;  %v5045_v20 = vmul.f32 0.01, %v4981_v56  ;;  %v4679_v21 = vrot.slane %v4677_v60, 5 }
 0x288   : > { %v4216_v12 = vpop.f32.mrf.mxu3  ;;  %v5380_v18 = vrot.slane %v5375_v23, 4 }
 0x289   : > { %v5077_v63 = vsel %vm5013_vm9, %v4981_v56, %v5045_v20  ;;  %v4292_v29 = vadd.f32 %v4216_v12, %v13525_v59  ;;  %v5378_v56 = vor.u32 %v5376_v33, %v5375_v23  ;;  %v4674_v59 = vor.u32 %v4673_v16, %v13956_v52  ;;  %v4360_v20 = vld [vmem:[#allocation2 + $0x134] sm:$0xf] }
 0x28a   : > { %11760 = vmatmul.msk.bf16.gmra.mxu2 %vm927_vm3, %v12205_v53  ;;  %v5109_v9 = vpack.c.bf16 %v5077_v63, %v5077_v63  ;;  %v4670_v23 = vsel %vm12616_vm14, %v4665_v32, %v13956_v52 }
 0x28b   : > { %v4946_v40 = vadd.f32 %v13922_v37, %v4292_v29  ;;  %v5302_v61 = vld [vmem:[#allocation3 + $0x20] sm:$0xf]  ;;  %v4675_v16 = vrot.slane %v4674_v59, 4 }
 0x28c   : > { %5143 = vst.msk [vmem:[#allocation3 + $0x30] sm:$0xf] %vm5140_vm2, %v5109_v9  ;;  %v5382_v53 = vshrl.u32 %v5302_v61, 16  ;;  %v5385_v39 = vshll.u32 %v5302_v61, 16  ;;  %v5199_v9 = vsel %vm13826_vm1, 0, %v5198_v27  ;;  %v4682_v61 = vshrl.u32 %v4360_v20, 16 }
 0x28d   : > { %v13962_v8 = vpop.f32.mrf.mxu2  ;;  %v13964_v1 = vpop.f32.mrf.mxu0  ;;  %v4982_v54 = vadd.f32 %v13915_v13, %v4946_v40  ;;  %11632 = vmatmul.msk.bf16.gmra.mxu3 %vm927_vm3, %v12254_v44  ;;  %5200 = vst [vmem:[#allocation3 + $0x54] sm:$0x8] %v5199_v9  ;;  %v5379_v40 = vsel %vm12599_vm12, %v11656_v26, %v5378_v56  ;;  %v4361_v44 = vld [vmem:[#allocation2 + $0x138] sm:$0xf]  ;;  %v4680_v59 = vsel %vm12616_vm14, %v4675_v16, %v4679_v21  ;;  %v12206_v9 = vld [vmem:[%s12558_s26 + $0x50] sm:$0xff] }
 0x28e   : > { %v5384_v37 = vrot.slane %v5382_v53, 7  ;;  %v5700_v53 = vunpack.c.l.b16 %v5379_v40  ;;  %v4779_v40 = vunpack.c.l.b16 %v4670_v23  ;;  %v4362_v21 = vld [vmem:[#allocation2 + $0x13c] sm:$0x1] }
 0x28f   : > { %vm5014_vm10 = vcmp.ge.f32.partialorder %v4982_v54, 0.0  ;;  %v5046_v46 = vmul.f32 0.01, %v4982_v54 }
 0x290   : > { %11650 = vmatmul.msk.bf16.gmra.mxu0 %vm927_vm3, %v4798_v14  ;;  %v4219_v12 = vpop.f32.mrf.mxu3  ;;  %v5387_v5 = vor.u32 %v5385_v39, %v5384_v37  ;;  %v4685_v14 = vshll.u32 %v4360_v20, 16  ;;  %v4691_v37 = vshll.u32 %v4361_v44, 16  ;;  %v4695_v39 = vshrl.u32 %v4361_v44, 16 }
 0x291   : > { %v5078_v63 = vsel %vm5014_vm10, %v4982_v54, %v5046_v46  ;;  %v4293_v29 = vadd.f32 %v4219_v12, %v13543_v6  ;;  %v5303_v46 = vld [vmem:[#allocation3 + $0x2c] sm:$0x8]  ;;  %v4684_v12 = vrot.slane %v4682_v61, 4  ;;  %v12255_v61 = vld [vmem:[#allocation2 + $0x10c] sm:$0xff] }
 0x292   : > { %v5110_v33 = vpack.c.bf16 %v5078_v63, %v5078_v63  ;;  %v5388_v0 = vsel %vm12599_vm12, %v5380_v18, %v5387_v5  ;;  %v4687_v52 = vrot.slane %v4685_v14, 5  ;;  %v4780_v18 = vunpack.c.l.b16 %v4680_v59 }
 0x293   : > { %v4947_v60 = vadd.f32 %v13934_v34, %v4293_v29  ;;  %v5701_v27 = vunpack.c.l.b16 %v5388_v0  ;;  %v5304_v26 = vld [vmem:[#allocation3 + $0x30] sm:$0xf]  ;;  %v5390_v63 = vshrl.u32 %v5303_v46, 16  ;;  %v13991_v16 = vrot.slane %v4691_v37, 5 }
 0x294   : > { %5144 = vst.msk [vmem:[#allocation3 + $0x34] sm:$0xf] %vm5140_vm2, %v5110_v33  ;;  %v5395_v54 = vshrl.u32 %v5304_v26, 16  ;;  %v4697_v44 = vrot.slane %v4695_v39, 4  ;;  %v4799_v23 = vpack.c.b16 %v4780_v18, %v4779_v40 }
 0x295   : > { %v13982_v6 = vpop.f32.mrf.mxu2  ;;  %v13984_v56 = vpop.f32.mrf.mxu0  ;;  %v4983_v34 = vadd.f32 %v13915_v13, %v4947_v60  ;;  %v5731_v20 = vpack.c.b16 %v5701_v27, %v5700_v53  ;;  %v5398_v60 = vshll.u32 %v5304_v26, 16  ;;  %v4688_v53 = vor.u32 %v4687_v52, %v4684_v12  ;;  %v5201_v26 = vld [vmem:[#allocation3 + $0x68] sm:$0x8] }
 0x296   : > { %v5397_v29 = vrot.slane %v5395_v54, 7  ;;  %v11657_v39 = vrot.slane %v5390_v63, 11  ;;  %v5202_v40 = vsel %vm13826_vm1, 0, %v5201_v26 }
 0x297   : > { %vm5015_vm13 = vcmp.ge.f32.partialorder %v4983_v34, 0.0  ;;  %v5047_v32 = vmul.f32 0.01, %v4983_v34  ;;  %11672 = vmatmul.msk.bf16.gmra.mxu1 %vm5746_vm4, %v5731_v20  ;;  %v4701_v20 = vshll.u32 %v4362_v21, 16  ;;  %v4689_v52 = vrot.slane %v4688_v53, 4 }
 0x298   : > { %v4221_v5 = vpop.f32.mrf.mxu3  ;;  %5203 = vst [vmem:[#allocation3 + $0x68] sm:$0x8] %v5202_v40  ;;  %v12207_v40 = vld [vmem:[%s12558_s26 + $0x58] sm:$0xff] }
 0x299   : > { %v5079_v33 = vsel %vm5015_vm13, %v4983_v34, %v5047_v32  ;;  %v4294_v0 = vadd.f32 %v4221_v5, %v13565_v24  ;;  %v5400_v34 = vor.u32 %v5398_v60, %v5397_v29  ;;  %v4698_v24 = vor.u32 %v4697_v44, %v13991_v16  ;;  %v4363_v32 = vld [vmem:[#allocation2 + $0x148] sm:$0xf]  ;;  %v4364_v60 = vld [vmem:[#allocation2 + $0x14c] sm:$0xf] }
 0x29a   : > { %11761 = vmatmul.msk.bf16.gmra.mxu2 %vm927_vm3, %v12206_v9  ;;  %v5111_v14 = vpack.c.bf16 %v5079_v33, %v5079_v33  ;;  %v4703_v5 = vrot.slane %v4701_v20, 5  ;;  %v5402_v44 = vrot.slane %v5397_v29, 4  ;;  %v4694_v29 = vsel %vm12616_vm14, %v4689_v52, %v13991_v16 }
 0x29b   : > { %v4948_v27 = vadd.f32 %v13950_v17, %v4294_v0  ;;  %v5305_v59 = vld [vmem:[#allocation3 + $0x34] sm:$0xf]  ;;  %v5401_v21 = vsel %vm12599_vm12, %v11657_v39, %v5400_v34  ;;  %v4699_v0 = vrot.slane %v4698_v24, 4 }
 0x29c   : > { %5145 = vst.msk [vmem:[#allocation3 + $0x44] sm:$0xf] %vm5140_vm2, %v5111_v14  ;;  %v5404_v9 = vshrl.u32 %v5305_v59, 16  ;;  %v5407_v12 = vshll.u32 %v5305_v59, 16  ;;  %v4706_v59 = vshrl.u32 %v4363_v32, 16 }
 0x29d   : > { %v13997_v54 = vpop.f32.mrf.mxu2  ;;  %v13999_v37 = vpop.f32.mrf.mxu0  ;;  %v4984_v46 = vadd.f32 %v13915_v13, %v4948_v27  ;;  %11633 = vmatmul.msk.bf16.gmra.mxu3 %vm927_vm3, %v12255_v61  ;;  %v4704_v24 = vsel %vm12616_vm14, %v4699_v0, %v4703_v5 }
 0x29e   : > { %v5406_v17 = vrot.slane %v5404_v9, 7  ;;  %v5702_v9 = vunpack.c.l.b16 %v5401_v21  ;;  %v4708_v16 = vrot.slane %v4706_v59, 4  ;;  %v4782_v5 = vunpack.c.l.b16 %v4704_v24  ;;  %v12256_v59 = vld [vmem:[#allocation2 + $0x120] sm:$0xff] }
 0x29f   : > { %vm5016_vm0 = vcmp.ge.f32.partialorder %v4984_v46, 0.0  ;;  %v5048_v18 = vmul.f32 0.01, %v4984_v46 }
 0x2a0   : > { %11651 = vmatmul.msk.bf16.gmra.mxu0 %vm927_vm3, %v4799_v23  ;;  %v4224_v63 = vpop.f32.mrf.mxu3  ;;  %v5409_v33 = vor.u32 %v5407_v12, %v5406_v17  ;;  %v4709_v23 = vshll.u32 %v4363_v32, 16  ;;  %v4715_v17 = vshll.u32 %v4364_v60, 16  ;;  %v4719_v12 = vshrl.u32 %v4364_v60, 16  ;;  %v4365_v60 = vld [vmem:[#allocation2 + $0x150] sm:$0x1] }
 0x2a1   : > { %v5080_v61 = vsel %vm5016_vm0, %v4984_v46, %v5048_v18  ;;  %v4295_v14 = vadd.f32 %v4224_v63, %v13596_v58  ;;  %v5306_v18 = vld [vmem:[#allocation3 + $0x40] sm:$0x8]  ;;  %v439_v63 = vld [vmem:[#allocation2 + $0x164] sm:$0x1] }
 0x2a2   : > { %v5112_v53 = vpack.c.bf16 %v5080_v61, %v5080_v61  ;;  %v5410_v27 = vsel %vm12599_vm12, %v5402_v44, %v5409_v33  ;;  %v4711_v52 = vrot.slane %v4709_v23, 5  ;;  %v440_v21 = vsel %vm12579_vm11, 0, %v439_v63 }
 0x2a3   : > { %v4949_v20 = vadd.f32 %v13964_v1, %v4295_v14  ;;  %v5703_v26 = vunpack.c.l.b16 %v5410_v27  ;;  %v5307_v39 = vld [vmem:[#allocation3 + $0x44] sm:$0xf]  ;;  %v4781_v33 = vunpack.c.l.b16 %v4694_v29  ;;  %441 = vst [vmem:[#allocation2 + $0x164] sm:$0x1] %v440_v21  ;;  %v5412_v61 = vshrl.u32 %v5306_v18, 16 }
 0x2a4   : > { %5146 = vst.msk [vmem:[#allocation3 + $0x48] sm:$0xf] %vm5140_vm2, %v5112_v53  ;;  %v5417_v46 = vshrl.u32 %v5307_v39, 16  ;;  %v14028_v53 = vrot.slane %v4715_v17, 5  ;;  %v4721_v27 = vrot.slane %v4719_v12, 4  ;;  %v4725_v63 = vshll.u32 %v4365_v60, 16 }
 0x2a5   : > { %v14017_v58 = vpop.f32.mrf.mxu2  ;;  %v14019_v34 = vpop.f32.mrf.mxu0  ;;  %v4985_v1 = vadd.f32 %v13915_v13, %v4949_v20  ;;  %v5732_v32 = vpack.c.b16 %v5703_v26, %v5702_v9  ;;  %v5420_v9 = vshll.u32 %v5307_v39, 16  ;;  %v4712_v26 = vor.u32 %v4711_v52, %v4708_v16  ;;  %v5204_v39 = vld [vmem:[#allocation3 + $0x7c] sm:$0x8]  ;;  %v4366_v21 = vld [vmem:[#allocation2 + $0x15c] sm:$0xf] }
 0x2a6   : > { %v5419_v14 = vrot.slane %v5417_v46, 7  ;;  %v4800_v24 = vpack.c.b16 %v4782_v5, %v4781_v33  ;;  %v11658_v12 = vrot.slane %v5412_v61, 11  ;;  %v4727_v5 = vrot.slane %v4725_v63, 5 }
 0x2a7   : > { %vm5017_vm5 = vcmp.ge.f32.partialorder %v4985_v1, 0.0  ;;  %v5049_v44 = vmul.f32 0.01, %v4985_v1  ;;  %11673 = vmatmul.msk.bf16.gmra.mxu1 %vm5746_vm4, %v5732_v32  ;;  %v4713_v52 = vrot.slane %v4712_v26, 4 }
 0x2a8   : > { %v4226_v0 = vpop.f32.mrf.mxu3  ;;  %v5424_v60 = vrot.slane %v5419_v14, 4 }
 0x2a9   : > { %v5081_v20 = vsel %vm5017_vm5, %v4985_v1, %v5049_v44  ;;  %v4296_v25 = vadd.f32 %v4226_v0, %v13614_v43  ;;  %v5422_v1 = vor.u32 %v5420_v9, %v5419_v14  ;;  %v4722_v43 = vor.u32 %v4721_v27, %v14028_v53 }
 0x2aa   : > { %11762 = vmatmul.msk.bf16.gmra.mxu2 %vm927_vm3, %v12207_v40  ;;  %v5113_v23 = vpack.c.bf16 %v5081_v20, %v5081_v20  ;;  %v5205_v44 = vsel %vm13826_vm1, 0, %v5204_v39  ;;  %v4718_v14 = vsel %vm12616_vm14, %v4713_v52, %v14028_v53 }
 0x2ab   : > { %v4950_v29 = vadd.f32 %v13984_v56, %v4296_v25  ;;  %v5308_v32 = vld [vmem:[#allocation3 + $0x48] sm:$0xf]  ;;  %5206 = vst [vmem:[#allocation3 + $0x7c] sm:$0x8] %v5205_v44  ;;  %v5423_v61 = vsel %vm12599_vm12, %v11658_v12, %v5422_v1  ;;  %v4723_v20 = vrot.slane %v4722_v43, 4  ;;  %v12208_v44 = vld [vmem:[%s12558_s26 + $0x60] sm:$0xff] }
 0x2ac   : > { %5147 = vst.msk [vmem:[#allocation3 + $0x58] sm:$0xf] %vm5140_vm2, %v5113_v23  ;;  %v5426_v40 = vshrl.u32 %v5308_v32, 16  ;;  %v5429_v16 = vshll.u32 %v5308_v32, 16  ;;  %v4367_v23 = vld [vmem:[#allocation2 + $0x160] sm:$0xf] }
 0x2ad   : > { %v14034_v46 = vpop.f32.mrf.mxu2  ;;  %v14036_v17 = vpop.f32.mrf.mxu0  ;;  %v4986_v18 = vadd.f32 %v13915_v13, %v4950_v29  ;;  %11634 = vmatmul.msk.bf16.gmra.mxu3 %vm927_vm3, %v12256_v59  ;;  %v4730_v29 = vshrl.u32 %v4366_v21, 16  ;;  %v4733_v32 = vshll.u32 %v4366_v21, 16  ;;  %v4728_v43 = vsel %vm12616_vm14, %v4723_v20, %v4727_v5 }
 0x2ae   : > { %v5428_v56 = vrot.slane %v5426_v40, 7  ;;  %v5704_v40 = vunpack.c.l.b16 %v5423_v61  ;;  %v4784_v20 = vunpack.c.l.b16 %v4728_v43 }
 0x2af   : > { %vm5018_vm11 = vcmp.ge.f32.partialorder %v4986_v18, 0.0  ;;  %v5050_v33 = vmul.f32 0.01, %v4986_v18  ;;  %v4732_v52 = vrot.slane %v4730_v29, 4  ;;  %v4735_v61 = vrot.slane %v4733_v32, 5  ;;  %v12257_v32 = vld [vmem:[#allocation2 + $0x134] sm:$0xff] }
 0x2b0   : > { %11652 = vmatmul.msk.bf16.gmra.mxu0 %vm927_vm3, %v4800_v24  ;;  %v4229_v0 = vpop.f32.mrf.mxu3  ;;  %v5431_v27 = vor.u32 %v5429_v16, %v5428_v56  ;;  %v5251_v24 = vld [vmem:[#allocation3 + $0x4c] sm:$0x1]  ;;  %v4739_v56 = vshll.u32 %v4367_v23, 16  ;;  %v4743_v16 = vshrl.u32 %v4367_v23, 16 }
 0x2b1   : > { %v5082_v25 = vsel %vm5018_vm11, %v4986_v18, %v5050_v33  ;;  %v4297_v59 = vadd.f32 %v4229_v0, %v13638_v49  ;;  %v5309_v33 = vld [vmem:[#allocation3 + $0x54] sm:$0x8]  ;;  %v5242_v0 = vld [vmem:[#allocation3 + $0x10] sm:$0x1]  ;;  %v5252_v53 = vsel %vm13882_vm6, 0, %v5251_v24 }
 0x2b2   : > { %v5114_v9 = vpack.c.bf16 %v5082_v25, %v5082_v25  ;;  %v5432_v26 = vsel %vm12599_vm12, %v5424_v60, %v5431_v27  ;;  %v5243_v60 = vsel %vm13882_vm6, 0, %v5242_v0  ;;  %5253 = vst [vmem:[#allocation3 + $0x4c] sm:$0x1] %v5252_v53  ;;  %v4783_v27 = vunpack.c.l.b16 %v4718_v14  ;;  %v4368_v25 = vld [vmem:[#allocation2 + $0x164] sm:$0x1] }
 0x2b3   : > { %v4951_v63 = vadd.f32 %v13999_v37, %v4297_v59  ;;  %v5705_v39 = vunpack.c.l.b16 %v5432_v26  ;;  %v5310_v12 = vld [vmem:[#allocation3 + $0x58] sm:$0xf]  ;;  %v5434_v23 = vshrl.u32 %v5309_v33, 16  ;;  %v4741_v26 = vrot.slane %v4739_v56, 5  ;;  %5244 = vst [vmem:[#allocation3 + $0x10] sm:$0x1] %v5243_v60 }
 0x2b4   : > { %5148 = vst.msk [vmem:[#allocation3 + $0x5c] sm:$0xf] %vm5140_vm2, %v5114_v9  ;;  %v5439_v18 = vshrl.u32 %v5310_v12, 16  ;;  %v4736_v0 = vor.u32 %v4735_v61, %v4732_v52  ;;  %v4801_v14 = vpack.c.b16 %v4784_v20, %v4783_v27  ;;  %v4749_v53 = vshll.u32 %v4368_v25, 16  ;;  %v6362_v20 = vld [vmem:[#allocation3 + $0x8] sm:$0xf] }
 0x2b5   : > { %v14054_v49 = vpop.f32.mrf.mxu2  ;;  %v14056_v1 = vpop.f32.mrf.mxu0  ;;  %v4987_v37 = vadd.f32 %v13915_v13, %v4951_v63  ;;  %v5733_v21 = vpack.c.b16 %v5705_v39, %v5704_v40  ;;  %v4745_v63 = vrot.slane %v4743_v16, 4  ;;  %v5442_v39 = vshll.u32 %v5310_v12, 16  ;;  %v5207_v12 = vld [vmem:[#allocation3 + $0x90] sm:$0x8] }
 0x2b6   : > { %v5441_v9 = vrot.slane %v5439_v18, 7  ;;  %v11659_v16 = vrot.slane %v5434_v23, 11  ;;  %v4737_v61 = vrot.slane %v4736_v0, 4  ;;  %v5208_v60 = vsel %vm13826_vm1, 0, %v5207_v12 }
 0x2b7   : > { %vm5019_vm7 = vcmp.ge.f32.partialorder %v4987_v37, 0.0  ;;  %v5051_v5 = vmul.f32 0.01, %v4987_v37  ;;  %11674 = vmatmul.msk.bf16.gmra.mxu1 %vm5746_vm4, %v5733_v21  ;;  %v4746_v33 = vor.u32 %v4745_v63, %v4741_v26  ;;  %v4751_v27 = vrot.slane %v4749_v53, 5  ;;  %5209 = vst [vmem:[#allocation3 + $0x90] sm:$0x8] %v5208_v60 }
 0x2b8   : > { %v4231_v59 = vpop.f32.mrf.mxu3  ;;  %v5446_v23 = vrot.slane %v5441_v9, 4 }
 0x2b9   : > { %v5083_v24 = vsel %vm5019_vm7, %v4987_v37, %v5051_v5  ;;  %v4298_v29 = vadd.f32 %v4231_v59, %v13653_v22  ;;  %v5444_v37 = vor.u32 %v5442_v39, %v5441_v9 }
 0x2ba   : > { %11763 = vmatmul.msk.bf16.gmra.mxu2 %vm927_vm3, %v12208_v44  ;;  %v5115_v40 = vpack.c.bf16 %v5083_v24, %v5083_v24  ;;  %v4747_v24 = vrot.slane %v4746_v33, 4 }
 0x2bb   : > { %v4952_v21 = vadd.f32 %v14019_v34, %v4298_v29  ;;  %v5311_v43 = vld [vmem:[#allocation3 + $0x5c] sm:$0xf]  ;;  %v5445_v59 = vsel %vm12599_vm12, %v11659_v16, %v5444_v37  ;;  %v6414_v37 = vshll.u32 %v6362_v20, 16 }
 0x2bc   : > { %5149 = vst.msk [vmem:[#allocation3 + $0x6c] sm:$0xf] %vm5140_vm2, %v5115_v40  ;;  %v5448_v44 = vshrl.u32 %v5311_v43, 16  ;;  %v5451_v34 = vshll.u32 %v5311_v43, 16  ;;  %v6363_v40 = vld [vmem:[#allocation3 + $0xc] sm:$0xf]  ;;  %v5706_v53 = vunpack.c.l.b16 %v5445_v59  ;;  %v4752_v33 = vsel %vm12616_vm14, %v4747_v24, %v4751_v27 }
 0x2bd   : > { %v14071_v18 = vpop.f32.mrf.mxu2  ;;  %v14073_v56 = vpop.f32.mrf.mxu0  ;;  %v4988_v22 = vadd.f32 %v13915_v13, %v4952_v21  ;;  %11635 = vmatmul.msk.bf16.gmra.mxu3 %vm927_vm3, %v12257_v32  ;;  %v4742_v21 = vsel %vm12616_vm14, %v4737_v61, %v4741_v26  ;;  %v6420_v12 = vshll.u32 %v6363_v40, 16  ;;  %v6424_v26 = vshrl.u32 %v6363_v40, 16  ;;  %v5312_v61 = vld [vmem:[#allocation3 + $0x68] sm:$0x8] }
 0x2be   : > { %v5450_v52 = vrot.slane %v5448_v44, 7  ;;  %v4785_v60 = vunpack.c.l.b16 %v4742_v21  ;;  %v4786_v59 = vunpack.c.l.b16 %v4752_v33  ;;  %v5456_v27 = vshrl.u32 %v5312_v61, 16  ;;  %v12258_v21 = vld [vmem:[#allocation2 + $0x148] sm:$0xff] }
 0x2bf   : > { %vm5020_vm8 = vcmp.ge.f32.partialorder %v4988_v22, 0.0  ;;  %v5052_v5 = vmul.f32 0.01, %v4988_v22  ;;  %v6426_v40 = vrot.slane %v6424_v26, 4 }
 0x2c0   : > { %11653 = vmatmul.msk.bf16.gmra.mxu0 %vm927_vm3, %v4801_v14  ;;  %v4234_v25 = vpop.f32.mrf.mxu3  ;;  %v5453_v63 = vor.u32 %v5451_v34, %v5450_v52  ;;  %v6411_v14 = vshrl.u32 %v6362_v20, 16  ;;  %v5254_v20 = vld [vmem:[#allocation3 + $0x60] sm:$0x1]  ;;  %v4802_v33 = vpack.c.b16 %v4786_v59, %v4785_v60 }
 0x2c1   : > { %v5084_v29 = vsel %vm5020_vm8, %v4988_v22, %v5052_v5  ;;  %v4299_v32 = vadd.f32 %v4234_v25, %v13675_v28 }
 0x2c2   : > { %v5116_v39 = vpack.c.bf16 %v5084_v29, %v5084_v29  ;;  %v5454_v0 = vsel %vm12599_vm12, %v5446_v23, %v5453_v63  ;;  %v6413_v5 = vrot.slane %v6411_v14, 4  ;;  %v6364_v23 = vld [vmem:[#allocation3 + $0x10] sm:$0x1]  ;;  %v6416_v63 = vrot.slane %v6414_v37, 5 }
 0x2c3   : > { %v4953_v43 = vadd.f32 %v14036_v17, %v4299_v32  ;;  %v5707_v9 = vunpack.c.l.b16 %v5454_v0  ;;  %v5313_v16 = vld [vmem:[#allocation3 + $0x6c] sm:$0xf]  ;;  %v12209_v17 = vld [vmem:[%s12558_s26 + $0x68] sm:$0xff]  ;;  %v14098_v32 = vrot.slane %v6420_v12, 5  ;;  %v5257_v12 = vld [vmem:[#allocation3 + $0x74] sm:$0x1] }
 0x2c4   : > { %5150 = vst.msk [vmem:[#allocation3 + $0x70] sm:$0xf] %vm5140_vm2, %v5116_v39  ;;  %v5461_v22 = vshrl.u32 %v5313_v16, 16 }
 0x2c5   : > { %v14089_v44 = vpop.f32.mrf.mxu2  ;;  %v14091_v28 = vpop.f32.mrf.mxu0  ;;  %v4989_v52 = vadd.f32 %v13915_v13, %v4953_v43  ;;  %v5734_v34 = vpack.c.b16 %v5707_v9, %v5706_v53  ;;  %v5464_v43 = vshll.u32 %v5313_v16, 16  ;;  %v6430_v53 = vshll.u32 %v6364_v23, 16 }
 0x2c6   : > { %v5463_v24 = vrot.slane %v5461_v22, 7  ;;  %v5255_v9 = vsel %vm13882_vm6, 0, %v5254_v20  ;;  %v6417_v22 = vor.u32 %v6416_v63, %v6413_v5  ;;  %v6427_v61 = vor.u32 %v6426_v40, %v14098_v32 }
 0x2c7   : > { %vm5021_vm9 = vcmp.ge.f32.partialorder %v4989_v52, 0.0  ;;  %v5053_v25 = vmul.f32 0.01, %v4989_v52  ;;  %11675 = vmatmul.msk.bf16.gmra.mxu1 %vm5746_vm4, %v5734_v34  ;;  %5256 = vst [vmem:[#allocation3 + $0x60] sm:$0x1] %v5255_v9  ;;  %v5258_v5 = vsel %vm13882_vm6, 0, %v5257_v12 }
 0x2c8   : > { %v4236_v29 = vpop.f32.mrf.mxu3  ;;  %v6418_v59 = vrot.slane %v6417_v22, 4  ;;  %v6432_v23 = vrot.slane %v6430_v53, 5  ;;  %5259 = vst [vmem:[#allocation3 + $0x74] sm:$0x1] %v5258_v5  ;;  %v6365_v5 = vld [vmem:[#allocation3 + $0x1c] sm:$0xf] }
 0x2c9   : > { %v5085_v39 = vsel %vm5021_vm9, %v4989_v52, %v5053_v25  ;;  %v4300_v0 = vadd.f32 %v4236_v29, %v13693_v62  ;;  %v11660_v62 = vrot.slane %v5456_v27, 11  ;;  %v5468_v27 = vrot.slane %v5463_v24, 4 }
 0x2ca   : > { %11764 = vmatmul.msk.bf16.gmra.mxu2 %vm927_vm3, %v12209_v17  ;;  %v5117_v14 = vpack.c.bf16 %v5085_v39, %v5085_v39  ;;  %v5466_v17 = vor.u32 %v5464_v43, %v5463_v24  ;;  %v6428_v39 = vrot.slane %v6427_v61, 4  ;;  %v12210_v61 = vld [vmem:[%s12558_s26 + $0x70] sm:$0xff] }
 0x2cb   : > { %v4954_v37 = vadd.f32 %v14056_v1, %v4300_v0  ;;  %v5314_v34 = vld [vmem:[#allocation3 + $0x70] sm:$0xf] }
 0x2cc   : > { %5151 = vst.msk [vmem:[#allocation3 + $0x80] sm:$0xf] %vm5140_vm2, %v5117_v14  ;;  %v5470_v16 = vshrl.u32 %v5314_v34, 16  ;;  %v5473_v60 = vshll.u32 %v5314_v34, 16  ;;  %v5467_v29 = vsel %vm12599_vm12, %v11660_v62, %v5466_v17  ;;  %v6366_v14 = vld [vmem:[#allocation3 + $0x20] sm:$0xf]  ;;  %v6433_v62 = vsel %vm12616_vm14, %v6428_v39, %v6432_v23 }
 0x2cd   : > { %v14106_v26 = vpop.f32.mrf.mxu2  ;;  %v14108_v52 = vpop.f32.mrf.mxu0  ;;  %v4990_v20 = vadd.f32 %v13915_v13, %v4954_v37  ;;  %11636 = vmatmul.msk.bf16.gmra.mxu3 %vm927_vm3, %v12258_v21  ;;  %v5708_v53 = vunpack.c.l.b16 %v5467_v29  ;;  %v6444_v17 = vshll.u32 %v6366_v14, 16 }
 0x2ce   : > { %v5472_v1 = vrot.slane %v5470_v16, 7 }
 0x2cf   : > { %vm5022_vm10 = vcmp.ge.f32.partialorder %v4990_v20, 0.0  ;;  %v5054_v25 = vmul.f32 0.01, %v4990_v20 }
 0x2d0   : > { %11654 = vmatmul.msk.bf16.gmra.mxu0 %vm927_vm3, %v4802_v33  ;;  %v4239_v63 = vpop.f32.mrf.mxu3  ;;  %v5475_v40 = vor.u32 %v5473_v60, %v5472_v1  ;;  %v6448_v1 = vshrl.u32 %v6366_v14, 16  ;;  %v5210_v60 = vld [vmem:[#allocation3 + $0xa4] sm:$0x8] }
 0x2d1   : > { %v5086_v0 = vsel %vm5022_vm10, %v4990_v20, %v5054_v25  ;;  %v4301_v21 = vadd.f32 %v4239_v63, %v13703_v35  ;;  %v6423_v35 = vsel %vm12616_vm14, %v6418_v59, %v14098_v32  ;;  %v5315_v20 = vld [vmem:[#allocation3 + $0x7c] sm:$0x8]  ;;  %v5211_v25 = vsel %vm13826_vm1, 0, %v5210_v60 }
 0x2d2   : > { %v5118_v43 = vpack.c.bf16 %v5086_v0, %v5086_v0  ;;  %v5476_v9 = vsel %vm12599_vm12, %v5468_v27, %v5475_v40  ;;  %v6796_v32 = vunpack.c.l.b16 %v6423_v35  ;;  %v6797_v59 = vunpack.c.l.b16 %v6433_v62  ;;  %5212 = vst [vmem:[#allocation3 + $0xa4] sm:$0x8] %v5211_v25  ;;  %v12259_v0 = vld [vmem:[#allocation2 + $0x15c] sm:$0xff] }
 0x2d3   : > { %v4955_v37 = vadd.f32 %v14073_v56, %v4301_v21  ;;  %v5709_v33 = vunpack.c.l.b16 %v5476_v9  ;;  %v5316_v34 = vld [vmem:[#allocation3 + $0x80] sm:$0xf]  ;;  %v5478_v29 = vshrl.u32 %v5315_v20, 16  ;;  %v14139_v21 = vrot.slane %v6444_v17, 5 }
 0x2d4   : > { %5152 = vst.msk [vmem:[#allocation3 + $0x84] sm:$0xf] %vm5140_vm2, %v5118_v43  ;;  %v5483_v12 = vshrl.u32 %v5316_v34, 16  ;;  %v6450_v14 = vrot.slane %v6448_v1, 4  ;;  %v5260_v43 = vld [vmem:[#allocation3 + $0x88] sm:$0x1]  ;;  %v6828_v20 = vpack.c.b16 %v6797_v59, %v6796_v32 }
 0x2d5   : > { %v14123_v24 = vpop.f32.mrf.mxu2  ;;  %v14125_v22 = vpop.f32.mrf.mxu0  ;;  %v4991_v56 = vadd.f32 %v13915_v13, %v4955_v37  ;;  %v5735_v16 = vpack.c.b16 %v5709_v33, %v5708_v53  ;;  %v5486_v37 = vshll.u32 %v5316_v34, 16  ;;  %v6367_v53 = vld [vmem:[#allocation3 + $0x24] sm:$0x1]  ;;  %v6435_v33 = vshrl.u32 %v6365_v5, 16 }
 0x2d6   : > { %v5485_v27 = vrot.slane %v5483_v12, 7  ;;  %v6438_v35 = vshll.u32 %v6365_v5, 16  ;;  %v5261_v1 = vsel %vm13882_vm6, 0, %v5260_v43  ;;  %v6454_v60 = vshll.u32 %v6367_v53, 16  ;;  %v5263_v43 = vld [vmem:[#allocation3 + $0x9c] sm:$0x1] }
 0x2d7   : > { %vm5023_vm13 = vcmp.ge.f32.partialorder %v4991_v56, 0.0  ;;  %v5055_v63 = vmul.f32 0.01, %v4991_v56  ;;  %11676 = vmatmul.msk.bf16.gmra.mxu1 %vm5746_vm4, %v5735_v16  ;;  %5262 = vst [vmem:[#allocation3 + $0x88] sm:$0x1] %v5261_v1 }
 0x2d8   : > { %v4241_v23 = vpop.f32.mrf.mxu3  ;;  %v5488_v17 = vor.u32 %v5486_v37, %v5485_v27  ;;  %v6440_v32 = vrot.slane %v6438_v35, 5  ;;  %v6456_v37 = vrot.slane %v6454_v60, 5  ;;  %v6369_v53 = vld [vmem:[#allocation3 + $0x34] sm:$0xf] }
 0x2d9   : > { %v5087_v40 = vsel %vm5023_vm13, %v4991_v56, %v5055_v63  ;;  %v4302_v39 = vadd.f32 %v4241_v23, %v13721_v19  ;;  %v11661_v19 = vrot.slane %v5478_v29, 11  ;;  %v6437_v63 = vrot.slane %v6435_v33, 4 }
 0x2da   : > { %11765 = vmatmul.msk.bf16.gmra.mxu2 %vm927_vm3, %v12210_v61  ;;  %v5119_v9 = vpack.c.bf16 %v5087_v40, %v5087_v40  ;;  %v5490_v40 = vrot.slane %v5485_v27, 4  ;;  %v5264_v27 = vsel %vm13882_vm6, 0, %v5263_v43 }
 0x2db   : > { %v4956_v62 = vadd.f32 %v14091_v28, %v4302_v39  ;;  %v5317_v16 = vld [vmem:[#allocation3 + $0x84] sm:$0xf]  ;;  %v6451_v28 = vor.u32 %v6450_v14, %v14139_v21  ;;  %v5489_v29 = vsel %vm12599_vm12, %v11661_v19, %v5488_v17  ;;  %5265 = vst [vmem:[#allocation3 + $0x9c] sm:$0x1] %v5264_v27 }
 0x2dc   : > { %5153 = vst.msk [vmem:[#allocation3 + $0x94] sm:$0xf] %vm5140_vm2, %v5119_v9  ;;  %v5492_v61 = vshrl.u32 %v5317_v16, 16  ;;  %v5495_v25 = vshll.u32 %v5317_v16, 16 }
 0x2dd   : > { %v14143_v12 = vpop.f32.mrf.mxu2  ;;  %v14145_v56 = vpop.f32.mrf.mxu0  ;;  %v4992_v34 = vadd.f32 %v13915_v13, %v4956_v62  ;;  %11637 = vmatmul.msk.bf16.gmra.mxu3 %vm927_vm3, %v12259_v0  ;;  %v6452_v9 = vrot.slane %v6451_v28, 4  ;;  %v6441_v62 = vor.u32 %v6440_v32, %v6437_v63  ;;  %v6472_v63 = vshrl.u32 %v6369_v53, 16 }
 0x2de   : > { %v5494_v5 = vrot.slane %v5492_v61, 7 }
 0x2df   : > { %vm5024_vm0 = vcmp.ge.f32.partialorder %v4992_v34, 0.0  ;;  %v5056_v59 = vmul.f32 0.01, %v4992_v34  ;;  %v6442_v32 = vrot.slane %v6441_v62, 4  ;;  %v6370_v62 = vld [vmem:[#allocation3 + $0x38] sm:$0x1] }
 0x2e0   : > { %11849 = vmatmul.msk.bf16.vlgmr.msrb.gmra.mxu0 %vm5746_vm4, %v6828_v20  ;;  %v4244_v23 = vpop.f32.mrf.mxu3  ;;  %v5497_v39 = vor.u32 %v5495_v25, %v5494_v5  ;;  %v5710_v20 = vunpack.c.l.b16 %v5489_v29  ;;  %v12211_v5 = vld [vmem:[%s12558_s26 + $0x78] sm:$0xff]  ;;  %v5318_v25 = vld [vmem:[#allocation3 + $0x90] sm:$0x8]  ;;  %s11194_s26 = sshll.u32 %s244_s16, 4  ;;  %s11195_s26 = int_to_ptr.vmem [resolvable:$true] %s11194_s26 }
 0x2e1   : > { %v5088_v0 = vsel %vm5024_vm0, %v4992_v34, %v5056_v59  ;;  %v4303_v14 = vadd.f32 %v4244_v23, %v13727_v11  ;;  %v6468_v34 = vshll.u32 %v6369_v53, 16  ;;  %v6368_v23 = vld [vmem:[#allocation3 + $0x30] sm:$0xf]  ;;  %v6474_v53 = vrot.slane %v6472_v63, 4 }
 0x2e2   : > { %v5120_v33 = vpack.c.bf16 %v5088_v0, %v5088_v0  ;;  %v5498_v35 = vsel %vm12599_vm12, %v5490_v40, %v5497_v39  ;;  %v5500_v40 = vshrl.u32 %v5318_v25, 16  ;;  %v14189_v25 = vld [vmem:[%s16569_s2] ss:$0 sm:$0xff] }
 0x2e3   : > { %v4957_v16 = vadd.f32 %v14108_v52, %v4303_v14  ;;  %v5711_v61 = vunpack.c.l.b16 %v5498_v35  ;;  %v5319_v19 = vld [vmem:[#allocation3 + $0x94] sm:$0xf]  ;;  %v6457_v52 = vsel %vm12616_vm14, %v6452_v9, %v6456_v37  ;;  %v12260_v9 = vld [vmem:[#allocation3 + $0x8] sm:$0xff]  ;;  %v14176_v37 = vrot.slane %v6468_v34, 5 }
 0x2e4   : > { %5154 = vst.msk [vmem:[#allocation3 + $0x98] sm:$0xf] %vm5140_vm2, %v5120_v33  ;;  %v5505_v1 = vshrl.u32 %v5319_v19, 16  ;;  %v6799_v43 = vunpack.c.l.b16 %v6457_v52  ;;  %v5508_v35 = vshll.u32 %v5319_v19, 16 }
 0x2e5   : > { %v14162_v11 = vpop.f32.mrf.mxu2  ;;  %v14164_v17 = vpop.f32.mrf.mxu0  ;;  %v4993_v28 = vadd.f32 %v13915_v13, %v4957_v16  ;;  %v5736_v60 = vpack.c.b16 %v5711_v61, %v5710_v20  ;;  %v6447_v13 = vsel %vm12616_vm14, %v6442_v32, %v14139_v21  ;;  %v6459_v16 = vshrl.u32 %v6368_v23, 16  ;;  %v5213_v21 = vld [vmem:[#allocation3 + $0xb8] sm:$0x8] }
 0x2e6   : > { %v5507_v39 = vrot.slane %v5505_v1, 7  ;;  %v6462_v20 = vshll.u32 %v6368_v23, 16  ;;  %v6798_v1 = vunpack.c.l.b16 %v6447_v13  ;;  %v5214_v19 = vsel %vm13826_vm1, 0, %v5213_v21  ;;  %v5266_v13 = vld [vmem:[#allocation3 + $0xb0] sm:$0x1] }
 0x2e7   : > { %vm5025_vm5 = vcmp.ge.f32.partialorder %v4993_v28, 0.0  ;;  %v5057_v59 = vmul.f32 0.01, %v4993_v28  ;;  %11677 = vmatmul.msk.bf16.gmra.mxu1 %vm5746_vm4, %v5736_v60  ;;  %v6475_v63 = vor.u32 %v6474_v53, %v14176_v37  ;;  %v6478_v32 = vshll.u32 %v6370_v62, 16  ;;  %5215 = vst [vmem:[#allocation3 + $0xb8] sm:$0x8] %v5214_v19 }
 0x2e8   : > { %v4246_v29 = vpop.f32.mrf.mxu3  ;;  %v5510_v34 = vor.u32 %v5508_v35, %v5507_v39  ;;  %v6829_v52 = vpack.c.b16 %v6799_v43, %v6798_v1  ;;  %v5512_v35 = vrot.slane %v5507_v39, 4  ;;  %v5267_v43 = vsel %vm13882_vm6, 0, %v5266_v13 }
 0x2e9   : > { %v5089_v0 = vsel %vm5025_vm5, %v4993_v28, %v5057_v59  ;;  %v4304_v14 = vadd.f32 %v4246_v29, %v13737_v51  ;;  %v11662_v51 = vrot.slane %v5500_v40, 11  ;;  %v6461_v29 = vrot.slane %v6459_v16, 4  ;;  %5268 = vst [vmem:[#allocation3 + $0xb0] sm:$0x1] %v5267_v43 }
 0x2ea   : > { %11766 = vmatmul.msk.bf16.gmra.mxu2 %vm927_vm3, %v12211_v5  ;;  %v5121_v33 = vpack.c.bf16 %v5089_v0, %v5089_v0  ;;  %v6464_v40 = vrot.slane %v6462_v20, 5  ;;  %v6480_v16 = vrot.slane %v6478_v32, 5  ;;  %v5321_v32 = vld [vmem:[#allocation3 + $0xa4] sm:$0x8] }
 0x2eb   : > { %v4958_v61 = vadd.f32 %v14125_v22, %v4304_v14  ;;  %v5320_v27 = vld [vmem:[#allocation3 + $0x98] sm:$0xf] }
 0x2ec   : > { %5155 = vst.msk [vmem:[#allocation3 + $0xa8] sm:$0xf] %vm5140_vm2, %v5121_v33  ;;  %v5514_v5 = vshrl.u32 %v5320_v27, 16  ;;  %v5517_v23 = vshll.u32 %v5320_v27, 16  ;;  %v5511_v33 = vsel %vm12599_vm12, %v11662_v51, %v5510_v34  ;;  %v6465_v1 = vor.u32 %v6464_v40, %v6461_v29  ;;  %v6372_v34 = vld [vmem:[#allocation3 + $0x48] sm:$0xf] }
 0x2ed   : > { %v14180_v28 = vpop.f32.mrf.mxu2  ;;  %v14182_v60 = vpop.f32.mrf.mxu0  ;;  %v4994_v22 = vadd.f32 %v14189_v25, %v4958_v61  ;;  %11832 = vmatmul.msk.bf16.vlgmr.msrb.gmra.mxu3 %vm5746_vm4, %v12260_v9  ;;  %v6476_v61 = vrot.slane %v6475_v63, 4  ;;  %v6492_v29 = vshll.u32 %v6372_v34, 16  ;;  %v6496_v40 = vshrl.u32 %v6372_v34, 16 }
 0x2ee   : > { %v5516_v59 = vrot.slane %v5514_v5, 7  ;;  %v5712_v5 = vunpack.c.l.b16 %v5511_v33  ;;  %v5522_v33 = vshrl.u32 %v5321_v32, 16 }
 0x2ef   : > { %vm5026_vm3 = vcmp.ge.f32.partialorder %v4994_v22, 0.0  ;;  %v5058_v0 = vmul.f32 0.01, %v4994_v22 }
 0x2f0   : > { %11850 = vmatmul.msk.bf16.gmra.mxu0 %vm5746_vm4, %v6829_v52  ;;  %v4249_v14 = vpop.f32.mrf.mxu3  ;;  %v5519_v9 = vor.u32 %v5517_v23, %v5516_v59  ;;  %v6481_v59 = vsel %vm12616_vm14, %v6476_v61, %v6480_v16  ;;  %v6466_v23 = vrot.slane %v6465_v1, 4  ;;  %v14217_v1 = vrot.slane %v6492_v29, 5 }
 0x2f1   : > { %v5090_v53 = vsel %vm5026_vm3, %v4994_v22, %v5058_v0  ;;  %v4305_v62 = vadd.f32 %v4249_v14, %v13743_v3  ;;  %v12276_v0 = vld [vmem:[#allocation3 + $0x1c] sm:$0xff]  ;;  %v6801_v43 = vunpack.c.l.b16 %v6481_v59 }
 0x2f2   : > { %v5122_v20 = vpack.c.bf16 %v5090_v53, %v5090_v53  ;;  %v5520_v27 = vsel %vm12599_vm12, %v5512_v35, %v5519_v9  ;;  %v6471_v9 = vsel %vm12616_vm14, %v6466_v23, %v14176_v37 }
 0x2f3   : > { %v4959_v21 = vadd.f32 %v14145_v56, %v4305_v62  ;;  %v5713_v51 = vunpack.c.l.b16 %v5520_v27  ;;  %v5322_v39 = vld [vmem:[#allocation3 + $0xa8] sm:$0xf]  ;;  %v6371_v56 = vld [vmem:[#allocation3 + $0x44] sm:$0xf] }
 0x2f4   : > { %5156 = vst.msk [vmem:[#allocation3 + $0xac] sm:$0xf] %vm5140_vm2, %v5122_v20  ;;  %v5527_v3 = vshrl.u32 %v5322_v39, 16  ;;  %v6483_v61 = vshrl.u32 %v6371_v56, 16  ;;  %v6486_v16 = vshll.u32 %v6371_v56, 16  ;;  %v5530_v27 = vshll.u32 %v5322_v39, 16 }
 0x2f5   : > { %v14204_v19 = vpop.f32.mrf.mxu2  ;;  %v14206_v22 = vpop.f32.mrf.mxu0  ;;  %v4995_v52 = vadd.f32 %v14189_v25, %v4959_v21  ;;  %v5737_v63 = vpack.c.b16 %v5713_v51, %v5712_v5  ;;  %v6498_v21 = vrot.slane %v6496_v40, 4  ;;  %v12261_v51 = vld [vmem:[#allocation3 + $0x1c] sm:$0xff] }
 0x2f6   : > { %v5529_v35 = vrot.slane %v5527_v3, 7  ;;  %v6800_v3 = vunpack.c.l.b16 %v6471_v9  ;;  %v6485_v56 = vrot.slane %v6483_v61, 4 }
 0x2f7   : > { %vm5027_vm11 = vcmp.ge.f32.partialorder %v4995_v52, 0.0  ;;  %v5059_v13 = vmul.f32 0.01, %v4995_v52  ;;  %11678 = vmatmul.msk.bf16.gmra.mxu1 %vm5746_vm4, %v5737_v63  ;;  %v6373_v63 = vld [vmem:[#allocation3 + $0x4c] sm:$0x1] }
 0x2f8   : > { %v4251_v14 = vpop.f32.mrf.mxu3  ;;  %v5532_v32 = vor.u32 %v5530_v27, %v5529_v35  ;;  %v6830_v23 = vpack.c.b16 %v6801_v43, %v6800_v3  ;;  %v5534_v43 = vrot.slane %v5529_v35, 4  ;;  %v5216_v35 = vld [vmem:[#allocation3 + $0xcc] sm:$0x8] }
 0x2f9   : > { %v5091_v53 = vsel %vm5027_vm11, %v4995_v52, %v5059_v13  ;;  %v4306_v62 = vadd.f32 %v4251_v14, %v13754_v10  ;;  %v11663_v10 = vrot.slane %v5522_v33, 11  ;;  %v6499_v13 = vor.u32 %v6498_v21, %v14217_v1  ;;  %v5269_v14 = vld [vmem:[#allocation3 + $0xc4] sm:$0x1] }
 0x2fa   : > { %11963 = vmatmul.msk.bf16.vlgmr.msrb.gmra.mxu2 %vm5746_vm4, %v12276_v0  ;;  %v5123_v20 = vpack.c.bf16 %v5091_v53, %v5091_v53  ;;  %v6502_v0 = vshll.u32 %v6373_v63, 16  ;;  %v5270_v33 = vsel %vm13882_vm6, 0, %v5269_v14 }
 0x2fb   : > { %v4960_v5 = vadd.f32 %v14164_v17, %v4306_v62  ;;  %v5323_v34 = vld [vmem:[#allocation3 + $0xac] sm:$0xf]  ;;  %v6488_v17 = vrot.slane %v6486_v16, 5  ;;  %v5533_v62 = vsel %vm12599_vm12, %v11663_v10, %v5532_v32  ;;  %5271 = vst [vmem:[#allocation3 + $0xc4] sm:$0x1] %v5270_v33 }
 0x2fc   : > { %5157 = vst.msk [vmem:[#allocation3 + $0xbc] sm:$0xf] %vm5140_vm2, %v5123_v20  ;;  %v5536_v59 = vshrl.u32 %v5323_v34, 16  ;;  %v5539_v40 = vshll.u32 %v5323_v34, 16  ;;  %v14233_v20 = vpop.f32.mrf.mxu1  ;;  %v6500_v34 = vrot.slane %v6499_v13, 4  ;;  %v6504_v3 = vrot.slane %v6502_v0, 5 }
 0x2fd   : > { %v14221_v37 = vpop.f32.mrf.mxu2  ;;  %v14223_v52 = vpop.f32.mrf.mxu0  ;;  %v4996_v39 = vadd.f32 %v14189_v25, %v4960_v5  ;;  %11833 = vmatmul.msk.bf16.gmra.mxu3 %vm5746_vm4, %v12261_v51  ;;  %v6489_v21 = vor.u32 %v6488_v17, %v6485_v56  ;;  %v6375_v32 = vld [vmem:[#allocation3 + $0x5c] sm:$0xf]  ;;  %v5217_v56 = vsel %vm13826_vm1, 0, %v5216_v35  ;;  %v5324_v13 = vld [vmem:[#allocation3 + $0xb8] sm:$0x8] }
 0x2fe   : > { %16628 = vst [vmem:[#allocation12_spill] sm:$0xff] %v14221_v37  ;;  %v5538_v29 = vrot.slane %v5536_v59, 7  ;;  %v5714_v59 = vunpack.c.l.b16 %v5533_v62  ;;  %v6505_v14 = vsel %vm12616_vm14, %v6500_v34, %v6504_v3  ;;  %v6520_v33 = vshrl.u32 %v6375_v32, 16  ;;  %v12277_v62 = vld [vmem:[#allocation3 + $0x30] sm:$0xff]  ;;  %v6380_v37 = vld [vmem:[#allocation3 + $0x80] sm:$0xf] }
 0x2ff   : > { %vm5028_vm7 = vcmp.ge.f32.partialorder %v4996_v39, 0.0  ;;  %v5060_v9 = vmul.f32 0.01, %v4996_v39  ;;  %5218 = vst [vmem:[#allocation3 + $0xcc] sm:$0x8] %v5217_v56  ;;  %v6490_v0 = vrot.slane %v6489_v21, 4  ;;  %v6803_v34 = vunpack.c.l.b16 %v6505_v14 }
 0x300   : > { %11851 = vmatmul.msk.bf16.gmra.mxu0 %vm5746_vm4, %v6830_v23  ;;  %v4254_v53 = vpop.f32.mrf.mxu3  ;;  %v5541_v61 = vor.u32 %v5539_v40, %v5538_v29  ;;  %v6522_v35 = vrot.slane %v6520_v33, 4  ;;  %v12262_v56 = vld [vmem:[#allocation3 + $0x30] sm:$0xff] }
 0x301   : > { %v5092_v16 = vsel %vm5028_vm7, %v4996_v39, %v5060_v9  ;;  %v4307_v27 = vadd.f32 %v4254_v53, %v13761_v42  ;;  %v6516_v9 = vshll.u32 %v6375_v32, 16 }
 0x302   : > { %v5124_v5 = vpack.c.bf16 %v5092_v16, %v5092_v16  ;;  %v5542_v51 = vsel %vm12599_vm12, %v5534_v43, %v5541_v61  ;;  %v5544_v61 = vshrl.u32 %v5324_v13, 16  ;;  %v6376_v13 = vld [vmem:[#allocation3 + $0x60] sm:$0x1] }
 0x303   : > { %v4961_v63 = vadd.f32 %v14182_v60, %v4307_v27  ;;  %v5715_v23 = vunpack.c.l.b16 %v5542_v51  ;;  %v5325_v10 = vld [vmem:[#allocation3 + $0xbc] sm:$0xf]  ;;  %v6374_v60 = vld [vmem:[#allocation3 + $0x58] sm:$0xf]  ;;  %v6495_v27 = vsel %vm12616_vm14, %v6490_v0, %v14217_v1 }
 0x304   : > { %5158 = vst.msk [vmem:[#allocation3 + $0xc0] sm:$0xf] %vm5140_vm2, %v5124_v5  ;;  %v5549_v42 = vshrl.u32 %v5325_v10, 16  ;;  %v6507_v5 = vshrl.u32 %v6374_v60, 16  ;;  %v6510_v3 = vshll.u32 %v6374_v60, 16  ;;  %v14257_v32 = vpop.f32.mrf.mxu1  ;;  %v6802_v1 = vunpack.c.l.b16 %v6495_v27 }
 0x305   : > { %v14240_v39 = vpop.f32.mrf.mxu2  ;;  %v14242_v29 = vpop.f32.mrf.mxu0  ;;  %v4997_v17 = vadd.f32 %v14189_v25, %v4961_v63  ;;  %v5738_v40 = vpack.c.b16 %v5715_v23, %v5714_v59  ;;  %v5552_v59 = vshll.u32 %v5325_v10, 16  ;;  %v14255_v23 = vrot.slane %v6516_v9, 5 }
 0x306   : > { %16629 = vst [vmem:[#allocation13_spill] sm:$0xff] %v14240_v39  ;;  %v5551_v16 = vrot.slane %v5549_v42, 7  ;;  %v11664_v60 = vrot.slane %v5544_v61, 11  ;;  %v6831_v9 = vpack.c.b16 %v6803_v34, %v6802_v1  ;;  %v6509_v33 = vrot.slane %v6507_v5, 4 }
 0x307   : > { %vm5029_vm8 = vcmp.ge.f32.partialorder %v4997_v17, 0.0  ;;  %v5061_v53 = vmul.f32 0.01, %v4997_v17  ;;  %11679 = vmatmul.msk.bf16.gmra.mxu1 %vm5746_vm4, %v5738_v40  ;;  %v6526_v27 = vshll.u32 %v6376_v13, 16 }
 0x308   : > { %v4256_v43 = vpop.f32.mrf.mxu3  ;;  %v5554_v0 = vor.u32 %v5552_v59, %v5551_v16  ;;  %v5556_v59 = vrot.slane %v5551_v16, 4 }
 0x309   : > { %v5093_v51 = vsel %vm5029_vm8, %v4997_v17, %v5061_v53  ;;  %v4308_v21 = vadd.f32 %v4256_v43, %v13770_v48  ;;  %v6523_v43 = vor.u32 %v6522_v35, %v14255_v23  ;;  %v6528_v13 = vrot.slane %v6526_v27, 5  ;;  %v5327_v27 = vld [vmem:[#allocation3 + $0xcc] sm:$0x8] }
 0x30a   : > { %11964 = vmatmul.msk.bf16.gmra.mxu2 %vm5746_vm4, %v12277_v62  ;;  %v5125_v63 = vpack.c.bf16 %v5093_v51, %v5093_v51  ;;  %v5272_v51 = vld [vmem:[#allocation3 + $0xd8] sm:$0x1] }
 0x30b   : > { %v4962_v42 = vadd.f32 %v14206_v22, %v4308_v21  ;;  %v5326_v40 = vld [vmem:[#allocation3 + $0xc0] sm:$0xf]  ;;  %v6512_v22 = vrot.slane %v6510_v3, 5  ;;  %v5273_v5 = vsel %vm13882_vm6, 0, %v5272_v51  ;;  %v6524_v1 = vrot.slane %v6523_v43, 4 }
 0x30c   : > { %5159 = vst.msk [vmem:[#allocation3 + $0xd0] sm:$0xf] %vm5140_vm2, %v5125_v63  ;;  %v5558_v10 = vshrl.u32 %v5326_v40, 16  ;;  %v5561_v62 = vshll.u32 %v5326_v40, 16  ;;  %v5555_v63 = vsel %vm12599_vm12, %v11664_v60, %v5554_v0  ;;  %v6377_v0 = vld [vmem:[#allocation3 + $0x6c] sm:$0xf] }
 0x30d   : > { %v14261_v17 = vpop.f32.mrf.mxu2  ;;  %v14263_v48 = vpop.f32.mrf.mxu0  ;;  %v4998_v14 = vadd.f32 %v14189_v25, %v4962_v42  ;;  %11834 = vmatmul.msk.bf16.gmra.mxu3 %vm5746_vm4, %v12262_v56  ;;  %v6513_v56 = vor.u32 %v6512_v22, %v6509_v33  ;;  %5274 = vst [vmem:[#allocation3 + $0xd8] sm:$0x1] %v5273_v5  ;;  %v5219_v22 = vld [vmem:[#allocation3 + $0xe0] sm:$0x8]  ;;  %v12278_v5 = vld [vmem:[#allocation3 + $0x44] sm:$0xff] }
 0x30e   : > { %16630 = vst [vmem:[#allocation14_spill] sm:$0xff] %v14261_v17  ;;  %v5560_v53 = vrot.slane %v5558_v10, 7 }
 0x30f   : > { %vm5030_vm9 = vcmp.ge.f32.partialorder %v4998_v14, 0.0  ;;  %v5062_v21 = vmul.f32 0.01, %v4998_v14 }
 0x310   : > { %11852 = vmatmul.msk.bf16.gmra.mxu0 %vm5746_vm4, %v6831_v9  ;;  %v4259_v61 = vpop.f32.mrf.mxu3  ;;  %v5563_v42 = vor.u32 %v5561_v62, %v5560_v53  ;;  %v5716_v9 = vunpack.c.l.b16 %v5555_v63  ;;  %v6378_v53 = vld [vmem:[#allocation3 + $0x70] sm:$0xf] }
 0x311   : > { %v5094_v34 = vsel %vm5030_vm9, %v4998_v14, %v5062_v21  ;;  %v4309_v3 = vadd.f32 %v4259_v61, %v13776_v7  ;;  %v6514_v21 = vrot.slane %v6513_v56, 4  ;;  %v6529_v61 = vsel %vm12616_vm14, %v6524_v1, %v6528_v13 }
 0x312   : > { %v5126_v35 = vpack.c.bf16 %v5094_v34, %v5094_v34  ;;  %v5564_v40 = vsel %vm12599_vm12, %v5556_v59, %v5563_v42  ;;  %v6540_v63 = vshll.u32 %v6378_v53, 16  ;;  %v6544_v59 = vshrl.u32 %v6378_v53, 16 }
 0x313   : > { %v4963_v10 = vadd.f32 %v14223_v52, %v4309_v3  ;;  %v5717_v60 = vunpack.c.l.b16 %v5564_v40  ;;  %v5328_v16 = vld [vmem:[#allocation3 + $0xd0] sm:$0xf]  ;;  %v5220_v52 = vsel %vm13826_vm1, 0, %v5219_v22  ;;  %v6531_v34 = vshrl.u32 %v6377_v0, 16  ;;  %v6379_v22 = vld [vmem:[#allocation3 + $0x74] sm:$0x1] }
 0x314   : > { %5160 = vst.msk [vmem:[#allocation3 + $0xd4] sm:$0xf] %vm5140_vm2, %v5126_v35  ;;  %v14280_v7 = vpop.f32.mrf.mxu1  ;;  %v5571_v33 = vshrl.u32 %v5328_v16, 16  ;;  %v5566_v35 = vshrl.u32 %v5327_v27, 16  ;;  %v6534_v56 = vshll.u32 %v6377_v0, 16  ;;  %v6805_v13 = vunpack.c.l.b16 %v6529_v61 }
 0x315   : > { %v14278_v14 = vpop.f32.mrf.mxu2  ;;  %v4999_v62 = vadd.f32 %v14189_v25, %v4963_v10  ;;  %v5739_v51 = vpack.c.b16 %v5717_v60, %v5716_v9  ;;  %v14283_v43 = vpop.f32.mrf.mxu0  ;;  %5221 = vst [vmem:[#allocation3 + $0xe0] sm:$0x8] %v5220_v52  ;;  %v6519_v10 = vsel %vm12616_vm14, %v6514_v21, %v14255_v23  ;;  %v5574_v53 = vshll.u32 %v5328_v16, 16 }
 0x316   : > { %16631 = vst [vmem:[#allocation15_spill] sm:$0xff] %v14278_v14  ;;  %v5573_v40 = vrot.slane %v5571_v33, 7  ;;  %v6546_v52 = vrot.slane %v6544_v59, 4  ;;  %v12263_v33 = vld [vmem:[#allocation3 + $0x44] sm:$0xff]  ;;  %v6804_v17 = vunpack.c.l.b16 %v6519_v10  ;;  %v6533_v39 = vrot.slane %v6531_v34, 4 }
 0x317   : > { %vm5031_vm10 = vcmp.ge.f32.partialorder %v4999_v62, 0.0  ;;  %v5063_v42 = vmul.f32 0.01, %v4999_v62  ;;  %11680 = vmatmul.msk.bf16.gmra.mxu1 %vm5746_vm4, %v5739_v51  ;;  %v14295_v51 = vrot.slane %v6540_v63, 5  ;;  %v6536_v16 = vrot.slane %v6534_v56, 5 }
 0x318   : > { %v4261_v3 = vpop.f32.mrf.mxu3  ;;  %v6550_v59 = vshll.u32 %v6379_v22, 16 }
 0x319   : > { %v5095_v9 = vsel %vm5031_vm10, %v4999_v62, %v5063_v42  ;;  %v4310_v1 = vadd.f32 %v4261_v3, %v13786_v31  ;;  %v11665_v31 = vrot.slane %v5566_v35, 11  ;;  %v5576_v62 = vor.u32 %v5574_v53, %v5573_v40  ;;  %v6381_v35 = vld [vmem:[#allocation3 + $0x84] sm:$0xf] }
 0x31a   : > { %11965 = vmatmul.msk.bf16.gmra.mxu2 %vm5746_vm4, %v12278_v5  ;;  %v5127_v60 = vpack.c.bf16 %v5095_v9, %v5095_v9  ;;  %v6547_v34 = vor.u32 %v6546_v52, %v14295_v51  ;;  %v5578_v9 = vrot.slane %v5573_v40, 4 }
 0x31b   : > { %v4964_v27 = vadd.f32 %v14242_v29, %v4310_v1  ;;  %v5329_v14 = vld [vmem:[#allocation3 + $0xd4] sm:$0xf]  ;;  %v6832_v29 = vpack.c.b16 %v6805_v13, %v6804_v17  ;;  %v5577_v56 = vsel %vm12599_vm12, %v11665_v31, %v5576_v62  ;;  %v6552_v13 = vrot.slane %v6550_v59, 5 }
 0x31c   : > { %5161 = vst.msk [vmem:[#allocation3 + $0xe4] sm:$0xf] %vm5140_vm2, %v5127_v60  ;;  %v14301_v0 = vpop.f32.mrf.mxu1  ;;  %v5580_v21 = vshrl.u32 %v5329_v14, 16  ;;  %v5583_v5 = vshll.u32 %v5329_v14, 16  ;;  %v6537_v60 = vor.u32 %v6536_v16, %v6533_v39  ;;  %v6548_v52 = vrot.slane %v6547_v34, 4 }
 0x31d   : > { %v14299_v23 = vpop.f32.mrf.mxu2  ;;  %v5000_v61 = vadd.f32 %v14189_v25, %v4964_v27  ;;  %11835 = vmatmul.msk.bf16.gmra.mxu3 %vm5746_vm4, %v12263_v33  ;;  %v14305_v63 = vpop.f32.mrf.mxu0  ;;  %v6564_v27 = vshll.u32 %v6381_v35, 16  ;;  %v6568_v31 = vshrl.u32 %v6381_v35, 16  ;;  %v5222_v16 = vld [vmem:[#allocation3 + $0xf4] sm:$0x8]  ;;  %v6555_v35 = vshrl.u32 %v6380_v37, 16 }
 0x31e   : > { %16632 = vst [vmem:[#allocation16_spill] sm:$0xff] %v14299_v23  ;;  %v5582_v42 = vrot.slane %v5580_v21, 7  ;;  %v5718_v21 = vunpack.c.l.b16 %v5577_v56  ;;  %v6538_v62 = vrot.slane %v6537_v60, 4 }
 0x31f   : > { %vm5032_vm13 = vcmp.ge.f32.partialorder %v5000_v61, 0.0  ;;  %v5064_v3 = vmul.f32 0.01, %v5000_v61  ;;  %v6570_v60 = vrot.slane %v6568_v31, 4 }
 0x320   : > { %11853 = vmatmul.msk.bf16.gmra.mxu0 %vm5746_vm4, %v6832_v29  ;;  %v4264_v10 = vpop.f32.mrf.mxu3  ;;  %v5585_v1 = vor.u32 %v5583_v5, %v5582_v42  ;;  %v5223_v5 = vsel %vm13826_vm1, 0, %v5222_v16  ;;  %v6543_v34 = vsel %vm12616_vm14, %v6538_v62, %v14295_v51  ;;  %v12264_v62 = vld [vmem:[#allocation3 + $0x58] sm:$0xff] }
 0x321   : > { %v5096_v53 = vsel %vm5032_vm13, %v5000_v61, %v5064_v3  ;;  %v4311_v17 = vadd.f32 %v4264_v10, %v13791_v47  ;;  %v6553_v3 = vsel %vm12616_vm14, %v6548_v52, %v6552_v13  ;;  %5224 = vst [vmem:[#allocation3 + $0xf4] sm:$0x8] %v5223_v5  ;;  %v6558_v10 = vshll.u32 %v6380_v37, 16  ;;  %v6382_v52 = vld [vmem:[#allocation3 + $0x88] sm:$0x1] }
 0x322   : > { %v5128_v22 = vpack.c.bf16 %v5096_v53, %v5096_v53  ;;  %v5586_v14 = vsel %vm12599_vm12, %v5578_v9, %v5585_v1  ;;  %v12279_v9 = vld [vmem:[#allocation3 + $0x58] sm:$0xff]  ;;  %v14331_v1 = vrot.slane %v6564_v27, 5  ;;  %v6807_v13 = vunpack.c.l.b16 %v6553_v3 }
 0x323   : > { %v4965_v33 = vadd.f32 %v14263_v48, %v4311_v17  ;;  %v5719_v29 = vunpack.c.l.b16 %v5586_v14  ;;  %v5331_v23 = vld [vmem:[#allocation3 + $0xe4] sm:$0xf]  ;;  %v5330_v48 = vld [vmem:[#allocation3 + $0xe0] sm:$0x8]  ;;  %v6557_v27 = vrot.slane %v6555_v35, 4  ;;  %v6574_v3 = vshll.u32 %v6382_v52, 16 }
 0x324   : > { %5162 = vst.msk [vmem:[#allocation3 + $0xe8] sm:$0xf] %vm5140_vm2, %v5128_v22  ;;  %v14318_v40 = vpop.f32.mrf.mxu1  ;;  %v5593_v47 = vshrl.u32 %v5331_v23, 16  ;;  %v5588_v17 = vshrl.u32 %v5330_v48, 16  ;;  %v5596_v37 = vshll.u32 %v5331_v23, 16  ;;  %v6571_v31 = vor.u32 %v6570_v60, %v14331_v1 }
 0x325   : > { %v14316_v39 = vpop.f32.mrf.mxu2  ;;  %v5001_v61 = vadd.f32 %v14189_v25, %v4965_v33  ;;  %v5740_v59 = vpack.c.b16 %v5719_v29, %v5718_v21  ;;  %v14321_v42 = vpop.f32.mrf.mxu0  ;;  %v6806_v21 = vunpack.c.l.b16 %v6543_v34  ;;  %v6576_v52 = vrot.slane %v6574_v3, 5  ;;  %v5225_v3 = vld [vmem:[#allocation3 + $0x108] sm:$0x8] }
 0x326   : > { %16633 = vst [vmem:[#allocation17_spill] sm:$0xff] %v14316_v39  ;;  %v5595_v22 = vrot.slane %v5593_v47, 7  ;;  %v6572_v60 = vrot.slane %v6571_v31, 4  ;;  %v6390_v39 = vld [vmem:[#allocation3 + $0xc0] sm:$0xf] }
 0x327   : > { %vm5033_vm0 = vcmp.ge.f32.partialorder %v5001_v61, 0.0  ;;  %v5065_v56 = vmul.f32 0.01, %v5001_v61  ;;  %11681 = vmatmul.msk.bf16.gmra.mxu1 %vm5746_vm4, %v5740_v59  ;;  %v6560_v59 = vrot.slane %v6558_v10, 5  ;;  %v6833_v34 = vpack.c.b16 %v6807_v13, %v6806_v21 }
 0x328   : > { %v4266_v53 = vpop.f32.mrf.mxu3  ;;  %v5598_v48 = vor.u32 %v5596_v37, %v5595_v22 }
 0x329   : > { %v5097_v14 = vsel %vm5033_vm0, %v5001_v61, %v5065_v56  ;;  %v4312_v51 = vadd.f32 %v4266_v53, %v13802_v15  ;;  %v11666_v15 = vrot.slane %v5588_v17, 11 }
 0x32a   : > { %11966 = vmatmul.msk.bf16.gmra.mxu2 %vm5746_vm4, %v12279_v9  ;;  %v5129_v33 = vpack.c.bf16 %v5097_v14, %v5097_v14  ;;  %v6561_v9 = vor.u32 %v6560_v59, %v6557_v27  ;;  %v5600_v14 = vrot.slane %v5595_v22, 4 }
 0x32b   : > { %v4966_v29 = vadd.f32 %v14283_v43, %v4312_v51  ;;  %v5332_v16 = vld [vmem:[#allocation3 + $0xe8] sm:$0xf]  ;;  %v5599_v17 = vsel %vm12599_vm12, %v11666_v15, %v5598_v48 }
 0x32c   : > { %5163 = vst.msk [vmem:[#allocation3 + $0xf8] sm:$0xf] %vm5140_vm2, %v5129_v33  ;;  %v14340_v61 = vpop.f32.mrf.mxu1  ;;  %v5602_v5 = vshrl.u32 %v5332_v16, 16  ;;  %v5605_v10 = vshll.u32 %v5332_v16, 16  ;;  %v5720_v16 = vunpack.c.l.b16 %v5599_v17  ;;  %v6562_v31 = vrot.slane %v6561_v9, 4  ;;  %v12280_v17 = vld [vmem:[#allocation3 + $0x6c] sm:$0xff] }
 0x32d   : > { %v14338_v47 = vpop.f32.mrf.mxu2  ;;  %v5002_v23 = vadd.f32 %v14189_v25, %v4966_v29  ;;  %11836 = vmatmul.msk.bf16.gmra.mxu3 %vm5746_vm4, %v12264_v62  ;;  %v14344_v43 = vpop.f32.mrf.mxu0  ;;  %v6384_v29 = vld [vmem:[#allocation3 + $0x98] sm:$0xf] }
 0x32e   : > { %16634 = vst [vmem:[#allocation18_spill] sm:$0xff] %v14338_v47  ;;  %v5604_v35 = vrot.slane %v5602_v5, 7  ;;  %v6383_v5 = vld [vmem:[#allocation3 + $0x94] sm:$0xf]  ;;  %v6592_v9 = vshrl.u32 %v6384_v29, 16 }
 0x32f   : > { %vm5034_vm5 = vcmp.ge.f32.partialorder %v5002_v23, 0.0  ;;  %v5066_v56 = vmul.f32 0.01, %v5002_v23  ;;  %v6388_v47 = vld [vmem:[#allocation3 + $0xb0] sm:$0x1] }
 0x330   : > { %11854 = vmatmul.msk.bf16.gmra.mxu0 %vm5746_vm4, %v6833_v34  ;;  %v4269_v53 = vpop.f32.mrf.mxu3  ;;  %v5607_v51 = vor.u32 %v5605_v10, %v5604_v35  ;;  %v5333_v10 = vld [vmem:[#allocation3 + $0xf4] sm:$0x8] }
 0x331   : > { %v5098_v33 = vsel %vm5034_vm5, %v5002_v23, %v5066_v56  ;;  %v4313_v37 = vadd.f32 %v4269_v53, %v13809_v38  ;;  %v6577_v38 = vsel %vm12616_vm14, %v6572_v60, %v6576_v52  ;;  %v6588_v23 = vshll.u32 %v6384_v29, 16 }
 0x332   : > { %v5130_v13 = vpack.c.bf16 %v5098_v33, %v5098_v33  ;;  %v5608_v21 = vsel %vm12599_vm12, %v5600_v14, %v5607_v51  ;;  %v5226_v56 = vsel %vm13826_vm1, 0, %v5225_v3  ;;  %v6567_v60 = vsel %vm12616_vm14, %v6562_v31, %v14331_v1  ;;  %v12265_v1 = vld [vmem:[#allocation3 + $0x6c] sm:$0xff] }
 0x333   : > { %v4967_v62 = vadd.f32 %v14305_v63, %v4313_v37  ;;  %v5721_v27 = vunpack.c.l.b16 %v5608_v21  ;;  %v5334_v59 = vld [vmem:[#allocation3 + $0xf8] sm:$0xf]  ;;  %5227 = vst [vmem:[#allocation3 + $0x108] sm:$0x8] %v5226_v56  ;;  %v6579_v14 = vshrl.u32 %v6383_v5, 16  ;;  %v5610_v52 = vshrl.u32 %v5333_v10, 16 }
 0x334   : > { %5164 = vst.msk [vmem:[#allocation3 + $0xfc] sm:$0xf] %vm5140_vm2, %v5130_v13  ;;  %v14356_v15 = vpop.f32.mrf.mxu1  ;;  %v5615_v48 = vshrl.u32 %v5334_v59, 16  ;;  %v6809_v37 = vunpack.c.l.b16 %v6577_v38  ;;  %v6582_v13 = vshll.u32 %v6383_v5, 16  ;;  %v5618_v3 = vshll.u32 %v5334_v59, 16 }
 0x335   : > { %v14354_v22 = vpop.f32.mrf.mxu2  ;;  %v5003_v34 = vadd.f32 %v14189_v25, %v4967_v62  ;;  %v5741_v63 = vpack.c.b16 %v5721_v27, %v5720_v16  ;;  %v14361_v35 = vpop.f32.mrf.mxu0  ;;  %v14371_v62 = vrot.slane %v6588_v23, 5  ;;  %v6594_v16 = vrot.slane %v6592_v9, 4 }
 0x336   : > { %16635 = vst [vmem:[#allocation19_spill] sm:$0xff] %v14354_v22  ;;  %v5617_v33 = vrot.slane %v5615_v48, 7  ;;  %v6808_v22 = vunpack.c.l.b16 %v6567_v60  ;;  %v6581_v10 = vrot.slane %v6579_v14, 4  ;;  %v11667_v38 = vrot.slane %v5610_v52, 11 }
 0x337   : > { %vm5035_vm3 = vcmp.ge.f32.partialorder %v5003_v34, 0.0  ;;  %v5067_v53 = vmul.f32 0.01, %v5003_v34  ;;  %11682 = vmatmul.msk.bf16.gmra.mxu1 %vm5746_vm4, %v5741_v63  ;;  %v6385_v63 = vld [vmem:[#allocation3 + $0x9c] sm:$0x1]  ;;  %vm10662_vm5 = vcmask 1041409  }
 0x338   : > { %v4271_v51 = vpop.f32.mrf.mxu3 }
 0x339   : > { %v5099_v21 = vsel %vm5035_vm3, %v5003_v34, %v5067_v53  ;;  %v4314_v29 = vadd.f32 %v4271_v51, %v13820_v30  ;;  %v5620_v30 = vor.u32 %v5618_v3, %v5617_v33  ;;  %v6584_v34 = vrot.slane %v6582_v13, 5 }
 0x33a   : > { %11967 = vmatmul.msk.bf16.gmra.mxu2 %vm5746_vm4, %v12280_v17  ;;  %v5131_v27 = vpack.c.bf16 %v5099_v21, %v5099_v21  ;;  %v6595_v53 = vor.u32 %v6594_v16, %v14371_v62  ;;  %v6598_v17 = vshll.u32 %v6385_v63, 16  ;;  %v5622_v21 = vrot.slane %v5617_v33, 4 }
 0x33b   : > { %v4968_v56 = vadd.f32 %v14321_v42, %v4314_v29  ;;  %v5335_v31 = vld [vmem:[#allocation3 + $0xfc] sm:$0xf]  ;;  %v6834_v42 = vpack.c.b16 %v6809_v37, %v6808_v22  ;;  %v5621_v13 = vsel %vm12599_vm12, %v11667_v38, %v5620_v30  ;;  %vm10664_vm3 = vcmask 1043459  }
 0x33c   : > { %5165 = vst.msk [vmem:[#allocation3 + $0x10c] sm:$0xf] %vm5140_vm2, %v5131_v27  ;;  %v14377_v48 = vpop.f32.mrf.mxu1  ;;  %v5624_v23 = vshrl.u32 %v5335_v31, 16  ;;  %v5627_v14 = vshll.u32 %v5335_v31, 16  ;;  %v6585_v27 = vor.u32 %v6584_v34, %v6581_v10  ;;  %v6596_v22 = vrot.slane %v6595_v53, 4 }
 0x33d   : > { %v14375_v5 = vpop.f32.mrf.mxu2  ;;  %v5004_v9 = vadd.f32 %v14189_v25, %v4968_v56  ;;  %11837 = vmatmul.msk.bf16.gmra.mxu3 %vm5746_vm4, %v12265_v1  ;;  %v14381_v59 = vpop.f32.mrf.mxu0  ;;  %v6600_v37 = vrot.slane %v6598_v17, 5  ;;  %v5722_v31 = vunpack.c.l.b16 %v5621_v13  ;;  %v5228_v30 = vld [vmem:[#allocation3 + $0x11c] sm:$0x8]  ;;  %v5336_v17 = vld [vmem:[#allocation3 + $0x108] sm:$0x8] }
 0x33e   : > { %16636 = vst [vmem:[#allocation21_spill] sm:$0xff] %v14375_v5  ;;  %v5626_v60 = vrot.slane %v5624_v23, 7  ;;  %v6387_v5 = vld [vmem:[#allocation3 + $0xac] sm:$0xf] }
 0x33f   : > { %vm5036_vm11 = vcmp.ge.f32.partialorder %v5004_v9, 0.0  ;;  %v5068_v51 = vmul.f32 0.01, %v5004_v9 }
 0x340   : > { %11855 = vmatmul.msk.bf16.gmra.mxu0 %vm5746_vm4, %v6834_v42  ;;  %v4274_v52 = vpop.f32.mrf.mxu3  ;;  %v5629_v29 = vor.u32 %v5627_v14, %v5626_v60  ;;  %v5229_v60 = vsel %vm13826_vm1, 0, %v5228_v30  ;;  %v6386_v14 = vld [vmem:[#allocation3 + $0xa8] sm:$0xf] }
 0x341   : > { %v5100_v3 = vsel %vm5036_vm11, %v5004_v9, %v5068_v51  ;;  %v4315_v56 = vadd.f32 %v4274_v52, %v13833_v4  ;;  %v6586_v4 = vrot.slane %v6585_v27, 4  ;;  %5230 = vst [vmem:[#allocation3 + $0x11c] sm:$0x8] %v5229_v60  ;;  %v6612_v51 = vshll.u32 %v6387_v5, 16 }
 0x342   : > { %v5132_v16 = vpack.c.bf16 %v5100_v3, %v5100_v3  ;;  %v5630_v63 = vsel %vm12599_vm12, %v5622_v21, %v5629_v29  ;;  %v6616_v52 = vshrl.u32 %v6387_v5, 16  ;;  %v12281_v21 = vld [vmem:[#allocation3 + $0x80] sm:$0xff]  ;;  %v5632_v27 = vshrl.u32 %v5336_v17, 16 }
 0x343   : > { %v4969_v1 = vadd.f32 %v14344_v43, %v4315_v56  ;;  %v5723_v23 = vunpack.c.l.b16 %v5630_v63  ;;  %v5337_v42 = vld [vmem:[#allocation3 + $0x10c] sm:$0xf]  ;;  %v6601_v43 = vsel %vm12616_vm14, %v6596_v22, %v6600_v37  ;;  %v6591_v56 = vsel %vm12616_vm14, %v6586_v4, %v14371_v62 }
 0x344   : > { %5166 = vst.msk [vmem:[#allocation3 + $0x110] sm:$0xf] %vm5140_vm2, %v5132_v16  ;;  %v14394_v10 = vpop.f32.mrf.mxu1  ;;  %v5637_v38 = vshrl.u32 %v5337_v42, 16  ;;  %v6811_v22 = vunpack.c.l.b16 %v6601_v43  ;;  %v16638_v16 = vld [vmem:[#allocation8_spill] sm:$0xff]  ;;  %v6606_v5 = vshll.u32 %v6386_v14, 16  ;;  %v14409_v30 = vrot.slane %v6612_v51, 5 }
 0x345   : > { %v14392_v33 = vpop.f32.mrf.mxu2  ;;  %v5005_v34 = vadd.f32 %v14189_v25, %v4969_v1  ;;  %v5742_v9 = vpack.c.b16 %v5723_v23, %v5722_v31  ;;  %v14397_v53 = vpop.f32.mrf.mxu0  ;;  %v6603_v1 = vshrl.u32 %v6386_v14, 16  ;;  %v5640_v23 = vshll.u32 %v5337_v42, 16 }
 0x346   : > { %16637 = vst [vmem:[#allocation22_spill] sm:$0xff] %v14392_v33  ;;  %v5639_v3 = vrot.slane %v5637_v38, 7  ;;  %v12266_v38 = vld [vmem:[#allocation3 + $0x80] sm:$0xff]  ;;  %v6810_v33 = vunpack.c.l.b16 %v6591_v56  ;;  %vm10666_vm11 = vcmask 1045509  }
 0x347   : > { %vm5037_vm7 = vcmp.ge.f32.partialorder %v5005_v34, 0.0  ;;  %v5069_v13 = vmul.f32 0.01, %v5005_v34  ;;  %11683 = vmatmul.msk.bf16.gmra.mxu1 %vm5746_vm4, %v5742_v9  ;;  %v6618_v9 = vrot.slane %v6616_v52, 4  ;;  %v6605_v52 = vrot.slane %v6603_v1, 4 }
 0x348   : > { %v4276_v29 = vpop.f32.mrf.mxu3  ;;  %v5642_v43 = vor.u32 %v5640_v23, %v5639_v3 }
 0x349   : > { %v5101_v37 = vsel %vm5037_vm7, %v5005_v34, %v5069_v13  ;;  %v4316_v63 = vadd.f32 %v4276_v29, %v16638_v16  ;;  %v11668_v34 = vrot.slane %v5632_v27, 11  ;;  %v6608_v13 = vrot.slane %v6606_v5, 5 }
 0x34a   : > { %11968 = vmatmul.msk.bf16.gmra.mxu2 %vm5746_vm4, %v12281_v21  ;;  %v5133_v31 = vpack.c.bf16 %v5101_v37, %v5101_v37  ;;  %v6619_v56 = vor.u32 %v6618_v9, %v14409_v30  ;;  %v6622_v37 = vshll.u32 %v6388_v47, 16  ;;  %vm10668_vm7 = vcmask 1047559  }
 0x34b   : > { %v4970_v17 = vadd.f32 %v14361_v35, %v4316_v63  ;;  %v5338_v60 = vld [vmem:[#allocation3 + $0x110] sm:$0xf]  ;;  %v6835_v35 = vpack.c.b16 %v6811_v22, %v6810_v33  ;;  %v5643_v63 = vsel %vm12599_vm12, %v11668_v34, %v5642_v43  ;;  %v6609_v22 = vor.u32 %v6608_v13, %v6605_v52 }
 0x34c   : > { %5167 = vst.msk [vmem:[#allocation3 + $0x120] sm:$0xf] %vm5140_vm2, %v5133_v31  ;;  %v14415_v4 = vpop.f32.mrf.mxu1  ;;  %v5646_v14 = vshrl.u32 %v5338_v60, 16  ;;  %v5649_v29 = vshll.u32 %v5338_v60, 16  ;;  %v5644_v31 = vrot.slane %v5639_v3, 4  ;;  %v6620_v9 = vrot.slane %v6619_v56, 4 }
 0x34d   : > { %v14413_v62 = vpop.f32.mrf.mxu2  ;;  %v5006_v42 = vadd.f32 %v14189_v25, %v4970_v17  ;;  %11838 = vmatmul.msk.bf16.gmra.mxu3 %vm5746_vm4, %v12266_v38  ;;  %v14419_v51 = vpop.f32.mrf.mxu0  ;;  %v6624_v47 = vrot.slane %v6622_v37, 5  ;;  %v5724_v60 = vunpack.c.l.b16 %v5643_v63  ;;  %v5231_v43 = vld [vmem:[#allocation3 + $0x130] sm:$0x8]  ;;  %v6636_v37 = vshll.u32 %v6390_v39, 16  ;;  %v12282_v63 = vld [vmem:[#allocation3 + $0x94] sm:$0xff] }
 0x34e   : > { %16639 = vst [vmem:[#allocation8_spill] sm:$0xff] %v14413_v62  ;;  %v5648_v21 = vrot.slane %v5646_v14, 7  ;;  %v6389_v62 = vld [vmem:[#allocation3 + $0xbc] sm:$0xf] }
 0x34f   : > { %vm5038_vm8 = vcmp.ge.f32.partialorder %v5006_v42, 0.0  ;;  %v5070_v16 = vmul.f32 0.01, %v5006_v42  ;;  %v6625_v56 = vsel %vm12616_vm14, %v6620_v9, %v6624_v47 }
 0x350   : > { %11856 = vmatmul.msk.bf16.gmra.mxu0 %vm5746_vm4, %v6835_v35  ;;  %v4279_v27 = vpop.f32.mrf.mxu3  ;;  %v5651_v23 = vor.u32 %v5649_v29, %v5648_v21  ;;  %v5339_v21 = vld [vmem:[#allocation3 + $0x11c] sm:$0x8]  ;;  %v6610_v29 = vrot.slane %v6609_v22, 4  ;;  %v6630_v22 = vshll.u32 %v6389_v62, 16 }
 0x351   : > { %v5102_v17 = vsel %vm5038_vm8, %v5006_v42, %v5070_v16  ;;  %v4317_v33 = vadd.f32 %v4279_v27, %v13859_v57  ;;  %v6640_v16 = vshrl.u32 %v6390_v39, 16  ;;  %v6813_v39 = vunpack.c.l.b16 %v6625_v56  ;;  %v14458_v56 = vld [vmem:[%s16569_s2] ss:$0 sm:$0xff] }
 0x352   : > { %v5134_v1 = vpack.c.bf16 %v5102_v17, %v5102_v17  ;;  %v5652_v5 = vsel %vm12599_vm12, %v5644_v31, %v5651_v23  ;;  %v5654_v23 = vshrl.u32 %v5339_v21, 16 }
 0x353   : > { %v4971_v38 = vadd.f32 %v14381_v59, %v4317_v33  ;;  %v5725_v14 = vunpack.c.l.b16 %v5652_v5  ;;  %v5340_v35 = vld [vmem:[#allocation3 + $0x120] sm:$0xf]  ;;  %v5232_v59 = vsel %vm13826_vm1, 0, %v5231_v43  ;;  %v6615_v33 = vsel %vm12616_vm14, %v6610_v29, %v14409_v30 }
 0x354   : > { %5168 = vst.msk [vmem:[#allocation3 + $0x124] sm:$0xf] %vm5140_vm2, %v5134_v1  ;;  %v14432_v34 = vpop.f32.mrf.mxu1  ;;  %v5659_v57 = vshrl.u32 %v5340_v35, 16  ;;  %v5662_v47 = vshll.u32 %v5340_v35, 16  ;;  %v6812_v21 = vunpack.c.l.b16 %v6615_v33  ;;  %v6632_v35 = vrot.slane %v6630_v22, 5 }
 0x355   : > { %v14430_v3 = vpop.f32.mrf.mxu2  ;;  %v5007_v42 = vadd.f32 %v14189_v25, %v4971_v38  ;;  %v5743_v52 = vpack.c.b16 %v5725_v14, %v5724_v60  ;;  %v14435_v13 = vpop.f32.mrf.mxu0  ;;  %5233 = vst [vmem:[#allocation3 + $0x130] sm:$0x8] %v5232_v59  ;;  %v6627_v25 = vshrl.u32 %v6389_v62, 16  ;;  %v6391_v38 = vld [vmem:[#allocation3 + $0xc4] sm:$0x1]  ;;  %v14447_v60 = vrot.slane %v6636_v37, 5 }
 0x356   : > { %16640 = vst [vmem:[#allocation23_spill] sm:$0xff] %v14430_v3  ;;  %v5661_v17 = vrot.slane %v5659_v57, 7  ;;  %v6642_v14 = vrot.slane %v6640_v16, 4  ;;  %v12267_v57 = vld [vmem:[#allocation3 + $0x94] sm:$0xff]  ;;  %v6836_v16 = vpack.c.b16 %v6813_v39, %v6812_v21 }
 0x357   : > { %vm5039_vm9 = vcmp.ge.f32.partialorder %v5007_v42, 0.0  ;;  %v5071_v27 = vmul.f32 0.01, %v5007_v42  ;;  %11684 = vmatmul.msk.bf16.gmra.mxu1 %vm5746_vm4, %v5743_v52  ;;  %v6629_v59 = vrot.slane %v6627_v25, 4 }
 0x358   : > { %v4281_v31 = vpop.f32.mrf.mxu3  ;;  %v5666_v39 = vrot.slane %v5661_v17, 4 }
 0x359   : > { %v5103_v1 = vsel %vm5039_vm9, %v5007_v42, %v5071_v27  ;;  %v4318_v5 = vadd.f32 %v4281_v31, %v13877_v50  ;;  %v11669_v50 = vrot.slane %v5654_v23, 11  ;;  %v5664_v42 = vor.u32 %v5662_v47, %v5661_v17 }
 0x35a   : > { %11969 = vmatmul.msk.bf16.gmra.mxu2 %vm5746_vm4, %v12282_v63  ;;  %v5135_v9 = vpack.c.bf16 %v5103_v1, %v5103_v1  ;;  %v6646_v27 = vshll.u32 %v6391_v38, 16  ;;  %v11979_v63 = vld [vmem:[%s16570_s3 + $0x14] sm:$0xf]  ;;  %v6643_v23 = vor.u32 %v6642_v14, %v14447_v60  ;;  %v6633_v47 = vor.u32 %v6632_v35, %v6629_v59 }
 0x35b   : > { %v4972_v43 = vadd.f32 %v14397_v53, %v4318_v5  ;;  %v5341_v52 = vld [vmem:[#allocation3 + $0x124] sm:$0xf]  ;;  %v8423_v33 = vsel %vm5795_vm15, %v11979_v63, 0  ;;  %v5665_v5 = vsel %vm12599_vm12, %v11669_v50, %v5664_v42  ;;  %v12110_v42 = vld [vmem:[%s16570_s3 + $0x20] sm:$0xf] }
 0x35c   : > { %5169 = vst.msk [vmem:[#allocation3 + $0x134] sm:$0xf] %vm5140_vm2, %v5135_v9  ;;  %v14453_v62 = vpop.f32.mrf.mxu1  ;;  %v5668_v29 = vshrl.u32 %v5341_v52, 16  ;;  %v5671_v31 = vshll.u32 %v5341_v52, 16  ;;  %8432 = vmatpush.bf16.msra.mxu3 %v8423_v33  ;;  %v6644_v52 = vrot.slane %v6643_v23, 4  ;;  %v6648_v21 = vrot.slane %v6646_v27, 5 }
 0x35d   : > { %v14451_v30 = vpop.f32.mrf.mxu2  ;;  %v5008_v53 = vadd.f32 %v14458_v56, %v4972_v43  ;;  %11839 = vmatmul.msk.bf16.gmra.mxu3 %vm5746_vm4, %v12267_v57  ;;  %v14462_v37 = vpop.f32.mrf.mxu0  ;;  %v5726_v63 = vunpack.c.l.b16 %v5665_v5  ;;  %v6634_v50 = vrot.slane %v6633_v47, 4  ;;  %v5342_v27 = vld [vmem:[#allocation3 + $0x130] sm:$0x8] }
 0x35e   : > { %16641 = vst [vmem:[#allocation24_spill] sm:$0xff] %v14451_v30  ;;  %v5670_v25 = vrot.slane %v5668_v29, 7  ;;  %v6393_v29 = vld [vmem:[#allocation3 + $0xd4] sm:$0xf]  ;;  %v6392_v30 = vld [vmem:[#allocation3 + $0xd0] sm:$0xf] }
 0x35f   : > { %16642 = vst [vmem:[#allocation25_spill] sm:$0xff] %v14462_v37  ;;  %vm5040_vm10 = vcmp.ge.f32.partialorder %v5008_v53, 0.0  ;;  %v5072_v22 = vmul.f32 0.01, %v5008_v53  ;;  %v6660_v23 = vshll.u32 %v6393_v29, 16  ;;  %v6664_v5 = vshrl.u32 %v6393_v29, 16 }
 0x360   : > { %11857 = vmatmul.msk.bf16.gmra.mxu0 %vm5746_vm4, %v6836_v16  ;;  %v4284_v1 = vpop.f32.mrf.mxu3  ;;  %v5673_v9 = vor.u32 %v5671_v31, %v5670_v25  ;;  %v9954_v25 = vsel %vm5795_vm15, %v12110_v42, 0  ;;  %v12012_v31 = vld [vmem:[%s16570_s3 + $0x18] sm:$0xf]  ;;  %v6639_v47 = vsel %vm12616_vm14, %v6634_v50, %v14447_v60  ;;  %v12029_v42 = vld [vmem:[%s16570_s3 + $0x1c] sm:$0xf] }
 0x361   : > { %v5104_v38 = vsel %vm5040_vm10, %v5008_v53, %v5072_v22  ;;  %v4319_v43 = vadd.f32 %v4284_v1, %v13902_v36  ;;  %v6649_v22 = vsel %vm12616_vm14, %v6644_v52, %v6648_v21  ;;  %9963 = vmatpush.bf16.msra.mxu2 %v9954_v25  ;;  %v9046_v1 = vsel %vm5795_vm15, %v12012_v31, 0  ;;  %v16645_v21 = vld [vmem:[#allocation10_spill] sm:$0xff]  ;;  %v6394_v31 = vld [vmem:[#allocation3 + $0xd8] sm:$0x1] }
 0x362   : > { %v5136_v57 = vpack.c.bf16 %v5104_v38, %v5104_v38  ;;  %v5674_v14 = vsel %vm12599_vm12, %v5666_v39, %v5673_v9  ;;  %v12283_v9 = vld [vmem:[#allocation3 + $0xa8] sm:$0xff]  ;;  %9055 = vmatpush.bf16.msra.mxu0 %v9046_v1  ;;  %v6666_v50 = vrot.slane %v6664_v5, 4  ;;  %v6814_v25 = vunpack.c.l.b16 %v6639_v47 }
 0x363   : > { %v4973_v16 = vadd.f32 %v14419_v51, %v4319_v43  ;;  %v5727_v33 = vunpack.c.l.b16 %v5674_v14  ;;  %v5343_v41 = vld [vmem:[#allocation3 + $0x134] sm:$0xf]  ;;  %v5676_v43 = vshrl.u32 %v5342_v27, 16  ;;  %v6651_v14 = vshrl.u32 %v6392_v30, 16 }
 0x364   : > { %5170 = vst.msk [vmem:[#allocation3 + $0x138] sm:$0xf] %vm5140_vm2, %v5136_v57  ;;  %v14479_v59 = vpop.f32.mrf.mxu1  ;;  %v5681_v36 = vshrl.u32 %v5343_v41, 16  ;;  %v5684_v60 = vshll.u32 %v5343_v41, 16  ;;  %v9300_v27 = vsel %vm5795_vm15, %v12029_v42, 0 }
 0x365   : > { %v14477_v17 = vpop.f32.mrf.mxu2  ;;  %v5009_v35 = vadd.f32 %v14458_v56, %v4973_v16  ;;  %v5744_v53 = vpack.c.b16 %v5727_v33, %v5726_v63  ;;  %v14485_v51 = vpop.f32.mrf.mxu0  ;;  %v6654_v16 = vshll.u32 %v6392_v30, 16  ;;  %v6815_v63 = vunpack.c.l.b16 %v6649_v22  ;;  %v12268_v30 = vld [vmem:[#allocation3 + $0xa8] sm:$0xff]  ;;  %9309 = vmatpush.bf16.msra.mxu1 %v9300_v27 }
 0x366   : > { %16643 = vst [vmem:[#allocation26_spill] sm:$0xff] %v14477_v17  ;;  %v5683_v57 = vrot.slane %v5681_v36, 7  ;;  %v14500_v33 = vrot.slane %v6660_v23, 5  ;;  %v11670_v1 = vrot.slane %v5676_v43, 11  ;;  %v5275_v27 = vld [vmem:[#allocation3 + $0xec] sm:$0x1] }
 0x367   : > { %16644 = vst [vmem:[#allocation27_spill] sm:$0xff] %v14485_v51  ;;  %vm5041_vm13 = vcmp.ge.f32.partialorder %v5009_v35, 0.0  ;;  %v5073_v39 = vmul.f32 0.01, %v5009_v35  ;;  %11685 = vmatmul.msk.bf16.gmra.mxu1 %vm5746_vm4, %v5744_v53  ;;  %v6656_v47 = vrot.slane %v6654_v16, 5  ;;  %v16648_v43 = vld [vmem:[#allocation11_spill] sm:$0xff] }
 0x368   : > { %v4286_v38 = vpop.f32.mrf.mxu3  ;;  %v6667_v42 = vor.u32 %v6666_v50, %v14500_v33  ;;  %v5688_v16 = vrot.slane %v5683_v57, 4 }
 0x369   : > { %v5105_v52 = vsel %vm5041_vm13, %v5009_v35, %v5073_v39  ;;  %v4320_v29 = vadd.f32 %v4286_v38, %v16645_v21  ;;  %v5686_v39 = vor.u32 %v5684_v60, %v5683_v57  ;;  %v6653_v38 = vrot.slane %v6651_v14, 4 }
 0x36a   : > { %11970 = vmatmul.msk.bf16.gmra.mxu2 %vm5746_vm4, %v12283_v9  ;;  %v5137_v53 = vpack.c.bf16 %v5105_v52, %v5105_v52  ;;  %v7018_v52 = vld [vmem:[#allocation3 + $0x20] sm:$0xf]  ;;  %v6029_v60 = vadd.f32 %v16648_v43, %v14233_v20 }
 0x36b   : > { %v4974_v36 = vadd.f32 %v14435_v13, %v4320_v29  ;;  %v5344_v35 = vld [vmem:[#allocation3 + $0x138] sm:$0xf]  ;;  %v6837_v13 = vpack.c.b16 %v6815_v63, %v6814_v25  ;;  %v5687_v14 = vsel %vm12599_vm12, %v11670_v1, %v5686_v39  ;;  %v6657_v25 = vor.u32 %v6656_v47, %v6653_v38 }
 0x36c   : > { %5171 = vst.msk [vmem:[#allocation3 + $0x148] sm:$0xf] %vm5140_vm2, %v5137_v53  ;;  %v14510_v22 = vpop.f32.mrf.mxu1  ;;  %v5690_v9 = vshrl.u32 %v5344_v35, 16  ;;  %v5693_v29 = vshll.u32 %v5344_v35, 16  ;;  %v6670_v53 = vshll.u32 %v6394_v31, 16  ;;  %v7079_v20 = vshrl.u32 %v7018_v52, 16 }
 0x36d   : > { %v14508_v23 = vpop.f32.mrf.mxu2  ;;  %v5010_v41 = vadd.f32 %v14458_v56, %v4974_v36  ;;  %11840 = vmatmul.msk.bf16.gmra.mxu3 %vm5746_vm4, %v12268_v30  ;;  %v14514_v5 = vpop.f32.mrf.mxu0  ;;  %v5276_v56 = vsel %vm13882_vm6, 0, %v5275_v27  ;;  %v7017_v30 = vld [vmem:[#allocation3 + $0x1c] sm:$0xf]  ;;  %v5728_v27 = vunpack.c.l.b16 %v5687_v14  ;;  %v6658_v47 = vrot.slane %v6657_v25, 4 }
 0x36e   : > { %16646 = vst [vmem:[#allocation10_spill] sm:$0xff] %v14508_v23  ;;  %v5692_v21 = vrot.slane %v5690_v9, 7  ;;  %v6672_v43 = vrot.slane %v6670_v53, 5  ;;  %v7070_v3 = vshrl.u32 %v7017_v30, 16  ;;  %v7081_v38 = vrot.slane %v7079_v20, 7  ;;  %v12284_v53 = vld [vmem:[#allocation3 + $0xbc] sm:$0xff] }
 0x36f   : > { %16647 = vst [vmem:[#allocation28_spill] sm:$0xff] %v14514_v5  ;;  %vm5042_vm15 = vcmp.ge.f32.partialorder %v5010_v41, 0.0  ;;  %v5074_v23 = vmul.f32 0.01, %v5010_v41  ;;  %v6396_v5 = vld [vmem:[#allocation3 + $0xe8] sm:$0xf] }
 0x370   : > { %11858 = vmatmul.msk.bf16.gmra.mxu0 %vm5746_vm4, %v6837_v13  ;;  %v6250_v63 = vpop.f32.mrf.mxu3  ;;  %v5695_v36 = vor.u32 %v5693_v29, %v5692_v21  ;;  %5277 = vst [vmem:[#allocation3 + $0xec] sm:$0x1] %v5276_v56  ;;  %v6668_v13 = vrot.slane %v6667_v42, 4  ;;  %v6684_v29 = vshll.u32 %v6396_v5, 16  ;;  %v6688_v42 = vshrl.u32 %v6396_v5, 16 }
 0x371   : > { %v5106_v50 = vsel %vm5042_vm15, %v5010_v41, %v5074_v23  ;;  %v14524_v35 = vadd.f32 %v6250_v63, %v6029_v60  ;;  %v7016_v41 = vld [vmem:[#allocation3 + $0x18] sm:$0x8]  ;;  %v7072_v60 = vrot.slane %v7070_v3, 7  ;;  %v7082_v56 = vshll.u32 %v7018_v52, 16  ;;  %v6395_v63 = vld [vmem:[#allocation3 + $0xe4] sm:$0xf] }
 0x372   : > { %v5138_v31 = vpack.c.bf16 %v5106_v50, %v5106_v50  ;;  %v5696_v9 = vsel %vm12599_vm12, %v5688_v16, %v5695_v36  ;;  %v6673_v21 = vsel %vm12616_vm14, %v6668_v13, %v6672_v43  ;;  %v7065_v16 = vshrl.u32 %v7016_v41, 16  ;;  %v14544_v20 = vld [vmem:[#allocation3 + $0x30] sm:$0xf]  ;;  %v7021_v5 = vld [vmem:[#allocation3 + $0x34] sm:$0xf]  ;;  %v12269_v13 = vld [vmem:[#allocation3 + $0xbc] sm:$0xff] }
 0x373   : > { %16649 = vst [vmem:[#allocation11_spill] sm:$0xff] %v14524_v35  ;;  %v5729_v17 = vunpack.c.l.b16 %v5696_v9  ;;  %v6817_v36 = vunpack.c.l.b16 %v6673_v21  ;;  %v7073_v50 = vshll.u32 %v7017_v30, 16  ;;  %v7084_v25 = vor.u32 %v7082_v56, %v7081_v38 }
 0x374   : > { %5172 = vst.msk [vmem:[#allocation3 + $0x14c] sm:$0xf] %vm5140_vm2, %v5138_v31  ;;  %v14531_v1 = vpop.f32.mrf.mxu1  ;;  %v6675_v31 = vshrl.u32 %v6395_v63, 16  ;;  %v6678_v9 = vshll.u32 %v6395_v63, 16  ;;  %v14546_v3 = vrot.slane %v6684_v29, 5  ;;  %v6690_v52 = vrot.slane %v6688_v42, 4 }
 0x375   : > { %v14529_v57 = vpop.f32.mrf.mxu2  ;;  %v5745_v23 = vpack.c.b16 %v5729_v17, %v5728_v27  ;;  %v14533_v39 = vpop.f32.mrf.mxu0  ;;  %v6663_v17 = vsel %vm12616_vm14, %v6658_v47, %v14500_v33  ;;  %v7077_v27 = vrot.slane %v7072_v60, 4  ;;  %v11865_v41 = vrot.slane %v7065_v16, 11 }
 0x376   : > { %16650 = vst [vmem:[#allocation29_spill] sm:$0xff] %v14529_v57  ;;  %v6816_v43 = vunpack.c.l.b16 %v6663_v17  ;;  %v7075_v47 = vor.u32 %v7073_v50, %v7072_v60  ;;  %v7092_v30 = vshrl.u32 %v14544_v20, 16  ;;  %v7101_v38 = vshrl.u32 %v7021_v5, 16 }
 0x377   : > { %16651 = vst [vmem:[#allocation30_spill] sm:$0xff] %v14533_v39  ;;  %11686 = vmatmul.msk.bf16.gmra.mxu1 %vm5746_vm4, %v5745_v23  ;;  %v6397_v23 = vld [vmem:[#allocation3 + $0xec] sm:$0x1]  ;;  %v7085_v42 = vsel %vm12599_vm12, %v7077_v27, %v7084_v25  ;;  %v6680_v56 = vrot.slane %v6678_v9, 5  ;;  %v6691_v63 = vor.u32 %v6690_v52, %v14546_v3  ;;  %v6034_v16 = vadd.f32 %v13962_v8, %v14280_v7  ;;  %v7019_v25 = vld [vmem:[#allocation3 + $0x2c] sm:$0x8] }
 0x378   : > { %v14538_v14 = vpop.f32.mrf.mxu3  ;;  %v6838_v29 = vpack.c.b16 %v6817_v36, %v6816_v43  ;;  %v6694_v17 = vshll.u32 %v6397_v23, 16  ;;  %v7076_v50 = vsel %vm12599_vm12, %v11865_v41, %v7075_v47  ;;  %v7419_v43 = vunpack.c.l.b16 %v7085_v42 }
 0x379   : > { %v6692_v52 = vrot.slane %v6691_v63, 4  ;;  %v7104_v23 = vshll.u32 %v7021_v5, 16  ;;  %v7418_v8 = vunpack.c.l.b16 %v7076_v50  ;;  %v7087_v39 = vshrl.u32 %v7019_v25, 16 }
 0x37a   : > { %11971 = vmatmul.msk.bf16.gmra.mxu2 %vm5746_vm4, %v12284_v53  ;;  %v6677_v53 = vrot.slane %v6675_v31, 4  ;;  %v14566_v31 = vld [vmem:[#allocation3 + $0x44] sm:$0xf]  ;;  %v6696_v27 = vrot.slane %v6694_v17, 5  ;;  %v7095_v41 = vshll.u32 %v14544_v20, 16  ;;  %v6036_v20 = vadd.f32 %v13982_v6, %v14301_v0 }
 0x37b   : > { %vm10920_vm15 = vcmask 1047556  }
 0x37c   : > { %v14550_v33 = vpop.f32.mrf.mxu1  ;;  %v6681_v9 = vor.u32 %v6680_v56, %v6677_v53  ;;  %v7114_v53 = vshrl.u32 %v14566_v31, 16  ;;  %v6697_v63 = vsel %vm12616_vm14, %v6692_v52, %v6696_v27 }
 0x37d   : > { %v14548_v57 = vpop.f32.mrf.mxu2  ;;  %11841 = vmatmul.msk.bf16.gmra.mxu3 %vm5746_vm4, %v12269_v13  ;;  %v14554_v21 = vpop.f32.mrf.mxu0  ;;  %v7094_v13 = vrot.slane %v7092_v30, 7  ;;  %v6819_v0 = vunpack.c.l.b16 %v6697_v63 }
 0x37e   : > { %16652 = vst [vmem:[#allocation31_spill] sm:$0xff] %v14548_v57  ;;  %v7103_v57 = vrot.slane %v7101_v38, 7  ;;  %v7450_v38 = vpack.c.b16 %v7419_v43, %v7418_v8  ;;  %v6682_v5 = vrot.slane %v6681_v9, 4  ;;  %v6398_v43 = vld [vmem:[#allocation3 + $0xf8] sm:$0xf]  ;;  %v11866_v8 = vrot.slane %v7087_v39, 11 }
 0x37f   : > { %16653 = vst [vmem:[#allocation32_spill] sm:$0xff] %v14554_v21  ;;  %v7024_v21 = vld [vmem:[#allocation3 + $0x48] sm:$0xf]  ;;  %v7099_v47 = vrot.slane %v7094_v13, 4  ;;  %v7097_v52 = vor.u32 %v7095_v41, %v7094_v13  ;;  %v12270_v39 = vld [vmem:[#allocation3 + $0xd0] sm:$0xff] }
 0x380   : > { %11859 = vmatmul.msk.bf16.gmra.mxu0 %vm5746_vm4, %v6838_v29  ;;  %v6255_v60 = vpop.f32.mrf.mxu3  ;;  %v7106_v30 = vor.u32 %v7104_v23, %v7103_v57  ;;  %v7123_v56 = vshrl.u32 %v7024_v21, 16  ;;  %v12285_v57 = vld [vmem:[#allocation3 + $0xd0] sm:$0xff]  ;;  %v6687_v9 = vsel %vm12616_vm14, %v6682_v5, %v14546_v3  ;;  %v7126_v41 = vshll.u32 %v7024_v21, 16 }
 0x381   : > { %v14564_v36 = vadd.f32 %v6255_v60, %v6034_v16  ;;  %v5278_v16 = vld [vmem:[#allocation3 + $0x100] sm:$0x1]  ;;  %v6399_v60 = vld [vmem:[#allocation3 + $0xfc] sm:$0xf]  ;;  %v6818_v13 = vunpack.c.l.b16 %v6687_v9  ;;  %v7028_v9 = vld [vmem:[#allocation3 + $0x68] sm:$0x8] }
 0x382   : > { %v5279_v17 = vsel %vm13882_vm6, 0, %v5278_v16  ;;  %v6708_v50 = vshll.u32 %v6399_v60, 16  ;;  %v6712_v25 = vshrl.u32 %v6399_v60, 16  ;;  %v7107_v27 = vsel %vm12599_vm12, %v7099_v47, %v7106_v30  ;;  %v7026_v16 = vld [vmem:[#allocation3 + $0x58] sm:$0xf]  ;;  %v16659_v30 = vld [vmem:[#allocation20_spill] sm:$0xff] }
 0x383   : > { %16654 = vst [vmem:[#allocation33_spill] sm:$0xff] %v14564_v36  ;;  %v7125_v60 = vrot.slane %v7123_v56, 7  ;;  %v6702_v36 = vshll.u32 %v6398_v43, 16  ;;  %v7136_v5 = vshrl.u32 %v7026_v16, 16  ;;  %v14595_v37 = vadd.f32 %v16659_v30, %v14257_v32 }
 0x384   : > { %v14570_v29 = vpop.f32.mrf.mxu1  ;;  %5280 = vst [vmem:[#allocation3 + $0x100] sm:$0x1] %v5279_v17  ;;  %v7116_v17 = vrot.slane %v7114_v53, 7  ;;  %v14591_v51 = vrot.slane %v6708_v50, 5  ;;  %v6714_v3 = vrot.slane %v6712_v25, 4  ;;  %v7098_v53 = vsel %vm12599_vm12, %v11866_v8, %v7097_v52 }
 0x385   : > { %v14568_v7 = vpop.f32.mrf.mxu2  ;;  %16656 = vst [vmem:[#allocation35_spill] sm:$0xff] %v14570_v29  ;;  %v14573_v42 = vpop.f32.mrf.mxu0  ;;  %v7421_v56 = vunpack.c.l.b16 %v7107_v27  ;;  %v6839_v21 = vpack.c.b16 %v6819_v0, %v6818_v13  ;;  %v7117_v25 = vshll.u32 %v14566_v31, 16  ;;  %v7128_v32 = vor.u32 %v7126_v41, %v7125_v60  ;;  %v14611_v0 = vld [vmem:[#allocation3 + $0x6c] sm:$0xf] }
 0x386   : > { %16655 = vst [vmem:[#allocation34_spill] sm:$0xff] %v14568_v7  ;;  %v7027_v7 = vld [vmem:[#allocation3 + $0x5c] sm:$0xf]  ;;  %v6039_v30 = vadd.f32 %v13997_v54, %v14318_v40  ;;  %v6704_v35 = vrot.slane %v6702_v36, 5  ;;  %v6715_v8 = vor.u32 %v6714_v3, %v14591_v51  ;;  %v7420_v13 = vunpack.c.l.b16 %v7098_v53 }
 0x387   : > { %16657 = vst [vmem:[#allocation36_spill] sm:$0xff] %v14573_v42  ;;  %11882 = vmatmul.msk.bf16.vlgmr.msrb.gmra.mxu1 %vm5746_vm4, %v7450_v38  ;;  %v7022_v38 = vld [vmem:[#allocation3 + $0x40] sm:$0x8]  ;;  %v6699_v42 = vshrl.u32 %v6398_v43, 16  ;;  %v7145_v47 = vshrl.u32 %v7027_v7, 16  ;;  %v14615_v41 = vor.u32 %v7117_v25, %v7116_v17  ;;  %v7153_v54 = vshrl.u32 %v7028_v9, 16 }
 0x388   : > { %v6257_v23 = vpop.f32.mrf.mxu3  ;;  %v7109_v50 = vshrl.u32 %v7022_v38, 16  ;;  %v7138_v38 = vrot.slane %v7136_v5, 7  ;;  %v7148_v3 = vshll.u32 %v7027_v7, 16  ;;  %v14625_v5 = vld [vmem:[#allocation3 + $0x80] sm:$0xf] }
 0x389   : > { %v14589_v6 = vadd.f32 %v6257_v23, %v6036_v20  ;;  %v7121_v23 = vrot.slane %v7116_v17, 4  ;;  %v14628_v17 = vld [vmem:[#allocation3 + $0x84] sm:$0xf] }
 0x38a   : > { %11972 = vmatmul.msk.bf16.gmra.mxu2 %vm5746_vm4, %v12285_v57  ;;  %v7025_v57 = vld [vmem:[#allocation3 + $0x54] sm:$0x8]  ;;  %v14613_v60 = vrot.slane %v7109_v50, 11  ;;  %v7158_v50 = vshrl.u32 %v14611_v0, 16 }
 0x38b   : > { %16658 = vst [vmem:[#allocation37_spill] sm:$0xff] %v14589_v6  ;;  %v6701_v6 = vrot.slane %v6699_v42, 4  ;;  %v7131_v27 = vshrl.u32 %v7025_v57, 16  ;;  %v14621_v36 = vsel %vm12599_vm12, %v7121_v23, %v7128_v32  ;;  %v7139_v42 = vshll.u32 %v7026_v16, 16 }
 0x38c   : > { %v14599_v63 = vpop.f32.mrf.mxu1  ;;  %v6716_v57 = vrot.slane %v6715_v8, 4  ;;  %v7143_v16 = vrot.slane %v7138_v38, 4  ;;  %v6041_v8 = vadd.f32 %v14017_v58, %v14340_v61  ;;  %v6401_v58 = vld [vmem:[#allocation3 + $0x10c] sm:$0xf] }
 0x38d   : > { %v14597_v20 = vpop.f32.mrf.mxu2  ;;  %16661 = vst [vmem:[#allocation38_spill] sm:$0xff] %v14599_v63  ;;  %11842 = vmatmul.msk.bf16.gmra.mxu3 %vm5746_vm4, %v12270_v39  ;;  %v14604_v43 = vpop.f32.mrf.mxu0  ;;  %v7147_v39 = vrot.slane %v7145_v47, 7  ;;  %v6705_v47 = vor.u32 %v6704_v35, %v6701_v6  ;;  %v14630_v25 = vrot.slane %v7131_v27, 11  ;;  %v14632_v9 = vor.u32 %v7139_v42, %v7138_v38  ;;  %v12271_v63 = vld [vmem:[#allocation3 + $0xe4] sm:$0xff] }
 0x38e   : > { %16660 = vst [vmem:[#allocation20_spill] sm:$0xff] %v14597_v20  ;;  %v6400_v20 = vld [vmem:[#allocation3 + $0x100] sm:$0x1]  ;;  %v14642_v6 = vrot.slane %v7153_v54, 11  ;;  %v7189_v42 = vshrl.u32 %v14628_v17, 16 }
 0x38f   : > { %16662 = vst [vmem:[#allocation39_spill] sm:$0xff] %v14604_v43  ;;  %v6718_v52 = vshll.u32 %v6400_v20, 16  ;;  %v14623_v20 = vld [vmem:[#allocation3 + $0x70] sm:$0xf]  ;;  %v7150_v23 = vor.u32 %v7148_v3, %v7147_v39  ;;  %v5281_v39 = vld [vmem:[#allocation3 + $0x114] sm:$0x1] }
 0x390   : > { %11860 = vmatmul.msk.bf16.gmra.mxu0 %vm5746_vm4, %v6839_v21  ;;  %v6260_v31 = vpop.f32.mrf.mxu3  ;;  %v7451_v21 = vpack.c.b16 %v7421_v56, %v7420_v13  ;;  %v7031_v56 = vld [vmem:[#allocation3 + $0x7c] sm:$0x8]  ;;  %v7180_v13 = vshrl.u32 %v14625_v5, 16  ;;  %v12286_v3 = vld [vmem:[#allocation3 + $0xe4] sm:$0xff]  ;;  %v6706_v38 = vrot.slane %v6705_v47, 4  ;;  %v5282_v35 = vsel %vm13882_vm6, 0, %v5281_v39 }
 0x391   : > { %v14617_v40 = vadd.f32 %v6260_v31, %v6039_v30  ;;  %v6720_v53 = vrot.slane %v6718_v52, 5  ;;  %v7167_v30 = vshrl.u32 %v14623_v20, 16  ;;  %v6402_v31 = vld [vmem:[#allocation3 + $0x110] sm:$0xf]  ;;  %5283 = vst [vmem:[#allocation3 + $0x114] sm:$0x1] %v5282_v35  ;;  %v7151_v47 = vsel %vm12599_vm12, %v7143_v16, %v7150_v23 }
 0x392   : > { %v6732_v61 = vshll.u32 %v6402_v31, 16  ;;  %v6736_v27 = vshrl.u32 %v6402_v31, 16  ;;  %v7035_v35 = vld [vmem:[#allocation3 + $0x94] sm:$0xf] }
 0x393   : > { %16663 = vst [vmem:[#allocation40_spill] sm:$0xff] %v14617_v40  ;;  %v6721_v54 = vsel %vm12616_vm14, %v6716_v57, %v6720_v53  ;;  %v6711_v57 = vsel %vm12616_vm14, %v6706_v38, %v14591_v51  ;;  %v7161_v53 = vshll.u32 %v14611_v0, 16  ;;  %v7182_v40 = vrot.slane %v7180_v13, 7  ;;  %v7034_v38 = vld [vmem:[#allocation3 + $0x90] sm:$0x8] }
 0x394   : > { %v14636_v7 = vpop.f32.mrf.mxu1  ;;  %v6821_v31 = vunpack.c.l.b16 %v6721_v54  ;;  %v14670_v23 = vrot.slane %v6732_v61, 5  ;;  %v6738_v16 = vrot.slane %v6736_v27, 4  ;;  %v6820_v29 = vunpack.c.l.b16 %v6711_v57 }
 0x395   : > { %v14634_v32 = vpop.f32.mrf.mxu2  ;;  %16665 = vst [vmem:[#allocation42_spill] sm:$0xff] %v14636_v7  ;;  %v14647_v52 = vpop.f32.mrf.mxu0  ;;  %v6726_v7 = vshll.u32 %v6401_v58, 16  ;;  %v7170_v51 = vshll.u32 %v14623_v20, 16  ;;  %v7183_v0 = vshll.u32 %v14625_v5, 16 }
 0x396   : > { %16664 = vst [vmem:[#allocation41_spill] sm:$0xff] %v14634_v32  ;;  %v7160_v32 = vrot.slane %v7158_v50, 7  ;;  %v7169_v50 = vrot.slane %v7167_v30, 7  ;;  %v7202_v30 = vshrl.u32 %v7035_v35, 16  ;;  %v6840_v54 = vpack.c.b16 %v6821_v31, %v6820_v29 }
 0x397   : > { %16666 = vst [vmem:[#allocation43_spill] sm:$0xff] %v14647_v52  ;;  %11883 = vmatmul.msk.bf16.gmra.mxu1 %vm5746_vm4, %v7451_v21  ;;  %v7142_v52 = vsel %vm12599_vm12, %v14630_v25, %v14632_v9  ;;  %v7175_v21 = vshrl.u32 %v7031_v56, 16  ;;  %v7191_v25 = vrot.slane %v7189_v42, 7  ;;  %v6723_v9 = vshrl.u32 %v6401_v58, 16 }
 0x398   : > { %v6262_v43 = vpop.f32.mrf.mxu3  ;;  %v7165_v13 = vrot.slane %v7160_v32, 4  ;;  %v7192_v42 = vshll.u32 %v14628_v17, 16  ;;  %v7172_v58 = vor.u32 %v7170_v51, %v7169_v50  ;;  %v7185_v61 = vor.u32 %v7183_v0, %v7182_v40  ;;  %v6403_v5 = vld [vmem:[#allocation3 + $0x114] sm:$0x1] }
 0x399   : > { %v14668_v39 = vadd.f32 %v6262_v43, %v6041_v8  ;;  %v7425_v43 = vunpack.c.l.b16 %v7151_v47  ;;  %v7163_v8 = vor.u32 %v7161_v53, %v7160_v32  ;;  %v11870_v20 = vrot.slane %v7175_v21, 11 }
 0x39a   : > { %11973 = vmatmul.msk.bf16.gmra.mxu2 %vm5746_vm4, %v12286_v3  ;;  %v6725_v57 = vrot.slane %v6723_v9, 4  ;;  %v6044_v32 = vadd.f32 %v14034_v46, %v14356_v15  ;;  %v6742_v17 = vshll.u32 %v6403_v5, 16  ;;  %v7197_v47 = vshrl.u32 %v7034_v38, 16  ;;  %v14704_v9 = vld [vmem:[#allocation3 + $0x98] sm:$0xf] }
 0x39b   : > { %16667 = vst [vmem:[#allocation44_spill] sm:$0xff] %v14668_v39  ;;  %v6728_v39 = vrot.slane %v6726_v7, 5  ;;  %v16671_v29 = vsel %vm12599_vm12, %v14613_v60, %v14615_v41  ;;  %v7424_v7 = vunpack.c.l.b16 %v7142_v52  ;;  %v7164_v21 = vsel %vm12599_vm12, %v14642_v6, %v7163_v8  ;;  %v14710_v6 = vld [vmem:[#allocation3 + $0x30] sm:$0xf]  ;;  %v12272_v5 = vld [vmem:[#allocation3 + $0xf8] sm:$0xff] }
 0x39c   : > { %v14676_v3 = vpop.f32.mrf.mxu1  ;;  %v7422_v50 = vunpack.c.l.b16 %v16671_v29  ;;  %v7187_v31 = vrot.slane %v7182_v40, 4  ;;  %v14700_v15 = vsel %vm12599_vm12, %v7165_v13, %v7172_v58  ;;  %v6744_v52 = vrot.slane %v6742_v17, 5  ;;  %v8547_v40 = vld [vmem:[#allocation3 + $0x2c] sm:$0x8]  ;;  %v5284_v58 = vld [vmem:[#allocation3 + $0x128] sm:$0x1] }
 0x39d   : > { %v14674_v56 = vpop.f32.mrf.mxu2  ;;  %16669 = vst [vmem:[#allocation46_spill] sm:$0xff] %v14676_v3  ;;  %11843 = vmatmul.msk.bf16.gmra.mxu3 %vm5746_vm4, %v12271_v63  ;;  %v14680_v27 = vpop.f32.mrf.mxu0  ;;  %v7194_v3 = vor.u32 %v7192_v42, %v7191_v25  ;;  %v14686_v63 = vrot.slane %v7202_v30, 7  ;;  %v7186_v25 = vsel %vm12599_vm12, %v11870_v20, %v7185_v61  ;;  %v6729_v60 = vor.u32 %v6728_v39, %v6725_v57  ;;  %v6405_v20 = vld [vmem:[#allocation3 + $0x124] sm:$0xf] }
 0x39e   : > { %16668 = vst [vmem:[#allocation45_spill] sm:$0xff] %v14674_v56  ;;  %v6739_v56 = vor.u32 %v6738_v16, %v14670_v23  ;;  %v7205_v16 = vshll.u32 %v7035_v35, 16  ;;  %v16673_v0 = vunpack.c.l.b16 %v14621_v36  ;;  %v14714_v8 = vpack.c.b16 %v7425_v43, %v7424_v7  ;;  %v14721_v35 = vld [vmem:[#allocation3 + $0x34] sm:$0xf]  ;;  %v6404_v7 = vld [vmem:[#allocation3 + $0x120] sm:$0xf] }
 0x39f   : > { %16670 = vst [vmem:[#allocation47_spill] sm:$0xff] %v14680_v27  ;;  %v14708_v51 = vsel %vm12599_vm12, %v7187_v31, %v7194_v3  ;;  %v14716_v13 = vrot.slane %v7197_v47, 11  ;;  %v6046_v39 = vadd.f32 %v14054_v49, %v14377_v48  ;;  %v14729_v38 = vunpack.c.l.b16 %v7164_v21  ;;  %v12287_v48 = vld [vmem:[#allocation3 + $0xf8] sm:$0xff] }
 0x3a0   : > { %11861 = vmatmul.msk.bf16.gmra.mxu0 %vm5746_vm4, %v6840_v54  ;;  %v6265_v53 = vpop.f32.mrf.mxu3  ;;  %v6740_v41 = vrot.slane %v6739_v56, 4  ;;  %v7452_v30 = vpack.c.b16 %v16673_v0, %v7422_v50  ;;  %v14719_v42 = vor.u32 %v7205_v16, %v14686_v63  ;;  %v7211_v43 = vshrl.u32 %v14704_v9, 16  ;;  %v7892_v54 = vld [vmem:[#allocation3 + $0x1c] sm:$0xf] }
 0x3a1   : > { %v14696_v46 = vadd.f32 %v6265_v53, %v6044_v32  ;;  %v14733_v61 = vunpack.c.l.b16 %v7186_v25  ;;  %v8596_v57 = vshrl.u32 %v8547_v40, 16  ;;  %v8601_v49 = vshrl.u32 %v14710_v6, 16 }
 0x3a2   : > { %v6730_v32 = vrot.slane %v6729_v60, 4  ;;  %v6745_v17 = vsel %vm12616_vm14, %v6740_v41, %v6744_v52  ;;  %v5285_v47 = vsel %vm13882_vm6, 0, %v5284_v58  ;;  %v8610_v53 = vshrl.u32 %v14721_v35, 16 }
 0x3a3   : > { %16672 = vst [vmem:[#allocation48_spill] sm:$0xff] %v14696_v46  ;;  %v6049_v29 = vadd.f32 %v14071_v18, %v14394_v10  ;;  %v6756_v21 = vshll.u32 %v6405_v20, 16  ;;  %v6760_v31 = vshrl.u32 %v6405_v20, 16  ;;  %v7208_v25 = vsel %vm12599_vm12, %v14716_v13, %v14719_v42  ;;  %v7893_v42 = vld [vmem:[#allocation3 + $0x20] sm:$0xf] }
 0x3a4   : > { %v14727_v3 = vpop.f32.mrf.mxu1  ;;  %5286 = vst [vmem:[#allocation3 + $0x128] sm:$0x1] %v5285_v47  ;;  %v6735_v60 = vsel %vm12616_vm14, %v6730_v32, %v14670_v23  ;;  %v7213_v41 = vrot.slane %v7211_v43, 7  ;;  %v7941_v18 = vshrl.u32 %v7892_v54, 16  ;;  %v7944_v10 = vshll.u32 %v7892_v54, 16 }
 0x3a5   : > { %v14725_v56 = vpop.f32.mrf.mxu2  ;;  %v14745_v50 = vpop.f32.mrf.mxu0  ;;  %v6823_v40 = vunpack.c.l.b16 %v6745_v17  ;;  %v7214_v0 = vshll.u32 %v14704_v9, 16  ;;  %v6747_v58 = vshrl.u32 %v6404_v7, 16  ;;  %v6750_v20 = vshll.u32 %v6404_v7, 16  ;;  %v7894_v32 = vld [vmem:[#allocation3 + $0x24] sm:$0x1] }
 0x3a6   : > { %16674 = vst [vmem:[#allocation49_spill] sm:$0xff] %v14725_v56  ;;  %v14758_v47 = vrot.slane %v6756_v21, 5  ;;  %v6762_v13 = vrot.slane %v6760_v31, 4  ;;  %v6822_v36 = vunpack.c.l.b16 %v6735_v60  ;;  %v7209_v23 = vrot.slane %v14686_v63, 4  ;;  %v8550_v21 = vld [vmem:[#allocation3 + $0x40] sm:$0x8] }
 0x3a7   : > { %11884 = vmatmul.msk.bf16.gmra.mxu1 %vm5746_vm4, %v7452_v30  ;;  %16675 = vst [vmem:[#allocation50_spill] sm:$0xff] %v14745_v50  ;;  %v8603_v30 = vrot.slane %v8601_v49, 7  ;;  %v11996_v43 = vrot.slane %v8596_v57, 11  ;;  %v8612_v54 = vrot.slane %v8610_v53, 7  ;;  %v7216_v17 = vor.u32 %v7214_v0, %v7213_v41 }
 0x3a8   : > { %v6267_v16 = vpop.f32.mrf.mxu3  ;;  %v8604_v9 = vshll.u32 %v14710_v6, 16  ;;  %v7943_v49 = vrot.slane %v7941_v18, 4  ;;  %v7946_v7 = vrot.slane %v7944_v10, 5  ;;  %v6841_v31 = vpack.c.b16 %v6823_v40, %v6822_v36 }
 0x3a9   : > { %v14755_v52 = vadd.f32 %v6267_v16, %v6046_v39  ;;  %v8613_v16 = vshll.u32 %v14721_v35, 16  ;;  %v7950_v60 = vshll.u32 %v7893_v42, 16  ;;  %v7954_v63 = vshrl.u32 %v7893_v42, 16 }
 0x3aa   : > { %11974 = vmatmul.msk.bf16.gmra.mxu2 %vm5746_vm4, %v12287_v48  ;;  %v6749_v53 = vrot.slane %v6747_v58, 4  ;;  %v6752_v56 = vrot.slane %v6750_v20, 5  ;;  %v8606_v50 = vor.u32 %v8604_v9, %v8603_v30  ;;  %v7960_v18 = vshll.u32 %v7894_v32, 16  ;;  %v9424_v58 = vld [vmem:[#allocation3 + $0x34] sm:$0xf] }
 0x3ab   : > { %16676 = vst [vmem:[#allocation51_spill] sm:$0xff] %v14755_v52  ;;  %v6406_v57 = vld [vmem:[#allocation3 + $0x128] sm:$0x1]  ;;  %v8615_v6 = vor.u32 %v8613_v16, %v8612_v54  ;;  %v8618_v10 = vshrl.u32 %v8550_v21, 16  ;;  %v14774_v35 = vsel %vm12599_vm12, %v7209_v23, %v7216_v17  ;;  %v14776_v40 = vunpack.c.l.b16 %v7208_v25  ;;  %v14784_v9 = vld [vmem:[#allocation3 + $0x44] sm:$0xf] }
 0x3ac   : > { %v14763_v39 = vpop.f32.mrf.mxu1  ;;  %v6766_v41 = vshll.u32 %v6406_v57, 16  ;;  %v7947_v0 = vor.u32 %v7946_v7, %v7943_v49  ;;  %v8608_v42 = vrot.slane %v8603_v30, 4  ;;  %v14782_v54 = vrot.slane %v7950_v60, 5  ;;  %v14788_v25 = vld [vmem:[#allocation3 + $0x48] sm:$0xf] }
 0x3ad   : > { %v14761_v48 = vpop.f32.mrf.mxu2  ;;  %11844 = vmatmul.msk.bf16.gmra.mxu3 %vm5746_vm4, %v12272_v5  ;;  %v6051_v5 = vadd.f32 %v14089_v44, %v14415_v4  ;;  %v7956_v32 = vrot.slane %v7954_v63, 4  ;;  %v6753_v44 = vor.u32 %v6752_v56, %v6749_v53  ;;  %v8607_v23 = vsel %vm12599_vm12, %v11996_v43, %v8606_v50  ;;  %v9423_v7 = vld [vmem:[#allocation3 + $0x30] sm:$0xf]  ;;  %v5287_v60 = vld [vmem:[#allocation3 + $0x13c] sm:$0x1] }
 0x3ae   : > { %16677 = vst [vmem:[#allocation52_spill] sm:$0xff] %v14761_v48  ;;  %v6763_v48 = vor.u32 %v6762_v13, %v14758_v47  ;;  %v14780_v13 = vpop.f32.mrf.mxu0  ;;  %v6768_v21 = vrot.slane %v6766_v41, 5  ;;  %v14795_v30 = vrot.slane %v7960_v18, 5  ;;  %v14797_v49 = vrot.slane %v8618_v10, 11  ;;  %v6408_v63 = vld [vmem:[#allocation3 + $0x138] sm:$0xf] }
 0x3af   : > { %16679 = vst [vmem:[#allocation54_spill] sm:$0xff] %v14780_v13  ;;  %v8623_v50 = vshrl.u32 %v14784_v9, 16  ;;  %v9481_v43 = vshll.u32 %v9424_v58, 16  ;;  %v9485_v16 = vshrl.u32 %v9424_v58, 16  ;;  %v14806_v57 = vunpack.c.l.b16 %v8607_v23  ;;  %v12288_v18 = vld [vmem:[#allocation3 + $0x10c] sm:$0xff] }
 0x3b0   : > { %11862 = vmatmul.msk.bf16.gmra.mxu0 %vm5746_vm4, %v6841_v31  ;;  %v6270_v36 = vpop.f32.mrf.mxu3  ;;  %v6764_v4 = vrot.slane %v6763_v48, 4  ;;  %v14803_v48 = vrot.slane %v7947_v0, 4  ;;  %v7957_v53 = vor.u32 %v7956_v32, %v14782_v54  ;;  %v8626_v41 = vshll.u32 %v14784_v9, 16  ;;  %v6407_v32 = vld [vmem:[#allocation3 + $0x134] sm:$0xf] }
 0x3b1   : > { %v14778_v20 = vadd.f32 %v6270_v36, %v6049_v29  ;;  %v14793_v29 = vsel %vm12599_vm12, %v8608_v42, %v8615_v6  ;;  %v8632_v6 = vshrl.u32 %v14788_v25, 16  ;;  %v6754_v10 = vrot.slane %v6753_v44, 4  ;;  %v7895_v17 = vld [vmem:[#allocation3 + $0x30] sm:$0xf] }
 0x3b2   : > { %v6769_v36 = vsel %vm12616_vm14, %v6764_v4, %v6768_v21  ;;  %v5288_v0 = vsel %vm13882_vm6, 0, %v5287_v60  ;;  %v9472_v42 = vshrl.u32 %v9423_v7, 16  ;;  %v6054_v58 = vadd.f32 %v14106_v26, %v14432_v34 }
 0x3b3   : > { %16678 = vst [vmem:[#allocation53_spill] sm:$0xff] %v14778_v20  ;;  %v6780_v9 = vshll.u32 %v6408_v63, 16  ;;  %v6784_v23 = vshrl.u32 %v6408_v63, 16  ;;  %v6759_v4 = vsel %vm12616_vm14, %v6754_v10, %v14758_v47  ;;  %v9475_v21 = vshll.u32 %v9423_v7, 16 }
 0x3b4   : > { %v14801_v56 = vpop.f32.mrf.mxu1  ;;  %5289 = vst [vmem:[#allocation3 + $0x13c] sm:$0x1] %v5288_v0  ;;  %v14823_v60 = vrot.slane %v9481_v43, 5  ;;  %v6825_v34 = vunpack.c.l.b16 %v6769_v36  ;;  %v7958_v63 = vrot.slane %v7957_v53, 4  ;;  %v9425_v0 = vld [vmem:[#allocation3 + $0x38] sm:$0x1] }
 0x3b5   : > { %v14799_v31 = vpop.f32.mrf.mxu2  ;;  %16681 = vst [vmem:[#allocation56_spill] sm:$0xff] %v14801_v56  ;;  %v6771_v2 = vshrl.u32 %v6407_v32, 16  ;;  %v6774_v13 = vshll.u32 %v6407_v32, 16  ;;  %v14832_v47 = vrot.slane %v6780_v9, 5  ;;  %v6786_v7 = vrot.slane %v6784_v23, 4 }
 0x3b6   : > { %16680 = vst [vmem:[#allocation55_spill] sm:$0xff] %v14799_v31  ;;  %v9487_v31 = vrot.slane %v9485_v16, 4  ;;  %v7896_v43 = vld [vmem:[#allocation3 + $0x34] sm:$0xf]  ;;  %v14834_v16 = vpop.f32.mrf.mxu0  ;;  %v8625_v10 = vrot.slane %v8623_v50, 7  ;;  %v8634_v36 = vrot.slane %v8632_v6, 7 }
 0x3b7   : > { %11885 = vmatmul.msk.bf16.gmra.mxu1 %vm5746_vm4, %v14714_v8  ;;  %v7953_v8 = vsel %vm12616_vm14, %v14803_v48, %v14782_v54  ;;  %16683 = vst [vmem:[#allocation58_spill] sm:$0xff] %v14834_v16  ;;  %v9474_v48 = vrot.slane %v9472_v42, 4  ;;  %v9477_v53 = vrot.slane %v9475_v21, 5  ;;  %v9491_v9 = vshll.u32 %v9425_v0, 16 }
 0x3b8   : > { %v6272_v44 = vpop.f32.mrf.mxu3  ;;  %v9488_v32 = vor.u32 %v9487_v31, %v14823_v60  ;;  %v7965_v27 = vshrl.u32 %v7895_v17, 16  ;;  %v7974_v16 = vshll.u32 %v7896_v43, 16  ;;  %v7978_v20 = vshrl.u32 %v7896_v43, 16 }
 0x3b9   : > { %v14826_v26 = vadd.f32 %v6272_v44, %v6051_v5  ;;  %v6824_v5 = vunpack.c.l.b16 %v6759_v4  ;;  %v8635_v44 = vshll.u32 %v14788_v25, 16  ;;  %v6773_v50 = vrot.slane %v6771_v2, 4 }
 0x3ba   : > { %11975 = vmatmul.msk.bf16.gmra.mxu2 %vm5746_vm4, %v12288_v18  ;;  %v12273_v18 = vld [vmem:[#allocation3 + $0x10c] sm:$0xff]  ;;  %v6776_v6 = vrot.slane %v6774_v13, 5  ;;  %v6787_v25 = vor.u32 %v6786_v7, %v14832_v47  ;;  %v7968_v52 = vshll.u32 %v7895_v17, 16  ;;  %v7963_v31 = vsel %vm12616_vm14, %v7958_v63, %v14795_v30 }
 0x3bb   : > { %16682 = vst [vmem:[#allocation57_spill] sm:$0xff] %v14826_v26  ;;  %v6842_v23 = vpack.c.b16 %v6825_v34, %v6824_v5  ;;  %v6409_v4 = vld [vmem:[#allocation3 + $0x13c] sm:$0x1]  ;;  %v8628_v42 = vor.u32 %v8626_v41, %v8625_v10  ;;  %v8637_v21 = vor.u32 %v8635_v44, %v8634_v36  ;;  %v8630_v34 = vrot.slane %v8625_v10, 4 }
 0x3bc   : > { %v14839_v54 = vpop.f32.mrf.mxu1  ;;  %v9489_v5 = vrot.slane %v9488_v32, 4  ;;  %v9493_v43 = vrot.slane %v9491_v9, 5  ;;  %v7967_v2 = vrot.slane %v7965_v27, 4  ;;  %v14850_v13 = vrot.slane %v7974_v16, 5  ;;  %v12289_v9 = vld [vmem:[#allocation3 + $0x120] sm:$0xff] }
 0x3bd   : > { %v14837_v26 = vpop.f32.mrf.mxu2  ;;  %16685 = vst [vmem:[#allocation60_spill] sm:$0xff] %v14839_v54  ;;  %11845 = vmatmul.msk.bf16.gmra.mxu3 %vm5746_vm4, %v12273_v18  ;;  %v9478_v18 = vor.u32 %v9477_v53, %v9474_v48  ;;  %v7980_v17 = vrot.slane %v7978_v20, 4  ;;  %v6777_v7 = vor.u32 %v6776_v6, %v6773_v50  ;;  %v7897_v54 = vld [vmem:[#allocation3 + $0x38] sm:$0x1]  ;;  %v7970_v56 = vrot.slane %v7968_v52, 5 }
 0x3be   : > { %16684 = vst [vmem:[#allocation59_spill] sm:$0xff] %v14837_v26  ;;  %v6790_v26 = vshll.u32 %v6409_v4, 16  ;;  %v16687_v30 = vunpack.c.l.b16 %v14700_v15  ;;  %v16688_v63 = vunpack.c.l.b16 %v14708_v51  ;;  %v8638_v27 = vsel %vm12599_vm12, %v8630_v34, %v8637_v21  ;;  %v14883_v36 = vpop.f32.mrf.mxu0  ;;  %v14888_v53 = vld [vmem:[#allocation3 + $0x58] sm:$0xf] }
 0x3bf   : > { %v16690_v52 = vunpack.c.l.b16 %v14774_v35  ;;  %v16691_v15 = vunpack.c.l.b16 %v14793_v29  ;;  %16692 = vst [vmem:[#allocation63_spill] sm:$0xff] %v14883_v36  ;;  %v9479_v44 = vrot.slane %v9478_v18, 4  ;;  %v9494_v48 = vsel %vm12616_vm14, %v9489_v5, %v9493_v43  ;;  %v9427_v5 = vld [vmem:[#allocation3 + $0x48] sm:$0xf] }
 0x3c0   : > { %11863 = vmatmul.msk.bf16.gmra.mxu0 %vm5746_vm4, %v6842_v23  ;;  %v6275_v0 = vpop.f32.mrf.mxu3  ;;  %v6788_v23 = vrot.slane %v6787_v25, 4  ;;  %v6792_v4 = vrot.slane %v6790_v26, 5  ;;  %v7454_v41 = vpack.c.b16 %v16687_v30, %v14729_v38  ;;  %v14858_v10 = vpack.c.b16 %v16688_v63, %v14733_v61  ;;  %v8553_v25 = vld [vmem:[#allocation3 + $0x54] sm:$0x8]  ;;  %v7899_v30 = vld [vmem:[#allocation3 + $0x48] sm:$0xf] }
 0x3c1   : > { %v14848_v46 = vadd.f32 %v6275_v0, %v6054_v58  ;;  %v14860_v58 = vunpack.c.l.b16 %v7963_v31  ;;  %v14871_v26 = vpack.c.b16 %v16690_v52, %v14776_v40  ;;  %v14876_v51 = vpack.c.b16 %v16691_v15, %v14806_v57 }
 0x3c2   : > { %v14878_v38 = vunpack.c.l.b16 %v7953_v8  ;;  %v8629_v61 = vsel %vm12599_vm12, %v14797_v49, %v8628_v42  ;;  %v7981_v35 = vor.u32 %v7980_v17, %v14850_v13  ;;  %v7984_v40 = vshll.u32 %v7897_v54, 16 }
 0x3c3   : > { %16686 = vst [vmem:[#allocation61_spill] sm:$0xff] %v14848_v46  ;;  %v6778_v29 = vrot.slane %v6777_v7, 4  ;;  %v6793_v57 = vsel %vm12616_vm14, %v6788_v23, %v6792_v4  ;;  %v8952_v8 = vunpack.c.l.b16 %v8638_v27  ;;  %v7971_v32 = vor.u32 %v7970_v56, %v7967_v2  ;;  %v8555_v56 = vld [vmem:[#allocation3 + $0x5c] sm:$0xf]  ;;  %v12274_v7 = vld [vmem:[#allocation3 + $0x120] sm:$0xff]  ;;  %v16711_v46 = vld [vmem:[#allocation46_spill] sm:$0xff] }
 0x3c4   : > { %v14866_v16 = vpop.f32.mrf.mxu1  ;;  %v6056_v49 = vadd.f32 %v14123_v24, %v14453_v62  ;;  %v8951_v6 = vunpack.c.l.b16 %v8629_v61  ;;  %v9484_v54 = vsel %vm12616_vm14, %v9479_v44, %v14823_v60  ;;  %v6059_v31 = vadd.f32 %v14143_v12, %v14479_v59 }
 0x3c5   : > { %v14864_v20 = vpop.f32.mrf.mxu2  ;;  %v6783_v24 = vsel %vm12616_vm14, %v6778_v29, %v14832_v47  ;;  %v14905_v62 = vunpack.c.l.b16 %v9494_v48  ;;  %v8645_v21 = vshrl.u32 %v14888_v53, 16  ;;  %v6827_v34 = vunpack.c.l.b16 %v6793_v57 }
 0x3c6   : > { %16689 = vst [vmem:[#allocation62_spill] sm:$0xff] %v14864_v20  ;;  %v7982_v60 = vrot.slane %v7981_v35, 4  ;;  %v7986_v18 = vrot.slane %v7984_v40, 5  ;;  %v14911_v43 = vpack.c.b16 %v8952_v8, %v8951_v6  ;;  %v14913_v12 = vunpack.c.l.b16 %v9484_v54  ;;  %v7898_v40 = vld [vmem:[#allocation3 + $0x44] sm:$0xf]  ;;  %v14942_v57 = vpop.f32.mrf.mxu0 }
 0x3c7   : > { %11886 = vmatmul.msk.bf16.gmra.mxu1 %vm5746_vm4, %v7454_v41  ;;  %v7972_v59 = vrot.slane %v7971_v32, 4  ;;  %v8640_v2 = vshrl.u32 %v8553_v25, 16  ;;  %v14917_v47 = vadd.f32 %v14162_v11, %v14510_v22  ;;  %v14921_v17 = vadd.f32 %v14180_v28, %v14531_v1  ;;  %v9426_v22 = vld [vmem:[#allocation3 + $0x44] sm:$0xf]  ;;  %16695 = vst [vmem:[#allocation66_spill] sm:$0xff] %v14942_v57 }
 0x3c8   : > { %v6277_v42 = vpop.f32.mrf.mxu3  ;;  %v6826_v23 = vunpack.c.l.b16 %v6783_v24  ;;  %v8654_v4 = vshrl.u32 %v8555_v56, 16  ;;  %v9505_v52 = vshll.u32 %v9427_v5, 16  ;;  %v9509_v15 = vshrl.u32 %v9427_v5, 16 }
 0x3c9   : > { %v14909_v0 = vadd.f32 %v6277_v42, %v6056_v49  ;;  %v7977_v11 = vsel %vm12616_vm14, %v7972_v59, %v14850_v13  ;;  %v14934_v28 = vadd.f32 %v14538_v14, %v14595_v37  ;;  %v7987_v61 = vsel %vm12616_vm14, %v7982_v60, %v7986_v18  ;;  %v8558_v49 = vld [vmem:[#allocation3 + $0x70] sm:$0xf]  ;;  %v14953_v18 = vld [vmem:[#allocation3 + $0x6c] sm:$0xf] }
 0x3ca   : > { %11976 = vmatmul.msk.bf16.gmra.mxu2 %vm5746_vm4, %v12289_v9  ;;  %v6843_v1 = vpack.c.b16 %v6827_v34, %v6826_v23  ;;  %v8647_v44 = vrot.slane %v8645_v21, 7  ;;  %v14939_v48 = vrot.slane %v8640_v2, 11  ;;  %v8648_v35 = vshll.u32 %v14888_v53, 16  ;;  %v9428_v21 = vld [vmem:[#allocation3 + $0x4c] sm:$0x1] }
 0x3cb   : > { %16693 = vst [vmem:[#allocation64_spill] sm:$0xff] %v14909_v0  ;;  %v7998_v13 = vshll.u32 %v7899_v30, 16  ;;  %v8002_v29 = vshrl.u32 %v7899_v30, 16  ;;  %v14945_v37 = vunpack.c.l.b16 %v7977_v11  ;;  %v8656_v14 = vrot.slane %v8654_v4, 7  ;;  %v7900_v59 = vld [vmem:[#allocation3 + $0x4c] sm:$0x1] }
 0x3cc   : > { %v14925_v63 = vpop.f32.mrf.mxu1  ;;  %v9496_v8 = vshrl.u32 %v9426_v22, 16  ;;  %v9499_v32 = vshll.u32 %v9426_v22, 16  ;;  %v14947_v6 = vunpack.c.l.b16 %v7987_v61  ;;  %v8657_v54 = vshll.u32 %v8555_v56, 16  ;;  %v9429_v11 = vld [vmem:[#allocation3 + $0x58] sm:$0xf] }
 0x3cd   : > { %v14923_v41 = vpop.f32.mrf.mxu2  ;;  %11846 = vmatmul.msk.bf16.gmra.mxu3 %vm5746_vm4, %v12274_v7  ;;  %v14949_v25 = vrot.slane %v9505_v52, 5  ;;  %v9511_v53 = vrot.slane %v9509_v15, 4  ;;  %v8650_v24 = vor.u32 %v8648_v35, %v8647_v44  ;;  %v7989_v34 = vshrl.u32 %v7898_v40, 16 }
 0x3ce   : > { %16694 = vst [vmem:[#allocation65_spill] sm:$0xff] %v14923_v41  ;;  %v7992_v60 = vshll.u32 %v7898_v40, 16  ;;  %v14957_v5 = vadd.f32 %v14204_v19, %v14550_v33  ;;  %v14959_v2 = vrot.slane %v7998_v13, 5  ;;  %v8004_v7 = vrot.slane %v8002_v29, 4  ;;  %v9430_v33 = vld [vmem:[#allocation3 + $0x5c] sm:$0xf] }
 0x3cf   : > { %v8676_v56 = vshrl.u32 %v8558_v49, 16  ;;  %v8652_v23 = vrot.slane %v8647_v44, 4  ;;  %v8659_v4 = vor.u32 %v8657_v54, %v8656_v14  ;;  %v9498_v30 = vrot.slane %v9496_v8, 4  ;;  %v8556_v14 = vld [vmem:[#allocation3 + $0x68] sm:$0x8]  ;;  %v12290_v54 = vld [vmem:[#allocation3 + $0x134] sm:$0xff] }
 0x3d0   : > { %11864 = vmatmul.msk.bf16.gmra.mxu0 %vm5746_vm4, %v6843_v1  ;;  %v6280_v9 = vpop.f32.mrf.mxu3  ;;  %v9512_v15 = vor.u32 %v9511_v53, %v14949_v25  ;;  %v9515_v1 = vshll.u32 %v9428_v21, 16  ;;  %v8667_v19 = vshrl.u32 %v14953_v18, 16  ;;  %v8651_v44 = vsel %vm12599_vm12, %v14939_v48, %v8650_v24 }
 0x3d1   : > { %v14951_v42 = vadd.f32 %v6280_v9, %v6059_v31  ;;  %v9501_v31 = vrot.slane %v9499_v32, 5  ;;  %v7991_v35 = vrot.slane %v7989_v34, 4  ;;  %v7994_v40 = vrot.slane %v7992_v60, 5 }
 0x3d2   : > { %v8008_v13 = vshll.u32 %v7900_v59, 16  ;;  %v8005_v29 = vor.u32 %v8004_v7, %v14959_v2  ;;  %v8678_v8 = vrot.slane %v8676_v56, 7  ;;  %v9520_v32 = vshrl.u32 %v9429_v11, 16  ;;  %v14977_v7 = vpop.f32.mrf.mxu0 }
 0x3d3   : > { %16696 = vst [vmem:[#allocation67_spill] sm:$0xff] %v14951_v42  ;;  %v9523_v9 = vshll.u32 %v9429_v11, 16  ;;  %v8660_v53 = vsel %vm12599_vm12, %v8652_v23, %v8659_v4  ;;  %v9502_v21 = vor.u32 %v9501_v31, %v9498_v30  ;;  %v9529_v52 = vshll.u32 %v9430_v33, 16  ;;  %v12275_v31 = vld [vmem:[#allocation3 + $0x134] sm:$0xff] }
 0x3d4   : > { %v14961_v22 = vpop.f32.mrf.mxu1  ;;  %v9533_v27 = vshrl.u32 %v9430_v33, 16  ;;  %v9513_v24 = vrot.slane %v9512_v15, 4  ;;  %v9517_v34 = vrot.slane %v9515_v1, 5  ;;  %v8669_v60 = vrot.slane %v8667_v19, 7  ;;  %16698 = vst [vmem:[#allocation69_spill] sm:$0xff] %v14977_v7  ;;  %v16700_v19 = vld [vmem:[#allocation35_spill] sm:$0xff] }
 0x3d5   : > { %v14967_v61 = vpop.f32.mrf.mxu2  ;;  %v8679_v59 = vshll.u32 %v8558_v49, 16  ;;  %v8010_v11 = vrot.slane %v8008_v13, 5  ;;  %v8662_v50 = vshrl.u32 %v8556_v14, 16  ;;  %v8006_v41 = vrot.slane %v8005_v29, 4  ;;  %v9431_v29 = vld [vmem:[#allocation3 + $0x60] sm:$0x1] }
 0x3d6   : > { %16697 = vst [vmem:[#allocation68_spill] sm:$0xff] %v14967_v61  ;;  %v9522_v4 = vrot.slane %v9520_v32, 4  ;;  %v9525_v30 = vrot.slane %v9523_v9, 5  ;;  %v9503_v33 = vrot.slane %v9502_v21, 4  ;;  %v8670_v15 = vshll.u32 %v14953_v18, 16  ;;  %v16701_v61 = vld [vmem:[#allocation12_spill] sm:$0xff] }
 0x3d7   : > { %11887 = vmatmul.msk.bf16.gmra.mxu1 %vm5746_vm4, %v14858_v10  ;;  %v7995_v10 = vor.u32 %v7994_v40, %v7991_v35  ;;  %v8681_v23 = vor.u32 %v8679_v59, %v8678_v8  ;;  %v14984_v1 = vrot.slane %v9529_v52, 5  ;;  %v9535_v49 = vrot.slane %v9533_v27, 4  ;;  %v7902_v14 = vld [vmem:[#allocation3 + $0x5c] sm:$0xf] }
 0x3d8   : > { %v6282_v48 = vpop.f32.mrf.mxu3  ;;  %v8953_v35 = vunpack.c.l.b16 %v8651_v44  ;;  %v8954_v40 = vunpack.c.l.b16 %v8660_v53  ;;  %v8674_v13 = vrot.slane %v8669_v60, 4  ;;  %v9508_v18 = vsel %vm12616_vm14, %v9503_v33, %v14949_v25  ;;  %v7901_v53 = vld [vmem:[#allocation3 + $0x58] sm:$0xf]  ;;  %v15006_v25 = vld [vmem:[#allocation3 + $0xac] sm:$0xf] }
 0x3d9   : > { %v14981_v56 = vadd.f32 %v6282_v48, %v14917_v47  ;;  %v9518_v27 = vsel %vm12616_vm14, %v9513_v24, %v9517_v34  ;;  %v11999_v52 = vrot.slane %v8662_v50, 11  ;;  %v8672_v8 = vor.u32 %v8670_v15, %v8669_v60 }
 0x3da   : > { %11977 = vmatmul.msk.bf16.gmra.mxu2 %vm5746_vm4, %v12290_v54  ;;  %v14988_v54 = vadd.f32 %v16701_v61, %v16700_v19  ;;  %v7996_v61 = vrot.slane %v7995_v10, 4  ;;  %v8011_v32 = vsel %vm12616_vm14, %v8006_v41, %v8010_v11  ;;  %v8682_v44 = vsel %vm12599_vm12, %v8674_v13, %v8681_v23  ;;  %v7038_v23 = vld [vmem:[#allocation3 + $0xa8] sm:$0xf] }
 0x3db   : > { %16699 = vst [vmem:[#allocation70_spill] sm:$0xff] %v14981_v56  ;;  %v9526_v9 = vor.u32 %v9525_v30, %v9522_v4  ;;  %v9536_v48 = vor.u32 %v9535_v49, %v14984_v1  ;;  %v9539_v50 = vshll.u32 %v9431_v29, 16  ;;  %v8022_v24 = vshll.u32 %v7902_v14, 16 }
 0x3dc   : > { %v14990_v47 = vpop.f32.mrf.mxu1  ;;  %v8026_v34 = vshrl.u32 %v7902_v14, 16  ;;  %v15009_v59 = vpack.c.b16 %v8954_v40, %v8953_v35  ;;  %v15011_v41 = vunpack.c.l.b16 %v9508_v18  ;;  %v15013_v10 = vunpack.c.l.b16 %v9518_v27  ;;  %v15026_v35 = vpop.f32.mrf.mxu0 }
 0x3dd   : > { %11847 = vmatmul.msk.bf16.gmra.mxu3 %vm5746_vm4, %v12275_v31  ;;  %v15002_v21 = vpop.f32.mrf.mxu2  ;;  %v8001_v11 = vsel %vm12616_vm14, %v7996_v61, %v14959_v2  ;;  %v8673_v4 = vsel %vm12599_vm12, %v11999_v52, %v8672_v8  ;;  %v8013_v30 = vshrl.u32 %v7901_v53, 16  ;;  %v8016_v31 = vshll.u32 %v7901_v53, 16  ;;  %16704 = vst [vmem:[#allocation71_spill] sm:$0xff] %v15026_v35  ;;  %v7903_v8 = vld [vmem:[#allocation3 + $0x60] sm:$0x1]  ;;  %v16705_v61 = vld [vmem:[#allocation38_spill] sm:$0xff] }
 0x3de   : > { %16702 = vst [vmem:[#allocation35_spill] sm:$0xff] %v15002_v21  ;;  %v7233_v33 = vshrl.u32 %v15006_v25, 16  ;;  %v15024_v15 = vunpack.c.l.b16 %v8011_v32  ;;  %v8956_v49 = vunpack.c.l.b16 %v8682_v44  ;;  %v9527_v19 = vrot.slane %v9526_v9, 4  ;;  %v16706_v32 = vld [vmem:[#allocation13_spill] sm:$0xff]  ;;  %v7037_v9 = vld [vmem:[#allocation3 + $0xa4] sm:$0x8] }
 0x3df   : > { %v9537_v40 = vrot.slane %v9536_v48, 4  ;;  %v9541_v13 = vrot.slane %v9539_v50, 5  ;;  %v15028_v2 = vrot.slane %v8022_v24, 5  ;;  %v7224_v14 = vshrl.u32 %v7038_v23, 16  ;;  %v8561_v24 = vld [vmem:[#allocation3 + $0x84] sm:$0xf] }
 0x3e0   : > { %12013 = vmatmul.msk.bf16.vlgmr.msra.gmra.mxu0 %vm5746_vm4, %v14876_v51  ;;  %v6285_v60 = vpop.f32.mrf.mxu3  ;;  %v15032_v18 = vunpack.c.l.b16 %v8001_v11  ;;  %v8955_v27 = vunpack.c.l.b16 %v8673_v4  ;;  %v9532_v52 = vsel %vm12616_vm14, %v9527_v19, %v14984_v1  ;;  %v15039_v44 = vadd.f32 %v16706_v32, %v16705_v61  ;;  %v9433_v21 = vld [vmem:[#allocation3 + $0x70] sm:$0xf]  ;;  %v12291_v61 = vld [vmem:[#allocation3 + $0x148] sm:$0xff] }
 0x3e1   : > { %v15019_v51 = vadd.f32 %v6285_v60, %v14921_v17  ;;  %v8028_v17 = vrot.slane %v8026_v34, 4  ;;  %v8015_v48 = vrot.slane %v8013_v30, 4  ;;  %v8018_v50 = vrot.slane %v8016_v31, 5  ;;  %v16707_v34 = vld [vmem:[#allocation42_spill] sm:$0xff]  ;;  %v9432_v35 = vld [vmem:[#allocation3 + $0x6c] sm:$0xf] }
 0x3e2   : > { %v16708_v60 = vld [vmem:[#allocation14_spill] sm:$0xff]  ;;  %v7235_v4 = vrot.slane %v7233_v33, 7  ;;  %v15049_v19 = vpack.c.b16 %v8956_v49, %v8955_v27  ;;  %v9542_v30 = vsel %vm12616_vm14, %v9537_v40, %v9541_v13  ;;  %v15055_v31 = vunpack.c.l.b16 %v9532_v52  ;;  %v8560_v33 = vld [vmem:[#allocation3 + $0x80] sm:$0xf] }
 0x3e3   : > { %16703 = vst [vmem:[#allocation12_spill] sm:$0xff] %v15019_v51  ;;  %v15045_v11 = vadd.f32 %v16708_v60, %v16707_v34  ;;  %v8029_v32 = vor.u32 %v8028_v17, %v15028_v2  ;;  %v8032_v34 = vshll.u32 %v7903_v8, 16  ;;  %v8559_v60 = vld [vmem:[#allocation3 + $0x7c] sm:$0x8]  ;;  %v7219_v20 = vshrl.u32 %v7037_v9, 16 }
 0x3e4   : > { %v15030_v29 = vpop.f32.mrf.mxu1  ;;  %v7226_v1 = vrot.slane %v7224_v14, 7  ;;  %v7236_v49 = vshll.u32 %v15006_v25, 16  ;;  %v8698_v27 = vshrl.u32 %v8561_v24, 16  ;;  %v8019_v40 = vor.u32 %v8018_v50, %v8015_v48  ;;  %v15071_v48 = vpop.f32.mrf.mxu0 }
 0x3e5   : > { %v15059_v7 = vpop.f32.mrf.mxu2  ;;  %v9553_v13 = vshll.u32 %v9433_v21, 16  ;;  %v9557_v17 = vshrl.u32 %v9433_v21, 16  ;;  %v7227_v52 = vshll.u32 %v7038_v23, 16  ;;  %v8684_v51 = vshrl.u32 %v8559_v60, 16  ;;  %16713 = vst [vmem:[#allocation42_spill] sm:$0xff] %v15071_v48 }
 0x3e6   : > { %16709 = vst [vmem:[#allocation38_spill] sm:$0xff] %v15059_v7  ;;  %v7238_v8 = vor.u32 %v7236_v49, %v7235_v4  ;;  %v8689_v57 = vshrl.u32 %v8560_v33, 16  ;;  %v8030_v9 = vrot.slane %v8029_v32, 4  ;;  %v8034_v14 = vrot.slane %v8032_v34, 5  ;;  %v7042_v34 = vld [vmem:[#allocation3 + $0xc0] sm:$0xf] }
 0x3e7   : > { %11888 = vmatmul.msk.bf16.gmra.mxu1 %vm5746_vm4, %v14871_v26  ;;  %v9544_v56 = vshrl.u32 %v9432_v35, 16  ;;  %v9547_v25 = vshll.u32 %v9432_v35, 16  ;;  %v11872_v42 = vrot.slane %v7219_v20, 11  ;;  %v7229_v7 = vor.u32 %v7227_v52, %v7226_v1 }
 0x3e8   : > { %v6287_v53 = vpop.f32.mrf.mxu3  ;;  %v7231_v0 = vrot.slane %v7226_v1, 4  ;;  %v16714_v21 = vpack.c.b16 %v14860_v58, %v14878_v38  ;;  %v15077_v23 = vunpack.c.l.b16 %v9542_v30  ;;  %v15079_v35 = vrot.slane %v9553_v13, 5 }
 0x3e9   : > { %v15063_v26 = vadd.f32 %v6287_v53, %v14957_v5  ;;  %v16712_v5 = vld [vmem:[#allocation15_spill] sm:$0xff]  ;;  %v9559_v50 = vrot.slane %v9557_v17, 4  ;;  %v8020_v4 = vrot.slane %v8019_v40, 4  ;;  %v8691_v1 = vrot.slane %v8689_v57, 7  ;;  %v7904_v40 = vld [vmem:[#allocation3 + $0x6c] sm:$0xf] }
 0x3ea   : > { %11978 = vmatmul.msk.bf16.gmra.mxu2 %vm5746_vm4, %v12291_v61  ;;  %v8700_v61 = vrot.slane %v8698_v27, 7  ;;  %v15069_v53 = vadd.f32 %v16712_v5, %v16711_v46  ;;  %v7239_v20 = vsel %vm12599_vm12, %v7231_v0, %v7238_v8  ;;  %v8701_v32 = vshll.u32 %v8561_v24, 16  ;;  %v9434_v46 = vld [vmem:[#allocation3 + $0x74] sm:$0x1]  ;;  %v7041_v17 = vld [vmem:[#allocation3 + $0xbc] sm:$0xf] }
 0x3eb   : > { %16710 = vst [vmem:[#allocation13_spill] sm:$0xff] %v15063_v26  ;;  %v8035_v58 = vsel %vm12616_vm14, %v8030_v9, %v8034_v14  ;;  %v12000_v38 = vrot.slane %v8684_v51, 11  ;;  %v9546_v30 = vrot.slane %v9544_v56, 4  ;;  %v9549_v60 = vrot.slane %v9547_v25, 5 }
 0x3ec   : > { %v15065_v36 = vpop.f32.mrf.mxu1  ;;  %v7230_v27 = vsel %vm12599_vm12, %v11872_v42, %v7229_v7  ;;  %v8025_v0 = vsel %vm12616_vm14, %v8020_v4, %v15028_v2  ;;  %v8692_v57 = vshll.u32 %v8560_v33, 16  ;;  %v8703_v24 = vor.u32 %v8701_v32, %v8700_v61  ;;  %v7905_v33 = vld [vmem:[#allocation3 + $0x70] sm:$0xf]  ;;  %v7040_v32 = vld [vmem:[#allocation3 + $0xb8] sm:$0x8] }
 0x3ed   : > { %11980 = vmatmul.msk.bf16.vlgmr.msra.gmra.mxu3 %vm5746_vm4, %v16714_v21  ;;  %v7433_v13 = vunpack.c.l.b16 %v7239_v20  ;;  %v9560_v51 = vor.u32 %v9559_v50, %v15079_v35  ;;  %v9563_v56 = vshll.u32 %v9434_v46, 16  ;;  %v7255_v52 = vshrl.u32 %v7042_v34, 16  ;;  %v15098_v7 = vpop.f32.mrf.mxu2  ;;  %v16853_v45 = vld [vmem:[#allocation38_spill] sm:$0xff] }
 0x3ee   : > { %v15096_v8 = vunpack.c.l.b16 %v8035_v58  ;;  %v8694_v9 = vor.u32 %v8692_v57, %v8691_v1  ;;  %v8696_v42 = vrot.slane %v8691_v1, 4  ;;  %16716 = vst [vmem:[#allocation46_spill] sm:$0xff] %v15098_v7  ;;  %v7432_v14 = vunpack.c.l.b16 %v7230_v27 }
 0x3ef   : > { %v9550_v2 = vor.u32 %v9549_v60, %v9546_v30  ;;  %v8037_v25 = vshrl.u32 %v7904_v40, 16  ;;  %v8040_v61 = vshll.u32 %v7904_v40, 16  ;;  %v7246_v50 = vshrl.u32 %v7041_v17, 16  ;;  %v15114_v40 = vpop.f32.mrf.mxu0 }
 0x3f0   : > { %12014 = vmatmul.msk.bf16.gmra.mxu0 %vm5746_vm4, %v14911_v43  ;;  %v6290_v49 = vpop.f32.mrf.mxu3  ;;  %v15108_v4 = vunpack.c.l.b16 %v8025_v0  ;;  %v7457_v1 = vpack.c.b16 %v7433_v13, %v7432_v14  ;;  %v8704_v46 = vsel %vm12599_vm12, %v8696_v42, %v8703_v24  ;;  %v9561_v58 = vrot.slane %v9560_v51, 4  ;;  %16718 = vst [vmem:[#allocation15_spill] sm:$0xff] %v15114_v40  ;;  %v8563_v24 = vld [vmem:[#allocation3 + $0x94] sm:$0xf] }
 0x3f1   : > { %v15093_v43 = vadd.f32 %v6290_v49, %v14988_v54  ;;  %v16717_v54 = vld [vmem:[#allocation16_spill] sm:$0xff]  ;;  %v9565_v30 = vrot.slane %v9563_v56, 5  ;;  %v7257_v60 = vrot.slane %v7255_v52, 7  ;;  %v7906_v49 = vld [vmem:[#allocation3 + $0x74] sm:$0x1]  ;;  %v8046_v27 = vshll.u32 %v7905_v33, 16 }
 0x3f2   : > { %v15102_v5 = vadd.f32 %v16717_v54, %v14727_v3  ;;  %v8050_v57 = vshrl.u32 %v7905_v33, 16  ;;  %v8695_v0 = vsel %vm12599_vm12, %v12000_v38, %v8694_v9  ;;  %v9551_v13 = vrot.slane %v9550_v2, 4  ;;  %v8564_v3 = vld [vmem:[#allocation3 + $0x98] sm:$0xf] }
 0x3f3   : > { %16715 = vst [vmem:[#allocation14_spill] sm:$0xff] %v15093_v43  ;;  %v8039_v14 = vrot.slane %v8037_v25, 4  ;;  %v8042_v54 = vrot.slane %v8040_v61, 5  ;;  %v7241_v56 = vshrl.u32 %v7040_v32, 16  ;;  %v7248_v52 = vrot.slane %v7246_v50, 7 }
 0x3f4   : > { %v15104_v21 = vpop.f32.mrf.mxu1  ;;  %v7258_v42 = vshll.u32 %v7042_v34, 16  ;;  %v8958_v20 = vunpack.c.l.b16 %v8704_v46  ;;  %v16719_v33 = vpack.c.b16 %v14905_v62, %v14913_v12  ;;  %v9556_v38 = vsel %vm12616_vm14, %v9551_v13, %v15079_v35  ;;  %v8562_v12 = vld [vmem:[#allocation3 + $0x90] sm:$0x8]  ;;  %v7043_v43 = vld [vmem:[#allocation3 + $0xcc] sm:$0x8] }
 0x3f5   : > { %v9566_v9 = vsel %vm12616_vm14, %v9561_v58, %v9565_v30  ;;  %v8056_v2 = vshll.u32 %v7906_v49, 16  ;;  %v7249_v25 = vshll.u32 %v7041_v17, 16  ;;  %v15131_v61 = vrot.slane %v8046_v27, 5  ;;  %v16722_v30 = vld [vmem:[#allocation56_spill] sm:$0xff]  ;;  %v16723_v17 = vld [vmem:[#allocation18_spill] sm:$0xff]  ;;  %v15143_v49 = vpop.f32.mrf.mxu2 }
 0x3f6   : > { %v7260_v34 = vor.u32 %v7258_v42, %v7257_v60  ;;  %v8052_v50 = vrot.slane %v8050_v57, 4  ;;  %v8957_v32 = vunpack.c.l.b16 %v8695_v0  ;;  %v8043_v62 = vor.u32 %v8042_v54, %v8039_v14  ;;  %v9435_v14 = vld [vmem:[#allocation3 + $0x80] sm:$0xf] }
 0x3f7   : > { %11889 = vmatmul.msk.bf16.gmra.mxu1 %vm5746_vm4, %v7457_v1  ;;  %v8711_v46 = vshrl.u32 %v8563_v24, 16  ;;  %v11873_v35 = vrot.slane %v7241_v56, 11  ;;  %v7251_v13 = vor.u32 %v7249_v25, %v7248_v52  ;;  %v7253_v58 = vrot.slane %v7248_v52, 4  ;;  %v9436_v25 = vld [vmem:[#allocation3 + $0x84] sm:$0xf] }
 0x3f8   : > { %v6292_v51 = vpop.f32.mrf.mxu3  ;;  %v15141_v60 = vadd.f32 %v16723_v17, %v16722_v30  ;;  %v16725_v27 = vpack.c.b16 %v14947_v6, %v14945_v37  ;;  %v15149_v57 = vpack.c.b16 %v8958_v20, %v8957_v32  ;;  %v15153_v0 = vunpack.c.l.b16 %v9566_v9  ;;  %v7045_v37 = vld [vmem:[#allocation3 + $0xd4] sm:$0xf]  ;;  %v7044_v17 = vld [vmem:[#allocation3 + $0xd0] sm:$0xf] }
 0x3f9   : > { %v15124_v1 = vadd.f32 %v6292_v51, %v15039_v44  ;;  %v16721_v44 = vld [vmem:[#allocation17_spill] sm:$0xff]  ;;  %v7261_v54 = vsel %vm12599_vm12, %v7253_v58, %v7260_v34  ;;  %v8053_v56 = vor.u32 %v8052_v50, %v15131_v61  ;;  %v15158_v52 = vrot.slane %v8056_v2, 5  ;;  %v15164_v50 = vpop.f32.mrf.mxu0 }
 0x3fa   : > { %12111 = vmatmul.msk.bf16.vlgmr.msra.gmra.mxu2 %vm5746_vm4, %v16719_v33  ;;  %v8720_v33 = vshrl.u32 %v8564_v3, 16  ;;  %v15135_v51 = vadd.f32 %v16721_v44, %v14763_v39  ;;  %16724 = vst [vmem:[#allocation17_spill] sm:$0xff] %v15143_v49  ;;  %v15151_v39 = vunpack.c.l.b16 %v9556_v38  ;;  %v8706_v42 = vshrl.u32 %v8562_v12, 16 }
 0x3fb   : > { %16720 = vst [vmem:[#allocation16_spill] sm:$0xff] %v15124_v1  ;;  %v8044_v6 = vrot.slane %v8043_v62, 4  ;;  %v8713_v20 = vrot.slane %v8711_v46, 7  ;;  %v8714_v38 = vshll.u32 %v8563_v24, 16  ;;  %v7252_v44 = vsel %vm12599_vm12, %v11873_v35, %v7251_v13  ;;  %v16728_v35 = vld [vmem:[#allocation11_spill] sm:$0xff] }
 0x3fc   : > { %v15137_v7 = vpop.f32.mrf.mxu1  ;;  %v8722_v32 = vrot.slane %v8720_v33, 7  ;;  %v8723_v30 = vshll.u32 %v8564_v3, 16  ;;  %v9568_v34 = vshrl.u32 %v9435_v14, 16  ;;  %v9571_v58 = vshll.u32 %v9435_v14, 16  ;;  %16726 = vst [vmem:[#allocation56_spill] sm:$0xff] %v15164_v50  ;;  %v16729_v3 = vld [vmem:[#allocation25_spill] sm:$0xff] }
 0x3fd   : > { %11981 = vmatmul.msk.bf16.gmra.mxu3 %vm5746_vm4, %v16725_v27  ;;  %v7435_v12 = vunpack.c.l.b16 %v7261_v54  ;;  %v9581_v27 = vshrl.u32 %v9436_v25, 16  ;;  %v7277_v62 = vshrl.u32 %v7045_v37, 16  ;;  %v8049_v24 = vsel %vm12616_vm14, %v8044_v6, %v15131_v61  ;;  %v7907_v1 = vld [vmem:[#allocation3 + $0x80] sm:$0xf] }
 0x3fe   : > { %v8054_v46 = vrot.slane %v8053_v56, 4  ;;  %v12001_v33 = vrot.slane %v8706_v42, 11  ;;  %v6984_v13 = vadd.f32 %v16729_v3, %v16728_v35  ;;  %v7434_v14 = vunpack.c.l.b16 %v7252_v44  ;;  %v16730_v56 = vld [vmem:[#allocation60_spill] sm:$0xff]  ;;  %v16731_v42 = vld [vmem:[#allocation19_spill] sm:$0xff] }
 0x3ff   : > { %v8716_v49 = vor.u32 %v8714_v38, %v8713_v20  ;;  %v8725_v50 = vor.u32 %v8723_v30, %v8722_v32  ;;  %v9570_v54 = vrot.slane %v9568_v34, 4  ;;  %v9583_v61 = vrot.slane %v9581_v27, 4  ;;  %v15186_v30 = vpop.f32.mrf.mxu2 }
 0x400   : > { %12015 = vmatmul.msk.bf16.gmra.mxu0 %vm5746_vm4, %v15009_v59  ;;  %v6295_v9 = vpop.f32.mrf.mxu3  ;;  %v9577_v59 = vshll.u32 %v9436_v25, 16  ;;  %v7458_v48 = vpack.c.b16 %v7435_v12, %v7434_v14  ;;  %v15180_v6 = vadd.f32 %v16731_v42, %v16730_v56  ;;  %v7279_v44 = vrot.slane %v7277_v62, 7  ;;  %16732 = vst [vmem:[#allocation11_spill] sm:$0xff] %v15186_v30  ;;  %v7908_v12 = vld [vmem:[#allocation3 + $0x84] sm:$0xf] }
 0x401   : > { %v15167_v2 = vadd.f32 %v6295_v9, %v15045_v11  ;;  %v7268_v11 = vshrl.u32 %v7044_v17, 16  ;;  %v8718_v9 = vrot.slane %v8713_v20, 4  ;;  %v15184_v32 = vunpack.c.l.b16 %v8049_v24  ;;  %v9437_v20 = vld [vmem:[#allocation3 + $0x88] sm:$0x1] }
 0x402   : > { %v15176_v26 = vrot.slane %v9577_v59, 5  ;;  %v8717_v34 = vsel %vm12599_vm12, %v12001_v33, %v8716_v49  ;;  %v8061_v59 = vshrl.u32 %v7907_v1, 16  ;;  %v7263_v62 = vshrl.u32 %v7043_v43, 16  ;;  %v15204_v43 = vpop.f32.mrf.mxu0 }
 0x403   : > { %16727 = vst [vmem:[#allocation18_spill] sm:$0xff] %v15167_v2  ;;  %v9573_v2 = vrot.slane %v9571_v58, 5  ;;  %v8726_v58 = vsel %vm12599_vm12, %v8718_v9, %v8725_v50  ;;  %v7270_v24 = vrot.slane %v7268_v11, 7  ;;  %v7280_v35 = vshll.u32 %v7045_v37, 16 }
 0x404   : > { %v7526_v40 = vpop.f32.mrf.mxu1  ;;  %v8064_v3 = vshll.u32 %v7907_v1, 16  ;;  %v9584_v49 = vor.u32 %v9583_v61, %v15176_v26  ;;  %v9587_v33 = vshll.u32 %v9437_v20, 16  ;;  %v7271_v50 = vshll.u32 %v7044_v17, 16  ;;  %v16734_v1 = vld [vmem:[#allocation27_spill] sm:$0xff] }
 0x405   : > { %v15174_v25 = vadd.f32 %v7526_v40, %v6984_v13  ;;  %v8059_v40 = vsel %vm12616_vm14, %v8054_v46, %v15158_v52  ;;  %v9574_v46 = vor.u32 %v9573_v2, %v9570_v54  ;;  %v7282_v13 = vor.u32 %v7280_v35, %v7279_v44  ;;  %v7909_v54 = vld [vmem:[#allocation3 + $0x88] sm:$0x1] }
 0x406   : > { %v8070_v14 = vshll.u32 %v7908_v12, 16  ;;  %v8074_v9 = vshrl.u32 %v7908_v12, 16  ;;  %v6985_v37 = vadd.f32 %v16734_v1, %v14934_v28  ;;  %v15208_v11 = vunpack.c.l.b16 %v8059_v40  ;;  %v8567_v40 = vld [vmem:[#allocation3 + $0xac] sm:$0xf] }
 0x407   : > { %11890 = vmatmul.msk.bf16.gmra.mxu1 %vm5746_vm4, %v7458_v48  ;;  %v16733_v48 = vpack.c.b16 %v15013_v10, %v15011_v41  ;;  %v8960_v41 = vunpack.c.l.b16 %v8726_v58  ;;  %v8063_v10 = vrot.slane %v8061_v59, 4  ;;  %v7273_v42 = vor.u32 %v7271_v50, %v7270_v24  ;;  %v16736_v35 = vld [vmem:[#allocation21_spill] sm:$0xff] }
 0x408   : > { %v6297_v27 = vpop.f32.mrf.mxu3  ;;  %v7275_v2 = vrot.slane %v7270_v24, 4  ;;  %v8066_v61 = vrot.slane %v8064_v3, 5  ;;  %v16735_v17 = vpack.c.b16 %v15024_v15, %v15032_v18  ;;  %v8959_v44 = vunpack.c.l.b16 %v8717_v34  ;;  %v15220_v24 = vld [vmem:[#allocation3 + $0xa8] sm:$0xf]  ;;  %v7046_v18 = vld [vmem:[#allocation3 + $0xe0] sm:$0x8] }
 0x409   : > { %v15201_v52 = vadd.f32 %v6297_v27, %v15069_v53  ;;  %v11874_v53 = vrot.slane %v7263_v62, 11  ;;  %v9585_v12 = vrot.slane %v9584_v49, 4  ;;  %v9589_v28 = vrot.slane %v9587_v33, 5  ;;  %v7048_v15 = vld [vmem:[#allocation3 + $0xe8] sm:$0xf] }
 0x40a   : > { %12112 = vmatmul.msk.bf16.gmra.mxu2 %vm5746_vm4, %v16733_v48  ;;  %v7283_v58 = vsel %vm12599_vm12, %v7275_v2, %v7282_v13  ;;  %v9575_v59 = vrot.slane %v9574_v46, 4  ;;  %v15218_v27 = vrot.slane %v8070_v14, 5  ;;  %v8076_v62 = vrot.slane %v8074_v9, 4  ;;  %v8565_v46 = vld [vmem:[#allocation3 + $0xa4] sm:$0x8]  ;;  %v15241_v9 = vpop.f32.mrf.mxu2 }
 0x40b   : > { %v15224_v3 = vadd.f32 %v16736_v35, %v14866_v16  ;;  %v15230_v34 = vpack.c.b16 %v8960_v41, %v8959_v44  ;;  %v8080_v48 = vshll.u32 %v7909_v54, 16  ;;  %v7274_v33 = vsel %vm12599_vm12, %v11874_v53, %v7273_v42  ;;  %16738 = vst [vmem:[#allocation25_spill] sm:$0xff] %v15241_v9  ;;  %v7047_v41 = vld [vmem:[#allocation3 + $0xe4] sm:$0xf]  ;;  %v9438_v2 = vld [vmem:[#allocation3 + $0x94] sm:$0xf] }
 0x40c   : > { %v7528_v56 = vpop.f32.mrf.mxu1  ;;  %v9580_v16 = vsel %vm12616_vm14, %v9575_v59, %v15176_v26  ;;  %v8067_v50 = vor.u32 %v8066_v61, %v8063_v10  ;;  %v8742_v13 = vshrl.u32 %v8567_v40, 16  ;;  %v7299_v53 = vshrl.u32 %v7048_v15, 16  ;;  %v16739_v54 = vld [vmem:[#allocation33_spill] sm:$0xff] }
 0x40d   : > { %v15210_v20 = vadd.f32 %v7528_v56, %v6985_v37  ;;  %11982 = vmatmul.msk.bf16.gmra.mxu3 %vm5746_vm4, %v16735_v17  ;;  %v7437_v37 = vunpack.c.l.b16 %v7283_v58  ;;  %v9590_v56 = vsel %vm12616_vm14, %v9585_v12, %v9589_v28  ;;  %v8077_v42 = vor.u32 %v8076_v62, %v15218_v27  ;;  %v9439_v28 = vld [vmem:[#allocation3 + $0x98] sm:$0xf] }
 0x40e   : > { %v8728_v26 = vshrl.u32 %v8565_v46, 16  ;;  %v8733_v10 = vshrl.u32 %v15220_v24, 16  ;;  %v7436_v17 = vunpack.c.l.b16 %v7274_v33  ;;  %v15252_v44 = vunpack.c.l.b16 %v9580_v16 }
 0x40f   : > { %v7290_v58 = vshrl.u32 %v7047_v41, 16  ;;  %v15254_v35 = vunpack.c.l.b16 %v9590_v56  ;;  %v8744_v12 = vrot.slane %v8742_v13, 7  ;;  %v9592_v38 = vshrl.u32 %v9438_v2, 16 }
 0x410   : > { %12016 = vmatmul.msk.bf16.gmra.mxu0 %vm5746_vm4, %v15049_v19  ;;  %v6300_v49 = vpop.f32.mrf.mxu3  ;;  %v16737_v19 = vld [vmem:[#allocation22_spill] sm:$0xff]  ;;  %v7459_v46 = vpack.c.b16 %v7437_v37, %v7436_v17  ;;  %v9595_v30 = vshll.u32 %v9438_v2, 16  ;;  %v8078_v33 = vrot.slane %v8077_v42, 4  ;;  %v15260_v16 = vrot.slane %v8728_v26, 11 }
 0x411   : > { %v15239_v14 = vadd.f32 %v16737_v19, %v14925_v63  ;;  %v15244_v1 = vadd.f32 %v6300_v49, %v15102_v5  ;;  %v16740_v63 = vld [vmem:[#allocation28_spill] sm:$0xff]  ;;  %v8082_v5 = vrot.slane %v8080_v48, 5  ;;  %v8068_v49 = vrot.slane %v8067_v50, 4  ;;  %v15256_v19 = vpop.f32.mrf.mxu0 }
 0x412   : > { %v6986_v61 = vadd.f32 %v16740_v63, %v16739_v54  ;;  %v7301_v54 = vrot.slane %v7299_v53, 7  ;;  %v8735_v48 = vrot.slane %v8733_v10, 7  ;;  %v8745_v13 = vshll.u32 %v8567_v40, 16  ;;  %v9440_v10 = vld [vmem:[#allocation3 + $0x9c] sm:$0x1] }
 0x413   : > { %v8073_v50 = vsel %vm12616_vm14, %v8068_v49, %v15218_v27  ;;  %v9601_v56 = vshll.u32 %v9439_v28, 16  ;;  %v9605_v63 = vshrl.u32 %v9439_v28, 16  ;;  %v7292_v37 = vrot.slane %v7290_v58, 7  ;;  %v15276_v58 = vpop.f32.mrf.mxu2 }
 0x414   : > { %v7531_v59 = vpop.f32.mrf.mxu1  ;;  %v7302_v17 = vshll.u32 %v7048_v15, 16  ;;  %v8736_v2 = vshll.u32 %v15220_v24, 16  ;;  %v16741_v53 = vpack.c.b16 %v15077_v23, %v15055_v31  ;;  %v8747_v26 = vor.u32 %v8745_v13, %v8744_v12  ;;  %16743 = vst [vmem:[#allocation19_spill] sm:$0xff] %v15276_v58  ;;  %v16744_v24 = vld [vmem:[#allocation37_spill] sm:$0xff] }
 0x415   : > { %v15258_v62 = vadd.f32 %v7531_v59, %v6986_v61  ;;  %v7285_v59 = vshrl.u32 %v7046_v18, 16  ;;  %v9594_v27 = vrot.slane %v9592_v38, 4  ;;  %v9597_v40 = vrot.slane %v9595_v30, 5 }
 0x416   : > { %v7293_v49 = vshll.u32 %v7047_v41, 16  ;;  %v7304_v28 = vor.u32 %v7302_v17, %v7301_v54  ;;  %v8083_v18 = vsel %vm12616_vm14, %v8078_v33, %v8082_v5  ;;  %v8738_v15 = vor.u32 %v8736_v2, %v8735_v48 }
 0x417   : > { %11891 = vmatmul.msk.bf16.gmra.mxu1 %vm5746_vm4, %v7459_v46  ;;  %v16745_v46 = vld [vmem:[#allocation30_spill] sm:$0xff]  ;;  %v8740_v23 = vrot.slane %v8735_v48, 4  ;;  %v9607_v9 = vrot.slane %v9605_v63, 4  ;;  %v11875_v12 = vrot.slane %v7285_v59, 11  ;;  %v7297_v38 = vrot.slane %v7292_v37, 4  ;;  %v16747_v63 = vld [vmem:[#allocation8_spill] sm:$0xff] }
 0x418   : > { %v6302_v61 = vpop.f32.mrf.mxu3  ;;  %v6987_v31 = vadd.f32 %v16745_v46, %v16744_v24  ;;  %v7295_v13 = vor.u32 %v7293_v49, %v7292_v37  ;;  %v9611_v30 = vshll.u32 %v9440_v10, 16  ;;  %v16746_v5 = vpack.c.b16 %v15096_v8, %v15108_v4  ;;  %v7051_v4 = vld [vmem:[#allocation3 + $0xfc] sm:$0xf] }
 0x419   : > { %v15272_v42 = vadd.f32 %v6302_v61, %v15135_v51  ;;  %v7910_v51 = vld [vmem:[#allocation3 + $0x94] sm:$0xf]  ;;  %v8748_v33 = vsel %vm12599_vm12, %v8740_v23, %v8747_v26  ;;  %v9598_v48 = vor.u32 %v9597_v40, %v9594_v27  ;;  %v15292_v59 = vadd.f32 %v16747_v63, %v14961_v22  ;;  %v15296_v8 = vpop.f32.mrf.mxu0  ;;  %v7912_v40 = vld [vmem:[#allocation3 + $0x9c] sm:$0x1] }
 0x41a   : > { %12113 = vmatmul.msk.bf16.gmra.mxu2 %vm5746_vm4, %v16741_v53  ;;  %v9603_v53 = vrot.slane %v9601_v56, 5  ;;  %v7911_v56 = vld [vmem:[#allocation3 + $0x98] sm:$0xf]  ;;  %v7305_v37 = vsel %vm12599_vm12, %v7297_v38, %v7304_v28  ;;  %v8085_v17 = vshrl.u32 %v7910_v51, 16  ;;  %v8088_v2 = vshll.u32 %v7910_v51, 16  ;;  %16748 = vst [vmem:[#allocation27_spill] sm:$0xff] %v15296_v8 }
 0x41b   : > { %16742 = vst [vmem:[#allocation60_spill] sm:$0xff] %v15272_v42  ;;  %v15300_v10 = vunpack.c.l.b16 %v8073_v50  ;;  %v15302_v26 = vunpack.c.l.b16 %v8083_v18  ;;  %v8739_v22 = vsel %vm12599_vm12, %v15260_v16, %v8738_v15  ;;  %v7296_v28 = vsel %vm12599_vm12, %v11875_v12, %v7295_v13  ;;  %v7050_v18 = vld [vmem:[#allocation3 + $0xf8] sm:$0xf]  ;;  %v16750_v15 = vld [vmem:[#allocation40_spill] sm:$0xff] }
 0x41c   : > { %v7533_v61 = vpop.f32.mrf.mxu1  ;;  %v9608_v27 = vor.u32 %v9607_v9, %v9603_v53  ;;  %v8962_v24 = vunpack.c.l.b16 %v8748_v33  ;;  %v15309_v46 = vrot.slane %v9611_v30, 5  ;;  %v7439_v50 = vunpack.c.l.b16 %v7305_v37 }
 0x41d   : > { %v15280_v41 = vadd.f32 %v7533_v61, %v6987_v31  ;;  %11983 = vmatmul.msk.bf16.gmra.mxu3 %vm5746_vm4, %v16746_v5  ;;  %v8094_v31 = vshll.u32 %v7911_v56, 16  ;;  %v9599_v23 = vrot.slane %v9598_v48, 4  ;;  %v8098_v51 = vshrl.u32 %v7911_v56, 16  ;;  %v16751_v5 = vld [vmem:[#allocation32_spill] sm:$0xff] }
 0x41e   : > { %v7321_v61 = vshrl.u32 %v7051_v4, 16  ;;  %v8087_v38 = vrot.slane %v8085_v17, 4  ;;  %v8090_v16 = vrot.slane %v8088_v2, 5  ;;  %v8104_v9 = vshll.u32 %v7912_v40, 16  ;;  %v8568_v17 = vld [vmem:[#allocation3 + $0xb8] sm:$0x8]  ;;  %v15328_v40 = vpop.f32.mrf.mxu2 }
 0x41f   : > { %v6988_v63 = vadd.f32 %v16751_v5, %v16750_v15  ;;  %v7438_v54 = vunpack.c.l.b16 %v7296_v28  ;;  %v9604_v12 = vsel %vm12616_vm14, %v9599_v23, %v9603_v53  ;;  %v15318_v13 = vrot.slane %v9608_v27, 4  ;;  %v15326_v2 = vld [vmem:[#allocation3 + $0xbc] sm:$0xf]  ;;  %16753 = vst [vmem:[#allocation22_spill] sm:$0xff] %v15328_v40  ;;  %v7049_v27 = vld [vmem:[#allocation3 + $0xf4] sm:$0x8] }
 0x420   : > { %12017 = vmatmul.msk.bf16.gmra.mxu0 %vm5746_vm4, %v15149_v57  ;;  %v6305_v49 = vpop.f32.mrf.mxu3  ;;  %v7312_v48 = vshrl.u32 %v7050_v18, 16  ;;  %v8961_v37 = vunpack.c.l.b16 %v8739_v22  ;;  %v15332_v28 = vrot.slane %v8094_v31, 5  ;;  %v8100_v23 = vrot.slane %v8098_v51, 4  ;;  %v9441_v22 = vld [vmem:[#allocation3 + $0xa8] sm:$0xf] }
 0x421   : > { %v15312_v57 = vadd.f32 %v6305_v49, %v15141_v60  ;;  %v16752_v60 = vld [vmem:[#allocation23_spill] sm:$0xff]  ;;  %v7460_v53 = vpack.c.b16 %v7439_v50, %v7438_v54  ;;  %v7323_v15 = vrot.slane %v7321_v61, 7  ;;  %v8091_v56 = vor.u32 %v8090_v16, %v8087_v38  ;;  %v9442_v51 = vld [vmem:[#allocation3 + $0xac] sm:$0xf]  ;;  %v15346_v38 = vpop.f32.mrf.mxu0 }
 0x422   : > { %v15322_v30 = vadd.f32 %v16752_v60, %v14990_v47  ;;  %v8570_v47 = vld [vmem:[#allocation3 + $0xc0] sm:$0xf]  ;;  %v15334_v5 = vpack.c.b16 %v8962_v24, %v8961_v37  ;;  %v15336_v60 = vunpack.c.l.b16 %v9604_v12  ;;  %v15343_v54 = vrot.slane %v8104_v9, 5  ;;  %16754 = vst [vmem:[#allocation33_spill] sm:$0xff] %v15346_v38 }
 0x423   : > { %16749 = vst [vmem:[#allocation21_spill] sm:$0xff] %v15312_v57  ;;  %v8750_v31 = vshrl.u32 %v8568_v17, 16  ;;  %v8755_v50 = vshrl.u32 %v15326_v2, 16  ;;  %v7307_v24 = vshrl.u32 %v7049_v27, 16  ;;  %v7324_v12 = vshll.u32 %v7051_v4, 16  ;;  %v16757_v4 = vld [vmem:[#allocation24_spill] sm:$0xff] }
 0x424   : > { %v7536_v33 = vpop.f32.mrf.mxu1  ;;  %v8764_v37 = vshrl.u32 %v8570_v47, 16  ;;  %v16755_v16 = vpack.c.b16 %v15153_v0, %v15151_v39  ;;  %v8101_v9 = vor.u32 %v8100_v23, %v15332_v28  ;;  %v9619_v17 = vshll.u32 %v9441_v22, 16  ;;  %v16758_v38 = vld [vmem:[#allocation44_spill] sm:$0xff] }
 0x425   : > { %v15330_v49 = vadd.f32 %v7536_v33, %v6988_v63  ;;  %v9614_v63 = vsel %vm12616_vm14, %v15318_v13, %v15309_v46  ;;  %v7314_v33 = vrot.slane %v7312_v48, 7  ;;  %v9616_v13 = vshrl.u32 %v9441_v22, 16  ;;  %v16759_v57 = vld [vmem:[#allocation36_spill] sm:$0xff] }
 0x426   : > { %v7326_v58 = vor.u32 %v7324_v12, %v7323_v15  ;;  %v9625_v27 = vshll.u32 %v9442_v51, 16  ;;  %v9629_v48 = vshrl.u32 %v9442_v51, 16  ;;  %v15358_v40 = vadd.f32 %v16757_v4, %v15030_v29 }
 0x427   : > { %11892 = vmatmul.msk.bf16.gmra.mxu1 %vm5746_vm4, %v7460_v53  ;;  %v7315_v53 = vshll.u32 %v7050_v18, 16  ;;  %v6989_v39 = vadd.f32 %v16759_v57, %v16758_v38  ;;  %v8092_v0 = vrot.slane %v8091_v56, 4  ;;  %v8766_v23 = vrot.slane %v8764_v37, 7 }
 0x428   : > { %v6307_v61 = vpop.f32.mrf.mxu3  ;;  %v16760_v18 = vpack.c.b16 %v15208_v11, %v15184_v32  ;;  %v8758_v29 = vshll.u32 %v15326_v2, 16  ;;  %v9618_v15 = vrot.slane %v9616_v13, 4  ;;  %v9621_v22 = vrot.slane %v9619_v17, 5  ;;  %v7054_v32 = vld [vmem:[#allocation3 + $0x110] sm:$0xf] }
 0x429   : > { %v15353_v46 = vadd.f32 %v6307_v61, %v15180_v6  ;;  %v11876_v6 = vrot.slane %v7307_v24, 11  ;;  %v7317_v61 = vor.u32 %v7315_v53, %v7314_v33  ;;  %v8767_v56 = vshll.u32 %v8570_v47, 16  ;;  %v7913_v17 = vld [vmem:[#allocation3 + $0xa8] sm:$0xf]  ;;  %v7053_v53 = vld [vmem:[#allocation3 + $0x10c] sm:$0xf] }
 0x42a   : > { %12114 = vmatmul.msk.bf16.gmra.mxu2 %vm5746_vm4, %v16755_v16  ;;  %v8757_v16 = vrot.slane %v8755_v50, 7  ;;  %v9443_v50 = vld [vmem:[#allocation3 + $0xb0] sm:$0x1]  ;;  %v15371_v51 = vrot.slane %v9625_v27, 5  ;;  %v9631_v24 = vrot.slane %v9629_v48, 4  ;;  %v15377_v11 = vunpack.c.l.b16 %v9614_v63 }
 0x42b   : > { %16756 = vst [vmem:[#allocation28_spill] sm:$0xff] %v15353_v46  ;;  %v7319_v46 = vrot.slane %v7314_v33, 4  ;;  %v15373_v33 = vpop.f32.mrf.mxu2  ;;  %v8102_v2 = vrot.slane %v8101_v9, 4  ;;  %v12003_v12 = vrot.slane %v8750_v31, 11  ;;  %v7318_v37 = vsel %vm12599_vm12, %v11876_v6, %v7317_v61  ;;  %v16763_v6 = vld [vmem:[#allocation39_spill] sm:$0xff] }
 0x42c   : > { %v7538_v8 = vpop.f32.mrf.mxu1  ;;  %16761 = vst [vmem:[#allocation37_spill] sm:$0xff] %v15373_v33  ;;  %v8760_v38 = vor.u32 %v8758_v29, %v8757_v16  ;;  %v8769_v13 = vor.u32 %v8767_v56, %v8766_v23  ;;  %v9622_v27 = vor.u32 %v9621_v22, %v9618_v15  ;;  %v9635_v48 = vshll.u32 %v9443_v50, 16 }
 0x42d   : > { %v15362_v42 = vadd.f32 %v7538_v8, %v6989_v39  ;;  %11984 = vmatmul.msk.bf16.gmra.mxu3 %vm5746_vm4, %v16760_v18  ;;  %v7327_v57 = vsel %vm12599_vm12, %v7319_v46, %v7326_v58  ;;  %v8097_v8 = vsel %vm12616_vm14, %v8092_v0, %v15332_v28  ;;  %v7914_v58 = vld [vmem:[#allocation3 + $0xac] sm:$0xf]  ;;  %v8762_v46 = vrot.slane %v8757_v16, 4  ;;  %v15388_v39 = vpop.f32.mrf.mxu0  ;;  %v16762_v0 = vld [vmem:[#allocation48_spill] sm:$0xff] }
 0x42e   : > { %v7441_v63 = vunpack.c.l.b16 %v7327_v57  ;;  %v7343_v4 = vshrl.u32 %v7054_v32, 16  ;;  %v9632_v28 = vor.u32 %v9631_v24, %v15371_v51  ;;  %v8118_v31 = vshll.u32 %v7914_v58, 16  ;;  %v7052_v24 = vld [vmem:[#allocation3 + $0x108] sm:$0x8] }
 0x42f   : > { %v8122_v9 = vshrl.u32 %v7914_v58, 16  ;;  %v6990_v61 = vadd.f32 %v16763_v6, %v16762_v0  ;;  %v7440_v16 = vunpack.c.l.b16 %v7318_v37  ;;  %v8109_v23 = vshrl.u32 %v7913_v17, 16 }
 0x430   : > { %12018 = vmatmul.msk.bf16.gmra.mxu0 %vm5746_vm4, %v15230_v34  ;;  %v6310_v47 = vpop.f32.mrf.mxu3  ;;  %v8112_v18 = vshll.u32 %v7913_v17, 16  ;;  %v8107_v15 = vsel %vm12616_vm14, %v8102_v2, %v15343_v54  ;;  %v15397_v22 = vunpack.c.l.b16 %v8097_v8  ;;  %v8761_v58 = vsel %vm12599_vm12, %v12003_v12, %v8760_v38  ;;  %v7915_v2 = vld [vmem:[#allocation3 + $0xb0] sm:$0x1]  ;;  %v8571_v38 = vld [vmem:[#allocation3 + $0xcc] sm:$0x8] }
 0x431   : > { %v15385_v34 = vadd.f32 %v6310_v47, %v15224_v3  ;;  %v7334_v3 = vshrl.u32 %v7053_v53, 16  ;;  %v7461_v50 = vpack.c.b16 %v7441_v63, %v7440_v16  ;;  %v8770_v47 = vsel %vm12599_vm12, %v8762_v46, %v8769_v13 }
 0x432   : > { %v7345_v37 = vrot.slane %v7343_v4, 7  ;;  %v9623_v17 = vrot.slane %v9622_v27, 4  ;;  %v15405_v0 = vrot.slane %v8118_v31, 5  ;;  %v8124_v6 = vrot.slane %v8122_v9, 4 }
 0x433   : > { %v9633_v54 = vrot.slane %v9632_v28, 4  ;;  %v9637_v8 = vrot.slane %v9635_v48, 5  ;;  %v7329_v16 = vshrl.u32 %v7052_v24, 16  ;;  %v7336_v57 = vrot.slane %v7334_v3, 7  ;;  %v15410_v46 = vpop.f32.mrf.mxu2  ;;  %v8573_v3 = vld [vmem:[#allocation3 + $0xd4] sm:$0xf] }
 0x434   : > { %v7541_v29 = vpop.f32.mrf.mxu1  ;;  %v7346_v33 = vshll.u32 %v7054_v32, 16  ;;  %v15408_v12 = vunpack.c.l.b16 %v8107_v15  ;;  %16764 = vst [vmem:[#allocation30_spill] sm:$0xff] %v15410_v46  ;;  %v16765_v13 = vpack.c.b16 %v15254_v35, %v15252_v44  ;;  %v8963_v48 = vunpack.c.l.b16 %v8761_v58  ;;  %v8572_v32 = vld [vmem:[#allocation3 + $0xd0] sm:$0xf]  ;;  %v16767_v15 = vld [vmem:[#allocation51_spill] sm:$0xff] }
 0x435   : > { %v15399_v56 = vadd.f32 %v7541_v29, %v6990_v61  ;;  %v8111_v61 = vrot.slane %v8109_v23, 4  ;;  %v8114_v29 = vrot.slane %v8112_v18, 5  ;;  %v8964_v4 = vunpack.c.l.b16 %v8770_v47  ;;  %v16768_v44 = vld [vmem:[#allocation43_spill] sm:$0xff] }
 0x436   : > { %v9628_v28 = vsel %vm12616_vm14, %v9623_v17, %v15371_v51  ;;  %v7337_v31 = vshll.u32 %v7053_v53, 16  ;;  %v7348_v9 = vor.u32 %v7346_v33, %v7345_v37  ;;  %v8125_v23 = vor.u32 %v8124_v6, %v15405_v0  ;;  %v16769_v53 = vld [vmem:[#allocation26_spill] sm:$0xff]  ;;  %v15431_v37 = vpop.f32.mrf.mxu0 }
 0x437   : > { %11893 = vmatmul.msk.bf16.gmra.mxu1 %vm5746_vm4, %v7461_v50  ;;  %v8128_v18 = vshll.u32 %v7915_v2, 16  ;;  %v6991_v35 = vadd.f32 %v16768_v44, %v16767_v15  ;;  %v8115_v50 = vor.u32 %v8114_v29, %v8111_v61  ;;  %v8772_v24 = vshrl.u32 %v8571_v38, 16  ;;  %16770 = vst [vmem:[#allocation40_spill] sm:$0xff] %v15431_v37  ;;  %v9444_v2 = vld [vmem:[#allocation3 + $0xbc] sm:$0xf] }
 0x438   : > { %v6312_v63 = vpop.f32.mrf.mxu3  ;;  %v11877_v47 = vrot.slane %v7329_v16, 11  ;;  %v8777_v51 = vshrl.u32 %v8572_v32, 16  ;;  %v15429_v33 = vadd.f32 %v16769_v53, %v15065_v36  ;;  %v16771_v6 = vpack.c.b16 %v15302_v26, %v15300_v10  ;;  %v16772_v16 = vld [vmem:[#allocation10_spill] sm:$0xff]  ;;  %v7057_v10 = vld [vmem:[#allocation3 + $0x124] sm:$0xf] }
 0x439   : > { %v15417_v27 = vadd.f32 %v6312_v63, %v15239_v14  ;;  %v9638_v14 = vsel %vm12616_vm14, %v9633_v54, %v9637_v8  ;;  %v7339_v63 = vor.u32 %v7337_v31, %v7336_v57  ;;  %v8786_v8 = vshrl.u32 %v8573_v3, 16 }
 0x43a   : > { %12115 = vmatmul.msk.bf16.gmra.mxu2 %vm5746_vm4, %v16765_v13  ;;  %v7341_v13 = vrot.slane %v7336_v57, 4  ;;  %v15443_v61 = vpack.c.b16 %v8964_v4, %v8963_v48  ;;  %v8126_v36 = vrot.slane %v8125_v23, 4  ;;  %v8130_v29 = vrot.slane %v8128_v18, 5  ;;  %v9445_v23 = vld [vmem:[#allocation3 + $0xc0] sm:$0xf] }
 0x43b   : > { %16766 = vst [vmem:[#allocation8_spill] sm:$0xff] %v15417_v27  ;;  %v15447_v38 = vadd.f32 %v16772_v16, %v15104_v21  ;;  %v15451_v26 = vunpack.c.l.b16 %v9628_v28  ;;  %v15453_v31 = vunpack.c.l.b16 %v9638_v14  ;;  %v15455_v15 = vrot.slane %v8115_v50, 4 }
 0x43c   : > { %v7543_v58 = vpop.f32.mrf.mxu1  ;;  %v7349_v57 = vsel %vm12599_vm12, %v7341_v13, %v7348_v9  ;;  %v7340_v48 = vsel %vm12599_vm12, %v11877_v47, %v7339_v63  ;;  %v15459_v4 = vrot.slane %v8772_v24, 11  ;;  %v8779_v9 = vrot.slane %v8777_v51, 7  ;;  %v16775_v24 = vld [vmem:[#allocation53_spill] sm:$0xff]  ;;  %v16776_v47 = vld [vmem:[#allocation47_spill] sm:$0xff] }
 0x43d   : > { %v15433_v17 = vadd.f32 %v7543_v58, %v6991_v35  ;;  %11985 = vmatmul.msk.bf16.gmra.mxu3 %vm5746_vm4, %v16771_v6  ;;  %v9640_v21 = vshrl.u32 %v9444_v2, 16  ;;  %v7056_v35 = vld [vmem:[#allocation3 + $0x120] sm:$0xf]  ;;  %v8788_v28 = vrot.slane %v8786_v8, 7  ;;  %v9643_v58 = vshll.u32 %v9444_v2, 16  ;;  %v15466_v6 = vpop.f32.mrf.mxu2 }
 0x43e   : > { %v7365_v14 = vshrl.u32 %v7057_v10, 16  ;;  %v8131_v50 = vsel %vm12616_vm14, %v8126_v36, %v8130_v29  ;;  %v8780_v13 = vshll.u32 %v8572_v32, 16  ;;  %v8789_v53 = vshll.u32 %v8573_v3, 16  ;;  %16774 = vst [vmem:[#allocation23_spill] sm:$0xff] %v15466_v6  ;;  %v7917_v3 = vld [vmem:[#allocation3 + $0xc0] sm:$0xf]  ;;  %v15480_v37 = vpop.f32.mrf.mxu0 }
 0x43f   : > { %v6992_v63 = vadd.f32 %v16776_v47, %v16775_v24  ;;  %v7442_v51 = vunpack.c.l.b16 %v7340_v48  ;;  %v9649_v16 = vshll.u32 %v9445_v23, 16  ;;  %v9653_v54 = vshrl.u32 %v9445_v23, 16  ;;  %v7055_v6 = vld [vmem:[#allocation3 + $0x11c] sm:$0x8] }
 0x440   : > { %12019 = vmatmul.msk.bf16.gmra.mxu0 %vm5746_vm4, %v15334_v5  ;;  %v6315_v44 = vpop.f32.mrf.mxu3  ;;  %v7443_v5 = vunpack.c.l.b16 %v7349_v57  ;;  %v7356_v57 = vshrl.u32 %v7056_v35, 16  ;;  %v8121_v8 = vsel %vm12616_vm14, %v15455_v15, %v15405_v0  ;;  %v15474_v2 = vor.u32 %v8780_v13, %v8779_v9 }
 0x441   : > { %v15462_v18 = vadd.f32 %v6315_v44, %v15292_v59  ;;  %v7916_v59 = vld [vmem:[#allocation3 + $0xbc] sm:$0xf]  ;;  %v9642_v32 = vrot.slane %v9640_v21, 4  ;;  %v8791_v24 = vor.u32 %v8789_v53, %v8788_v28  ;;  %v9645_v48 = vrot.slane %v9643_v58, 5 }
 0x442   : > { %v7462_v29 = vpack.c.b16 %v7443_v5, %v7442_v51  ;;  %v7367_v47 = vrot.slane %v7365_v14, 7  ;;  %v15478_v23 = vunpack.c.l.b16 %v8131_v50  ;;  %v8784_v46 = vrot.slane %v8779_v9, 4 }
 0x443   : > { %16773 = vst [vmem:[#allocation32_spill] sm:$0xff] %v15462_v18  ;;  %v9446_v18 = vld [vmem:[#allocation3 + $0xc4] sm:$0x1]  ;;  %v8133_v27 = vshrl.u32 %v7916_v59, 16  ;;  %v15483_v0 = vrot.slane %v9649_v16, 5  ;;  %v9655_v15 = vrot.slane %v9653_v54, 4  ;;  %v16778_v14 = vpack.c.b16 %v15377_v11, %v15336_v60 }
 0x444   : > { %v7546_v44 = vpop.f32.mrf.mxu1  ;;  %v8142_v21 = vshll.u32 %v7917_v3, 16  ;;  %v8146_v13 = vshrl.u32 %v7917_v3, 16  ;;  %v7351_v5 = vshrl.u32 %v7055_v6, 16  ;;  %v7358_v51 = vrot.slane %v7356_v57, 7  ;;  %v5234_v16 = vld [vmem:[#allocation3 + $0x144] sm:$0x8] }
 0x445   : > { %v15476_v36 = vadd.f32 %v7546_v44, %v6992_v63  ;;  %v7368_v28 = vshll.u32 %v7057_v10, 16  ;;  %v8136_v58 = vshll.u32 %v7916_v59, 16  ;;  %v8792_v50 = vsel %vm12599_vm12, %v8784_v46, %v8791_v24  ;;  %v16780_v59 = vld [vmem:[#allocation57_spill] sm:$0xff] }
 0x446   : > { %v9646_v53 = vor.u32 %v9645_v48, %v9642_v32  ;;  %v9659_v54 = vshll.u32 %v9446_v18, 16  ;;  %v7359_v44 = vshll.u32 %v7056_v35, 16  ;;  %v8135_v6 = vrot.slane %v8133_v27, 4  ;;  %v15501_v48 = vpop.f32.mrf.mxu2 }
 0x447   : > { %16777 = vst [vmem:[#allocation24_spill] sm:$0xff] %v15476_v36  ;;  %11894 = vmatmul.msk.bf16.gmra.mxu1 %vm5746_vm4, %v7462_v29  ;;  %v7370_v3 = vor.u32 %v7368_v28, %v7367_v47  ;;  %v5235_v10 = vsel %vm13826_vm1, 0, %v5234_v16  ;;  %v16781_v29 = vld [vmem:[#allocation50_spill] sm:$0xff]  ;;  %v9656_v11 = vor.u32 %v9655_v15, %v15483_v0  ;;  %v11878_v32 = vrot.slane %v7351_v5, 11  ;;  %v8575_v16 = vld [vmem:[#allocation3 + $0xe4] sm:$0xf] }
 0x448   : > { %v6317_v63 = vpop.f32.mrf.mxu3  ;;  %v6993_v60 = vadd.f32 %v16781_v29, %v16780_v59  ;;  %5236 = vst [vmem:[#allocation3 + $0x144] sm:$0x8] %v5235_v10  ;;  %v7361_v18 = vor.u32 %v7359_v44, %v7358_v51  ;;  %v7363_v24 = vrot.slane %v7358_v51, 4  ;;  %v8138_v35 = vrot.slane %v8136_v58, 5 }
 0x449   : > { %v15490_v9 = vadd.f32 %v6317_v63, %v15322_v30  ;;  %v15499_v30 = vrot.slane %v8142_v21, 5  ;;  %v8148_v63 = vrot.slane %v8146_v13, 4  ;;  %16782 = vst [vmem:[#allocation44_spill] sm:$0xff] %v15501_v48  ;;  %v16783_v47 = vpack.c.b16 %v15408_v12, %v15397_v22  ;;  %v16784_v22 = vld [vmem:[#allocation29_spill] sm:$0xff] }
 0x44a   : > { %12116 = vmatmul.msk.bf16.gmra.mxu2 %vm5746_vm4, %v16778_v14  ;;  %v7918_v14 = vld [vmem:[#allocation3 + $0xc4] sm:$0x1]  ;;  %v15511_v21 = vunpack.c.l.b16 %v8121_v8  ;;  %v8783_v13 = vsel %vm12599_vm12, %v15459_v4, %v15474_v2  ;;  %v7371_v5 = vsel %vm12599_vm12, %v7363_v24, %v7370_v3  ;;  %v8966_v51 = vunpack.c.l.b16 %v8792_v50  ;;  %v7060_v8 = vld [vmem:[#allocation3 + $0x138] sm:$0xf]  ;;  %v8574_v4 = vld [vmem:[#allocation3 + $0xe0] sm:$0x8] }
 0x44b   : > { %v9661_v28 = vrot.slane %v9659_v54, 5  ;;  %v8152_v58 = vshll.u32 %v7918_v14, 16  ;;  %v15521_v12 = vadd.f32 %v16784_v22, %v15137_v7  ;;  %v9647_v44 = vrot.slane %v9646_v53, 4  ;;  %v15530_v7 = vpop.f32.mrf.mxu0  ;;  %v7059_v53 = vld [vmem:[#allocation3 + $0x134] sm:$0xf] }
 0x44c   : > { %v7548_v46 = vpop.f32.mrf.mxu1  ;;  %v9657_v10 = vrot.slane %v9656_v11, 4  ;;  %v8149_v59 = vor.u32 %v8148_v63, %v15499_v30  ;;  %v7362_v50 = vsel %vm12599_vm12, %v11878_v32, %v7361_v18  ;;  %v8965_v3 = vunpack.c.l.b16 %v8783_v13  ;;  %v8576_v18 = vld [vmem:[#allocation3 + $0xe8] sm:$0xf]  ;;  %v9448_v22 = vld [vmem:[#allocation3 + $0xd4] sm:$0xf] }
 0x44d   : > { %v15503_v27 = vadd.f32 %v7548_v46, %v6993_v60  ;;  %11986 = vmatmul.msk.bf16.gmra.mxu3 %vm5746_vm4, %v16783_v47  ;;  %v8139_v29 = vor.u32 %v8138_v35, %v8135_v6  ;;  %v9652_v11 = vsel %vm12616_vm14, %v9647_v44, %v15483_v0  ;;  %v8799_v14 = vshrl.u32 %v8575_v16, 16  ;;  %v16786_v6 = vld [vmem:[#allocation61_spill] sm:$0xff]  ;;  %v16787_v35 = vld [vmem:[#allocation54_spill] sm:$0xff] }
 0x44e   : > { %v7387_v63 = vshrl.u32 %v7060_v8, 16  ;;  %v15538_v46 = vpack.c.b16 %v8966_v51, %v8965_v3  ;;  %v15540_v32 = vrot.slane %v8152_v58, 5  ;;  %v8794_v24 = vshrl.u32 %v8574_v4, 16  ;;  %v9447_v3 = vld [vmem:[#allocation3 + $0xd0] sm:$0xf] }
 0x44f   : > { %v6994_v47 = vadd.f32 %v16787_v35, %v16786_v6  ;;  %v7444_v13 = vunpack.c.l.b16 %v7362_v50  ;;  %v7378_v54 = vshrl.u32 %v7059_v53, 16  ;;  %v15546_v0 = vunpack.c.l.b16 %v9652_v11  ;;  %v7058_v4 = vld [vmem:[#allocation3 + $0x130] sm:$0x8] }
 0x450   : > { %12020 = vmatmul.msk.bf16.gmra.mxu0 %vm5746_vm4, %v15443_v61  ;;  %v6320_v2 = vpop.f32.mrf.mxu3  ;;  %v7445_v61 = vunpack.c.l.b16 %v7371_v5  ;;  %v8150_v5 = vrot.slane %v8149_v59, 4  ;;  %v8140_v44 = vrot.slane %v8139_v29, 4  ;;  %v8802_v51 = vshll.u32 %v8575_v16, 16  ;;  %v15554_v59 = vpop.f32.mrf.mxu2 }
 0x451   : > { %v15533_v60 = vadd.f32 %v6320_v2, %v15358_v40  ;;  %v9662_v40 = vsel %vm12616_vm14, %v9657_v10, %v9661_v28  ;;  %v15550_v36 = vrot.slane %v8799_v14, 7  ;;  %v8808_v6 = vshrl.u32 %v8576_v18, 16  ;;  %16789 = vst [vmem:[#allocation39_spill] sm:$0xff] %v15554_v59  ;;  %v16792_v59 = vld [vmem:[#allocation64_spill] sm:$0xff] }
 0x452   : > { %v7463_v15 = vpack.c.b16 %v7445_v61, %v7444_v13  ;;  %v7389_v50 = vrot.slane %v7387_v63, 7  ;;  %v15552_v35 = vunpack.c.l.b16 %v9662_v40  ;;  %v9673_v28 = vshll.u32 %v9448_v22, 16 }
 0x453   : > { %16785 = vst [vmem:[#allocation36_spill] sm:$0xff] %v15533_v60  ;;  %v9677_v10 = vshrl.u32 %v9448_v22, 16  ;;  %v8145_v16 = vsel %vm12616_vm14, %v8140_v44, %v15499_v30  ;;  %v8155_v29 = vsel %vm12616_vm14, %v8150_v5, %v15540_v32  ;;  %v15563_v61 = vrot.slane %v8794_v24, 11  ;;  %v7919_v22 = vld [vmem:[#allocation3 + $0xd0] sm:$0xf] }
 0x454   : > { %v7551_v2 = vpop.f32.mrf.mxu1  ;;  %v9664_v11 = vshrl.u32 %v9447_v3, 16  ;;  %v7373_v63 = vshrl.u32 %v7058_v4, 16  ;;  %v7390_v13 = vshll.u32 %v7060_v8, 16  ;;  %v9667_v40 = vshll.u32 %v9447_v3, 16  ;;  %v15577_v3 = vpop.f32.mrf.mxu0 }
 0x455   : > { %v15548_v58 = vadd.f32 %v7551_v2, %v6994_v47  ;;  %v7380_v47 = vrot.slane %v7378_v54, 7  ;;  %v15573_v2 = vor.u32 %v8802_v51, %v15550_v36  ;;  %v8810_v32 = vrot.slane %v8808_v6, 7  ;;  %v7920_v54 = vld [vmem:[#allocation3 + $0xd4] sm:$0xf] }
 0x456   : > { %v8811_v24 = vshll.u32 %v8576_v18, 16  ;;  %v7381_v5 = vshll.u32 %v7059_v53, 16  ;;  %v7392_v44 = vor.u32 %v7390_v13, %v7389_v50  ;;  %v15575_v4 = vrot.slane %v9673_v28, 5 }
 0x457   : > { %16788 = vst [vmem:[#allocation48_spill] sm:$0xff] %v15548_v58  ;;  %11895 = vmatmul.msk.bf16.gmra.mxu1 %vm5746_vm4, %v7463_v15  ;;  %v16790_v15 = vpack.c.b16 %v15453_v31, %v15451_v26  ;;  %v9679_v8 = vrot.slane %v9677_v10, 4  ;;  %v16793_v26 = vld [vmem:[#allocation58_spill] sm:$0xff]  ;;  %v9666_v58 = vrot.slane %v9664_v11, 4  ;;  %v11879_v51 = vrot.slane %v7373_v63, 11 }
 0x458   : > { %v6322_v14 = vpop.f32.mrf.mxu3  ;;  %v6995_v31 = vadd.f32 %v16793_v26, %v16792_v59  ;;  %v7385_v6 = vrot.slane %v7380_v47, 4  ;;  %v9669_v18 = vrot.slane %v9667_v40, 5  ;;  %v16794_v50 = vpack.c.b16 %v15478_v23, %v15511_v21  ;;  %v7063_v21 = vld [vmem:[#allocation3 + $0x14c] sm:$0xf] }
 0x459   : > { %v15570_v30 = vadd.f32 %v6322_v14, %v15429_v33  ;;  %v8157_v33 = vshrl.u32 %v7919_v22, 16  ;;  %v8160_v14 = vshll.u32 %v7919_v22, 16  ;;  %v15587_v28 = vunpack.c.l.b16 %v8145_v16 }
 0x45a   : > { %12117 = vmatmul.msk.bf16.gmra.mxu2 %vm5746_vm4, %v16790_v15  ;;  %v9449_v15 = vld [vmem:[#allocation3 + $0xd8] sm:$0x1]  ;;  %v8166_v10 = vshll.u32 %v7920_v54, 16  ;;  %v8170_v59 = vshrl.u32 %v7920_v54, 16  ;;  %v7393_v11 = vsel %vm12599_vm12, %v7385_v6, %v7392_v44  ;;  %v8813_v13 = vor.u32 %v8811_v24, %v8810_v32 }
 0x45b   : > { %16791 = vst [vmem:[#allocation51_spill] sm:$0xff] %v15570_v30  ;;  %v7383_v30 = vor.u32 %v7381_v5, %v7380_v47  ;;  %v9680_v63 = vor.u32 %v9679_v8, %v15575_v4  ;;  %v9683_v22 = vshll.u32 %v9449_v15, 16  ;;  %v15596_v23 = vunpack.c.l.b16 %v8155_v29  ;;  %v7921_v44 = vld [vmem:[#allocation3 + $0xd8] sm:$0x1]  ;;  %v15605_v8 = vpop.f32.mrf.mxu2  ;;  %v7062_v29 = vld [vmem:[#allocation3 + $0x148] sm:$0xf] }
 0x45c   : > { %v7553_v48 = vpop.f32.mrf.mxu1  ;;  %v8159_v16 = vrot.slane %v8157_v33, 4  ;;  %v8162_v47 = vrot.slane %v8160_v14, 5  ;;  %v8805_v32 = vsel %vm12599_vm12, %v15563_v61, %v15573_v2  ;;  %v8806_v24 = vrot.slane %v15550_v36, 4  ;;  %16795 = vst [vmem:[#allocation43_spill] sm:$0xff] %v15605_v8  ;;  %v8579_v36 = vld [vmem:[#allocation3 + $0xfc] sm:$0xf]  ;;  %v15618_v8 = vpop.f32.mrf.mxu0 }
 0x45d   : > { %v15581_v53 = vadd.f32 %v7553_v48, %v6995_v31  ;;  %11987 = vmatmul.msk.bf16.gmra.mxu3 %vm5746_vm4, %v16794_v50  ;;  %v9896_v48 = vpack.c.b16 %v15552_v35, %v15546_v0  ;;  %v7384_v5 = vsel %vm12599_vm12, %v11879_v51, %v7383_v30  ;;  %v7447_v35 = vunpack.c.l.b16 %v7393_v11  ;;  %v8578_v30 = vld [vmem:[#allocation3 + $0xf8] sm:$0xf]  ;;  %16799 = vst [vmem:[#allocation10_spill] sm:$0xff] %v15618_v8 }
 0x45e   : > { %v15610_v54 = vrot.slane %v8166_v10, 5  ;;  %v8172_v26 = vrot.slane %v8170_v59, 4  ;;  %v7409_v31 = vshrl.u32 %v7063_v21, 16  ;;  %v8814_v15 = vsel %vm12599_vm12, %v8806_v24, %v8813_v13  ;;  %v16798_v33 = vld [vmem:[#allocation63_spill] sm:$0xff] }
 0x45f   : > { %v9681_v61 = vrot.slane %v9680_v63, 4  ;;  %v9685_v2 = vrot.slane %v9683_v22, 5  ;;  %v7446_v51 = vunpack.c.l.b16 %v7384_v5  ;;  %v8163_v6 = vor.u32 %v8162_v47, %v8159_v16  ;;  %v7061_v22 = vld [vmem:[#allocation3 + $0x144] sm:$0x8] }
 0x460   : > { %12021 = vmatmul.msk.bf16.gmra.mxu0 %vm5746_vm4, %v15538_v46  ;;  %v6325_v40 = vpop.f32.mrf.mxu3  ;;  %v9670_v46 = vor.u32 %v9669_v18, %v9666_v58  ;;  %v16797_v58 = vld [vmem:[#allocation67_spill] sm:$0xff]  ;;  %v8577_v18 = vld [vmem:[#allocation3 + $0xf4] sm:$0x8]  ;;  %v8366_v10 = vpack.c.b16 %v15596_v23, %v15587_v28  ;;  %v7400_v59 = vshrl.u32 %v7062_v29, 16  ;;  %v8173_v24 = vor.u32 %v8172_v26, %v15610_v54 }
 0x461   : > { %v15608_v0 = vadd.f32 %v6325_v40, %v15447_v38  ;;  %v6996_v14 = vadd.f32 %v16798_v33, %v16797_v58  ;;  %v8176_v38 = vshll.u32 %v7921_v44, 16  ;;  %v8821_v40 = vshrl.u32 %v8578_v30, 16  ;;  %v9450_v33 = vld [vmem:[#allocation3 + $0xe4] sm:$0xf] }
 0x462   : > { %v9671_v11 = vrot.slane %v9670_v46, 4  ;;  %v7464_v63 = vpack.c.b16 %v7447_v35, %v7446_v51  ;;  %v8830_v58 = vshrl.u32 %v8579_v36, 16  ;;  %v7411_v5 = vrot.slane %v7409_v31, 7  ;;  %v9451_v51 = vld [vmem:[#allocation3 + $0xe8] sm:$0xf] }
 0x463   : > { %16796 = vst [vmem:[#allocation26_spill] sm:$0xff] %v15608_v0  ;;  %v8967_v16 = vunpack.c.l.b16 %v8805_v32  ;;  %v8968_v47 = vunpack.c.l.b16 %v8814_v15  ;;  %v8816_v44 = vshrl.u32 %v8577_v18, 16  ;;  %v9686_v23 = vsel %vm12616_vm14, %v9681_v61, %v9685_v2 }
 0x464   : > { %v7556_v50 = vpop.f32.mrf.mxu1  ;;  %v9676_v28 = vsel %vm12616_vm14, %v9671_v11, %v15575_v4  ;;  %v15629_v46 = vrot.slane %v8163_v6, 4  ;;  %v15631_v35 = vrot.slane %v8176_v38, 5  ;;  %v7402_v31 = vrot.slane %v7400_v59, 7 }
 0x465   : > { %v15620_v13 = vadd.f32 %v7556_v50, %v6996_v14  ;;  %v7395_v14 = vshrl.u32 %v7061_v22, 16  ;;  %v7412_v32 = vshll.u32 %v7063_v21, 16  ;;  %v8823_v15 = vrot.slane %v8821_v40, 7  ;;  %v16803_v22 = vld [vmem:[#allocation66_spill] sm:$0xff] }
 0x466   : > { %v8174_v4 = vrot.slane %v8173_v24, 4  ;;  %v8824_v50 = vshll.u32 %v8578_v30, 16  ;;  %v8832_v11 = vrot.slane %v8830_v58, 7  ;;  %v7403_v61 = vshll.u32 %v7062_v29, 16 }
 0x467   : > { %16800 = vst [vmem:[#allocation53_spill] sm:$0xff] %v15620_v13  ;;  %11896 = vmatmul.msk.bf16.gmra.mxu1 %vm5746_vm4, %v7464_v63  ;;  %v7414_v2 = vor.u32 %v7412_v32, %v7411_v5  ;;  %v12006_v6 = vrot.slane %v8816_v44, 11  ;;  %v8833_v38 = vshll.u32 %v8579_v36, 16  ;;  %v15637_v63 = vpop.f32.mrf.mxu2  ;;  %v16802_v13 = vld [vmem:[#allocation70_spill] sm:$0xff]  ;;  %v9688_v21 = vshrl.u32 %v9450_v33, 16 }
 0x468   : > { %v6327_v26 = vpop.f32.mrf.mxu3  ;;  %16801 = vst [vmem:[#allocation47_spill] sm:$0xff] %v15637_v63  ;;  %v6997_v59 = vadd.f32 %v16803_v22, %v16802_v13  ;;  %v9697_v40 = vshll.u32 %v9451_v51, 16  ;;  %v9701_v0 = vshrl.u32 %v9451_v51, 16  ;;  %v7405_v60 = vor.u32 %v7403_v61, %v7402_v31  ;;  %v7922_v61 = vld [vmem:[#allocation3 + $0xe4] sm:$0xf]  ;;  %v16806_v22 = vld [vmem:[#allocation69_spill] sm:$0xff] }
 0x469   : > { %v15635_v18 = vadd.f32 %v6327_v26, %v15521_v12  ;;  %v7407_v12 = vrot.slane %v7402_v31, 4  ;;  %v8826_v26 = vor.u32 %v8824_v50, %v8823_v15  ;;  %v8990_v29 = vpack.c.b16 %v8968_v47, %v8967_v16  ;;  %v15650_v31 = vpop.f32.mrf.mxu0  ;;  %v9452_v16 = vld [vmem:[#allocation3 + $0xec] sm:$0x1] }
 0x46a   : > { %12118 = vmatmul.msk.bf16.gmra.mxu2 %vm5746_vm4, %v9896_v48  ;;  %v11880_v48 = vrot.slane %v7395_v14, 11  ;;  %v8835_v30 = vor.u32 %v8833_v38, %v8832_v11  ;;  %v9691_v36 = vshll.u32 %v9450_v33, 16  ;;  %v9873_v5 = vunpack.c.l.b16 %v9676_v28  ;;  %v7923_v14 = vld [vmem:[#allocation3 + $0xe8] sm:$0xf] }
 0x46b   : > { %v7415_v58 = vsel %vm12599_vm12, %v7407_v12, %v7414_v2  ;;  %v9874_v13 = vunpack.c.l.b16 %v9686_v23  ;;  %v8169_v44 = vsel %vm12616_vm14, %v15629_v46, %v15610_v54  ;;  %v15655_v47 = vrot.slane %v9697_v40, 5 }
 0x46c   : > { %v7558_v8 = vpop.f32.mrf.mxu1  ;;  %v9703_v33 = vrot.slane %v9701_v0, 4  ;;  %v7406_v23 = vsel %vm12599_vm12, %v11880_v48, %v7405_v60  ;;  %v8179_v54 = vsel %vm12616_vm14, %v8174_v4, %v15631_v35  ;;  %v8827_v46 = vsel %vm12599_vm12, %v12006_v6, %v8826_v26  ;;  %v16805_v60 = vld [vmem:[#allocation12_spill] sm:$0xff] }
 0x46d   : > { %v15641_v24 = vadd.f32 %v7558_v8, %v6997_v59  ;;  %11988 = vmatmul.msk.bf16.gmra.mxu3 %vm5746_vm4, %v8366_v10  ;;  %v16804_v8 = vld [vmem:[#allocation31_spill] sm:$0xff]  ;;  %v8828_v10 = vrot.slane %v8823_v15, 4  ;;  %v9690_v51 = vrot.slane %v9688_v21, 4  ;;  %v7449_v50 = vunpack.c.l.b16 %v7415_v58  ;;  %v5290_v58 = vld [vmem:[#allocation3 + $0x150] sm:$0x1] }
 0x46e   : > { %v7860_v32 = vadd.f32 %v16804_v8, %v15174_v25  ;;  %v9693_v11 = vrot.slane %v9691_v36, 5  ;;  %v9707_v0 = vshll.u32 %v9452_v16, 16  ;;  %v8190_v2 = vshll.u32 %v7923_v14, 16 }
 0x46f   : > { %v8836_v15 = vsel %vm12599_vm12, %v8828_v10, %v8835_v30  ;;  %v8194_v38 = vshrl.u32 %v7923_v14, 16  ;;  %v6998_v59 = vadd.f32 %v16806_v22, %v16805_v60  ;;  %v7448_v40 = vunpack.c.l.b16 %v7406_v23  ;;  %v15671_v30 = vpop.f32.mrf.mxu2  ;;  %v8581_v10 = vld [vmem:[#allocation3 + $0x10c] sm:$0xf]  ;;  %v8580_v22 = vld [vmem:[#allocation3 + $0x108] sm:$0x8] }
 0x470   : > { %12022 = vmatmul.msk.bf16.gmra.mxu0 %vm5746_vm4, %v8990_v29  ;;  %v8434_v28 = vpop.f32.mrf.mxu3  ;;  %v9897_v35 = vpack.c.b16 %v9874_v13, %v9873_v5  ;;  %v9704_v4 = vor.u32 %v9703_v33, %v15655_v47  ;;  %v8344_v21 = vunpack.c.l.b16 %v8169_v44  ;;  %v8345_v48 = vunpack.c.l.b16 %v8179_v54  ;;  %v8582_v29 = vld [vmem:[#allocation3 + $0x110] sm:$0xf]  ;;  %16807 = vst [vmem:[#allocation7_spill] sm:$0xff] %v15671_v30  ;;  %v7924_v54 = vld [vmem:[#allocation3 + $0xec] sm:$0x1] }
 0x471   : > { %v15664_v25 = vadd.f32 %v8434_v28, %v7860_v32  ;;  %v8969_v12 = vunpack.c.l.b16 %v8827_v46  ;;  %v8970_v26 = vunpack.c.l.b16 %v8836_v15  ;;  %v7465_v8 = vpack.c.b16 %v7449_v50, %v7448_v40  ;;  %v16809_v44 = vld [vmem:[#allocation34_spill] sm:$0xff] }
 0x472   : > { %v9694_v14 = vor.u32 %v9693_v11, %v9690_v51  ;;  %v8181_v32 = vshrl.u32 %v7922_v61, 16  ;;  %v9709_v16 = vrot.slane %v9707_v0, 5  ;;  %v8184_v28 = vshll.u32 %v7922_v61, 16  ;;  %v15682_v11 = vpop.f32.mrf.mxu0 }
 0x473   : > { %v15675_v5 = vrot.slane %v8190_v2, 5  ;;  %v8196_v13 = vrot.slane %v8194_v38, 4  ;;  %v7861_v33 = vadd.f32 %v16809_v44, %v15210_v20  ;;  %v9705_v23 = vrot.slane %v9704_v4, 4  ;;  %v9454_v20 = vld [vmem:[#allocation3 + $0xfc] sm:$0xf] }
 0x474   : > { %v7561_v6 = vpop.f32.mrf.mxu1  ;;  %v8852_v46 = vshrl.u32 %v8582_v29, 16  ;;  %v5291_v60 = vsel %vm13882_vm6, 0, %v5290_v58  ;;  %v8843_v51 = vshrl.u32 %v8581_v10, 16  ;;  %v8367_v61 = vpack.c.b16 %v8345_v48, %v8344_v21  ;;  %v9453_v58 = vld [vmem:[#allocation3 + $0xf8] sm:$0xf] }
 0x475   : > { %v15673_v36 = vadd.f32 %v7561_v6, %v6998_v59  ;;  %5292 = vst [vmem:[#allocation3 + $0x150] sm:$0x1] %v5291_v60  ;;  %v8991_v2 = vpack.c.b16 %v8970_v26, %v8969_v12  ;;  %v9695_v38 = vrot.slane %v9694_v14, 4  ;;  %v8183_v59 = vrot.slane %v8181_v32, 4  ;;  %v16812_v44 = vld [vmem:[#allocation71_spill] sm:$0xff] }
 0x476   : > { %v8186_v40 = vrot.slane %v8184_v28, 5  ;;  %v8197_v4 = vor.u32 %v8196_v13, %v15675_v5  ;;  %v8200_v6 = vshll.u32 %v7924_v54, 16  ;;  %v9710_v21 = vsel %vm12616_vm14, %v9705_v23, %v9709_v16  ;;  %v16814_v16 = vld [vmem:[#allocation20_spill] sm:$0xff] }
 0x477   : > { %16808 = vst [vmem:[#allocation57_spill] sm:$0xff] %v15673_v36  ;;  %11897 = vmatmul.msk.bf16.gmra.mxu1 %vm5746_vm4, %v7465_v8  ;;  %v16811_v8 = vld [vmem:[#allocation13_spill] sm:$0xff]  ;;  %v8854_v48 = vrot.slane %v8852_v46, 7  ;;  %v8838_v26 = vshrl.u32 %v8580_v22, 16  ;;  %v8845_v14 = vrot.slane %v8843_v51, 7  ;;  %v9721_v32 = vshll.u32 %v9454_v20, 16 }
 0x478   : > { %v8436_v50 = vpop.f32.mrf.mxu3  ;;  %v6999_v60 = vadd.f32 %v16812_v44, %v16811_v8  ;;  %v9725_v28 = vshrl.u32 %v9454_v20, 16  ;;  %v8855_v13 = vshll.u32 %v8582_v29, 16  ;;  %v9712_v54 = vshrl.u32 %v9453_v58, 16  ;;  %v7926_v20 = vld [vmem:[#allocation3 + $0xfc] sm:$0xf] }
 0x479   : > { %v15685_v0 = vadd.f32 %v8436_v50, %v7861_v33  ;;  %v9715_v50 = vshll.u32 %v9453_v58, 16  ;;  %v8187_v44 = vor.u32 %v8186_v40, %v8183_v59  ;;  %v8198_v63 = vrot.slane %v8197_v4, 4  ;;  %v7925_v59 = vld [vmem:[#allocation3 + $0xf8] sm:$0xf] }
 0x47a   : > { %12119 = vmatmul.msk.bf16.gmra.mxu2 %vm5746_vm4, %v9897_v35  ;;  %v9700_v35 = vsel %vm12616_vm14, %v9695_v38, %v15655_v47  ;;  %v8202_v47 = vrot.slane %v8200_v6, 5  ;;  %v15698_v38 = vpop.f32.mrf.mxu2  ;;  %v7862_v23 = vadd.f32 %v16814_v16, %v15258_v62  ;;  %v9876_v46 = vunpack.c.l.b16 %v9710_v21  ;;  %v9455_v6 = vld [vmem:[#allocation3 + $0x100] sm:$0x1] }
 0x47b   : > { %v9875_v8 = vunpack.c.l.b16 %v9700_v35  ;;  %16813 = vst [vmem:[#allocation50_spill] sm:$0xff] %v15698_v38  ;;  %v8846_v51 = vshll.u32 %v8581_v10, 16  ;;  %v8857_v22 = vor.u32 %v8855_v13, %v8854_v48  ;;  %v8850_v29 = vrot.slane %v8845_v14, 4  ;;  %v15709_v48 = vpop.f32.mrf.mxu0  ;;  %v16816_v13 = vld [vmem:[#allocation42_spill] sm:$0xff] }
 0x47c   : > { %v7563_v12 = vpop.f32.mrf.mxu1  ;;  %v9727_v58 = vrot.slane %v9725_v28, 4  ;;  %v9714_v35 = vrot.slane %v9712_v54, 4  ;;  %v9717_v38 = vrot.slane %v9715_v50, 5  ;;  %v8188_v62 = vrot.slane %v8187_v44, 4 }
 0x47d   : > { %v15695_v33 = vadd.f32 %v7563_v12, %v6999_v60  ;;  %11989 = vmatmul.msk.bf16.gmra.mxu3 %vm5746_vm4, %v8367_v61  ;;  %v12007_v61 = vrot.slane %v8838_v26, 11  ;;  %v15703_v12 = vrot.slane %v9721_v32, 5  ;;  %v8848_v4 = vor.u32 %v8846_v51, %v8845_v14  ;;  %v16815_v26 = vld [vmem:[#allocation14_spill] sm:$0xff]  ;;  %v8584_v14 = vld [vmem:[#allocation3 + $0x120] sm:$0xf] }
 0x47e   : > { %v8214_v10 = vshll.u32 %v7926_v20, 16  ;;  %v8218_v21 = vshrl.u32 %v7926_v20, 16  ;;  %v7000_v32 = vadd.f32 %v16816_v13, %v16815_v26  ;;  %v8858_v28 = vsel %vm12599_vm12, %v8850_v29, %v8857_v22 }
 0x47f   : > { %v8205_v16 = vshrl.u32 %v7925_v59, 16  ;;  %v9898_v54 = vpack.c.b16 %v9876_v46, %v9875_v8  ;;  %v8193_v50 = vsel %vm12616_vm14, %v8188_v62, %v15675_v5  ;;  %v9731_v44 = vshll.u32 %v9455_v6, 16  ;;  %v8583_v46 = vld [vmem:[#allocation3 + $0x11c] sm:$0x8]  ;;  %v16818_v5 = vld [vmem:[#allocation41_spill] sm:$0xff] }
 0x480   : > { %12023 = vmatmul.msk.bf16.gmra.mxu0 %vm5746_vm4, %v8991_v2  ;;  %v8439_v60 = vpop.f32.mrf.mxu3  ;;  %v8203_v2 = vsel %vm12616_vm14, %v8198_v63, %v8202_v47  ;;  %v9728_v63 = vor.u32 %v9727_v58, %v15703_v12  ;;  %v8585_v47 = vld [vmem:[#allocation3 + $0x124] sm:$0xf]  ;;  %v8849_v22 = vsel %vm12599_vm12, %v12007_v61, %v8848_v4  ;;  %v9718_v29 = vor.u32 %v9717_v38, %v9714_v35 }
 0x481   : > { %v15705_v40 = vadd.f32 %v8439_v60, %v7862_v23  ;;  %v8208_v23 = vshll.u32 %v7925_v59, 16  ;;  %v12292_v60 = vld [vmem:[#allocation3 + $0x30] sm:$0xff]  ;;  %v8347_v26 = vunpack.c.l.b16 %v8203_v2  ;;  %v7927_v59 = vld [vmem:[#allocation3 + $0x100] sm:$0x1]  ;;  %v8972_v13 = vunpack.c.l.b16 %v8858_v28 }
 0x482   : > { %v15723_v36 = vrot.slane %v8214_v10, 5  ;;  %v8220_v8 = vrot.slane %v8218_v21, 4  ;;  %v8865_v15 = vshrl.u32 %v8584_v14, 16  ;;  %v7863_v58 = vadd.f32 %v16818_v5, %v15280_v41  ;;  %v15728_v4 = vpop.f32.mrf.mxu2  ;;  %v16820_v5 = vld [vmem:[#allocation16_spill] sm:$0xff] }
 0x483   : > { %v8207_v6 = vrot.slane %v8205_v16, 4  ;;  %v8210_v62 = vrot.slane %v8208_v23, 5  ;;  %v9729_v61 = vrot.slane %v9728_v63, 4  ;;  %v9733_v38 = vrot.slane %v9731_v44, 5  ;;  %16819 = vst [vmem:[#allocation61_spill] sm:$0xff] %v15728_v4 }
 0x484   : > { %v7566_v51 = vpop.f32.mrf.mxu1  ;;  %v9719_v10 = vrot.slane %v9718_v29, 4  ;;  %v8224_v21 = vshll.u32 %v7927_v59, 16  ;;  %v8860_v28 = vshrl.u32 %v8583_v46, 16  ;;  %v8221_v16 = vor.u32 %v8220_v8, %v15723_v36 }
 0x485   : > { %v15719_v20 = vadd.f32 %v7566_v51, %v7000_v32  ;;  %v8874_v32 = vshrl.u32 %v8585_v47, 16  ;;  %v8346_v51 = vunpack.c.l.b16 %v8193_v50  ;;  %v8867_v23 = vrot.slane %v8865_v15, 7  ;;  %v16821_v50 = vld [vmem:[#allocation15_spill] sm:$0xff] }
 0x486   : > { %v9724_v63 = vsel %vm12616_vm14, %v9719_v10, %v15703_v12  ;;  %v8211_v44 = vor.u32 %v8210_v62, %v8207_v6  ;;  %v9734_v29 = vsel %vm12616_vm14, %v9729_v61, %v9733_v38  ;;  %v8868_v59 = vshll.u32 %v8584_v14, 16  ;;  %v16822_v10 = vld [vmem:[#allocation45_spill] sm:$0xff] }
 0x487   : > { %16817 = vst [vmem:[#allocation29_spill] sm:$0xff] %v15719_v20  ;;  %12094 = vmatmul.msk.bf16.vlgmr.msra.gmra.mxu1 %vm5746_vm4, %v12292_v60  ;;  %v8971_v20 = vunpack.c.l.b16 %v8849_v22  ;;  %v9457_v60 = vld [vmem:[#allocation3 + $0x110] sm:$0xf]  ;;  %v8368_v30 = vpack.c.b16 %v8347_v26, %v8346_v51  ;;  %v7001_v22 = vadd.f32 %v16821_v50, %v16820_v5  ;;  %v8226_v8 = vrot.slane %v8224_v21, 5 }
 0x488   : > { %v8441_v2 = vpop.f32.mrf.mxu3  ;;  %v9745_v26 = vshll.u32 %v9457_v60, 16  ;;  %v12008_v46 = vrot.slane %v8860_v28, 11  ;;  %v8877_v51 = vshll.u32 %v8585_v47, 16  ;;  %v8222_v12 = vrot.slane %v8221_v16, 4 }
 0x489   : > { %v15731_v35 = vadd.f32 %v8441_v2, %v7863_v58  ;;  %v8992_v41 = vpack.c.b16 %v8972_v13, %v8971_v20  ;;  %v9456_v58 = vld [vmem:[#allocation3 + $0x10c] sm:$0xf]  ;;  %v9749_v20 = vshrl.u32 %v9457_v60, 16  ;;  %v15741_v13 = vpop.f32.mrf.mxu0  ;;  %v8870_v6 = vor.u32 %v8868_v59, %v8867_v23  ;;  %v16825_v59 = vld [vmem:[#allocation18_spill] sm:$0xff] }
 0x48a   : > { %12120 = vmatmul.msk.bf16.gmra.mxu2 %vm5746_vm4, %v9898_v54  ;;  %v8876_v54 = vrot.slane %v8874_v32, 7  ;;  %v9736_v62 = vshrl.u32 %v9456_v58, 16  ;;  %v9739_v32 = vshll.u32 %v9456_v58, 16  ;;  %v7864_v5 = vadd.f32 %v16822_v10, %v15330_v49  ;;  %v9458_v58 = vld [vmem:[#allocation3 + $0x114] sm:$0x1] }
 0x48b   : > { %v8212_v14 = vrot.slane %v8211_v44, 4  ;;  %v9877_v60 = vunpack.c.l.b16 %v9724_v63  ;;  %v15749_v50 = vrot.slane %v9745_v26, 5  ;;  %v9878_v47 = vunpack.c.l.b16 %v9734_v29  ;;  %v7928_v49 = vld [vmem:[#allocation3 + $0x10c] sm:$0xf]  ;;  %v16826_v26 = vld [vmem:[#allocation56_spill] sm:$0xff] }
 0x48c   : > { %v7568_v2 = vpop.f32.mrf.mxu1  ;;  %v8879_v61 = vor.u32 %v8877_v51, %v8876_v54  ;;  %v8872_v16 = vrot.slane %v8867_v23, 4  ;;  %v8871_v63 = vsel %vm12599_vm12, %v12008_v46, %v8870_v6  ;;  %v9738_v44 = vrot.slane %v9736_v62, 4  ;;  %v12293_v6 = vld [vmem:[#allocation3 + $0x44] sm:$0xff] }
 0x48d   : > { %v15743_v15 = vadd.f32 %v7568_v2, %v7001_v22  ;;  %11990 = vmatmul.msk.bf16.gmra.mxu3 %vm5746_vm4, %v8368_v30  ;;  %v9751_v22 = vrot.slane %v9749_v20, 4  ;;  %v7929_v30 = vld [vmem:[#allocation3 + $0x110] sm:$0xf]  ;;  %v8217_v28 = vsel %vm12616_vm14, %v8212_v14, %v15723_v36  ;;  %v9741_v54 = vrot.slane %v9739_v32, 5  ;;  %v15760_v2 = vpop.f32.mrf.mxu2  ;;  %v8588_v14 = vld [vmem:[#allocation3 + $0x138] sm:$0xf] }
 0x48e   : > { %16824 = vst [vmem:[#allocation64_spill] sm:$0xff] %v15760_v2  ;;  %v7002_v29 = vadd.f32 %v16826_v26, %v16825_v59  ;;  %v8880_v20 = vsel %vm12599_vm12, %v8872_v16, %v8879_v61  ;;  %v8238_v36 = vshll.u32 %v7929_v30, 16  ;;  %v8242_v23 = vshrl.u32 %v7929_v30, 16  ;;  %v15769_v2 = vld [vmem:[#allocation3 + $0x134] sm:$0xf] }
 0x48f   : > { %v9752_v10 = vor.u32 %v9751_v22, %v15749_v50  ;;  %v9899_v62 = vpack.c.b16 %v9878_v47, %v9877_v60  ;;  %v8348_v32 = vunpack.c.l.b16 %v8217_v28  ;;  %v8973_v4 = vunpack.c.l.b16 %v8871_v63  ;;  %v16828_v22 = vld [vmem:[#allocation49_spill] sm:$0xff]  ;;  %v7930_v28 = vld [vmem:[#allocation3 + $0x114] sm:$0x1] }
 0x490   : > { %12024 = vmatmul.msk.bf16.gmra.mxu0 %vm5746_vm4, %v8992_v41  ;;  %v8444_v38 = vpop.f32.mrf.mxu3  ;;  %v8227_v41 = vsel %vm12616_vm14, %v8222_v12, %v8226_v8  ;;  %v8229_v8 = vshrl.u32 %v7928_v49, 16  ;;  %v8232_v12 = vshll.u32 %v7928_v49, 16  ;;  %v8974_v59 = vunpack.c.l.b16 %v8880_v20 }
 0x491   : > { %v15751_v21 = vadd.f32 %v8444_v38, %v7864_v5  ;;  %v9755_v5 = vshll.u32 %v9458_v58, 16  ;;  %v8349_v38 = vunpack.c.l.b16 %v8227_v41  ;;  %v9742_v26 = vor.u32 %v9741_v54, %v9738_v44  ;;  %v15771_v61 = vpop.f32.mrf.mxu0 }
 0x492   : > { %v7865_v30 = vadd.f32 %v16828_v22, %v15362_v42  ;;  %v15776_v16 = vrot.slane %v8238_v36, 5  ;;  %v8244_v58 = vrot.slane %v8242_v23, 4  ;;  %v8896_v49 = vshrl.u32 %v8588_v14, 16  ;;  %v9460_v42 = vld [vmem:[#allocation3 + $0x124] sm:$0xf] }
 0x493   : > { %16823 = vst [vmem:[#allocation54_spill] sm:$0xff] %v15751_v21  ;;  %v9753_v60 = vrot.slane %v9752_v10, 4  ;;  %v9757_v47 = vrot.slane %v9755_v5, 5  ;;  %v8231_v41 = vrot.slane %v8229_v8, 4  ;;  %v8234_v63 = vrot.slane %v8232_v12, 5 }
 0x494   : > { %v7571_v51 = vpop.f32.mrf.mxu1  ;;  %v8887_v54 = vshrl.u32 %v15769_v2, 16  ;;  %v8369_v20 = vpack.c.b16 %v8349_v38, %v8348_v32  ;;  %v7003_v36 = vadd.f32 %v15204_v43, %v15201_v52  ;;  %v8245_v23 = vor.u32 %v8244_v58, %v15776_v16  ;;  %v8586_v5 = vld [vmem:[#allocation3 + $0x130] sm:$0x8]  ;;  %v9459_v8 = vld [vmem:[#allocation3 + $0x120] sm:$0xf] }
 0x495   : > { %v15767_v46 = vadd.f32 %v7571_v51, %v7002_v29  ;;  %v8993_v51 = vpack.c.b16 %v8974_v59, %v8973_v4  ;;  %v8248_v10 = vshll.u32 %v7930_v28, 16  ;;  %v8898_v22 = vrot.slane %v8896_v49, 7  ;;  %v15790_v59 = vpop.f32.mrf.mxu2  ;;  %v16831_v28 = vld [vmem:[#allocation52_spill] sm:$0xff] }
 0x496   : > { %v9758_v32 = vsel %vm12616_vm14, %v9753_v60, %v9757_v47  ;;  %v8235_v4 = vor.u32 %v8234_v63, %v8231_v41  ;;  %v8899_v38 = vshll.u32 %v8588_v14, 16  ;;  %16830 = vst [vmem:[#allocation63_spill] sm:$0xff] %v15790_v59  ;;  %v8889_v52 = vrot.slane %v8887_v54, 7  ;;  %v7931_v54 = vld [vmem:[#allocation3 + $0x120] sm:$0xf] }
 0x497   : > { %16827 = vst [vmem:[#allocation58_spill] sm:$0xff] %v15767_v46  ;;  %12095 = vmatmul.msk.bf16.gmra.mxu1 %vm5746_vm4, %v12293_v6  ;;  %v9743_v6 = vrot.slane %v9742_v26, 4  ;;  %v9769_v43 = vshll.u32 %v9460_v42, 16  ;;  %v8882_v58 = vshrl.u32 %v8586_v5, 16  ;;  %v9760_v49 = vshrl.u32 %v9459_v8, 16 }
 0x498   : > { %v8446_v29 = vpop.f32.mrf.mxu3  ;;  %v8246_v60 = vrot.slane %v8245_v23, 4  ;;  %v8250_v47 = vrot.slane %v8248_v10, 5  ;;  %v8901_v14 = vor.u32 %v8899_v38, %v8898_v22  ;;  %v8894_v5 = vrot.slane %v8889_v52, 4  ;;  %v9461_v10 = vld [vmem:[#allocation3 + $0x128] sm:$0x1] }
 0x499   : > { %v15779_v44 = vadd.f32 %v8446_v29, %v7865_v30  ;;  %v9773_v30 = vshrl.u32 %v9460_v42, 16  ;;  %v9763_v29 = vshll.u32 %v9459_v8, 16  ;;  %v15803_v8 = vrot.slane %v9769_v43, 5  ;;  %v8591_v46 = vld [vmem:[#allocation3 + $0x14c] sm:$0xf] }
 0x49a   : > { %12121 = vmatmul.msk.bf16.gmra.mxu2 %vm5746_vm4, %v9899_v62  ;;  %v9748_v62 = vsel %vm12616_vm14, %v9743_v6, %v15749_v50  ;;  %v7866_v50 = vadd.f32 %v16831_v28, %v15399_v56  ;;  %v9880_v6 = vunpack.c.l.b16 %v9758_v32  ;;  %v7932_v28 = vld [vmem:[#allocation3 + $0x124] sm:$0xf]  ;;  %v12009_v23 = vrot.slane %v8882_v58, 11  ;;  %v12294_v58 = vld [vmem:[#allocation3 + $0x58] sm:$0xff] }
 0x49b   : > { %16829 = vst [vmem:[#allocation67_spill] sm:$0xff] %v15779_v44  ;;  %v9879_v63 = vunpack.c.l.b16 %v9748_v62  ;;  %v9775_v56 = vrot.slane %v9773_v30, 4  ;;  %v9762_v22 = vrot.slane %v9760_v49, 4  ;;  %v9765_v62 = vrot.slane %v9763_v29, 5 }
 0x49c   : > { %v7573_v12 = vpop.f32.mrf.mxu1  ;;  %v8251_v32 = vsel %vm12616_vm14, %v8246_v60, %v8250_v47  ;;  %v8902_v38 = vsel %vm12599_vm12, %v8894_v5, %v8901_v14  ;;  %v8253_v30 = vshrl.u32 %v7931_v54, 16  ;;  %v8266_v59 = vshrl.u32 %v7932_v28, 16 }
 0x49d   : > { %v15792_v26 = vadd.f32 %v7573_v12, %v7003_v36  ;;  %11991 = vmatmul.msk.bf16.gmra.mxu3 %vm5746_vm4, %v8369_v20  ;;  %v8236_v36 = vrot.slane %v8235_v4, 4  ;;  %v8890_v20 = vshll.u32 %v15769_v2, 16  ;;  %v15799_v12 = vpop.f32.mrf.mxu0  ;;  %v7004_v2 = vadd.f32 %v15256_v19, %v15244_v1  ;;  %v15817_v60 = vpop.f32.mrf.mxu2 }
 0x49e   : > { %v9776_v49 = vor.u32 %v9775_v56, %v15803_v8  ;;  %v9779_v29 = vshll.u32 %v9461_v10, 16  ;;  %v9766_v19 = vor.u32 %v9765_v62, %v9762_v22  ;;  %v8351_v14 = vunpack.c.l.b16 %v8251_v32 }
 0x49f   : > { %v8892_v4 = vor.u32 %v8890_v20, %v8889_v52  ;;  %v16834_v52 = vld [vmem:[#allocation55_spill] sm:$0xff] }
 0x4a0   : > { %12025 = vmatmul.msk.bf16.gmra.mxu0 %vm5746_vm4, %v8993_v51  ;;  %v8449_v41 = vpop.f32.mrf.mxu3  ;;  %v8241_v51 = vsel %vm12616_vm14, %v8236_v36, %v15776_v16  ;;  %v9900_v36 = vpack.c.b16 %v9880_v6, %v9879_v63  ;;  %v7867_v47 = vadd.f32 %v16834_v52, %v15433_v17  ;;  %v8268_v63 = vrot.slane %v8266_v59, 4  ;;  %v8590_v6 = vld [vmem:[#allocation3 + $0x148] sm:$0xf] }
 0x4a1   : > { %v15801_v42 = vadd.f32 %v8449_v41, %v7866_v50  ;;  %v8256_v50 = vshll.u32 %v7931_v54, 16  ;;  %v8262_v41 = vshll.u32 %v7932_v28, 16  ;;  %v8350_v1 = vunpack.c.l.b16 %v8241_v51 }
 0x4a2   : > { %v8893_v20 = vsel %vm12599_vm12, %v12009_v23, %v8892_v4  ;;  %v8976_v54 = vunpack.c.l.b16 %v8902_v38  ;;  %v8255_v28 = vrot.slane %v8253_v30, 4  ;;  %v9777_v22 = vrot.slane %v9776_v49, 4  ;;  %v16836_v23 = vld [vmem:[#allocation60_spill] sm:$0xff]  ;;  %v16837_v4 = vld [vmem:[#allocation27_spill] sm:$0xff] }
 0x4a3   : > { %16832 = vst [vmem:[#allocation70_spill] sm:$0xff] %v15801_v42  ;;  %v8258_v56 = vrot.slane %v8256_v50, 5  ;;  %v15824_v10 = vrot.slane %v8262_v41, 5  ;;  %v9781_v62 = vrot.slane %v9779_v29, 5  ;;  %v8918_v17 = vshrl.u32 %v8591_v46, 16  ;;  %v16840_v42 = vld [vmem:[#allocation33_spill] sm:$0xff] }
 0x4a4   : > { %v7576_v43 = vpop.f32.mrf.mxu1  ;;  %v9767_v32 = vrot.slane %v9766_v19, 4  ;;  %v7005_v38 = vadd.f32 %v16837_v4, %v16836_v23  ;;  %v8370_v30 = vpack.c.b16 %v8351_v14, %v8350_v1  ;;  %v8975_v50 = vunpack.c.l.b16 %v8893_v20  ;;  %v9462_v20 = vld [vmem:[#allocation3 + $0x134] sm:$0xf] }
 0x4a5   : > { %v15814_v16 = vadd.f32 %v7576_v43, %v7004_v2  ;;  %v7933_v2 = vld [vmem:[#allocation3 + $0x128] sm:$0x1]  ;;  %v15829_v43 = vpop.f32.mrf.mxu0  ;;  %v8909_v41 = vshrl.u32 %v8590_v6, 16  ;;  %v8259_v52 = vor.u32 %v8258_v56, %v8255_v28  ;;  %v8269_v49 = vor.u32 %v8268_v63, %v15824_v10 }
 0x4a6   : > { %v8272_v29 = vshll.u32 %v7933_v2, 16  ;;  %v9782_v1 = vsel %vm12616_vm14, %v9777_v22, %v9781_v62  ;;  %v8920_v14 = vrot.slane %v8918_v17, 7  ;;  %v8921_v63 = vshll.u32 %v8591_v46, 16  ;;  %v7935_v2 = vld [vmem:[#allocation3 + $0x138] sm:$0xf] }
 0x4a7   : > { %16833 = vst [vmem:[#allocation66_spill] sm:$0xff] %v15814_v16  ;;  %12096 = vmatmul.msk.bf16.gmra.mxu1 %vm5746_vm4, %v12294_v58  ;;  %v9463_v58 = vld [vmem:[#allocation3 + $0x138] sm:$0xf]  ;;  %v8911_v56 = vrot.slane %v8909_v41, 7  ;;  %v8912_v22 = vshll.u32 %v8590_v6, 16  ;;  %v9784_v17 = vshrl.u32 %v9462_v20, 16 }
 0x4a8   : > { %v8451_v5 = vpop.f32.mrf.mxu3  ;;  %v9793_v23 = vshll.u32 %v9463_v58, 16  ;;  %v9797_v4 = vshrl.u32 %v9463_v58, 16  ;;  %v8923_v62 = vor.u32 %v8921_v63, %v8920_v14  ;;  %v9787_v16 = vshll.u32 %v9462_v20, 16  ;;  %v7934_v58 = vld [vmem:[#allocation3 + $0x134] sm:$0xf] }
 0x4a9   : > { %v15827_v51 = vadd.f32 %v8451_v5, %v7867_v47  ;;  %v8589_v47 = vld [vmem:[#allocation3 + $0x144] sm:$0x8]  ;;  %v8994_v5 = vpack.c.b16 %v8976_v54, %v8975_v50  ;;  %v8274_v54 = vrot.slane %v8272_v29, 5  ;;  %v15845_v50 = vpop.f32.mrf.mxu2  ;;  %v8286_v41 = vshll.u32 %v7935_v2, 16 }
 0x4aa   : > { %12122 = vmatmul.msk.bf16.gmra.mxu2 %vm5746_vm4, %v9900_v36  ;;  %v9772_v36 = vsel %vm12616_vm14, %v9767_v32, %v15803_v8  ;;  %v8904_v28 = vshrl.u32 %v8589_v47, 16  ;;  %v8290_v46 = vshrl.u32 %v7935_v2, 16  ;;  %v16839_v47 = vld [vmem:[#allocation21_spill] sm:$0xff]  ;;  %v8916_v29 = vrot.slane %v8911_v56, 4 }
 0x4ab   : > { %16835 = vst [vmem:[#allocation31_spill] sm:$0xff] %v15827_v51  ;;  %v9881_v8 = vunpack.c.l.b16 %v9772_v36  ;;  %v9464_v51 = vld [vmem:[#allocation3 + $0x13c] sm:$0x1]  ;;  %v9799_v36 = vrot.slane %v9797_v4, 4  ;;  %v8914_v14 = vor.u32 %v8912_v22, %v8911_v56  ;;  %v8277_v20 = vshrl.u32 %v7934_v58, 16  ;;  %v12295_v2 = vld [vmem:[#allocation3 + $0x6c] sm:$0xff] }
 0x4ac   : > { %v7578_v59 = vpop.f32.mrf.mxu1  ;;  %v9786_v44 = vrot.slane %v9784_v17, 4  ;;  %v8292_v21 = vrot.slane %v8290_v46, 4  ;;  %v7936_v22 = vld [vmem:[#allocation3 + $0x13c] sm:$0x1] }
 0x4ad   : > { %v15837_v19 = vadd.f32 %v7578_v59, %v7005_v38  ;;  %11992 = vmatmul.msk.bf16.gmra.mxu3 %vm5746_vm4, %v8370_v30  ;;  %v9882_v38 = vunpack.c.l.b16 %v9782_v1  ;;  %v8260_v59 = vrot.slane %v8259_v52, 4  ;;  %v8270_v30 = vrot.slane %v8269_v49, 4  ;;  %v15856_v63 = vpop.f32.mrf.mxu0 }
 0x4ae   : > { %v12010_v49 = vrot.slane %v8904_v28, 11 }
 0x4af   : > { %v8265_v52 = vsel %vm12616_vm14, %v8260_v59, %v15824_v10  ;;  %v8275_v1 = vsel %vm12616_vm14, %v8270_v30, %v8274_v54  ;;  %v8924_v10 = vsel %vm12599_vm12, %v8916_v29, %v8923_v62  ;;  %v15863_v59 = vrot.slane %v8286_v41, 5  ;;  %v16842_v30 = vld [vmem:[#allocation62_spill] sm:$0xff] }
 0x4b0   : > { %12026 = vmatmul.msk.bf16.gmra.mxu0 %vm5746_vm4, %v8994_v5  ;;  %v15843_v32 = vpop.f32.mrf.mxu3  ;;  %v15847_v5 = vrot.slane %v9793_v23, 5  ;;  %v8280_v23 = vshll.u32 %v7934_v58, 16  ;;  %v9901_v56 = vpack.c.b16 %v9882_v38, %v9881_v8  ;;  %v7869_v54 = vadd.f32 %v16842_v30, %v15503_v27  ;;  %v9466_v30 = vld [vmem:[#allocation3 + $0x14c] sm:$0xf] }
 0x4b1   : > { %16838 = vst [vmem:[#allocation12_spill] sm:$0xff] %v15843_v32  ;;  %v7006_v32 = vadd.f32 %v16840_v42, %v16839_v47  ;;  %v9789_v42 = vrot.slane %v9787_v16, 5  ;;  %v9803_v47 = vshll.u32 %v9464_v51, 16  ;;  %v8915_v16 = vsel %vm12599_vm12, %v12010_v49, %v8914_v14 }
 0x4b2   : > { %v9800_v28 = vor.u32 %v9799_v36, %v15847_v5  ;;  %v8279_v51 = vrot.slane %v8277_v20, 4  ;;  %v8282_v17 = vrot.slane %v8280_v23, 5  ;;  %v8352_v36 = vunpack.c.l.b16 %v8265_v52 }
 0x4b3   : > { %v8978_v41 = vunpack.c.l.b16 %v8924_v10  ;;  %v9790_v46 = vor.u32 %v9789_v42, %v9786_v44  ;;  %v9805_v8 = vrot.slane %v9803_v47, 5  ;;  %v8293_v38 = vor.u32 %v8292_v21, %v15863_v59 }
 0x4b4   : > { %v7581_v6 = vpop.f32.mrf.mxu1  ;;  %v9801_v29 = vrot.slane %v9800_v28, 4  ;;  %v8296_v27 = vshll.u32 %v7936_v22, 16  ;;  %v8977_v14 = vunpack.c.l.b16 %v8915_v16  ;;  %v8283_v23 = vor.u32 %v8282_v17, %v8279_v51 }
 0x4b5   : > { %v15858_v4 = vadd.f32 %v7581_v6, %v7006_v32  ;;  %v8353_v32 = vunpack.c.l.b16 %v8275_v1  ;;  %v15874_v6 = vpop.f32.mrf.mxu2  ;;  %v16844_v1 = vld [vmem:[#allocation28_spill] sm:$0xff]  ;;  %v9791_v52 = vrot.slane %v9790_v46, 4  ;;  %v8294_v42 = vrot.slane %v8293_v38, 4  ;;  %v15883_v10 = vpop.f32.mrf.mxu0 }
 0x4b6   : > { %v8995_v44 = vpack.c.b16 %v8978_v41, %v8977_v14  ;;  %v9806_v21 = vsel %vm12616_vm14, %v9801_v29, %v9805_v8  ;;  %v8298_v47 = vrot.slane %v8296_v27, 5  ;;  %16845 = vst [vmem:[#allocation13_spill] sm:$0xff] %v15883_v10  ;;  %v9821_v22 = vshrl.u32 %v9466_v30, 16  ;;  %v7938_v41 = vld [vmem:[#allocation3 + $0x14c] sm:$0xf]  ;;  %v12296_v27 = vld [vmem:[#allocation3 + $0x80] sm:$0xff] }
 0x4b7   : > { %16841 = vst [vmem:[#allocation69_spill] sm:$0xff] %v15858_v4  ;;  %12097 = vmatmul.msk.bf16.gmra.mxu1 %vm5746_vm4, %v12295_v2  ;;  %v7007_v2 = vadd.f32 %v15388_v39, %v16844_v1  ;;  %v8371_v49 = vpack.c.b16 %v8353_v32, %v8352_v36  ;;  %v9796_v39 = vsel %vm12616_vm14, %v9791_v52, %v15847_v5  ;;  %v9817_v32 = vshll.u32 %v9466_v30, 16  ;;  %v7937_v36 = vld [vmem:[#allocation3 + $0x148] sm:$0xf]  ;;  %v16847_v5 = vld [vmem:[#allocation40_spill] sm:$0xff] }
 0x4b8   : > { %v8456_v58 = vpop.f32.mrf.mxu3  ;;  %v8284_v16 = vrot.slane %v8283_v23, 4  ;;  %v9884_v17 = vunpack.c.l.b16 %v9806_v21  ;;  %v9883_v46 = vunpack.c.l.b16 %v9796_v39  ;;  %v8299_v8 = vsel %vm12616_vm14, %v8294_v42, %v8298_v47  ;;  %v5237_v39 = vld [vmem:[#allocation3 + $0x158] sm:$0x8] }
 0x4b9   : > { %v15871_v62 = vadd.f32 %v8456_v58, %v7869_v54  ;;  %v7008_v38 = vadd.f32 %v16847_v5, %v15385_v34  ;;  %v8310_v30 = vshll.u32 %v7938_v41, 16  ;;  %v8355_v47 = vunpack.c.l.b16 %v8299_v8  ;;  %v8593_v34 = vld [vmem:[#allocation3 + $0x15c] sm:$0xf] }
 0x4ba   : > { %12123 = vmatmul.msk.bf16.gmra.mxu2 %vm5746_vm4, %v9901_v56  ;;  %v9465_v56 = vld [vmem:[#allocation3 + $0x148] sm:$0xf]  ;;  %v8289_v29 = vsel %vm12616_vm14, %v8284_v16, %v15863_v59  ;;  %v9902_v21 = vpack.c.b16 %v9884_v17, %v9883_v46  ;;  %v8594_v16 = vld [vmem:[#allocation3 + $0x160] sm:$0xf] }
 0x4bb   : > { %16843 = vst [vmem:[#allocation34_spill] sm:$0xff] %v15871_v62  ;;  %v9808_v28 = vshrl.u32 %v9465_v56, 16  ;;  %v9811_v51 = vshll.u32 %v9465_v56, 16  ;;  %v8301_v56 = vshrl.u32 %v7937_v36, 16  ;;  %v8354_v42 = vunpack.c.l.b16 %v8289_v29 }
 0x4bc   : > { %v7583_v20 = vpop.f32.mrf.mxu1  ;;  %v8940_v5 = vshrl.u32 %v8594_v16, 16  ;;  %v8943_v17 = vshll.u32 %v8594_v16, 16  ;;  %v8312_v29 = vrot.slane %v8310_v30, 5 }
 0x4bd   : > { %v15878_v54 = vadd.f32 %v7583_v20, %v7007_v2  ;;  %11993 = vmatmul.msk.bf16.gmra.mxu3 %vm5746_vm4, %v8371_v49  ;;  %v9810_v1 = vrot.slane %v9808_v28, 4  ;;  %v15898_v2 = vrot.slane %v9817_v32, 5  ;;  %v9823_v49 = vrot.slane %v9821_v22, 4  ;;  %v9467_v20 = vld [vmem:[#allocation3 + $0x150] sm:$0x1]  ;;  %v15900_v52 = vpop.f32.mrf.mxu2 }
 0x4be   : > { %v9813_v23 = vrot.slane %v9811_v51, 5  ;;  %v8304_v28 = vshll.u32 %v7937_v36, 16  ;;  %v5238_v32 = vsel %vm13826_vm1, 0, %v5237_v39  ;;  %v8931_v22 = vshrl.u32 %v8593_v34, 16  ;;  %v16849_v51 = vld [vmem:[#allocation68_spill] sm:$0xff] }
 0x4bf   : > { %5239 = vst [vmem:[#allocation3 + $0x158] sm:$0x8] %v5238_v32  ;;  %v8942_v36 = vrot.slane %v8940_v5, 7  ;;  %v7939_v39 = vld [vmem:[#allocation3 + $0x150] sm:$0x1]  ;;  %v8372_v4 = vpack.c.b16 %v8355_v47, %v8354_v42  ;;  %v8303_v62 = vrot.slane %v8301_v56, 4 }
 0x4c0   : > { %12027 = vmatmul.msk.bf16.gmra.mxu0 %vm5746_vm4, %v8995_v44  ;;  %v15889_v58 = vpop.f32.mrf.mxu3  ;;  %v8314_v44 = vshrl.u32 %v7938_v41, 16  ;;  %v7871_v41 = vadd.f32 %v16849_v51, %v15581_v53  ;;  %v16850_v53 = vld [vmem:[#allocation8_spill] sm:$0xff]  ;;  %v8320_v5 = vshll.u32 %v7939_v39, 16 }
 0x4c1   : > { %16846 = vst [vmem:[#allocation71_spill] sm:$0xff] %v15889_v58  ;;  %v8306_v58 = vrot.slane %v8304_v28, 5  ;;  %v8945_v16 = vor.u32 %v8943_v17, %v8942_v36 }
 0x4c2   : > { %v8316_v8 = vrot.slane %v8314_v44, 4 }
 0x4c4   : > { %v7586_v14 = vpop.f32.mrf.mxu1 }
 0x4c5   : > { %v15902_v59 = vadd.f32 %v7586_v14, %v7008_v38  ;;  %v9824_v38 = vor.u32 %v9823_v49, %v15898_v2  ;;  %v9827_v14 = vshll.u32 %v9467_v20, 16  ;;  %v7009_v49 = vadd.f32 %v15480_v37, %v16850_v53 }
 0x4c6   : > { %v8934_v20 = vshll.u32 %v8593_v34, 16 }
 0x4c7   : > { %16848 = vst [vmem:[#allocation20_spill] sm:$0xff] %v15902_v59  ;;  %12098 = vmatmul.msk.bf16.gmra.mxu1 %vm5746_vm4, %v12296_v27  ;;  %v8933_v59 = vrot.slane %v8931_v22, 7  ;;  %v9814_v27 = vor.u32 %v9813_v23, %v9810_v1  ;;  %v9825_v30 = vrot.slane %v9824_v38, 4  ;;  %v9829_v44 = vrot.slane %v9827_v14, 5  ;;  %v8592_v1 = vld [vmem:[#allocation3 + $0x158] sm:$0x8]  ;;  %v15920_v23 = vpop.f32.mrf.mxu2 }
 0x4c8   : > { %v8461_v46 = vpop.f32.mrf.mxu3  ;;  %v8317_v22 = vor.u32 %v8316_v8, %v8312_v29  ;;  %v8926_v42 = vshrl.u32 %v8592_v1, 16  ;;  %v8322_v14 = vrot.slane %v8320_v5, 5  ;;  %v16851_v8 = vld [vmem:[#allocation32_spill] sm:$0xff] }
 0x4c9   : > { %v15911_v57 = vadd.f32 %v8461_v46, %v7871_v41  ;;  %v8938_v32 = vrot.slane %v8933_v59, 4  ;;  %v9815_v56 = vrot.slane %v9814_v27, 4  ;;  %v8936_v37 = vor.u32 %v8934_v20, %v8933_v59  ;;  %v12297_v20 = vld [vmem:[#allocation3 + $0x94] sm:$0xff] }
 0x4ca   : > { %12124 = vmatmul.msk.bf16.gmra.mxu2 %vm5746_vm4, %v9902_v21  ;;  %v15918_v21 = vpop.f32.mrf.mxu0  ;;  %v9830_v28 = vsel %vm12616_vm14, %v9825_v30, %v9829_v44  ;;  %v8307_v41 = vor.u32 %v8306_v58, %v8303_v62  ;;  %v8318_v38 = vrot.slane %v8317_v22, 4  ;;  %v7010_v59 = vadd.f32 %v15530_v7, %v16851_v8 }
 0x4cb   : > { %v8946_v47 = vsel %vm12599_vm12, %v8938_v32, %v8945_v16  ;;  %v9820_v17 = vsel %vm12616_vm14, %v9815_v56, %v15898_v2  ;;  %v9886_v36 = vunpack.c.l.b16 %v9830_v28  ;;  %v7011_v56 = vadd.f32 %v15577_v3, %v15490_v9  ;;  %v16854_v28 = vld [vmem:[#allocation36_spill] sm:$0xff] }
 0x4cc   : > { %v7588_v51 = vpop.f32.mrf.mxu1  ;;  %v8980_v46 = vunpack.c.l.b16 %v8946_v47  ;;  %v8308_v53 = vrot.slane %v8307_v41, 4  ;;  %v8323_v62 = vsel %vm12616_vm14, %v8318_v38, %v8322_v14  ;;  %v9885_v32 = vunpack.c.l.b16 %v9820_v17  ;;  %v16855_v41 = vld [vmem:[#allocation10_spill] sm:$0xff]  ;;  %v12298_v17 = vld [vmem:[#allocation3 + $0xa8] sm:$0xff] }
 0x4cd   : > { %v15915_v10 = vadd.f32 %v7588_v51, %v7009_v49  ;;  %11994 = vmatmul.msk.bf16.gmra.mxu3 %vm5746_vm4, %v8372_v4  ;;  %v12011_v4 = vrot.slane %v8926_v42, 11  ;;  %v7873_v51 = vadd.f32 %v16853_v45, %v15641_v24  ;;  %v8357_v30 = vunpack.c.l.b16 %v8323_v62  ;;  %v16860_v62 = vld [vmem:[#allocation26_spill] sm:$0xff] }
 0x4ce   : > { %v8313_v2 = vsel %vm12616_vm14, %v8308_v53, %v8312_v29  ;;  %v9903_v7 = vpack.c.b16 %v9886_v36, %v9885_v32  ;;  %v7012_v38 = vadd.f32 %v16855_v41, %v16854_v28 }
 0x4cf   : > { %v8937_v39 = vsel %vm12599_vm12, %v12011_v4, %v8936_v37  ;;  %v15947_v5 = vpop.f32.mrf.mxu2  ;;  %v8356_v29 = vunpack.c.l.b16 %v8313_v2  ;;  %v12299_v2 = vld [vmem:[#allocation3 + $0xbc] sm:$0xff] }
 0x4d0   : > { %v15924_v34 = vpop.f32.mrf.mxu3  ;;  %v8979_v58 = vunpack.c.l.b16 %v8937_v39 }
 0x4d1   : > { %v8373_v42 = vpack.c.b16 %v8357_v30, %v8356_v29  ;;  %v12300_v29 = vld [vmem:[#allocation3 + $0xd0] sm:$0xff] }
 0x4d2   : > { %v8996_v16 = vpack.c.b16 %v8980_v46, %v8979_v58  ;;  %v15944_v44 = vpop.f32.mrf.mxu0  ;;  %v16857_v46 = vld [vmem:[#allocation17_spill] sm:$0xff]  ;;  %v7014_v58 = vadd.f32 %v15682_v11, %v16860_v62 }
 0x4d3   : > { %v7875_v9 = vadd.f32 %v16857_v46, %v15695_v33  ;;  %v16862_v33 = vld [vmem:[#allocation25_spill] sm:$0xff] }
 0x4d4   : > { %v7591_v27 = vpop.f32.mrf.mxu1  ;;  %12028 = vmatmul.msk.bf16.gmra.mxu0 %vm5746_vm4, %v8996_v16  ;;  %v7877_v16 = vadd.f32 %v16862_v33, %v15743_v15 }
 0x4d5   : > { %v15937_v49 = vadd.f32 %v7591_v27, %v7010_v59  ;;  %v16858_v59 = vld [vmem:[#allocation51_spill] sm:$0xff] }
 0x4d6   : > { %v7013_v36 = vadd.f32 %v15650_v31, %v16858_v59  ;;  %v7015_v31 = vadd.f32 %v15709_v48, %v15635_v18  ;;  %v9137_v18 = vadd.f32 %v15741_v13, %v15664_v25  ;;  %v9138_v48 = vadd.f32 %v15771_v61, %v15685_v0  ;;  %v12301_v59 = vld [vmem:[#allocation3 + $0xe4] sm:$0xff] }
 0x4d7   : > { %16852 = vst [vmem:[#allocation14_spill] sm:$0xff] %v15937_v49  ;;  %12099 = vmatmul.msk.bf16.gmra.mxu1 %vm5746_vm4, %v12297_v20  ;;  %v9139_v25 = vadd.f32 %v15799_v12, %v15705_v40 }
 0x4d8   : > { %v8466_v22 = vpop.f32.mrf.mxu3 }
 0x4d9   : > { %v15950_v1 = vadd.f32 %v8466_v22, %v7873_v51 }
 0x4da   : > { %12125 = vmatmul.msk.bf16.gmra.mxu2 %vm5746_vm4, %v9903_v7 }
 0x4dc   : > { %v7593_v37 = vpop.f32.mrf.mxu1 }
 0x4dd   : > { %v15954_v47 = vadd.f32 %v7593_v37, %v7011_v56  ;;  %11995 = vmatmul.msk.bf16.gmra.mxu3 %vm5746_vm4, %v8373_v42  ;;  %v16864_v56 = vld [vmem:[#allocation22_spill] sm:$0xff]  ;;  %v15992_v37 = vpop.f32.mrf.mxu2 }
 0x4de   : > { %v7879_v42 = vadd.f32 %v16864_v56, %v15792_v26 }
 0x4e0   : > { %v15957_v24 = vpop.f32.mrf.mxu3 }
 0x4e4   : > { %v7596_v14 = vpop.f32.mrf.mxu1 }
 0x4e5   : > { %v15961_v4 = vadd.f32 %v7596_v14, %v7012_v38 }
 0x4e7   : > { %16856 = vst [vmem:[#allocation42_spill] sm:$0xff] %v15961_v4  ;;  %12100 = vmatmul.msk.bf16.gmra.mxu1 %vm5746_vm4, %v12298_v17  ;;  %v16000_v17 = vpop.f32.mrf.mxu0  ;;  %v12304_v4 = vld [vmem:[#allocation3 + $0x120] sm:$0xff] }
 0x4e8   : > { %v8471_v3 = vpop.f32.mrf.mxu3 }
 0x4e9   : > { %v15966_v8 = vadd.f32 %v8471_v3, %v7875_v9  ;;  %v16008_v9 = vld [vmem:[%s16572_s5] ss:$0 sm:$0xff]  ;;  %v16010_v3 = vpop.f32.mrf.mxu2 }
 0x4ec   : > { %v7598_v39 = vpop.f32.mrf.mxu1 }
 0x4ed   : > { %v15970_v27 = vadd.f32 %v7598_v39, %v7013_v36 }
 0x4ef   : > { %16859 = vst [vmem:[#allocation41_spill] sm:$0xff] %v15970_v27  ;;  %v16019_v62 = vpop.f32.mrf.mxu0 }
 0x4f0   : > { %v15972_v53 = vpop.f32.mrf.mxu3 }
 0x4f4   : > { %v7601_v20 = vpop.f32.mrf.mxu1 }
 0x4f5   : > { %v15976_v32 = vadd.f32 %v7601_v20, %v7014_v58 }
 0x4f7   : > { %16861 = vst [vmem:[#allocation16_spill] sm:$0xff] %v15976_v32  ;;  %12101 = vmatmul.msk.bf16.gmra.mxu1 %vm5746_vm4, %v12299_v2 }
 0x4f8   : > { %v8476_v7 = vpop.f32.mrf.mxu3 }
 0x4f9   : > { %v15981_v45 = vadd.f32 %v8476_v7, %v7877_v16  ;;  %v16027_v16 = vpop.f32.mrf.mxu2 }
 0x4fc   : > { %v7603_v51 = vpop.f32.mrf.mxu1 }
 0x4fd   : > { %v15985_v30 = vadd.f32 %v7603_v51, %v7015_v31 }
 0x4ff   : > { %16863 = vst [vmem:[#allocation15_spill] sm:$0xff] %v15985_v30  ;;  %v16880_v30 = vld [vmem:[#allocation71_spill] sm:$0xff] }
 0x500   : > { %v15987_v22 = vpop.f32.mrf.mxu3 }
 0x504   : > { %v9311_v11 = vpop.f32.mrf.mxu1 }
 0x505   : > { %v9391_v38 = vadd.f32 %v9311_v11, %v9137_v18  ;;  %v16034_v18 = vpop.f32.mrf.mxu0 }
 0x507   : > { %12102 = vmatmul.msk.bf16.gmra.mxu1 %vm5746_vm4, %v12300_v29  ;;  %v10045_v26 = vadd.f32 %v15817_v60, %v9391_v38  ;;  %v16865_v60 = vld [vmem:[#allocation30_spill] sm:$0xff] }
 0x508   : > { %v8481_v15 = vpop.f32.mrf.mxu3  ;;  %v7881_v39 = vadd.f32 %v16865_v60, %v15837_v19 }
 0x509   : > { %v15994_v28 = vadd.f32 %v8481_v15, %v7879_v42  ;;  %v10081_v13 = vadd.f32 %v16008_v9, %v10045_v26  ;;  %v12302_v26 = vld [vmem:[#allocation3 + $0xf8] sm:$0xff] }
 0x50b   : > { %v10145_v20 = vmul.f32 0.01, %v10081_v13  ;;  %vm10113_vm2 = vcmp.ge.f32.partialorder %v10081_v13, 0.0 }
 0x50c   : > { %v9313_v41 = vpop.f32.mrf.mxu1 }
 0x50d   : > { %v9392_v14 = vadd.f32 %v9313_v41, %v9138_v48  ;;  %v10177_v19 = vsel %vm10113_vm2, %v10081_v13, %v10145_v20  ;;  %v16868_v20 = vld [vmem:[#allocation67_spill] sm:$0xff] }
 0x50f   : > { %v10046_v2 = vadd.f32 %v15845_v50, %v9392_v14 }
 0x510   : > { %v16002_v46 = vpop.f32.mrf.mxu3 }
 0x511   : > { %v10082_v31 = vadd.f32 %v16008_v9, %v10046_v2  ;;  %v16869_v2 = vld [vmem:[#allocation13_spill] sm:$0xff] }
 0x513   : > { %v10146_v42 = vmul.f32 0.01, %v10082_v31  ;;  %vm10114_vm1 = vcmp.ge.f32.partialorder %v10082_v31, 0.0 }
 0x514   : > { %v9316_v0 = vpop.f32.mrf.mxu1 }
 0x515   : > { %v9393_v61 = vadd.f32 %v9316_v0, %v9139_v25  ;;  %v10178_v41 = vsel %vm10114_vm1, %v10082_v31, %v10146_v42  ;;  %v16036_v25 = vpop.f32.mrf.mxu2 }
 0x517   : > { %v10047_v36 = vadd.f32 %v15874_v6, %v9393_v61  ;;  %12103 = vmatmul.msk.bf16.gmra.mxu1 %vm5746_vm4, %v12301_v59  ;;  %v9140_v6 = vadd.f32 %v15829_v43, %v15731_v35  ;;  %v16866_v59 = vld [vmem:[#allocation44_spill] sm:$0xff] }
 0x518   : > { %v8486_v58 = vpop.f32.mrf.mxu3 }
 0x519   : > { %v10083_v40 = vadd.f32 %v16008_v9, %v10047_v36  ;;  %v16023_v12 = vadd.f32 %v8486_v58, %v7881_v39  ;;  %v7883_v36 = vadd.f32 %v16866_v59, %v15878_v54  ;;  %v16867_v39 = vld [vmem:[#allocation54_spill] sm:$0xff] }
 0x51a   : > { %v9141_v58 = vadd.f32 %v15856_v63, %v16867_v39 }
 0x51b   : > { %vm10115_vm12 = vcmp.ge.f32.partialorder %v10083_v40, 0.0  ;;  %v10147_v33 = vmul.f32 0.01, %v10083_v40 }
 0x51c   : > { %v9318_v7 = vpop.f32.mrf.mxu1 }
 0x51d   : > { %v10179_v51 = vsel %vm10115_vm12, %v10083_v40, %v10147_v33  ;;  %v9394_v11 = vadd.f32 %v9318_v7, %v9140_v6  ;;  %v9142_v40 = vadd.f32 %v16869_v2, %v16868_v20  ;;  %v16047_v33 = vpop.f32.mrf.mxu0  ;;  %v16873_v20 = vld [vmem:[#allocation24_spill] sm:$0xff]  ;;  %v16874_v2 = vld [vmem:[#allocation59_spill] sm:$0xff] }
 0x51e   : > { %v10209_v29 = vmax.f32 %v10177_v19, %v10179_v51 }
 0x51f   : > { %v10048_v50 = vadd.f32 %v15900_v52, %v9394_v11 }
 0x520   : > { %v16031_v56 = vpop.f32.mrf.mxu3  ;;  %v10241_v43 = vrot.slane %v10209_v29, 2  ;;  %v10243_v38 = vrot.slane %v10209_v29, 6  ;;  %v10242_v60 = vrot.slane %v10209_v29, 4 }
 0x521   : > { %v10084_v15 = vadd.f32 %v16008_v9, %v10048_v50  ;;  %v12127_v50 = vrot.slane %v10209_v29, 9 }
 0x522   : > { %v12128_v52 = vrot.slane %v10241_v43, 9  ;;  %v12130_v61 = vrot.slane %v10243_v38, 9  ;;  %v12129_v42 = vrot.slane %v10242_v60, 9 }
 0x523   : > { %vm10116_vm0 = vcmp.ge.f32.partialorder %v10084_v15, 0.0  ;;  %v10148_v35 = vmul.f32 0.01, %v10084_v15 }
 0x524   : > { %v9321_v48 = vpop.f32.mrf.mxu1  ;;  %v10530_v6 = vmax.f32 %v10241_v43, %v12128_v52  ;;  %v10532_v31 = vmax.f32 %v10243_v38, %v12130_v61  ;;  %v16871_v43 = vld [vmem:[#allocation70_spill] sm:$0xff] }
 0x525   : > { %v10180_v14 = vsel %vm10116_vm0, %v10084_v15, %v10148_v35  ;;  %v9395_v51 = vadd.f32 %v9321_v48, %v9141_v58  ;;  %v16051_v15 = vpop.f32.mrf.mxu2  ;;  %v9143_v52 = vadd.f32 %v15918_v21, %v16871_v43  ;;  %v16061_v39 = vpop.f32.mrf.mxu0  ;;  %v16872_v21 = vld [vmem:[#allocation43_spill] sm:$0xff] }
 0x526   : > { %v16038_v0 = vmax.f32 %v10178_v41, %v10180_v14  ;;  %v10661_v54 = vrot.slane %v10530_v6, 7  ;;  %v10672_v63 = vrot.slane %v10532_v31, 7  ;;  %v10529_v14 = vmax.f32 %v10209_v29, %v12127_v50 }
 0x527   : > { %12104 = vmatmul.msk.bf16.gmra.mxu1 %vm5746_vm4, %v12302_v26  ;;  %v10049_v41 = vadd.f32 %v15920_v23, %v9395_v51  ;;  %v10531_v26 = vmax.f32 %v10242_v60, %v12129_v42  ;;  %v7885_v58 = vadd.f32 %v16872_v21, %v15915_v10 }
 0x528   : > { %v8491_v13 = vpop.f32.mrf.mxu3  ;;  %v10663_v38 = vsel %vm10662_vm5, %v10661_v54, %v10529_v14  ;;  %v10244_v29 = vrot.slane %v16038_v0, 2  ;;  %v10245_v14 = vrot.slane %v16038_v0, 4 }
 0x529   : > { %v16049_v7 = vadd.f32 %v8491_v13, %v7883_v36  ;;  %v10673_v13 = vsel %vm10662_vm5, %v10672_v63, %v10531_v26  ;;  %v10085_v61 = vadd.f32 %v16008_v9, %v10049_v41  ;;  %v12303_v36 = vld [vmem:[#allocation3 + $0x10c] sm:$0xff]  ;;  %v10665_v23 = vsel %vm10664_vm3, %v10661_v54, %v10663_v38  ;;  %v16876_v38 = vld [vmem:[#allocation31_spill] sm:$0xff] }
 0x52a   : > { %v10674_v6 = vsel %vm10664_vm3, %v10672_v63, %v10673_v13  ;;  %v10667_v10 = vsel %vm10666_vm11, %v10661_v54, %v10665_v23  ;;  %v12131_v26 = vrot.slane %v16038_v0, 9  ;;  %v12132_v43 = vrot.slane %v10244_v29, 9  ;;  %v16878_v13 = vld [vmem:[#allocation48_spill] sm:$0xff] }
 0x52b   : > { %v10149_v51 = vmul.f32 0.01, %v10085_v61  ;;  %vm10117_vm8 = vcmp.ge.f32.partialorder %v10085_v61, 0.0  ;;  %v16093_v32 = vsel %vm10668_vm7, %v10661_v54, %v10667_v10 }
 0x52c   : > { %v9323_v19 = vpop.f32.mrf.mxu1 }
 0x52d   : > { %v9396_v11 = vadd.f32 %v9323_v19, %v9142_v40  ;;  %v7868_v40 = vadd.f32 %v16874_v2, %v16873_v20  ;;  %v10246_v19 = vrot.slane %v16038_v0, 6  ;;  %v16077_v41 = vpop.f32.mrf.mxu2 }
 0x52f   : > { %v10050_v50 = vadd.f32 %v15947_v5, %v9396_v11  ;;  %v16877_v5 = vld [vmem:[#allocation12_spill] sm:$0xff]  ;;  %v12134_v21 = vrot.slane %v10246_v19, 9 }
 0x530   : > { %v16053_v35 = vpop.f32.mrf.mxu3  ;;  %v8522_v11 = vadd.f32 %v16877_v5, %v7868_v40  ;;  %v10534_v5 = vmax.f32 %v10244_v29, %v12132_v43  ;;  %v12429_v29 = vmov 1934713408  }
 0x531   : > { %16870 = vst [vmem:[#allocation45_spill] sm:$0xff] %v16053_v35  ;;  %v10086_v20 = vadd.f32 %v16008_v9, %v10050_v50 }
 0x533   : > { %v10150_v54 = vmul.f32 0.01, %v10086_v20  ;;  %vm10118_vm10 = vcmp.ge.f32.partialorder %v10086_v20, 0.0 }
 0x534   : > { %v9326_v48 = vpop.f32.mrf.mxu1 }
 0x535   : > { %v9397_v59 = vadd.f32 %v9326_v48, %v9143_v52  ;;  %v9144_v48 = vadd.f32 %v15944_v44, %v16876_v38  ;;  %v12133_v44 = vrot.slane %v10245_v14, 9  ;;  %v16107_v43 = vpop.f32.mrf.mxu2 }
 0x537   : > { %v10051_v60 = vadd.f32 %v15992_v37, %v9397_v59  ;;  %12105 = vmatmul.msk.bf16.gmra.mxu1 %vm5746_vm4, %v12303_v36  ;;  %v16879_v59 = vld [vmem:[#allocation65_spill] sm:$0xff] }
 0x538   : > { %v8496_v31 = vpop.f32.mrf.mxu3  ;;  %v7870_v36 = vadd.f32 %v16879_v59, %v16878_v13 }
 0x539   : > { %v10087_v42 = vadd.f32 %v16008_v9, %v10051_v60  ;;  %v16075_v37 = vadd.f32 %v8496_v31, %v7885_v58  ;;  %v10675_v60 = vsel %vm10666_vm11, %v10672_v63, %v10674_v6  ;;  %v10181_v58 = vsel %vm10117_vm8, %v10085_v61, %v10149_v51  ;;  %v16100_v51 = vpop.f32.mrf.mxu0 }
 0x53a   : > { %v16090_v27 = vadd.f32 %v16880_v30, %v7870_v36  ;;  %v16096_v38 = vsel %vm10668_vm7, %v10672_v63, %v10675_v60  ;;  %v10533_v6 = vmax.f32 %v16038_v0, %v12131_v26  ;;  %v16105_v0 = vrot.slane %v10534_v5, 7 }
 0x53b   : > { %16875 = vst [vmem:[#allocation18_spill] sm:$0xff] %v16075_v37  ;;  %vm10119_vm9 = vcmp.ge.f32.partialorder %v10087_v42, 0.0  ;;  %v10151_v52 = vmul.f32 0.01, %v10087_v42  ;;  %v10535_v60 = vmax.f32 %v10245_v14, %v12133_v44  ;;  %v9145_v14 = vadd.f32 %v16000_v17, %v8522_v11  ;;  %v16882_v44 = vld [vmem:[#allocation7_spill] sm:$0xff] }
 0x53c   : > { %v9328_v23 = vpop.f32.mrf.mxu1  ;;  %v10680_v35 = vsel %vm10662_vm5, %v16105_v0, %v10533_v6 }
 0x53d   : > { %v10183_v2 = vsel %vm10119_vm9, %v10087_v42, %v10151_v52  ;;  %v9398_v31 = vadd.f32 %v9328_v23, %v9144_v48  ;;  %v10536_v48 = vmax.f32 %v10246_v19, %v12134_v21 }
 0x53e   : > { %v10211_v40 = vmax.f32 %v10181_v58, %v10183_v2  ;;  %v10182_v2 = vsel %vm10118_vm10, %v10086_v20, %v10150_v54 }
 0x53f   : > { %v10052_v61 = vadd.f32 %v16010_v3, %v9398_v31  ;;  %v10923_v3 = vunpack.c.l.s4 %v12429_v29  ;;  %v16109_v21 = vrot.slane %v10536_v48, 7 }
 0x540   : > { %v10247_v50 = vrot.slane %v10211_v40, 2  ;;  %v10248_v42 = vrot.slane %v10211_v40, 4  ;;  %v10249_v52 = vrot.slane %v10211_v40, 6  ;;  %v16102_v30 = vpop.f32.mrf.mxu3  ;;  %v12135_v10 = vrot.slane %v10211_v40, 9 }
 0x541   : > { %16881 = vst [vmem:[#allocation56_spill] sm:$0xff] %v16102_v30  ;;  %v10088_v13 = vadd.f32 %v16008_v9, %v10052_v61  ;;  %v16114_v49 = vunpack.c.0.s8 %v10923_v3  ;;  %v16126_v17 = vpop.f32.mrf.mxu0 }
 0x542   : > { %v12136_v63 = vrot.slane %v10247_v50, 9  ;;  %v12137_v59 = vrot.slane %v10248_v42, 9  ;;  %v12138_v36 = vrot.slane %v10249_v52, 9  ;;  %v10537_v31 = vmax.f32 %v10211_v40, %v12135_v10  ;;  %v16883_v10 = vld [vmem:[#allocation34_spill] sm:$0xff] }
 0x543   : > { %vm10120_vm13 = vcmp.ge.f32.partialorder %v10088_v13, 0.0  ;;  %v10152_v26 = vmul.f32 0.01, %v10088_v13 }
 0x544   : > { %v10538_v23 = vmax.f32 %v10247_v50, %v12136_v63  ;;  %v10540_v58 = vmax.f32 %v10249_v52, %v12138_v36  ;;  %v9331_v19 = vpop.f32.mrf.mxu1  ;;  %v10539_v5 = vmax.f32 %v10248_v42, %v12137_v59  ;;  %v7887_v50 = vadd.f32 %v16882_v44, %v15954_v47 }
 0x545   : > { %v10184_v61 = vsel %vm10120_vm13, %v10088_v13, %v10152_v26  ;;  %v9146_v13 = vadd.f32 %v16019_v62, %v16883_v10  ;;  %v9399_v44 = vadd.f32 %v9331_v19, %v9145_v14 }
 0x546   : > { %v10693_v37 = vrot.slane %v10538_v23, 7  ;;  %v10700_v30 = vrot.slane %v10540_v58, 7  ;;  %v10212_v29 = vmax.f32 %v10182_v2, %v10184_v61  ;;  %v10687_v58 = vsel %vm10662_vm5, %v16109_v21, %v10535_v60 }
 0x547   : > { %12106 = vmatmul.msk.bf16.gmra.mxu1 %vm5746_vm4, %v12304_v4 }
 0x548   : > { %v10694_v20 = vsel %vm10662_vm5, %v10693_v37, %v10537_v31  ;;  %v10701_v40 = vsel %vm10662_vm5, %v10700_v30, %v10539_v5  ;;  %v10250_v42 = vrot.slane %v10212_v29, 2  ;;  %v10251_v52 = vrot.slane %v10212_v29, 4  ;;  %v8501_v59 = vpop.f32.mrf.mxu3 }
 0x549   : > { %v10695_v48 = vsel %vm10664_vm3, %v10693_v37, %v10694_v20  ;;  %v10702_v54 = vsel %vm10664_vm3, %v10700_v30, %v10701_v40  ;;  %v10252_v6 = vrot.slane %v10212_v29, 6  ;;  %v12139_v11 = vrot.slane %v10212_v29, 9 }
 0x54a   : > { %v10696_v4 = vsel %vm10666_vm11, %v10693_v37, %v10695_v48  ;;  %v10703_v47 = vsel %vm10666_vm11, %v10700_v30, %v10702_v54  ;;  %v12140_v63 = vrot.slane %v10250_v42, 9  ;;  %v12141_v26 = vrot.slane %v10251_v52, 9  ;;  %v16136_v48 = vpop.f32.mrf.mxu2 }
 0x54b   : > { %v10697_v36 = vsel %vm10668_vm7, %v10693_v37, %v10696_v4  ;;  %v10704_v3 = vsel %vm10668_vm7, %v10700_v30, %v10703_v47  ;;  %v12142_v23 = vrot.slane %v10252_v6, 9  ;;  %v16134_v20 = vadd.f32 %v8501_v59, %v7887_v50  ;;  %v16166_v59 = vpop.f32.mrf.mxu0 }
 0x54c   : > { %v10919_v2 = vrot.slane %v10697_v36, 4  ;;  %v10952_v62 = vrot.slane %v10704_v3, 4  ;;  %v10542_v31 = vmax.f32 %v10250_v42, %v12140_v63  ;;  %v9333_v61 = vpop.f32.mrf.mxu1  ;;  %v10541_v54 = vmax.f32 %v10212_v29, %v12139_v11 }
 0x54d   : > { %v10544_v5 = vmax.f32 %v10252_v6, %v12142_v23  ;;  %v9400_v40 = vadd.f32 %v9333_v61, %v9146_v13  ;;  %v10681_v42 = vsel %vm10664_vm3, %v16105_v0, %v10680_v35  ;;  %v10543_v19 = vmax.f32 %v10251_v52, %v12141_v26  ;;  %v5293_v26 = vld [vmem:[#allocation3 + $0x164] sm:$0x1]  ;;  %v9468_v61 = vld [vmem:[#allocation3 + $0x15c] sm:$0xf] }
 0x54e   : > { %v10921_v37 = vsel %vm10920_vm15, %v10919_v2, %v16093_v32  ;;  %v16142_v30 = vsel %vm10920_vm15, %v10952_v62, %v16096_v38  ;;  %v10707_v60 = vrot.slane %v10542_v31, 7  ;;  %v10688_v50 = vsel %vm10664_vm3, %v16109_v21, %v10687_v58  ;;  %v12305_v31 = vld [vmem:[#allocation3 + $0x134] sm:$0xff] }
 0x54f   : > { %v16147_v6 = vperm.slane %v10921_v37, %v16114_v49  ;;  %v10714_v14 = vrot.slane %v10544_v5, 7  ;;  %v10053_v29 = vadd.f32 %v16027_v16, %v9399_v44  ;;  %v10682_v35 = vsel %vm10666_vm11, %v16105_v0, %v10681_v42  ;;  %v9469_v5 = vld [vmem:[#allocation3 + $0x160] sm:$0xf] }
 0x550   : > { %v10708_v10 = vsel %vm10662_vm5, %v10707_v60, %v10541_v54  ;;  %v10689_v4 = vsel %vm10666_vm11, %v16109_v21, %v10688_v50  ;;  %v9147_v63 = vadd.f32 %v16034_v18, %v16090_v27  ;;  %v10683_v23 = vsel %vm10668_vm7, %v16105_v0, %v10682_v35  ;;  %v16886_v0 = vld [vmem:[#allocation35_spill] sm:$0xff] }
 0x551   : > { %11052 = vst [vmem:[#allocation1] ss:$4 sm:$0xff] %v16147_v6  ;;  %v10709_v32 = vsel %vm10664_vm3, %v10707_v60, %v10708_v10  ;;  %v10715_v38 = vsel %vm10662_vm5, %v10714_v14, %v10543_v19  ;;  %v10089_v2 = vadd.f32 %v16008_v9, %v10053_v29  ;;  %v10690_v27 = vsel %vm10668_vm7, %v16109_v21, %v10689_v4 }
 0x552   : > { %v10710_v13 = vsel %vm10666_vm11, %v10707_v60, %v10709_v32  ;;  %v10716_v52 = vsel %vm10664_vm3, %v10714_v14, %v10715_v38  ;;  %v5294_v54 = vsel %vm13882_vm6, 0, %v5293_v26  ;;  %v9832_v42 = vshrl.u32 %v9468_v61, 16 }
 0x553   : > { %v10711_v47 = vsel %vm10668_vm7, %v10707_v60, %v10710_v13  ;;  %v10717_v11 = vsel %vm10666_vm11, %v10714_v14, %v10716_v52  ;;  %v16184_v60 = vpop.f32.mrf.mxu2  ;;  %5295 = vst [vmem:[#allocation3 + $0x164] sm:$0x1] %v5294_v54  ;;  %v9835_v19 = vshll.u32 %v9468_v61, 16  ;;  %v10153_v21 = vmul.f32 0.01, %v10089_v2 }
 0x554   : > { %v10718_v16 = vsel %vm10668_vm7, %v10714_v14, %v10717_v11  ;;  %v10984_v36 = vrot.slane %v10711_v47, 4  ;;  %v9336_v3 = vpop.f32.mrf.mxu1  ;;  %v9841_v14 = vshll.u32 %v9469_v5, 16  ;;  %v10054_v50 = vadd.f32 %v16036_v25, %v9400_v40  ;;  %v16191_v25 = vpop.f32.mrf.mxu0 }
 0x555   : > { %v11016_v58 = vrot.slane %v10718_v16, 4  ;;  %v9401_v62 = vadd.f32 %v9336_v3, %v9147_v63  ;;  %v9845_v32 = vshrl.u32 %v9469_v5, 16  ;;  %vm10121_vm2 = vcmp.ge.f32.partialorder %v10089_v2, 0.0 }
 0x556   : > { %v16175_v18 = vsel %vm10920_vm15, %v10984_v36, %v10683_v23  ;;  %v9834_v38 = vrot.slane %v9832_v42, 4  ;;  %v9843_v29 = vrot.slane %v9841_v14, 5  ;;  %v9148_v13 = vadd.f32 %v16047_v33, %v15911_v57 }
 0x557   : > { %v16178_v44 = vsel %vm10920_vm15, %v11016_v58, %v10690_v27  ;;  %v10055_v37 = vadd.f32 %v16051_v15, %v9401_v62  ;;  %12107 = vmatmul.msk.bf16.gmra.mxu1 %vm5746_vm4, %v12305_v31  ;;  %v9837_v15 = vrot.slane %v9835_v19, 5  ;;  %v9847_v52 = vrot.slane %v9845_v32, 4 }
 0x558   : > { %v10185_v47 = vsel %vm10121_vm2, %v10089_v2, %v10153_v21  ;;  %v10090_v11 = vadd.f32 %v16008_v9, %v10054_v50 }
 0x559   : > { %v10091_v10 = vadd.f32 %v16008_v9, %v10055_v37  ;;  %v9838_v36 = vor.u32 %v9837_v15, %v9834_v38  ;;  %v9848_v3 = vor.u32 %v9847_v52, %v9843_v29  ;;  %v16885_v37 = vld [vmem:[#allocation53_spill] sm:$0xff] }
 0x55a   : > { %v9470_v23 = vld [vmem:[#allocation3 + $0x164] sm:$0x1]  ;;  %v10154_v58 = vmul.f32 0.01, %v10090_v11  ;;  %vm10122_vm6 = vcmp.ge.f32.partialorder %v10090_v11, 0.0  ;;  %v7872_v54 = vadd.f32 %v16886_v0, %v16885_v37 }
 0x55b   : > { %vm10123_vm12 = vcmp.ge.f32.partialorder %v10091_v10, 0.0  ;;  %v10155_v35 = vmul.f32 0.01, %v10091_v10  ;;  %v9851_v31 = vshll.u32 %v9470_v23, 16  ;;  %v16195_v57 = vpop.f32.mrf.mxu2  ;;  %v9839_v33 = vrot.slane %v9838_v36, 4 }
 0x55c   : > { %v9338_v4 = vpop.f32.mrf.mxu1  ;;  %v9849_v2 = vrot.slane %v9848_v3, 4  ;;  %v10186_v42 = vsel %vm10122_vm6, %v10090_v11, %v10154_v58  ;;  %v16207_v32 = vpop.f32.mrf.mxu0 }
 0x55d   : > { %v10187_v63 = vsel %vm10123_vm12, %v10091_v10, %v10155_v35  ;;  %v9402_v16 = vadd.f32 %v9338_v4, %v9148_v13  ;;  %v9853_v5 = vrot.slane %v9851_v31, 5  ;;  %v9844_v21 = vsel %vm12616_vm14, %v9839_v33, %v9843_v29  ;;  %v16888_v29 = vld [vmem:[#allocation46_spill] sm:$0xff] }
 0x55e   : > { %v10213_v40 = vmax.f32 %v10185_v47, %v10187_v63  ;;  %v8526_v10 = vadd.f32 %v15924_v34, %v7872_v54  ;;  %v9887_v35 = vunpack.c.l.b16 %v9844_v21  ;;  %v9150_v4 = vadd.f32 %v16100_v51, %v15950_v1  ;;  %v16887_v47 = vld [vmem:[#allocation57_spill] sm:$0xff] }
 0x55f   : > { %v10056_v26 = vadd.f32 %v16077_v41, %v9402_v16  ;;  %v12306_v41 = vld [vmem:[#allocation3 + $0x148] sm:$0xff]  ;;  %v9854_v50 = vsel %vm12616_vm14, %v9849_v2, %v9853_v5  ;;  %v7874_v11 = vadd.f32 %v16888_v29, %v16887_v47  ;;  %v16891_v47 = vld [vmem:[#allocation58_spill] sm:$0xff]  ;;  %v16892_v29 = vld [vmem:[#allocation19_spill] sm:$0xff] }
 0x560   : > { %v10253_v38 = vrot.slane %v10213_v40, 2  ;;  %v10255_v15 = vrot.slane %v10213_v40, 6  ;;  %v9888_v13 = vunpack.c.l.b16 %v9854_v50  ;;  %v9149_v52 = vadd.f32 %v16061_v39, %v8526_v10 }
 0x561   : > { %v10092_v62 = vadd.f32 %v16008_v9, %v10056_v26  ;;  %v8528_v23 = vadd.f32 %v15957_v24, %v7874_v11  ;;  %v10254_v58 = vrot.slane %v10213_v40, 4  ;;  %v12143_v31 = vrot.slane %v10213_v40, 9 }
 0x562   : > { %v12144_v63 = vrot.slane %v10253_v38, 9  ;;  %v12146_v16 = vrot.slane %v10255_v15, 9  ;;  %v9904_v3 = vpack.c.b16 %v9888_v13, %v9887_v35 }
 0x563   : > { %vm10124_vm1 = vcmp.ge.f32.partialorder %v10092_v62, 0.0  ;;  %v10156_v61 = vmul.f32 0.01, %v10092_v62  ;;  %v16214_v55 = vpop.f32.mrf.mxu2  ;;  %v12145_v33 = vrot.slane %v10254_v58, 9  ;;  %v9151_v2 = vadd.f32 %v16126_v17, %v8528_v23 }
 0x564   : > { %v9341_v27 = vpop.f32.mrf.mxu1  ;;  %12126 = vmatmul.msk.bf16.gmra.mxu2 %vm5746_vm4, %v9904_v3  ;;  %v10546_v39 = vmax.f32 %v10253_v38, %v12144_v63  ;;  %v16219_v51 = vpop.f32.mrf.mxu0  ;;  %v16889_v38 = vld [vmem:[#allocation29_spill] sm:$0xff] }
 0x565   : > { %v10188_v19 = vsel %vm10124_vm1, %v10092_v62, %v10156_v61  ;;  %v9403_v36 = vadd.f32 %v9341_v27, %v9149_v52  ;;  %v10548_v62 = vmax.f32 %v10255_v15, %v12146_v16  ;;  %v12307_v61 = vld [vmem:[#allocation3 + $0x15c] sm:$0xff]  ;;  %v9152_v52 = vadd.f32 %v16166_v59, %v15966_v8 }
 0x566   : > { %v16199_v14 = vmax.f32 %v10186_v42, %v10188_v19  ;;  %v10721_v5 = vrot.slane %v10546_v39, 7  ;;  %v10545_v42 = vmax.f32 %v10213_v40, %v12143_v31  ;;  %v10547_v19 = vmax.f32 %v10254_v58, %v12145_v33  ;;  %v16890_v15 = vld [vmem:[#allocation11_spill] sm:$0xff] }
 0x567   : > { %12108 = vmatmul.msk.bf16.gmra.mxu1 %vm5746_vm4, %v12306_v41  ;;  %v10057_v1 = vadd.f32 %v16107_v43, %v9403_v36  ;;  %v10728_v37 = vrot.slane %v10548_v62, 7  ;;  %v7876_v35 = vadd.f32 %v16890_v15, %v16889_v38 }
 0x568   : > { %v10722_v43 = vsel %vm10662_vm5, %v10721_v5, %v10545_v42  ;;  %v10256_v13 = vrot.slane %v16199_v14, 2  ;;  %v10258_v40 = vrot.slane %v16199_v14, 6  ;;  %v12147_v59 = vrot.slane %v16199_v14, 9 }
 0x569   : > { %v10093_v0 = vadd.f32 %v16008_v9, %v10057_v1  ;;  %v10729_v21 = vsel %vm10662_vm5, %v10728_v37, %v10547_v19  ;;  %v10723_v11 = vsel %vm10664_vm3, %v10721_v5, %v10722_v43  ;;  %v8530_v58 = vadd.f32 %v15972_v53, %v7876_v35 }
 0x56a   : > { %v10730_v63 = vsel %vm10664_vm3, %v10728_v37, %v10729_v21  ;;  %v10724_v62 = vsel %vm10666_vm11, %v10721_v5, %v10723_v11  ;;  %v12148_v1 = vrot.slane %v10256_v13, 9  ;;  %v12150_v31 = vrot.slane %v10258_v40, 9 }
 0x56b   : > { %v16223_v54 = vpop.f32.mrf.mxu2  ;;  %v10157_v17 = vmul.f32 0.01, %v10093_v0  ;;  %vm10125_vm14 = vcmp.ge.f32.partialorder %v10093_v0, 0.0 }
 0x56c   : > { %v9343_v34 = vpop.f32.mrf.mxu1 }
 0x56d   : > { %v9404_v26 = vadd.f32 %v9343_v34, %v9150_v4  ;;  %v16237_v4 = vpop.f32.mrf.mxu0  ;;  %v10257_v34 = vrot.slane %v16199_v14, 4  ;;  %v10189_v36 = vsel %vm10125_vm14, %v10093_v0, %v10157_v17  ;;  %v10550_v17 = vmax.f32 %v10256_v13, %v12148_v1 }
 0x56f   : > { %v10058_v50 = vadd.f32 %v16136_v48, %v9404_v26  ;;  %v7878_v48 = vadd.f32 %v16892_v29, %v16891_v47  ;;  %v12149_v53 = vrot.slane %v10257_v34, 9 }
 0x571   : > { %v10094_v3 = vadd.f32 %v16008_v9, %v10058_v50  ;;  %v16247_v8 = vadd.f32 %v15987_v22, %v7878_v48  ;;  %v10552_v50 = vmax.f32 %v10258_v40, %v12150_v31  ;;  %v9154_v31 = vadd.f32 %v16207_v32, %v15981_v45 }
 0x573   : > { %v10158_v42 = vmul.f32 0.01, %v10094_v3  ;;  %vm10126_vm8 = vcmp.ge.f32.partialorder %v10094_v3, 0.0 }
 0x574   : > { %v9346_v27 = vpop.f32.mrf.mxu1 }
 0x575   : > { %v9405_v24 = vadd.f32 %v9346_v27, %v9151_v2  ;;  %v16252_v2 = vpop.f32.mrf.mxu2  ;;  %v10190_v47 = vsel %vm10126_vm8, %v10094_v3, %v10158_v42  ;;  %v16259_v11 = vpop.f32.mrf.mxu0 }
 0x577   : > { %v10059_v41 = vadd.f32 %v16184_v60, %v9405_v24  ;;  %12109 = vmatmul.msk.bf16.gmra.mxu1 %vm5746_vm4, %v12307_v61  ;;  %v10731_v61 = vsel %vm10666_vm11, %v10728_v37, %v10730_v63 }
 0x578   : > { %v10732_v38 = vsel %vm10668_vm7, %v10728_v37, %v10731_v61 }
 0x579   : > { %v10095_v10 = vadd.f32 %v16008_v9, %v10059_v41 }
 0x57b   : > { %vm10127_vm0 = vcmp.ge.f32.partialorder %v10095_v10, 0.0  ;;  %v10159_v60 = vmul.f32 0.01, %v10095_v10 }
 0x57c   : > { %v9348_v16 = vpop.f32.mrf.mxu1 }
 0x57d   : > { %v10191_v26 = vsel %vm10127_vm0, %v10095_v10, %v10159_v60  ;;  %v9406_v23 = vadd.f32 %v9348_v16, %v9152_v52  ;;  %v10725_v10 = vsel %vm10668_vm7, %v10721_v5, %v10724_v62  ;;  %v10549_v52 = vmax.f32 %v16199_v14, %v12147_v59 }
 0x57e   : > { %v10215_v39 = vmax.f32 %v10189_v36, %v10191_v26  ;;  %v10551_v36 = vmax.f32 %v10257_v34, %v12149_v53  ;;  %v10735_v26 = vrot.slane %v10550_v17, 7  ;;  %v9153_v5 = vadd.f32 %v16191_v25, %v8530_v58 }
 0x57f   : > { %v10060_v33 = vadd.f32 %v16195_v57, %v9406_v23  ;;  %v10742_v23 = vrot.slane %v10552_v50, 7 }
 0x580   : > { %v10259_v27 = vrot.slane %v10215_v39, 2  ;;  %v10260_v0 = vrot.slane %v10215_v39, 4  ;;  %v10261_v24 = vrot.slane %v10215_v39, 6  ;;  %v12151_v22 = vrot.slane %v10215_v39, 9 }
 0x581   : > { %v10096_v19 = vadd.f32 %v16008_v9, %v10060_v33  ;;  %v16268_v33 = vpop.f32.mrf.mxu2  ;;  %v10736_v42 = vsel %vm10662_vm5, %v10735_v26, %v10549_v52  ;;  %v10743_v32 = vsel %vm10662_vm5, %v10742_v23, %v10551_v36 }
 0x582   : > { %v12152_v41 = vrot.slane %v10259_v27, 9  ;;  %v12153_v43 = vrot.slane %v10260_v0, 9  ;;  %v12154_v21 = vrot.slane %v10261_v24, 9  ;;  %v10553_v29 = vmax.f32 %v10215_v39, %v12151_v22 }
 0x583   : > { %vm10128_vm9 = vcmp.ge.f32.partialorder %v10096_v19, 0.0  ;;  %v10160_v57 = vmul.f32 0.01, %v10096_v19 }
 0x584   : > { %v10554_v15 = vmax.f32 %v10259_v27, %v12152_v41  ;;  %v10556_v35 = vmax.f32 %v10261_v24, %v12154_v21  ;;  %v9351_v60 = vpop.f32.mrf.mxu1  ;;  %v10555_v63 = vmax.f32 %v10260_v0, %v12153_v43 }
 0x585   : > { %v10192_v48 = vsel %vm10128_vm9, %v10096_v19, %v10160_v57  ;;  %v9407_v21 = vadd.f32 %v9351_v60, %v9153_v5 }
 0x586   : > { %v10749_v16 = vrot.slane %v10554_v15, 7  ;;  %v10756_v13 = vrot.slane %v10556_v35, 7  ;;  %v10216_v40 = vmax.f32 %v10190_v47, %v10192_v48  ;;  %v10737_v47 = vsel %vm10664_vm3, %v10735_v26, %v10736_v42 }
 0x588   : > { %v10750_v37 = vsel %vm10662_vm5, %v10749_v16, %v10553_v29  ;;  %v10757_v62 = vsel %vm10662_vm5, %v10756_v13, %v10555_v63  ;;  %v10262_v1 = vrot.slane %v10216_v40, 2  ;;  %v10263_v14 = vrot.slane %v10216_v40, 4  ;;  %v9109_v63 = vpop.f32.mrf.mxu0 }
 0x589   : > { %v10751_v3 = vsel %vm10664_vm3, %v10749_v16, %v10750_v37  ;;  %v10758_v59 = vsel %vm10664_vm3, %v10756_v13, %v10757_v62  ;;  %v10264_v39 = vrot.slane %v10216_v40, 6  ;;  %v12155_v58 = vrot.slane %v10216_v40, 9 }
 0x58a   : > { %v10752_v34 = vsel %vm10666_vm11, %v10749_v16, %v10751_v3  ;;  %v10759_v25 = vsel %vm10666_vm11, %v10756_v13, %v10758_v59  ;;  %v12156_v61 = vrot.slane %v10262_v1, 9  ;;  %v12157_v24 = vrot.slane %v10263_v14, 9  ;;  %v10015_v3 = vpop.f32.mrf.mxu2 }
 0x58b   : > { %v10753_v27 = vsel %vm10668_vm7, %v10749_v16, %v10752_v34  ;;  %v10760_v0 = vsel %vm10668_vm7, %v10756_v13, %v10759_v25  ;;  %v12158_v53 = vrot.slane %v10264_v39, 9  ;;  %v10557_v15 = vmax.f32 %v10216_v40, %v12155_v58 }
 0x58c   : > { %v10928_v22 = vrot.slane %v10753_v27, 4  ;;  %v10960_v19 = vrot.slane %v10760_v0, 4  ;;  %v10558_v41 = vmax.f32 %v10262_v1, %v12156_v61  ;;  %v9353_v45 = vpop.f32.mrf.mxu1  ;;  %v10559_v29 = vmax.f32 %v10263_v14, %v12157_v24 }
 0x58d   : > { %v10560_v43 = vmax.f32 %v10264_v39, %v12158_v53  ;;  %v9408_v17 = vadd.f32 %v9353_v45, %v9154_v31  ;;  %v10744_v16 = vsel %vm10664_vm3, %v10742_v23, %v10743_v32  ;;  %v10061_v13 = vadd.f32 %v16214_v55, %v9407_v21 }
 0x58e   : > { %v10929_v50 = vsel %vm10920_vm15, %v10928_v22, %v10725_v10  ;;  %v16278_v57 = vsel %vm10920_vm15, %v10960_v19, %v10732_v38  ;;  %v10763_v35 = vrot.slane %v10558_v41, 7  ;;  %v10738_v40 = vsel %vm10666_vm11, %v10735_v26, %v10737_v47  ;;  %v16893_v47 = vld [vmem:[#allocation66_spill] sm:$0xff] }
 0x58f   : > { %v16282_v52 = vperm.slane %v10929_v50, %v16114_v49  ;;  %v10770_v48 = vrot.slane %v10560_v43, 7  ;;  %v10745_v37 = vsel %vm10666_vm11, %v10742_v23, %v10744_v16  ;;  %v9155_v14 = vadd.f32 %v16219_v51, %v16247_v8 }
 0x590   : > { %v10764_v60 = vsel %vm10662_vm5, %v10763_v35, %v10557_v15  ;;  %v10739_v31 = vsel %vm10668_vm7, %v10735_v26, %v10738_v40  ;;  %v10097_v25 = vadd.f32 %v16008_v9, %v10061_v13  ;;  %v10746_v61 = vsel %vm10668_vm7, %v10742_v23, %v10745_v37  ;;  %v9112_v26 = vpop.f32.mrf.mxu0  ;;  %v16895_v37 = vld [vmem:[#allocation69_spill] sm:$0xff] }
 0x591   : > { %11054 = vst [vmem:[#allocation1 + $0x1] ss:$4 sm:$0xff] %v16282_v52  ;;  %v10765_v10 = vsel %vm10664_vm3, %v10763_v35, %v10764_v60  ;;  %v10771_v38 = vsel %vm10662_vm5, %v10770_v48, %v10559_v29  ;;  %v10062_v24 = vadd.f32 %v16223_v54, %v9408_v17  ;;  %v9156_v23 = vadd.f32 %v16237_v4, %v15994_v28  ;;  %v16894_v28 = vld [vmem:[#allocation37_spill] sm:$0xff] }
 0x592   : > { %v10766_v36 = vsel %vm10666_vm11, %v10763_v35, %v10765_v10  ;;  %v10772_v5 = vsel %vm10664_vm3, %v10770_v48, %v10771_v38  ;;  %v10161_v8 = vmul.f32 0.01, %v10097_v25  ;;  %vm10129_vm10 = vcmp.ge.f32.partialorder %v10097_v25, 0.0  ;;  %v10017_v43 = vpop.f32.mrf.mxu2 }
 0x593   : > { %v10767_v62 = vsel %vm10668_vm7, %v10763_v35, %v10766_v36  ;;  %v10773_v1 = vsel %vm10666_vm11, %v10770_v48, %v10772_v5  ;;  %v10098_v41 = vadd.f32 %v16008_v9, %v10062_v24  ;;  %v7880_v4 = vadd.f32 %v16894_v28, %v16893_v47 }
 0x594   : > { %v10774_v59 = vsel %vm10668_vm7, %v10770_v48, %v10773_v1  ;;  %v10992_v39 = vrot.slane %v10767_v62, 4  ;;  %v9356_v55 = vpop.f32.mrf.mxu1  ;;  %v10193_v19 = vsel %vm10129_vm10, %v10097_v25, %v10161_v8  ;;  %v9158_v40 = vadd.f32 %v9109_v63, %v16023_v12  ;;  %v16896_v62 = vld [vmem:[#allocation23_spill] sm:$0xff] }
 0x595   : > { %v11024_v34 = vrot.slane %v10774_v59, 4  ;;  %v9409_v58 = vadd.f32 %v9356_v55, %v9155_v14  ;;  %v10162_v54 = vmul.f32 0.01, %v10098_v41  ;;  %vm10130_vm2 = vcmp.ge.f32.partialorder %v10098_v41, 0.0 }
 0x596   : > { %v16303_v27 = vsel %vm10920_vm15, %v10992_v39, %v10739_v31  ;;  %v8534_v60 = vadd.f32 %v16002_v46, %v7880_v4  ;;  %v7882_v1 = vadd.f32 %v16896_v62, %v16895_v37  ;;  %v16901_v37 = vld [vmem:[#allocation45_spill] sm:$0xff] }
 0x597   : > { %v16306_v0 = vsel %vm10920_vm15, %v11024_v34, %v10746_v61  ;;  %v10063_v51 = vadd.f32 %v16252_v2, %v9409_v58  ;;  %v10194_v29 = vsel %vm10130_vm2, %v10098_v41, %v10162_v54  ;;  %v16897_v54 = vld [vmem:[#allocation20_spill] sm:$0xff] }
 0x598   : > { %v9114_v15 = vpop.f32.mrf.mxu0  ;;  %v9157_v13 = vadd.f32 %v16259_v11, %v8534_v60  ;;  %v8536_v31 = vadd.f32 %v16031_v56, %v7882_v1 }
 0x599   : > { %v10099_v53 = vadd.f32 %v16008_v9, %v10063_v51  ;;  %v9160_v28 = vadd.f32 %v9114_v15, %v16049_v7  ;;  %v16902_v7 = vld [vmem:[#allocation56_spill] sm:$0xff] }
 0x59a   : > { %v10020_v10 = vpop.f32.mrf.mxu2  ;;  %v9159_v12 = vadd.f32 %v9112_v26, %v8536_v31 }
 0x59b   : > { %vm10131_vm13 = vcmp.ge.f32.partialorder %v10099_v53, 0.0  ;;  %v10163_v42 = vmul.f32 0.01, %v10099_v53 }
 0x59c   : > { %v9358_v22 = vpop.f32.mrf.mxu1 }
 0x59d   : > { %v10195_v45 = vsel %vm10131_vm13, %v10099_v53, %v10163_v42  ;;  %v9410_v32 = vadd.f32 %v9358_v22, %v9156_v23 }
 0x59e   : > { %v10217_v2 = vmax.f32 %v10193_v19, %v10195_v45 }
 0x59f   : > { %v10064_v21 = vadd.f32 %v16268_v33, %v9410_v32 }
 0x5a0   : > { %v10265_v38 = vrot.slane %v10217_v2, 2  ;;  %v10267_v33 = vrot.slane %v10217_v2, 6  ;;  %v16325_v55 = vpop.f32.mrf.mxu0  ;;  %v10266_v46 = vrot.slane %v10217_v2, 4  ;;  %v12159_v11 = vrot.slane %v10217_v2, 9 }
 0x5a1   : > { %v10100_v17 = vadd.f32 %v16008_v9, %v10064_v21 }
 0x5a2   : > { %v12160_v36 = vrot.slane %v10265_v38, 9  ;;  %v12162_v14 = vrot.slane %v10267_v33, 9  ;;  %v10022_v61 = vpop.f32.mrf.mxu2  ;;  %v12161_v51 = vrot.slane %v10266_v46, 9  ;;  %v10561_v23 = vmax.f32 %v10217_v2, %v12159_v11 }
 0x5a3   : > { %vm10132_vm12 = vcmp.ge.f32.partialorder %v10100_v17, 0.0  ;;  %v10164_v50 = vmul.f32 0.01, %v10100_v17 }
 0x5a4   : > { %v9361_v35 = vpop.f32.mrf.mxu1  ;;  %v10562_v34 = vmax.f32 %v10265_v38, %v12160_v36  ;;  %v10564_v25 = vmax.f32 %v10267_v33, %v12162_v14  ;;  %v10563_v22 = vmax.f32 %v10266_v46, %v12161_v51 }
 0x5a5   : > { %v10196_v48 = vsel %vm10132_vm12, %v10100_v17, %v10164_v50  ;;  %v9411_v59 = vadd.f32 %v9361_v35, %v9157_v13  ;;  %v16898_v17 = vld [vmem:[#allocation39_spill] sm:$0xff] }
 0x5a6   : > { %v16318_v16 = vmax.f32 %v10194_v29, %v10196_v48  ;;  %v10777_v63 = vrot.slane %v10562_v34, 7  ;;  %v10784_v24 = vrot.slane %v10564_v25, 7  ;;  %v7884_v50 = vadd.f32 %v16898_v17, %v16897_v54  ;;  %v16899_v29 = vld [vmem:[#allocation14_spill] sm:$0xff]  ;;  %v16900_v48 = vld [vmem:[#allocation47_spill] sm:$0xff] }
 0x5a7   : > { %v10065_v58 = vadd.f32 %v10015_v3, %v9411_v59  ;;  %v7886_v60 = vadd.f32 %v16900_v48, %v16899_v29 }
 0x5a8   : > { %v10268_v19 = vrot.slane %v16318_v16, 2  ;;  %v16330_v56 = vpop.f32.mrf.mxu0  ;;  %v10778_v45 = vsel %vm10662_vm5, %v10777_v63, %v10561_v23  ;;  %v10785_v3 = vsel %vm10662_vm5, %v10784_v24, %v10563_v22  ;;  %v10270_v35 = vrot.slane %v16318_v16, 6 }
 0x5a9   : > { %v10101_v53 = vadd.f32 %v16008_v9, %v10065_v58  ;;  %v10269_v38 = vrot.slane %v16318_v16, 4  ;;  %v8538_v62 = vadd.f32 %v16901_v37, %v7884_v50  ;;  %v16349_v15 = vadd.f32 %v16902_v7, %v7886_v60  ;;  %v16903_v7 = vld [vmem:[#allocation18_spill] sm:$0xff] }
 0x5aa   : > { %v12164_v2 = vrot.slane %v10268_v19, 9  ;;  %v16339_v4 = vpop.f32.mrf.mxu2  ;;  %v12163_v1 = vrot.slane %v16318_v16, 9 }
 0x5ab   : > { %v10165_v32 = vmul.f32 0.01, %v10101_v53  ;;  %vm10133_vm6 = vcmp.ge.f32.partialorder %v10101_v53, 0.0  ;;  %v12165_v11 = vrot.slane %v10269_v38, 9 }
 0x5ac   : > { %v9363_v5 = vpop.f32.mrf.mxu1  ;;  %v10566_v31 = vmax.f32 %v10268_v19, %v12164_v2  ;;  %v10565_v17 = vmax.f32 %v16318_v16, %v12163_v1 }
 0x5ad   : > { %v9412_v39 = vadd.f32 %v9363_v5, %v9158_v40  ;;  %v10197_v13 = vsel %vm10133_vm6, %v10101_v53, %v10165_v32 }
 0x5af   : > { %v10066_v21 = vadd.f32 %v10017_v43, %v9412_v39  ;;  %v10779_v43 = vsel %vm10664_vm3, %v10777_v63, %v10778_v45  ;;  %v12166_v39 = vrot.slane %v10270_v35, 9 }
 0x5b0   : > { %v10780_v59 = vsel %vm10666_vm11, %v10777_v63, %v10779_v43  ;;  %v10567_v43 = vmax.f32 %v10269_v38, %v12165_v11  ;;  %v9162_v38 = vadd.f32 %v16330_v56, %v16903_v7 }
 0x5b1   : > { %v10102_v40 = vadd.f32 %v16008_v9, %v10066_v21  ;;  %v10568_v19 = vmax.f32 %v10270_v35, %v12166_v39 }
 0x5b3   : > { %v10166_v51 = vmul.f32 0.01, %v10102_v40  ;;  %vm10134_vm14 = vcmp.ge.f32.partialorder %v10102_v40, 0.0 }
 0x5b4   : > { %v9366_v8 = vpop.f32.mrf.mxu1 }
 0x5b5   : > { %v9413_v42 = vadd.f32 %v9366_v8, %v9159_v12  ;;  %v16357_v8 = vld [vmem:[%s16572_s5] ss:$0 sm:$0xff]  ;;  %v10198_v50 = vsel %vm10134_vm14, %v10102_v40, %v10166_v51  ;;  %vm11177_vm14 = vcmask 457728  }
 0x5b7   : > { %v10067_v41 = vadd.f32 %v10020_v10, %v9413_v42  ;;  %v10786_v10 = vsel %vm10664_vm3, %v10784_v24, %v10785_v3  ;;  %v16360_v42 = vpop.f32.mrf.mxu0  ;;  %v10781_v3 = vsel %vm10668_vm7, %v10777_v63, %v10780_v59 }
 0x5b8   : > { %v10787_v34 = vsel %vm10666_vm11, %v10784_v24, %v10786_v10  ;;  %v10798_v10 = vrot.slane %v10568_v19, 7 }
 0x5b9   : > { %v10103_v26 = vadd.f32 %v16008_v9, %v10067_v41  ;;  %v16362_v41 = vrot.slane %v10566_v31, 7  ;;  %v10788_v32 = vsel %vm10668_vm7, %v10784_v24, %v10787_v34  ;;  %v9161_v24 = vadd.f32 %v16325_v55, %v8538_v62 }
 0x5bb   : > { %vm10135_vm1 = vcmp.ge.f32.partialorder %v10103_v26, 0.0  ;;  %v10167_v47 = vmul.f32 0.01, %v10103_v26  ;;  %v10792_v63 = vsel %vm10662_vm5, %v16362_v41, %v10565_v17 }
 0x5bc   : > { %v9368_v33 = vpop.f32.mrf.mxu1 }
 0x5bd   : > { %v10199_v36 = vsel %vm10135_vm1, %v10103_v26, %v10167_v47  ;;  %v9414_v5 = vadd.f32 %v9368_v33, %v9160_v28  ;;  %v16367_v28 = vpop.f32.mrf.mxu2 }
 0x5be   : > { %v10219_v14 = vmax.f32 %v10197_v13, %v10199_v36 }
 0x5bf   : > { %v10068_v46 = vadd.f32 %v10022_v61, %v9414_v5  ;;  %v9124_v34 = vpop.f32.mrf.mxu0 }
 0x5c0   : > { %v10271_v25 = vrot.slane %v10219_v14, 2  ;;  %v10272_v58 = vrot.slane %v10219_v14, 4  ;;  %v10273_v9 = vrot.slane %v10219_v14, 6  ;;  %v12167_v12 = vrot.slane %v10219_v14, 9 }
 0x5c1   : > { %v10104_v53 = vadd.f32 %v16357_v8, %v10068_v46 }
 0x5c2   : > { %v12168_v23 = vrot.slane %v10271_v25, 9  ;;  %v12169_v61 = vrot.slane %v10272_v58, 9  ;;  %v12170_v22 = vrot.slane %v10273_v9, 9  ;;  %v10569_v2 = vmax.f32 %v10219_v14, %v12167_v12 }
 0x5c3   : > { %vm10136_vm0 = vcmp.ge.f32.partialorder %v10104_v53, 0.0  ;;  %v10168_v45 = vmul.f32 0.01, %v10104_v53 }
 0x5c4   : > { %v10570_v21 = vmax.f32 %v10271_v25, %v12168_v23  ;;  %v10572_v26 = vmax.f32 %v10273_v9, %v12170_v22  ;;  %v9371_v54 = vpop.f32.mrf.mxu1  ;;  %v10571_v29 = vmax.f32 %v10272_v58, %v12169_v61  ;;  %v10799_v25 = vsel %vm10662_vm5, %v10798_v10, %v10567_v43 }
 0x5c5   : > { %v10200_v47 = vsel %vm10136_vm0, %v10104_v53, %v10168_v45  ;;  %v9415_v12 = vadd.f32 %v9371_v54, %v9161_v24  ;;  %v9164_v23 = vadd.f32 %v9124_v34, %v16134_v20  ;;  %v10800_v54 = vsel %vm10664_vm3, %v10798_v10, %v10799_v25 }
 0x5c6   : > { %v10805_v35 = vrot.slane %v10570_v21, 7  ;;  %v10812_v48 = vrot.slane %v10572_v26, 7  ;;  %v10220_v60 = vmax.f32 %v10198_v50, %v10200_v47  ;;  %v10793_v21 = vsel %vm10664_vm3, %v16362_v41, %v10792_v63 }
 0x5c7   : > { %v10069_v47 = vadd.f32 %v16339_v4, %v9415_v12  ;;  %v9163_v24 = vadd.f32 %v16360_v42, %v16349_v15  ;;  %v8504_v42 = vpop.f32.mrf.mxu3  ;;  %v9127_v34 = vpop.f32.mrf.mxu0 }
 0x5c8   : > { %v10806_v33 = vsel %vm10662_vm5, %v10805_v35, %v10569_v2  ;;  %v10813_v16 = vsel %vm10662_vm5, %v10812_v48, %v10571_v29  ;;  %v10274_v13 = vrot.slane %v10220_v60, 2  ;;  %v10275_v40 = vrot.slane %v10220_v60, 4  ;;  %v10030_v2 = vpop.f32.mrf.mxu2 }
 0x5c9   : > { %v10807_v36 = vsel %vm10664_vm3, %v10805_v35, %v10806_v33  ;;  %v10814_v5 = vsel %vm10664_vm3, %v10812_v48, %v10813_v16  ;;  %v10276_v37 = vrot.slane %v10220_v60, 6  ;;  %v12171_v59 = vrot.slane %v10220_v60, 9 }
 0x5ca   : > { %v10808_v1 = vsel %vm10666_vm11, %v10805_v35, %v10807_v36  ;;  %v10815_v14 = vsel %vm10666_vm11, %v10812_v48, %v10814_v5  ;;  %v12172_v55 = vrot.slane %v10274_v13, 9  ;;  %v12173_v31 = vrot.slane %v10275_v40, 9 }
 0x5cb   : > { %v10809_v62 = vsel %vm10668_vm7, %v10805_v35, %v10808_v1  ;;  %v10816_v39 = vsel %vm10668_vm7, %v10812_v48, %v10815_v14  ;;  %v12174_v46 = vrot.slane %v10276_v37, 9  ;;  %v10573_v19 = vmax.f32 %v10220_v60, %v12171_v59 }
 0x5cc   : > { %v10936_v58 = vrot.slane %v10809_v62, 4  ;;  %v10968_v9 = vrot.slane %v10816_v39, 4  ;;  %v10574_v11 = vmax.f32 %v10274_v13, %v12172_v55  ;;  %v9373_v51 = vpop.f32.mrf.mxu1  ;;  %v10575_v17 = vmax.f32 %v10275_v40, %v12173_v31 }
 0x5cd   : > { %v10576_v56 = vmax.f32 %v10276_v37, %v12174_v46  ;;  %v9416_v53 = vadd.f32 %v9373_v51, %v9162_v38  ;;  %v10794_v29 = vsel %vm10666_vm11, %v16362_v41, %v10793_v21  ;;  %v10801_v60 = vsel %vm10666_vm11, %v10798_v10, %v10800_v54 }
 0x5ce   : > { %v10937_v61 = vsel %vm10920_vm15, %v10936_v58, %v10781_v3  ;;  %v16386_v22 = vsel %vm10920_vm15, %v10968_v9, %v10788_v32  ;;  %v10819_v45 = vrot.slane %v10574_v11, 7  ;;  %v10795_v13 = vsel %vm10668_vm7, %v16362_v41, %v10794_v29 }
 0x5cf   : > { %v16391_v26 = vperm.slane %v10937_v61, %v16114_v49  ;;  %v10826_v50 = vrot.slane %v10576_v56, 7  ;;  %v10105_v36 = vadd.f32 %v16357_v8, %v10069_v47  ;;  %v10802_v37 = vsel %vm10668_vm7, %v10798_v10, %v10801_v60  ;;  %v16423_v51 = vpop.f32.mrf.mxu3  ;;  %v16905_v61 = vld [vmem:[#allocation50_spill] sm:$0xff] }
 0x5d0   : > { %v10820_v20 = vsel %vm10662_vm5, %v10819_v45, %v10573_v19  ;;  %v10070_v14 = vadd.f32 %v16367_v28, %v9416_v53  ;;  %v10032_v41 = vpop.f32.mrf.mxu2  ;;  %v16904_v53 = vld [vmem:[#allocation42_spill] sm:$0xff] }
 0x5d1   : > { %11056 = vst [vmem:[#allocation1 + $0x2] ss:$4 sm:$0xff] %v16391_v26  ;;  %v10821_v3 = vsel %vm10664_vm3, %v10819_v45, %v10820_v20  ;;  %v10827_v32 = vsel %vm10662_vm5, %v10826_v50, %v10575_v17  ;;  %v10169_v1 = vmul.f32 0.01, %v10105_v36  ;;  %vm10137_vm8 = vcmp.ge.f32.partialorder %v10105_v36, 0.0 }
 0x5d2   : > { %v10822_v35 = vsel %vm10666_vm11, %v10819_v45, %v10821_v3  ;;  %v10828_v48 = vsel %vm10664_vm3, %v10826_v50, %v10827_v32  ;;  %v10106_v10 = vadd.f32 %v16357_v8, %v10070_v14  ;;  %v7888_v19 = vadd.f32 %v16905_v61, %v16904_v53  ;;  %v16906_v3 = vld [vmem:[#allocation16_spill] sm:$0xff] }
 0x5d3   : > { %v10823_v43 = vsel %vm10668_vm7, %v10819_v45, %v10822_v35  ;;  %v10829_v63 = vsel %vm10666_vm11, %v10826_v50, %v10828_v48  ;;  %v10201_v39 = vsel %vm10137_vm8, %v10105_v36, %v10169_v1  ;;  %v16907_v32 = vld [vmem:[#allocation64_spill] sm:$0xff] }
 0x5d4   : > { %v10830_v33 = vsel %vm10668_vm7, %v10826_v50, %v10829_v63  ;;  %v11000_v16 = vrot.slane %v10823_v43, 4  ;;  %v9376_v4 = vpop.f32.mrf.mxu1  ;;  %v10170_v9 = vmul.f32 0.01, %v10106_v10  ;;  %vm10138_vm10 = vcmp.ge.f32.partialorder %v10106_v10, 0.0  ;;  %v16429_v50 = vpop.f32.mrf.mxu0 }
 0x5d5   : > { %v11032_v40 = vrot.slane %v10830_v33, 4  ;;  %v9417_v5 = vadd.f32 %v9376_v4, %v9163_v24  ;;  %v7890_v47 = vadd.f32 %v16907_v32, %v16906_v3 }
 0x5d6   : > { %v16414_v7 = vsel %vm10920_vm15, %v11000_v16, %v10795_v13  ;;  %v10202_v45 = vsel %vm10138_vm10, %v10106_v10, %v10170_v9 }
 0x5d7   : > { %v16417_v38 = vsel %vm10920_vm15, %v11032_v40, %v10802_v37  ;;  %v10071_v15 = vadd.f32 %v10030_v2, %v9417_v5  ;;  %v8509_v54 = vpop.f32.mrf.mxu3 }
 0x5d8   : > { %v10035_v56 = vpop.f32.mrf.mxu2  ;;  %v8544_v48 = vadd.f32 %v8509_v54, %v7890_v47 }
 0x5d9   : > { %v10107_v59 = vadd.f32 %v16357_v8, %v10071_v15 }
 0x5db   : > { %vm10139_vm9 = vcmp.ge.f32.partialorder %v10107_v59, 0.0  ;;  %v10171_v55 = vmul.f32 0.01, %v10107_v59 }
 0x5dc   : > { %v9378_v62 = vpop.f32.mrf.mxu1  ;;  %v9132_v60 = vpop.f32.mrf.mxu0 }
 0x5dd   : > { %v10203_v31 = vsel %vm10139_vm9, %v10107_v59, %v10171_v55  ;;  %v9418_v46 = vadd.f32 %v9378_v62, %v9164_v23  ;;  %v8542_v23 = vadd.f32 %v8504_v42, %v7888_v19  ;;  %v9167_v63 = vadd.f32 %v9132_v60, %v8544_v48 }
 0x5de   : > { %v10221_v25 = vmax.f32 %v10201_v39, %v10203_v31 }
 0x5df   : > { %v10072_v58 = vadd.f32 %v10032_v41, %v9418_v46  ;;  %v9165_v2 = vadd.f32 %v9127_v34, %v8542_v23 }
 0x5e0   : > { %v16435_v35 = vpop.f32.mrf.mxu2  ;;  %v10277_v24 = vrot.slane %v10221_v25, 2  ;;  %v10279_v33 = vrot.slane %v10221_v25, 6  ;;  %v10278_v15 = vrot.slane %v10221_v25, 4  ;;  %v12175_v55 = vrot.slane %v10221_v25, 9 }
 0x5e1   : > { %v10108_v11 = vadd.f32 %v16357_v8, %v10072_v58 }
 0x5e2   : > { %v12176_v36 = vrot.slane %v10277_v24, 9  ;;  %v12178_v37 = vrot.slane %v10279_v33, 9  ;;  %v12177_v62 = vrot.slane %v10278_v15, 9 }
 0x5e3   : > { %vm10140_vm13 = vcmp.ge.f32.partialorder %v10108_v11, 0.0  ;;  %v10172_v28 = vmul.f32 0.01, %v10108_v11 }
 0x5e4   : > { %v9381_v12 = vpop.f32.mrf.mxu1  ;;  %v10578_v14 = vmax.f32 %v10277_v24, %v12176_v36  ;;  %v10580_v41 = vmax.f32 %v10279_v33, %v12178_v37  ;;  %v16908_v37 = vld [vmem:[#allocation41_spill] sm:$0xff] }
 0x5e5   : > { %v10204_v21 = vsel %vm10140_vm13, %v10108_v11, %v10172_v28  ;;  %v9419_v29 = vadd.f32 %v9381_v12, %v9165_v2  ;;  %v10577_v28 = vmax.f32 %v10221_v25, %v12175_v55 }
 0x5e6   : > { %v16427_v17 = vmax.f32 %v10202_v45, %v10204_v21  ;;  %v10833_v46 = vrot.slane %v10578_v14, 7  ;;  %v10840_v34 = vrot.slane %v10580_v41, 7 }
 0x5e7   : > { %v10073_v43 = vadd.f32 %v10035_v56, %v9419_v29  ;;  %v10579_v56 = vmax.f32 %v10278_v15, %v12177_v62  ;;  %v16909_v15 = vld [vmem:[#allocation61_spill] sm:$0xff] }
 0x5e8   : > { %v10040_v40 = vpop.f32.mrf.mxu2  ;;  %v10834_v45 = vsel %vm10662_vm5, %v10833_v46, %v10577_v28  ;;  %v10942_v28 = vrot.slane %v16391_v26, 4 }
 0x5e9   : > { %v10109_v4 = vadd.f32 %v16357_v8, %v10073_v43  ;;  %v10841_v21 = vsel %vm10662_vm5, %v10840_v34, %v10579_v56  ;;  %v10835_v29 = vsel %vm10664_vm3, %v10833_v46, %v10834_v45  ;;  %v10282_v45 = vrot.slane %v16427_v17, 6 }
 0x5ea   : > { %v10842_v48 = vsel %vm10664_vm3, %v10840_v34, %v10841_v21  ;;  %v10836_v24 = vsel %vm10666_vm11, %v10833_v46, %v10835_v29 }
 0x5eb   : > { %v10173_v42 = vmul.f32 0.01, %v10109_v4  ;;  %vm10141_vm2 = vcmp.ge.f32.partialorder %v10109_v4, 0.0  ;;  %v10843_v33 = vsel %vm10666_vm11, %v10840_v34, %v10842_v48 }
 0x5ec   : > { %v16431_v20 = vpop.f32.mrf.mxu1  ;;  %v10844_v14 = vsel %vm10668_vm7, %v10840_v34, %v10843_v33  ;;  %v10973_v33 = vperm.slane %v16386_v22, %v16114_v49 }
 0x5ed   : > { %v10205_v39 = vsel %vm10141_vm2, %v10109_v4, %v10173_v42  ;;  %v7889_v42 = vadd.f32 %v16909_v15, %v16908_v37 }
 0x5ef   : > { %v8543_v55 = vadd.f32 %v16423_v51, %v7889_v42 }
 0x5f4   : > { %v9386_v16 = vpop.f32.mrf.mxu1 }
 0x5f5   : > { %v9421_v13 = vadd.f32 %v9386_v16, %v9167_v63 }
 0x5f7   : > { %v10075_v5 = vadd.f32 %v10040_v40, %v9421_v13 }
 0x5f9   : > { %v10111_v1 = vadd.f32 %v16357_v8, %v10075_v5 }
 0x5fb   : > { %vm10143_vm12 = vcmp.ge.f32.partialorder %v10111_v1, 0.0  ;;  %v10175_v59 = vmul.f32 0.01, %v10111_v1 }
 0x5fc   : > { %v9388_v21 = vpop.f32.mrf.mxu1 }
 0x5fd   : > { %v10207_v10 = vsel %vm10143_vm12, %v10111_v1, %v10175_v59  ;;  %v10837_v1 = vsel %vm10668_vm7, %v10833_v46, %v10836_v24  ;;  %v10934_v46 = vrot.slane %v16282_v52, 4 }
 0x5fe   : > { %v10223_v31 = vmax.f32 %v10205_v39, %v10207_v10  ;;  %v9166_v39 = vadd.f32 %v16429_v50, %v8543_v55  ;;  %v10926_v10 = vrot.slane %v16147_v6, 4 }
 0x5ff   : > { %v10935_v50 = vsel %vm10920_vm15, 0.0, %v10934_v46 }
 0x600   : > { %v10283_v58 = vrot.slane %v10223_v31, 2  ;;  %v10284_v9 = vrot.slane %v10223_v31, 4  ;;  %v10285_v11 = vrot.slane %v10223_v31, 6  ;;  %v12183_v12 = vrot.slane %v10223_v31, 9 }
 0x601   : > { %v9420_v34 = vadd.f32 %v16431_v20, %v9166_v39  ;;  %v10927_v51 = vsel %vm10920_vm15, 0.0, %v10926_v10  ;;  %v10280_v20 = vrot.slane %v16427_v17, 2 }
 0x602   : > { %v12184_v53 = vrot.slane %v10283_v58, 9  ;;  %v12185_v61 = vrot.slane %v10284_v9, 9  ;;  %v12186_v19 = vrot.slane %v10285_v11, 9  ;;  %v10585_v54 = vmax.f32 %v10223_v31, %v12183_v12  ;;  %v8511_v31 = vpop.f32.mrf.mxu3 }
 0x603   : > { %v10074_v6 = vadd.f32 %v16435_v35, %v9420_v34 }
 0x604   : > { %v10586_v23 = vmax.f32 %v10283_v58, %v12184_v53  ;;  %v10588_v2 = vmax.f32 %v10285_v11, %v12186_v19  ;;  %v10587_v3 = vmax.f32 %v10284_v9, %v12185_v61  ;;  %v16910_v58 = vld [vmem:[#allocation15_spill] sm:$0xff]  ;;  %v9134_v53 = vpop.f32.mrf.mxu0  ;;  %v10943_v19 = vsel %vm10920_vm15, 0.0, %v10942_v28 }
 0x605   : > { %v16911_v9 = vld [vmem:[#allocation63_spill] sm:$0xff] }
 0x606   : > { %v10861_v32 = vrot.slane %v10586_v23, 7  ;;  %v10868_v47 = vrot.slane %v10588_v2, 7  ;;  %v7891_v11 = vadd.f32 %v16911_v9, %v16910_v58  ;;  %v10110_v23 = vadd.f32 %v16357_v8, %v10074_v6 }
 0x608   : > { %v10862_v25 = vsel %vm10662_vm5, %v10861_v32, %v10585_v54  ;;  %v10869_v60 = vsel %vm10662_vm5, %v10868_v47, %v10587_v3  ;;  %v8545_v56 = vadd.f32 %v8511_v31, %v7891_v11  ;;  %v10042_v54 = vpop.f32.mrf.mxu2  ;;  %v12180_v3 = vrot.slane %v10280_v20, 9 }
 0x609   : > { %v10863_v43 = vsel %vm10664_vm3, %v10861_v32, %v10862_v25  ;;  %v10870_v63 = vsel %vm10664_vm3, %v10868_v47, %v10869_v60  ;;  %v10174_v29 = vmul.f32 0.01, %v10110_v23  ;;  %v10957_v25 = vperm.slane %v16142_v30, %v16114_v49 }
 0x60a   : > { %v10864_v16 = vsel %vm10666_vm11, %v10861_v32, %v10863_v43  ;;  %v10871_v4 = vsel %vm10666_vm11, %v10868_v47, %v10870_v63  ;;  %v9168_v52 = vadd.f32 %v9134_v53, %v8545_v56  ;;  %vm10142_vm6 = vcmp.ge.f32.partialorder %v10110_v23, 0.0 }
 0x60b   : > { %v10865_v13 = vsel %vm10668_vm7, %v10861_v32, %v10864_v16  ;;  %v10872_v40 = vsel %vm10668_vm7, %v10868_v47, %v10871_v4  ;;  %v12182_v32 = vrot.slane %v10282_v45, 9  ;;  %v10281_v47 = vrot.slane %v16427_v17, 4 }
 0x60c   : > { %v10944_v36 = vrot.slane %v10865_v13, 4  ;;  %v10976_v5 = vrot.slane %v10872_v40, 4  ;;  %v9422_v2 = vadd.f32 %v9388_v21, %v9168_v52  ;;  %v10965_v60 = vperm.slane %v16278_v57, %v16114_v49 }
 0x60d   : > { %v10582_v43 = vmax.f32 %v10280_v20, %v12180_v3  ;;  %v12179_v16 = vrot.slane %v16427_v17, 9  ;;  %v10584_v4 = vmax.f32 %v10282_v45, %v12182_v32  ;;  %v10206_v13 = vsel %vm10142_vm6, %v10110_v23, %v10174_v29 }
 0x60e   : > { %v10945_v59 = vsel %vm10920_vm15, %v10944_v36, %v10837_v1  ;;  %v10977_v41 = vsel %vm10920_vm15, %v10976_v5, %v10844_v14  ;;  %v10076_v35 = vadd.f32 %v10042_v54, %v9422_v2  ;;  %v10958_v42 = vrot.slane %v10957_v25, 4 }
 0x60f   : > { %v10949_v62 = vperm.slane %v10945_v59, %v16114_v49  ;;  %v10981_v30 = vperm.slane %v10977_v41, %v16114_v49  ;;  %v10847_v36 = vrot.slane %v10582_v43, 7  ;;  %v10854_v5 = vrot.slane %v10584_v4, 7 }
 0x610   : > { %v10112_v48 = vadd.f32 %v16357_v8, %v10076_v35  ;;  %v12181_v8 = vrot.slane %v10281_v47, 9  ;;  %v10581_v1 = vmax.f32 %v16427_v17, %v12179_v16  ;;  %v10966_v10 = vrot.slane %v10965_v60, 4 }
 0x611   : > { %11058 = vst [vmem:[#allocation1 + $0x3] ss:$4 sm:$0xff] %v10949_v62  ;;  %v10950_v12 = vrot.slane %v10949_v62, 4  ;;  %v10974_v41 = vrot.slane %v10973_v33, 4  ;;  %v10959_v46 = vsel %vm10920_vm15, 0.0, %v10958_v42  ;;  %v10982_v34 = vrot.slane %v10981_v30, 4 }
 0x612   : > { %vm10144_vm1 = vcmp.ge.f32.partialorder %v10112_v48, 0.0  ;;  %v10176_v24 = vmul.f32 0.01, %v10112_v48  ;;  %v10583_v14 = vmax.f32 %v10281_v47, %v12181_v8  ;;  %v10848_v31 = vsel %vm10662_vm5, %v10847_v36, %v10581_v1 }
 0x613   : > { %v10951_v26 = vsel %vm10920_vm15, 0.0, %v10950_v12  ;;  %v10967_v53 = vsel %vm10920_vm15, 0.0, %v10966_v10  ;;  %v11005_v16 = vperm.slane %v16414_v7, %v16114_v49 }
 0x614   : > { %v10208_v40 = vsel %vm10144_vm1, %v10112_v48, %v10176_v24  ;;  %v10855_v58 = vsel %vm10662_vm5, %v10854_v5, %v10583_v14  ;;  %v10997_v24 = vperm.slane %v16303_v27, %v16114_v49 }
 0x615   : > { %v10224_v57 = vmax.f32 %v10206_v13, %v10208_v40  ;;  %v10856_v6 = vsel %vm10664_vm3, %v10854_v5, %v10855_v58 }
 0x616   : > { %v10857_v2 = vsel %vm10666_vm11, %v10854_v5, %v10856_v6  ;;  %v10998_v13 = vrot.slane %v10997_v24, 4 }
 0x617   : > { %v10286_v37 = vrot.slane %v10224_v57, 2  ;;  %v10287_v15 = vrot.slane %v10224_v57, 4  ;;  %v10288_v22 = vrot.slane %v10224_v57, 6  ;;  %v12187_v59 = vrot.slane %v10224_v57, 9 }
 0x618   : > { %v16469_v61 = vld.sshfl [vmem:[#allocation1] sm:$0xff pattern:$0x73625140]  ;;  %v10999_v27 = vsel %vm10920_vm15, 0.0, %v10998_v13 }
 0x619   : > { %11065 = vst [vmem:[#allocation1] ss:$4 sm:$0xff] %v10927_v51  ;;  %v12188_v55 = vrot.slane %v10286_v37, 9  ;;  %v12189_v62 = vrot.slane %v10287_v15, 9  ;;  %v12190_v39 = vrot.slane %v10288_v22, 9  ;;  %v10589_v56 = vmax.f32 %v10224_v57, %v12187_v59 }
 0x61a   : > { %11067 = vst [vmem:[#allocation1 + $0x1] ss:$4 sm:$0xff] %v10935_v50  ;;  %v10849_v50 = vsel %vm10664_vm3, %v10847_v36, %v10848_v31 }
 0x61b   : > { %11069 = vst [vmem:[#allocation1 + $0x2] ss:$4 sm:$0xff] %v10943_v19  ;;  %v10590_v9 = vmax.f32 %v10286_v37, %v12188_v55  ;;  %v10592_v11 = vmax.f32 %v10288_v22, %v12190_v39  ;;  %v10591_v12 = vmax.f32 %v10287_v15, %v12189_v62  ;;  %v10975_v19 = vsel %vm10920_vm15, 0.0, %v10974_v41 }
 0x61c   : > { %11071 = vst [vmem:[#allocation1 + $0x3] ss:$4 sm:$0xff] %v10951_v26  ;;  %v10983_v26 = vsel %vm10920_vm15, 0.0, %v10982_v34  ;;  %v10850_v23 = vsel %vm10666_vm11, %v10847_v36, %v10849_v50  ;;  %v11029_v37 = vperm.slane %v16306_v0, %v16114_v49  ;;  %v11037_v22 = vperm.slane %v16417_v38, %v16114_v49 }
 0x61d   : > { %v10875_v17 = vrot.slane %v10590_v9, 7  ;;  %v10882_v51 = vrot.slane %v10592_v11, 7  ;;  %v10851_v48 = vsel %vm10668_vm7, %v10847_v36, %v10850_v23 }
 0x61e   : > { %v11030_v14 = vrot.slane %v11029_v37, 4  ;;  %v11038_v59 = vrot.slane %v11037_v22, 4 }
 0x61f   : > { %v10876_v52 = vsel %vm10662_vm5, %v10875_v17, %v10589_v56  ;;  %v10883_v20 = vsel %vm10662_vm5, %v10882_v51, %v10591_v12  ;;  %vm11167_vm5 = vcmask 130048  }
 0x620   : > { %v10877_v45 = vsel %vm10664_vm3, %v10875_v17, %v10876_v52  ;;  %v10884_v21 = vsel %vm10664_vm3, %v10882_v51, %v10883_v20  ;;  %v11031_v62 = vsel %vm10920_vm15, 0.0, %v11030_v14  ;;  %v11039_v38 = vsel %vm10920_vm15, 0.0, %v11038_v59 }
 0x621   : > { %v10878_v54 = vsel %vm10666_vm11, %v10875_v17, %v10877_v45  ;;  %v10885_v3 = vsel %vm10666_vm11, %v10882_v51, %v10884_v21  ;;  %vm11169_vm3 = vcmask 195584   ;;  %vm11171_vm11 = vcmask 261120  }
 0x622   : > { %v10879_v35 = vsel %vm10668_vm7, %v10875_v17, %v10878_v54  ;;  %v10886_v32 = vsel %vm10668_vm7, %v10882_v51, %v10885_v3 }
 0x623   : > { %v11072_v63 = vld.sshfl [vmem:[#allocation1] sm:$0xff pattern:$0x73625140]  ;;  %v11008_v47 = vrot.slane %v10879_v35, 4  ;;  %v11040_v29 = vrot.slane %v10886_v32, 4 }
 0x624   : > { %11080 = vst [vmem:[#allocation1] ss:$4 sm:$0xff] %v10957_v25  ;;  %11073 = vrot.lane.b32.xlu0 %v11072_v63, %s12430_s17  ;;  %v10858_v25 = vsel %vm10668_vm7, %v10854_v5, %v10857_v2  ;;  %v10989_v63 = vperm.slane %v16175_v18, %v16114_v49  ;;  %v11021_v5 = vperm.slane %v16178_v44, %v16114_v49  ;;  %vm11173_vm7 = vcmask 326656   ;;  %s11196_s17 = sshll.u32 %s11192_s15, 4  ;;  %s11197_s17 = int_to_ptr.hbm [resolvable:$true] %s11196_s17 }
 0x625   : > { %11082 = vst [vmem:[#allocation1 + $0x1] ss:$4 sm:$0xff] %v10965_v60  ;;  %v11009_v60 = vsel %vm10920_vm15, %v11008_v47, %v10851_v48  ;;  %v11041_v43 = vsel %vm10920_vm15, %v11040_v29, %v10858_v25 }
 0x626   : > { %11084 = vst [vmem:[#allocation1 + $0x2] ss:$4 sm:$0xff] %v10973_v33  ;;  %v11013_v4 = vperm.slane %v11009_v60, %v16114_v49  ;;  %v10990_v8 = vrot.slane %v10989_v63, 4  ;;  %v11045_v42 = vperm.slane %v11041_v43, %v16114_v49  ;;  %v11022_v1 = vrot.slane %v11021_v5, 4 }
 0x627   : > { %11086 = vst [vmem:[#allocation1 + $0x3] ss:$4 sm:$0xff] %v10981_v30  ;;  %v11006_v30 = vrot.slane %v11005_v16, 4 }
 0x628   : > { %v11014_v40 = vrot.slane %v11013_v4, 4  ;;  %v10991_v18 = vsel %vm10920_vm15, 0.0, %v10990_v8  ;;  %v11046_v55 = vrot.slane %v11045_v42, 4  ;;  %v11023_v44 = vsel %vm10920_vm15, 0.0, %v11022_v1 }
 0x629   : > { %v11007_v7 = vsel %vm10920_vm15, 0.0, %v11006_v30 }
 0x62a   : > { %v11015_v36 = vsel %vm10920_vm15, 0.0, %v11014_v40  ;;  %v11047_v49 = vsel %vm10920_vm15, 0.0, %v11046_v55  ;;  %vm11175_vm15 = vcmask 392192  }
 0x62e   : > { %v11087_v28 = vld.sshfl [vmem:[#allocation1] sm:$0xff pattern:$0x73625140] }
 0x62f   : > { %11095 = vst [vmem:[#allocation1] ss:$4 sm:$0xff] %v10959_v46  ;;  %11088 = vrot.lane.b32.xlu0 %v11087_v28, %s12431_s18  ;;  %s12378_s18 = sshra.s32 %s11197_s17, 4  ;;  %s12379_s18 = int_to_ptr.hbm [resolvable:$true] %s12378_s18 }
 0x630   : > { %11097 = vst [vmem:[#allocation1 + $0x1] ss:$4 sm:$0xff] %v10967_v53  ;;  %p12385_p0 = scmp.lt.s32.totalorder %s12379_s18, %s16573_s6 }
 0x631   : > { %11099 = vst [vmem:[#allocation1 + $0x2] ss:$4 sm:$0xff] %v10975_v19 }
 0x632   : > { %11101 = vst [vmem:[#allocation1 + $0x3] ss:$4 sm:$0xff] %v10983_v26 }
 0x639   : > { %v11102_v33 = vld.sshfl [vmem:[#allocation1] sm:$0xff pattern:$0x73625140] }
 0x63a   : > { %11110 = vst [vmem:[#allocation1] ss:$4 sm:$0xff] %v10989_v63  ;;  %11103 = vrot.lane.b32.xlu1 %v11102_v33, %s12432_s19  ;;  %s12380_s19 = scalar_lea.hbm %s12379_s18, 8 }
 0x63b   : > { %11112 = vst [vmem:[#allocation1 + $0x1] ss:$4 sm:$0xff] %v10997_v24  ;;  %p12381_p11 = scmp.ne.s32.totalorder %s12379_s18, %s12380_s19 }
 0x63c   : > { %11114 = vst [vmem:[#allocation1 + $0x2] ss:$4 sm:$0xff] %v11005_v16 }
 0x63d   : > { %11116 = vst [vmem:[#allocation1 + $0x3] ss:$4 sm:$0xff] %v11013_v4  ;;  %p12382_p12 = pnand %p12381_p11, %p12510_p5 }
 0x63f   : > { %p12383_p13 = pneg %p12382_p12 }
 0x644   : > { %v11117_v57 = vld.sshfl [vmem:[#allocation1] sm:$0xff pattern:$0x73625140] }
 0x645   : > { %11118 = vrot.lane.b32.xlu1 %v11117_v57, %s12433_s20  ;;  %11125 = vst [vmem:[#allocation1] ss:$4 sm:$0xff] %v10991_v18 }
 0x646   : > { %11127 = vst [vmem:[#allocation1 + $0x1] ss:$4 sm:$0xff] %v10999_v27 }
 0x647   : > { %11129 = vst [vmem:[#allocation1 + $0x2] ss:$4 sm:$0xff] %v11007_v7 }
 0x648   : > { %11131 = vst [vmem:[#allocation1 + $0x3] ss:$4 sm:$0xff] %v11015_v36 }
 0x64f   : > { %v11132_v15 = vld.sshfl [vmem:[#allocation1] sm:$0xff pattern:$0x73625140] }
 0x650   : > { %11133 = vrot.lane.b32.xlu2 %v11132_v15, %s12434_s28  ;;  %11140 = vst [vmem:[#allocation1] ss:$4 sm:$0xff] %v11021_v5 }
 0x651   : > { %11142 = vst [vmem:[#allocation1 + $0x1] ss:$4 sm:$0xff] %v11029_v37 }
 0x652   : > { %11144 = vst [vmem:[#allocation1 + $0x2] ss:$4 sm:$0xff] %v11037_v22 }
 0x653   : > { %11146 = vst [vmem:[#allocation1 + $0x3] ss:$4 sm:$0xff] %v11045_v42 }
 0x65a   : > { %v11147_v0 = vld.sshfl [vmem:[#allocation1] sm:$0xff pattern:$0x73625140] }
 0x65b   : > { %11148 = vrot.lane.b32.xlu2 %v11147_v0, %s12435_s29  ;;  %11155 = vst [vmem:[#allocation1] ss:$4 sm:$0xff] %v11023_v44  ;;  %s12384_s29 = scalar_lea.hbm %s16573_s6, 16 }
 0x65c   : > { %11157 = vst [vmem:[#allocation1 + $0x1] ss:$4 sm:$0xff] %v11031_v62  ;;  %p12386_p1 = scmp.lt.s32.totalorder %s12384_s29, %s12380_s19 }
 0x65d   : > { %11159 = vst [vmem:[#allocation1 + $0x2] ss:$4 sm:$0xff] %v11039_v38 }
 0x65e   : > { %11161 = vst [vmem:[#allocation1 + $0x3] ss:$4 sm:$0xff] %v11047_v49  ;;  %p12387_p2 = por %p12386_p1, %p12385_p0 }
 0x660   : > { %p12388_p3 = pnand %p12387_p2, %p12383_p13 }
 0x665   : > { %v11162_v39 = vld.sshfl [vmem:[#allocation1] sm:$0xff pattern:$0x73625140] }
 0x666   : > { %11163 = vrot.lane.b32.xlu0 %v11162_v39, %s12436_s9 }
 0x696   : > { %v11074_v10 = vpop.permute.xlu0 %11073 }
 0x697   : > { %v11166_v9 = vsel %vm5746_vm4, %v16469_v61, %v11074_v10  ;;  %vm11179_vm4 = vcmask 523264  }
 0x6a1   : > { %v11089_v31 = vpop.permute.xlu0 %11088 }
 0x6a2   : > { %v11168_v46 = vsel %vm11167_vm5, %v11166_v9, %v11089_v31 }
 0x6aa   : > { %v11134_v58 = vpop.permute.xlu2 %11133 }
 0x6ac   : > { %v11104_v41 = vpop.permute.xlu1 %11103 }
 0x6ad   : > { %v11170_v34 = vsel %vm11169_vm3, %v11168_v46, %v11104_v41 }
 0x6b5   : > { %v11149_v61 = vpop.permute.xlu2 %11148 }
 0x6b7   : > { %v11119_v11 = vpop.permute.xlu1 %11118 }
 0x6b8   : > { %v11172_v28 = vsel %vm11171_vm11, %v11170_v34, %v11119_v11 }
 0x6b9   : > { %v11174_v56 = vsel %vm11173_vm7, %v11172_v28, %v11134_v58 }
 0x6ba   : > { %v11176_v12 = vsel %vm11175_vm15, %v11174_v56, %v11149_v61 }
 0x6d8   : > { %v11164_v17 = vpop.permute.xlu0 %11163 }
 0x6d9   : > { %v11178_v51 = vsel %vm11177_vm14, %v11176_v12, %v11164_v17 }
 0x6da   : > { %11180 = vst.msk [vmem:[%s244_s16] sm:$0xff] %vm11179_vm4, %v11178_v51 }
 0x6db   : > { %12391 = shalt.err (!%p12388_p3)
}
 0x6dc   : > { %12311 = dma.vmem_to_hbm [thread:$0]  (%p12510_p5), %s11195_s26, 128, %s11197_s17, %s11182_s25  }
 0x6dd PF: > { %p12317_p4 = scmp.ge.s32.totalorder %s12426_s24, 2  ;;  %s11208_s10 = sand.u32 1, %s12414_s21  }
 0x6de   : > { %s11209_s12 = scalar_lea.sflag [#allocation5], %s11208_s10 }
 0x6df   : > { %p12314_p7 = pnand %p12317_p4, %p12514_p6 }
 0x6e1   : > { %p12315_p8 = pneg %p12314_p7 }
 0x6e3   : > { %12409 = dma.done.wait (%p12315_p8), %s11209_s12, 128  }
 0x6e4   : > { %12411 = vsyncadd (%p12315_p8), %s11209_s12, 4294967168  ;;  %p16_p9 = scmp.ge.s32.totalorder %s12497_s27, 4   ;;  %s16912_s21 = smov %s12418_s22 }
 0x6e5   : > { %s16913_s22 = smov %s12422_s23  ;;  %s16914_s23 = smov %s12508_s30 }
 0x6e6   : > { %s16915_s24 = smov %s12497_s27  ;;  %18 = sbr.rel (!%p16_p9) target bundleno = 3 (0x3), region = 125 }
 0x6eb   :  { %11215 = vsyncpa [#allocation5], 1 }
 0x6ec   :  { %11217 = vsyncpa [#allocation5 + $0x1], 1 }

</bundles_post_ra>
